<compile_context>
chip_gen: v7x
topology: tpu7x:2x2x1
jax: 0.10.0
libtpu: 0.0.40
codegen_flags: <defaults>
</compile_context>

<pallas_src>
import jax
import jax.numpy as jnp
from jax.experimental import pallas as pl
from jax.experimental.pallas import tpu as pltpu

LN_EPS = 1e-5  # nn.LayerNorm default eps


def _gelu_exact(x):
    # nn.GELU() default is the exact erf-based GELU.
    return 0.5 * x * (1.0 + jax.lax.erf(x * 0.7071067811865476))


def _layernorm(x):
    mu = jnp.mean(x, axis=-1, keepdims=True)
    var = jnp.mean(jnp.square(x - mu), axis=-1, keepdims=True)
    return (x - mu) * jax.lax.rsqrt(var + LN_EPS)


def _round_up(n, m):
    return ((n + m - 1) // m) * m


def _pick_batch_tile(n, target):
    """Largest divisor of n that is <= target and (multiple of 8 or == n)."""
    for t in range(min(target, n), 0, -1):
        if n % t == 0 and (t % 8 == 0 or t == n):
            return t
    return n


# ---------------------------------------------------------------------------
# The single fused kernel: patch embedding + all mixer blocks + head.
#   grid = (batch_tiles, num_blocks); the (nbt*S, C) f32 activation lives in
#   a VMEM scratch across the (arbitrary) block axis.
# ---------------------------------------------------------------------------
def fused_mixer_kernel(p_ref, pw_ref, pb_ref, ln_ref, tw_ref, tb_ref,
                       cw_ref, cb_ref, hln_ref, hw_ref, hb_ref,
                       o_ref, acc_ref):
    blk = pl.program_id(1)
    n_blk = pl.num_programs(1)

    R, C = acc_ref.shape            # R = nbt * S, rows ordered (batch, token)
    S = tw_ref.shape[-1]
    nb = R // S

    # ---- patch embedding, fused into the first block iteration ----
    @pl.when(blk == 0)
    def _():
        emb = jnp.dot(p_ref[...], pw_ref[...],
                      preferred_element_type=jnp.float32)
        acc_ref[...] = emb + pb_ref[...]

    x = acc_ref[...]                # (R, C) f32

    ln = ln_ref[0]                  # (4, C) f32: gamma1, beta1, gamma2, beta2
    tw = tw_ref[0]                  # (2, S, S) bf16, torch (out, in) layout
    tb = tb_ref[0]                  # (2, S, 1) f32
    cw = cw_ref[0]                  # (2, C, C) bf16, stored (in, out)
    cb = cb_ref[0]                  # (2, C) f32

    # ---- token mixing: one (S,S) @ (S, nb*C) lane-dense matmul ----
    y = (_layernorm(x) * ln[0] + ln[1]).astype(jnp.bfloat16)       # (R, C)
    y_wide = jnp.concatenate(
        [y[n * S:(n + 1) * S, :] for n in range(nb)], axis=1)      # (S, nb*C)
    h = jnp.dot(tw[0], y_wide, preferred_element_type=jnp.float32)
    h = _gelu_exact(h + tb[0]).astype(jnp.bfloat16)
    h = jnp.dot(tw[1], h, preferred_element_type=jnp.float32)
    h = h + tb[1]                                                   # (S, nb*C)
    h_rows = jnp.concatenate(
        [h[:, n * C:(n + 1) * C] for n in range(nb)], axis=0)       # (R, C)
    x = x + h_rows

    # ---- channel mixing: (R, C) @ (C, C) ----
    y2 = (_layernorm(x) * ln[2] + ln[3]).astype(jnp.bfloat16)
    h2 = jnp.dot(y2, cw[0], preferred_element_type=jnp.float32)
    h2 = _gelu_exact(h2 + cb[0]).astype(jnp.bfloat16)
    h2 = jnp.dot(h2, cw[1], preferred_element_type=jnp.float32)
    x = x + h2 + cb[1]

    # Skip the store on the last block iteration (head uses the local x).
    @pl.when(blk < n_blk - 1)
    def _():
        acc_ref[...] = x

    # ---- head: LayerNorm, mean-pool over tokens, classifier ----
    @pl.when(blk == n_blk - 1)
    def _():
        hln = hln_ref[...]                                          # (2, C)
        yh = _layernorm(x) * hln[0] + hln[1]
        pooled = jnp.mean(yh.reshape(nb, S, C), axis=1)             # (nb, C)
        logits = jnp.dot(pooled.astype(jnp.bfloat16), hw_ref[...],
                         preferred_element_type=jnp.float32) + hb_ref[...]
        o_ref[...] = logits.astype(o_ref.dtype)


# ---------------------------------------------------------------------------
# Wrapper
# ---------------------------------------------------------------------------
def _build_patches(x_nchw, patch_size):
    N, Cin, H, W = x_nchw.shape
    s = patch_size
    Hp, Wp = H // s, W // s
    # Non-overlapping s x s patches flattened (Cin, kh, kw) -> matches the
    # Conv2d (out_ch, in_ch, kh, kw) weight layout.  (Layout plumbing in JAX.)
    p = x_nchw.reshape(N, Cin, Hp, s, Wp, s).transpose(0, 2, 4, 1, 3, 5)
    return p.reshape(N * Hp * Wp, Cin * s * s), Hp * Wp


def mlp_mixer_forward(x_nchw, params, *, patch_size, hidden_dim, num_classes,
                      batch_tile=8):
    N = x_nchw.shape[0]
    C = hidden_dim
    patches, S = _build_patches(x_nchw, patch_size)
    K = patches.shape[1]
    num_blocks = params["ln"].shape[0]
    assert params["tok_w"].shape[-1] == S, "tokens_mlp_dim must be (H/s)*(W/s)"

    nbt = _pick_batch_tile(N, batch_tile)
    R = nbt * S
    nc_pad = _round_up(num_classes, 128)
    bf16, f32 = jnp.bfloat16, jnp.float32

    # bf16 weight slabs in HBM; LN params / biases / bias-like terms stay f32.
    patches = patches.astype(bf16)
    pw = params["conv_w"].reshape(C, K).T.astype(bf16)           # (K, C)
    pb = params["conv_b"].reshape(1, C).astype(f32)
    ln = params["ln"].astype(f32)                                # (L, 4, C)
    tok_w = params["tok_w"].astype(bf16)                         # (L, 2, S, S)
    tok_b = params["tok_b"][..., None].astype(f32)               # (L, 2, S, 1)
    ch_w = params["ch_w"].astype(bf16)                           # (L, 2, C, C)
    ch_b = params["ch_b"].astype(f32)                            # (L, 2, C)
    head_ln = params["head_ln"].astype(f32)                      # (2, C)
    head_w = jnp.pad(params["head_w"].astype(bf16),
                     ((0, 0), (0, nc_pad - num_classes)))        # (C, nc_pad)
    head_b = jnp.pad(params["head_b"].astype(f32),
                     (0, nc_pad - num_classes)).reshape(1, nc_pad)

    grid = (N // nbt, num_blocks)
    in_specs = [
        pl.BlockSpec((R, K), lambda b, l: (b, 0)),               # patches
        pl.BlockSpec((K, C), lambda b, l: (0, 0)),               # conv W
        pl.BlockSpec((1, C), lambda b, l: (0, 0)),               # conv b
        pl.BlockSpec((1, 4, C), lambda b, l: (l, 0, 0)),         # LN slab
        pl.BlockSpec((1, 2, S, S), lambda b, l: (l, 0, 0, 0)),   # token W
        pl.BlockSpec((1, 2, S, 1), lambda b, l: (l, 0, 0, 0)),   # token b
        pl.BlockSpec((1, 2, C, C), lambda b, l: (l, 0, 0, 0)),   # channel W
        pl.BlockSpec((1, 2, C), lambda b, l: (l, 0, 0)),         # channel b
        pl.BlockSpec((2, C), lambda b, l: (0, 0)),               # head LN
        pl.BlockSpec((C, nc_pad), lambda b, l: (0, 0)),          # head W
        pl.BlockSpec((1, nc_pad), lambda b, l: (0, 0)),          # head b
    ]
    out = pl.pallas_call(
        fused_mixer_kernel,
        grid=grid,
        in_specs=in_specs,
        out_specs=pl.BlockSpec((nbt, nc_pad), lambda b, l: (b, 0)),
        out_shape=jax.ShapeDtypeStruct((N, nc_pad), f32),
        scratch_shapes=[pltpu.VMEM((R, C), jnp.float32)],
        compiler_params=pltpu.CompilerParams(
            dimension_semantics=("parallel", "arbitrary")),
    )(patches, pw, pb, ln, tok_w, tok_b, ch_w, ch_b, head_ln, head_w, head_b)
    return out[:, :num_classes].astype(x_nchw.dtype)


# ---------------------------------------------------------------------------
# Pure-JAX f32 reference (same parameter layout) for correctness checking.
# ---------------------------------------------------------------------------
def reference_forward(x_nchw, params, *, patch_size, hidden_dim, num_classes):
    N, Cin, H, W = x_nchw.shape
    s = patch_size
    Hp, Wp = H // s, W // s
    patches = x_nchw.reshape(N, Cin, Hp, s, Wp, s).transpose(0, 2, 4, 1, 3, 5)
    patches = patches.reshape(N, Hp * Wp, Cin * s * s)
    x = patches @ params["conv_w"].reshape(hidden_dim, -1).T + params["conv_b"]

    def ln(v, g, b):
        mu = v.mean(-1, keepdims=True)
        var = jnp.square(v - mu).mean(-1, keepdims=True)
        return (v - mu) / jnp.sqrt(var + LN_EPS) * g + b

    for l in range(params["ln"].shape[0]):
        g1, b1, g2, b2 = params["ln"][l]
        W1, W2 = params["tok_w"][l]              # torch (out, in)
        tb1, tb2 = params["tok_b"][l]
        Wc1, Wc2 = params["ch_w"][l]             # stored (in, out)
        cb1, cb2 = params["ch_b"][l]
        y = jnp.swapaxes(ln(x, g1, b1), 1, 2)    # (N, C, S)
        y = _gelu_exact(y @ W1.T + tb1) @ W2.T + tb2
        x = x + jnp.swapaxes(y, 1, 2)
        y = ln(x, g2, b2)
        x = x + (_gelu_exact(y @ Wc1 + cb1) @ Wc2 + cb2)

    hg, hbeta = params["head_ln"]
    x = ln(x, hg, hbeta).mean(axis=1)
    return x @ params["head_w"] + params["head_b"]


# ---------------------------------------------------------------------------
# Deterministic parameter construction (shapes follow the nn.Module __init__).
# Token-MLP weights are kept in torch (out, in) layout; channel-MLP weights are
# stored pre-transposed as (in, out).  Per-block params are stacked into slabs.
# ---------------------------------------------------------------------------
def init_params(key, *, num_classes, num_blocks, patch_size, hidden_dim,
                tokens_mlp_dim, channels_mlp_dim):
    S, C = tokens_mlp_dim, channels_mlp_dim
    ks = jax.random.split(key, 10)

    def w(k, shape, scale=0.05):
        return (scale * jax.random.normal(k, shape)).astype(jnp.float32)

    return {
        "conv_w": w(ks[0], (hidden_dim, 3, patch_size, patch_size)),
        "conv_b": w(ks[1], (hidden_dim,)),
        # per-block LayerNorm params stacked: rows [gamma1, beta1, gamma2, beta2]
        "ln": jnp.concatenate([
            1.0 + w(ks[2], (num_blocks, 1, C)),
            w(ks[3], (num_blocks, 1, C)),
            1.0 + w(ks[4], (num_blocks, 1, C)),
            w(ks[5], (num_blocks, 1, C))], axis=1),
        "tok_w": w(ks[6], (num_blocks, 2, S, S)),    # [W1, W2], (out, in)
        "tok_b": w(ks[7], (num_blocks, 2, S)),
        "ch_w": w(ks[8], (num_blocks, 2, C, C)),     # [W1, W2], (in, out)
        "ch_b": w(ks[9], (num_blocks, 2, C)),
        "head_ln": jnp.concatenate([jnp.ones((1, C), jnp.float32),
                                    jnp.zeros((1, C), jnp.float32)], axis=0),
        # head is zero-initialized by MlpMixer._init_weights_zero
        "head_w": jnp.zeros((C, num_classes), jnp.float32),
        "head_b": jnp.zeros((num_classes,), jnp.float32),
    }


if __name__ == "__main__":
    # Small but lane-friendly configuration:
    #   image 3x32x32, patch 4 -> S = 64 tokens; hidden = channels_mlp_dim = 128
    N, Cin, H, W = 16, 3, 32, 32
    patch_size = 4
    hidden_dim = 128
    tokens_mlp_dim = (H // patch_size) * (W // patch_size)   # 64
    channels_mlp_dim = hidden_dim                            # 128
    num_blocks = 2
    num_classes = 10

    key = jax.random.PRNGKey(0)
    pkey, xkey, hwkey, hbkey = jax.random.split(key, 4)
    params = init_params(pkey, num_classes=num_classes, num_blocks=num_blocks,
                         patch_size=patch_size, hidden_dim=hidden_dim,
                         tokens_mlp_dim=tokens_mlp_dim,
                         channels_mlp_dim=channels_mlp_dim)
    x = jax.random.normal(xkey, (N, Cin, H, W), jnp.float32)

    out = jax.block_until_ready(
        mlp_mixer_forward(x, params, patch_size=patch_size,
                          hidden_dim=hidden_dim, num_classes=num_classes))
    assert out.shape == (N, num_classes), out.shape
    assert bool(jnp.all(jnp.isfinite(out)))
    # head is zero-initialized in the reference module -> logits must be 0
    assert bool(jnp.all(out == 0.0))

    # Numeric check of the full pipeline against the pure-JAX f32 reference,
    # with a non-zero head so the comparison is meaningful.
    params_chk = dict(params)
    params_chk["head_w"] = 0.05 * jax.random.normal(
        hwkey, (channels_mlp_dim, num_classes), jnp.float32)
    params_chk["head_b"] = 0.05 * jax.random.normal(
        hbkey, (num_classes,), jnp.float32)
    out_k = jax.block_until_ready(
        mlp_mixer_forward(x, params_chk, patch_size=patch_size,
                          hidden_dim=hidden_dim, num_classes=num_classes))
    out_r = reference_forward(x, params_chk, patch_size=patch_size,
                              hidden_dim=hidden_dim, num_classes=num_classes)
    max_err = float(jnp.max(jnp.abs(out_k - out_r)))
    assert max_err < 5e-2, f"max abs err {max_err}"
    print("KERNEL_OK")
</pallas_src>

<mosaic_0001>
module attributes {stable_mosaic.version = 11 : i64} {
  func.func @fused_mixer_kernel(%arg0: i32, %arg1: i32, %arg2: memref<512x48xbf16, #tpu.memory_space<vmem>>, %arg3: memref<48x128xbf16, #tpu.memory_space<vmem>>, %arg4: memref<1x128xf32, #tpu.memory_space<vmem>>, %arg5: memref<1x4x128xf32, #tpu.memory_space<vmem>>, %arg6: memref<1x2x64x64xbf16, #tpu.memory_space<vmem>>, %arg7: memref<1x2x64x1xf32, #tpu.memory_space<vmem>>, %arg8: memref<1x2x128x128xbf16, #tpu.memory_space<vmem>>, %arg9: memref<1x2x128xf32, #tpu.memory_space<vmem>>, %arg10: memref<2x128xf32, #tpu.memory_space<vmem>>, %arg11: memref<128x128xbf16, #tpu.memory_space<vmem>>, %arg12: memref<1x128xf32, #tpu.memory_space<vmem>>, %arg13: memref<8x128xf32, #tpu.memory_space<vmem>>, %arg14: memref<512x128xf32, #tpu.memory_space<vmem>>) attributes {dimension_semantics = [#tpu.dimension_semantics<parallel>, #tpu.dimension_semantics<arbitrary>], iteration_bounds = array<i64: 2, 2>, scalar_prefetch = 0 : i64, scratch_operands = 1 : i64, tpu.core_type = #tpu.core_type<tc>, window_params = [{transform_indices = @transform_0, window_bounds = array<i64: 512, 48>}, {pipeline_mode = #tpu.pipeline_mode<synchronous>, transform_indices = @transform_1, window_bounds = array<i64: 48, 128>}, {pipeline_mode = #tpu.pipeline_mode<synchronous>, transform_indices = @transform_2, window_bounds = array<i64: 1, 128>}, {transform_indices = @transform_3, window_bounds = array<i64: 1, 4, 128>}, {transform_indices = @transform_4, window_bounds = array<i64: 1, 2, 64, 64>}, {transform_indices = @transform_5, window_bounds = array<i64: 1, 2, 64, 1>}, {transform_indices = @transform_6, window_bounds = array<i64: 1, 2, 128, 128>}, {transform_indices = @transform_7, window_bounds = array<i64: 1, 2, 128>}, {pipeline_mode = #tpu.pipeline_mode<synchronous>, transform_indices = @transform_8, window_bounds = array<i64: 2, 128>}, {pipeline_mode = #tpu.pipeline_mode<synchronous>, transform_indices = @transform_9, window_bounds = array<i64: 128, 128>}, {pipeline_mode = #tpu.pipeline_mode<synchronous>, transform_indices = @transform_10, window_bounds = array<i64: 1, 128>}, {transform_indices = @transform_11, window_bounds = array<i64: 8, 128>}]} {
    %c0_i32 = arith.constant 0 : i32
    %0 = arith.cmpi eq, %arg1, %c0_i32 : i32
    %1 = arith.extui %0 : i1 to i32
    %c0_i32_0 = arith.constant 0 : i32
    %2 = arith.cmpi ne, %1, %c0_i32_0 : i32
    scf.if %2 {
      %c0_42 = arith.constant 0 : index
      %c0_43 = arith.constant 0 : index
      %146 = vector.load %arg2[%c0_42, %c0_43] : memref<512x48xbf16, #tpu.memory_space<vmem>>, vector<512x48xbf16>
      %c0_44 = arith.constant 0 : index
      %c0_45 = arith.constant 0 : index
      %147 = vector.load %arg3[%c0_44, %c0_45] : memref<48x128xbf16, #tpu.memory_space<vmem>>, vector<48x128xbf16>
      %cst_46 = arith.constant dense<0.000000e+00> : vector<512x128xf32>
      %148 = tpu.matmul %146, %147, %cst_46 {dimension_numbers = #tpu.dot_dimension_numbers<[1], [0], [0], [1], [0, 0, 1, 1], [], []>} : vector<512x48xbf16>, vector<48x128xbf16>, vector<512x128xf32> -> vector<512x128xf32>
      %c0_47 = arith.constant 0 : index
      %c0_48 = arith.constant 0 : index
      %149 = vector.load %arg4[%c0_47, %c0_48] : memref<1x128xf32, #tpu.memory_space<vmem>>, vector<1x128xf32>
      %150 = vector.broadcast %149 : vector<1x128xf32> to vector<512x128xf32>
      %151 = arith.addf %148, %150 : vector<512x128xf32>
      %c0_49 = arith.constant 0 : index
      %c0_50 = arith.constant 0 : index
      %152 = vector.load %arg14[%c0_49, %c0_50] : memref<512x128xf32, #tpu.memory_space<vmem>>, vector<512x128xf32>
      tpu.vector_store %arg14[%c0_49, %c0_50], %151 {strides = array<i32>} : memref<512x128xf32, #tpu.memory_space<vmem>>, vector<512x128xf32>,
    } else {
    }
    %c0 = arith.constant 0 : index
    %c0_1 = arith.constant 0 : index
    %3 = vector.load %arg14[%c0, %c0_1] : memref<512x128xf32, #tpu.memory_space<vmem>>, vector<512x128xf32>
    %c0_2 = arith.constant 0 : index
    %c0_3 = arith.constant 0 : index
    %c0_4 = arith.constant 0 : index
    %4 = vector.load %arg5[%c0_2, %c0_3, %c0_4] : memref<1x4x128xf32, #tpu.memory_space<vmem>>, vector<1x4x128xf32>
    %5 = vector.shape_cast %4 : vector<1x4x128xf32> to vector<4x128xf32>
    %c0_5 = arith.constant 0 : index
    %c0_6 = arith.constant 0 : index
    %c0_7 = arith.constant 0 : index
    %c0_8 = arith.constant 0 : index
    %6 = vector.load %arg6[%c0_5, %c0_6, %c0_7, %c0_8] : memref<1x2x64x64xbf16, #tpu.memory_space<vmem>>, vector<1x2x64x64xbf16>
    %7 = vector.shape_cast %6 : vector<1x2x64x64xbf16> to vector<2x64x64xbf16>
    %c0_9 = arith.constant 0 : index
    %c0_10 = arith.constant 0 : index
    %c0_11 = arith.constant 0 : index
    %c0_12 = arith.constant 0 : index
    %8 = vector.load %arg7[%c0_9, %c0_10, %c0_11, %c0_12] : memref<1x2x64x1xf32, #tpu.memory_space<vmem>>, vector<1x2x64x1xf32>
    %9 = vector.shape_cast %8 : vector<1x2x64x1xf32> to vector<2x64x1xf32>
    %c0_13 = arith.constant 0 : index
    %c0_14 = arith.constant 0 : index
    %c0_15 = arith.constant 0 : index
    %c0_16 = arith.constant 0 : index
    %10 = vector.load %arg8[%c0_13, %c0_14, %c0_15, %c0_16] : memref<1x2x128x128xbf16, #tpu.memory_space<vmem>>, vector<1x2x128x128xbf16>
    %11 = vector.shape_cast %10 : vector<1x2x128x128xbf16> to vector<2x128x128xbf16>
    %c0_17 = arith.constant 0 : index
    %c0_18 = arith.constant 0 : index
    %c0_19 = arith.constant 0 : index
    %12 = vector.load %arg9[%c0_17, %c0_18, %c0_19] : memref<1x2x128xf32, #tpu.memory_space<vmem>>, vector<1x2x128xf32>
    %13 = vector.shape_cast %12 : vector<1x2x128xf32> to vector<2x128xf32>
    %cst = arith.constant dense<0.000000e+00> : vector<512xf32>
    %14 = vector.multi_reduction <add>, %3, %cst [1] : vector<512x128xf32> to vector<512xf32>
    %15 = vector.shape_cast %14 : vector<512xf32> to vector<512x1xf32>
    %cst_20 = arith.constant 1.280000e+02 : f32
    %16 = vector.broadcast %cst_20 : f32 to vector<512x1xf32>
    %17 = arith.divf %15, %16 : vector<512x1xf32>
    %18 = vector.broadcast %17 : vector<512x1xf32> to vector<512x128xf32>
    %19 = arith.subf %3, %18 : vector<512x128xf32>
    %20 = arith.mulf %19, %19 : vector<512x128xf32>
    %cst_21 = arith.constant dense<0.000000e+00> : vector<512xf32>
    %21 = vector.multi_reduction <add>, %20, %cst_21 [1] : vector<512x128xf32> to vector<512xf32>
    %22 = vector.shape_cast %21 : vector<512xf32> to vector<512x1xf32>
    %cst_22 = arith.constant 1.280000e+02 : f32
    %23 = vector.broadcast %cst_22 : f32 to vector<512x1xf32>
    %24 = arith.divf %22, %23 : vector<512x1xf32>
    %25 = vector.broadcast %17 : vector<512x1xf32> to vector<512x128xf32>
    %26 = arith.subf %3, %25 : vector<512x128xf32>
    %cst_23 = arith.constant 9.99999974E-6 : f32
    %27 = vector.broadcast %cst_23 : f32 to vector<512x1xf32>
    %28 = arith.addf %24, %27 : vector<512x1xf32>
    %29 = math.rsqrt %28 : vector<512x1xf32>
    %30 = vector.broadcast %29 : vector<512x1xf32> to vector<512x128xf32>
    %31 = arith.mulf %26, %30 : vector<512x128xf32>
    %32 = vector.extract_strided_slice %5 {offsets = [0, 0], sizes = [1, 128], strides = [1, 1]} : vector<4x128xf32> to vector<1x128xf32>
    %33 = vector.shape_cast %32 : vector<1x128xf32> to vector<128xf32>
    %34 = vector.shape_cast %33 : vector<128xf32> to vector<1x128xf32>
    %35 = vector.broadcast %34 : vector<1x128xf32> to vector<512x128xf32>
    %36 = arith.mulf %31, %35 : vector<512x128xf32>
    %37 = vector.extract_strided_slice %5 {offsets = [1, 0], sizes = [1, 128], strides = [1, 1]} : vector<4x128xf32> to vector<1x128xf32>
    %38 = vector.shape_cast %37 : vector<1x128xf32> to vector<128xf32>
    %39 = vector.shape_cast %38 : vector<128xf32> to vector<1x128xf32>
    %40 = vector.broadcast %39 : vector<1x128xf32> to vector<512x128xf32>
    %41 = arith.addf %36, %40 : vector<512x128xf32>
    %42 = arith.truncf %41 : vector<512x128xf32> to vector<512x128xbf16>
    %43 = vector.extract_strided_slice %42 {offsets = [0, 0], sizes = [64, 128], strides = [1, 1]} : vector<512x128xbf16> to vector<64x128xbf16>
    %44 = vector.extract_strided_slice %42 {offsets = [64, 0], sizes = [64, 128], strides = [1, 1]} : vector<512x128xbf16> to vector<64x128xbf16>
    %45 = vector.extract_strided_slice %42 {offsets = [128, 0], sizes = [64, 128], strides = [1, 1]} : vector<512x128xbf16> to vector<64x128xbf16>
    %46 = vector.extract_strided_slice %42 {offsets = [192, 0], sizes = [64, 128], strides = [1, 1]} : vector<512x128xbf16> to vector<64x128xbf16>
    %47 = vector.extract_strided_slice %42 {offsets = [256, 0], sizes = [64, 128], strides = [1, 1]} : vector<512x128xbf16> to vector<64x128xbf16>
    %48 = vector.extract_strided_slice %42 {offsets = [320, 0], sizes = [64, 128], strides = [1, 1]} : vector<512x128xbf16> to vector<64x128xbf16>
    %49 = vector.extract_strided_slice %42 {offsets = [384, 0], sizes = [64, 128], strides = [1, 1]} : vector<512x128xbf16> to vector<64x128xbf16>
    %50 = vector.extract_strided_slice %42 {offsets = [448, 0], sizes = [64, 128], strides = [1, 1]} : vector<512x128xbf16> to vector<64x128xbf16>
    %51 = tpu.concatenate %43, %44, %45, %46, %47, %48, %49, %50 in 1 : vector<64x128xbf16>, vector<64x128xbf16>, vector<64x128xbf16>, vector<64x128xbf16>, vector<64x128xbf16>, vector<64x128xbf16>, vector<64x128xbf16>, vector<64x128xbf16> -> vector<64x1024xbf16>
    %52 = vector.extract_strided_slice %7 {offsets = [0, 0, 0], sizes = [1, 64, 64], strides = [1, 1, 1]} : vector<2x64x64xbf16> to vector<1x64x64xbf16>
    %53 = vector.shape_cast %52 : vector<1x64x64xbf16> to vector<64x64xbf16>
    %cst_24 = arith.constant dense<0.000000e+00> : vector<64x1024xf32>
    %54 = tpu.matmul %53, %51, %cst_24 {dimension_numbers = #tpu.dot_dimension_numbers<[1], [0], [0], [1], [0, 0, 1, 1], [], []>} : vector<64x64xbf16>, vector<64x1024xbf16>, vector<64x1024xf32> -> vector<64x1024xf32>
    %55 = vector.extract_strided_slice %9 {offsets = [0, 0, 0], sizes = [1, 64, 1], strides = [1, 1, 1]} : vector<2x64x1xf32> to vector<1x64x1xf32>
    %56 = vector.shape_cast %55 : vector<1x64x1xf32> to vector<64x1xf32>
    %57 = vector.broadcast %56 : vector<64x1xf32> to vector<64x1024xf32>
    %58 = arith.addf %54, %57 : vector<64x1024xf32>
    %cst_25 = arith.constant 5.000000e-01 : f32
    %59 = vector.broadcast %cst_25 : f32 to vector<64x1024xf32>
    %60 = arith.mulf %59, %58 : vector<64x1024xf32>
    %cst_26 = arith.constant 0.707106769 : f32
    %61 = vector.broadcast %cst_26 : f32 to vector<64x1024xf32>
    %62 = arith.mulf %58, %61 : vector<64x1024xf32>
    %63 = math.erf %62 : vector<64x1024xf32>
    %cst_27 = arith.constant 1.000000e+00 : f32
    %64 = vector.broadcast %cst_27 : f32 to vector<64x1024xf32>
    %65 = arith.addf %64, %63 : vector<64x1024xf32>
    %66 = arith.mulf %60, %65 : vector<64x1024xf32>
    %67 = arith.truncf %66 : vector<64x1024xf32> to vector<64x1024xbf16>
    %68 = vector.extract_strided_slice %7 {offsets = [1, 0, 0], sizes = [1, 64, 64], strides = [1, 1, 1]} : vector<2x64x64xbf16> to vector<1x64x64xbf16>
    %69 = vector.shape_cast %68 : vector<1x64x64xbf16> to vector<64x64xbf16>
    %cst_28 = arith.constant dense<0.000000e+00> : vector<64x1024xf32>
    %70 = tpu.matmul %69, %67, %cst_28 {dimension_numbers = #tpu.dot_dimension_numbers<[1], [0], [0], [1], [0, 0, 1, 1], [], []>} : vector<64x64xbf16>, vector<64x1024xbf16>, vector<64x1024xf32> -> vector<64x1024xf32>
    %71 = vector.extract_strided_slice %9 {offsets = [1, 0, 0], sizes = [1, 64, 1], strides = [1, 1, 1]} : vector<2x64x1xf32> to vector<1x64x1xf32>
    %72 = vector.shape_cast %71 : vector<1x64x1xf32> to vector<64x1xf32>
    %73 = vector.broadcast %72 : vector<64x1xf32> to vector<64x1024xf32>
    %74 = arith.addf %70, %73 : vector<64x1024xf32>
    %75 = vector.extract_strided_slice %74 {offsets = [0, 0], sizes = [64, 128], strides = [1, 1]} : vector<64x1024xf32> to vector<64x128xf32>
    %76 = vector.extract_strided_slice %74 {offsets = [0, 128], sizes = [64, 128], strides = [1, 1]} : vector<64x1024xf32> to vector<64x128xf32>
    %77 = vector.extract_strided_slice %74 {offsets = [0, 256], sizes = [64, 128], strides = [1, 1]} : vector<64x1024xf32> to vector<64x128xf32>
    %78 = vector.extract_strided_slice %74 {offsets = [0, 384], sizes = [64, 128], strides = [1, 1]} : vector<64x1024xf32> to vector<64x128xf32>
    %79 = vector.extract_strided_slice %74 {offsets = [0, 512], sizes = [64, 128], strides = [1, 1]} : vector<64x1024xf32> to vector<64x128xf32>
    %80 = vector.extract_strided_slice %74 {offsets = [0, 640], sizes = [64, 128], strides = [1, 1]} : vector<64x1024xf32> to vector<64x128xf32>
    %81 = vector.extract_strided_slice %74 {offsets = [0, 768], sizes = [64, 128], strides = [1, 1]} : vector<64x1024xf32> to vector<64x128xf32>
    %82 = vector.extract_strided_slice %74 {offsets = [0, 896], sizes = [64, 128], strides = [1, 1]} : vector<64x1024xf32> to vector<64x128xf32>
    %83 = tpu.concatenate %75, %76, %77, %78, %79, %80, %81, %82 in 0 : vector<64x128xf32>, vector<64x128xf32>, vector<64x128xf32>, vector<64x128xf32>, vector<64x128xf32>, vector<64x128xf32>, vector<64x128xf32>, vector<64x128xf32> -> vector<512x128xf32>
    %84 = arith.addf %3, %83 : vector<512x128xf32>
    %cst_29 = arith.constant dense<0.000000e+00> : vector<512xf32>
    %85 = vector.multi_reduction <add>, %84, %cst_29 [1] : vector<512x128xf32> to vector<512xf32>
    %86 = vector.shape_cast %85 : vector<512xf32> to vector<512x1xf32>
    %cst_30 = arith.constant 1.280000e+02 : f32
    %87 = vector.broadcast %cst_30 : f32 to vector<512x1xf32>
    %88 = arith.divf %86, %87 : vector<512x1xf32>
    %89 = vector.broadcast %88 : vector<512x1xf32> to vector<512x128xf32>
    %90 = arith.subf %84, %89 : vector<512x128xf32>
    %91 = arith.mulf %90, %90 : vector<512x128xf32>
    %cst_31 = arith.constant dense<0.000000e+00> : vector<512xf32>
    %92 = vector.multi_reduction <add>, %91, %cst_31 [1] : vector<512x128xf32> to vector<512xf32>
    %93 = vector.shape_cast %92 : vector<512xf32> to vector<512x1xf32>
    %cst_32 = arith.constant 1.280000e+02 : f32
    %94 = vector.broadcast %cst_32 : f32 to vector<512x1xf32>
    %95 = arith.divf %93, %94 : vector<512x1xf32>
    %96 = vector.broadcast %88 : vector<512x1xf32> to vector<512x128xf32>
    %97 = arith.subf %84, %96 : vector<512x128xf32>
    %cst_33 = arith.constant 9.99999974E-6 : f32
    %98 = vector.broadcast %cst_33 : f32 to vector<512x1xf32>
    %99 = arith.addf %95, %98 : vector<512x1xf32>
    %100 = math.rsqrt %99 : vector<512x1xf32>
    %101 = vector.broadcast %100 : vector<512x1xf32> to vector<512x128xf32>
    %102 = arith.mulf %97, %101 : vector<512x128xf32>
    %103 = vector.extract_strided_slice %5 {offsets = [2, 0], sizes = [1, 128], strides = [1, 1]} : vector<4x128xf32> to vector<1x128xf32>
    %104 = vector.shape_cast %103 : vector<1x128xf32> to vector<128xf32>
    %105 = vector.shape_cast %104 : vector<128xf32> to vector<1x128xf32>
    %106 = vector.broadcast %105 : vector<1x128xf32> to vector<512x128xf32>
    %107 = arith.mulf %102, %106 : vector<512x128xf32>
    %108 = vector.extract_strided_slice %5 {offsets = [3, 0], sizes = [1, 128], strides = [1, 1]} : vector<4x128xf32> to vector<1x128xf32>
    %109 = vector.shape_cast %108 : vector<1x128xf32> to vector<128xf32>
    %110 = vector.shape_cast %109 : vector<128xf32> to vector<1x128xf32>
    %111 = vector.broadcast %110 : vector<1x128xf32> to vector<512x128xf32>
    %112 = arith.addf %107, %111 : vector<512x128xf32>
    %113 = arith.truncf %112 : vector<512x128xf32> to vector<512x128xbf16>
    %114 = vector.extract_strided_slice %11 {offsets = [0, 0, 0], sizes = [1, 128, 128], strides = [1, 1, 1]} : vector<2x128x128xbf16> to vector<1x128x128xbf16>
    %115 = vector.shape_cast %114 : vector<1x128x128xbf16> to vector<128x128xbf16>
    %cst_34 = arith.constant dense<0.000000e+00> : vector<512x128xf32>
    %116 = tpu.matmul %113, %115, %cst_34 {dimension_numbers = #tpu.dot_dimension_numbers<[1], [0], [0], [1], [0, 0, 1, 1], [], []>} : vector<512x128xbf16>, vector<128x128xbf16>, vector<512x128xf32> -> vector<512x128xf32>
    %117 = vector.extract_strided_slice %13 {offsets = [0, 0], sizes = [1, 128], strides = [1, 1]} : vector<2x128xf32> to vector<1x128xf32>
    %118 = vector.shape_cast %117 : vector<1x128xf32> to vector<128xf32>
    %119 = vector.shape_cast %118 : vector<128xf32> to vector<1x128xf32>
    %120 = vector.broadcast %119 : vector<1x128xf32> to vector<512x128xf32>
    %121 = arith.addf %116, %120 : vector<512x128xf32>
    %cst_35 = arith.constant 5.000000e-01 : f32
    %122 = vector.broadcast %cst_35 : f32 to vector<512x128xf32>
    %123 = arith.mulf %122, %121 : vector<512x128xf32>
    %cst_36 = arith.constant 0.707106769 : f32
    %124 = vector.broadcast %cst_36 : f32 to vector<512x128xf32>
    %125 = arith.mulf %121, %124 : vector<512x128xf32>
    %126 = math.erf %125 : vector<512x128xf32>
    %cst_37 = arith.constant 1.000000e+00 : f32
    %127 = vector.broadcast %cst_37 : f32 to vector<512x128xf32>
    %128 = arith.addf %127, %126 : vector<512x128xf32>
    %129 = arith.mulf %123, %128 : vector<512x128xf32>
    %130 = arith.truncf %129 : vector<512x128xf32> to vector<512x128xbf16>
    %131 = vector.extract_strided_slice %11 {offsets = [1, 0, 0], sizes = [1, 128, 128], strides = [1, 1, 1]} : vector<2x128x128xbf16> to vector<1x128x128xbf16>
    %132 = vector.shape_cast %131 : vector<1x128x128xbf16> to vector<128x128xbf16>
    %cst_38 = arith.constant dense<0.000000e+00> : vector<512x128xf32>
    %133 = tpu.matmul %130, %132, %cst_38 {dimension_numbers = #tpu.dot_dimension_numbers<[1], [0], [0], [1], [0, 0, 1, 1], [], []>} : vector<512x128xbf16>, vector<128x128xbf16>, vector<512x128xf32> -> vector<512x128xf32>
    %134 = arith.addf %84, %133 : vector<512x128xf32>
    %135 = vector.extract_strided_slice %13 {offsets = [1, 0], sizes = [1, 128], strides = [1, 1]} : vector<2x128xf32> to vector<1x128xf32>
    %136 = vector.shape_cast %135 : vector<1x128xf32> to vector<128xf32>
    %137 = vector.shape_cast %136 : vector<128xf32> to vector<1x128xf32>
    %138 = vector.broadcast %137 : vector<1x128xf32> to vector<512x128xf32>
    %139 = arith.addf %134, %138 : vector<512x128xf32>
    %c1_i32 = arith.constant 1 : i32
    %140 = arith.cmpi slt, %arg1, %c1_i32 : i32
    %141 = arith.extui %140 : i1 to i32
    %c0_i32_39 = arith.constant 0 : i32
    %142 = arith.cmpi ne, %141, %c0_i32_39 : i32
    scf.if %142 {
      %c0_42 = arith.constant 0 : index
      %c0_43 = arith.constant 0 : index
      %146 = vector.load %arg14[%c0_42, %c0_43] : memref<512x128xf32, #tpu.memory_space<vmem>>, vector<512x128xf32>
      tpu.vector_store %arg14[%c0_42, %c0_43], %139 {strides = array<i32>} : memref<512x128xf32, #tpu.memory_space<vmem>>, vector<512x128xf32>,
    } else {
    }
    %c1_i32_40 = arith.constant 1 : i32
    %143 = arith.cmpi eq, %arg1, %c1_i32_40 : i32
    %144 = arith.extui %143 : i1 to i32
    %c0_i32_41 = arith.constant 0 : i32
    %145 = arith.cmpi ne, %144, %c0_i32_41 : i32
    scf.if %145 {
      %c0_42 = arith.constant 0 : index
      %c0_43 = arith.constant 0 : index
      %146 = vector.load %arg10[%c0_42, %c0_43] : memref<2x128xf32, #tpu.memory_space<vmem>>, vector<2x128xf32>
      %cst_44 = arith.constant dense<0.000000e+00> : vector<512xf32>
      %147 = vector.multi_reduction <add>, %139, %cst_44 [1] : vector<512x128xf32> to vector<512xf32>
      %148 = vector.shape_cast %147 : vector<512xf32> to vector<512x1xf32>
      %cst_45 = arith.constant 1.280000e+02 : f32
      %149 = vector.broadcast %cst_45 : f32 to vector<512x1xf32>
      %150 = arith.divf %148, %149 : vector<512x1xf32>
      %151 = vector.broadcast %150 : vector<512x1xf32> to vector<512x128xf32>
      %152 = arith.subf %139, %151 : vector<512x128xf32>
      %153 = arith.mulf %152, %152 : vector<512x128xf32>
      %cst_46 = arith.constant dense<0.000000e+00> : vector<512xf32>
      %154 = vector.multi_reduction <add>, %153, %cst_46 [1] : vector<512x128xf32> to vector<512xf32>
      %155 = vector.shape_cast %154 : vector<512xf32> to vector<512x1xf32>
      %cst_47 = arith.constant 1.280000e+02 : f32
      %156 = vector.broadcast %cst_47 : f32 to vector<512x1xf32>
      %157 = arith.divf %155, %156 : vector<512x1xf32>
      %158 = vector.broadcast %150 : vector<512x1xf32> to vector<512x128xf32>
      %159 = arith.subf %139, %158 : vector<512x128xf32>
      %cst_48 = arith.constant 9.99999974E-6 : f32
      %160 = vector.broadcast %cst_48 : f32 to vector<512x1xf32>
      %161 = arith.addf %157, %160 : vector<512x1xf32>
      %162 = math.rsqrt %161 : vector<512x1xf32>
      %163 = vector.broadcast %162 : vector<512x1xf32> to vector<512x128xf32>
      %164 = arith.mulf %159, %163 : vector<512x128xf32>
      %165 = vector.extract_strided_slice %146 {offsets = [0, 0], sizes = [1, 128], strides = [1, 1]} : vector<2x128xf32> to vector<1x128xf32>
      %166 = vector.shape_cast %165 : vector<1x128xf32> to vector<128xf32>
      %167 = vector.shape_cast %166 : vector<128xf32> to vector<1x128xf32>
      %168 = vector.broadcast %167 : vector<1x128xf32> to vector<512x128xf32>
      %169 = arith.mulf %164, %168 : vector<512x128xf32>
      %170 = vector.extract_strided_slice %146 {offsets = [1, 0], sizes = [1, 128], strides = [1, 1]} : vector<2x128xf32> to vector<1x128xf32>
      %171 = vector.shape_cast %170 : vector<1x128xf32> to vector<128xf32>
      %172 = vector.shape_cast %171 : vector<128xf32> to vector<1x128xf32>
      %173 = vector.broadcast %172 : vector<1x128xf32> to vector<512x128xf32>
      %174 = arith.addf %169, %173 : vector<512x128xf32>
      %175 = vector.shape_cast %174 : vector<512x128xf32> to vector<8x64x128xf32>
      %cst_49 = arith.constant dense<0.000000e+00> : vector<8x128xf32>
      %176 = vector.multi_reduction <add>, %175, %cst_49 [1] : vector<8x64x128xf32> to vector<8x128xf32>
      %cst_50 = arith.constant 6.400000e+01 : f32
      %177 = vector.broadcast %cst_50 : f32 to vector<8x128xf32>
      %178 = arith.divf %176, %177 : vector<8x128xf32>
      %179 = arith.truncf %178 : vector<8x128xf32> to vector<8x128xbf16>
      %c0_51 = arith.constant 0 : index
      %c0_52 = arith.constant 0 : index
      %180 = vector.load %arg11[%c0_51, %c0_52] : memref<128x128xbf16, #tpu.memory_space<vmem>>, vector<128x128xbf16>
      %cst_53 = arith.constant dense<0.000000e+00> : vector<8x128xf32>
      %181 = tpu.matmul %179, %180, %cst_53 {dimension_numbers = #tpu.dot_dimension_numbers<[1], [0], [0], [1], [0, 0, 1, 1], [], []>} : vector<8x128xbf16>, vector<128x128xbf16>, vector<8x128xf32> -> vector<8x128xf32>
      %c0_54 = arith.constant 0 : index
      %c0_55 = arith.constant 0 : index
      %182 = vector.load %arg12[%c0_54, %c0_55] : memref<1x128xf32, #tpu.memory_space<vmem>>, vector<1x128xf32>
      %183 = vector.broadcast %182 : vector<1x128xf32> to vector<8x128xf32>
      %184 = arith.addf %181, %183 : vector<8x128xf32>
      %c0_56 = arith.constant 0 : index
      %c0_57 = arith.constant 0 : index
      %185 = vector.load %arg13[%c0_56, %c0_57] : memref<8x128xf32, #tpu.memory_space<vmem>>, vector<8x128xf32>
      tpu.vector_store %arg13[%c0_56, %c0_57], %184 {strides = array<i32>} : memref<8x128xf32, #tpu.memory_space<vmem>>, vector<8x128xf32>,
    } else {
    }
    return
  }
  func.func @transform_0(%arg0: i32, %arg1: i32) -> (i32, i32) {
    %c0_i32 = arith.constant 0 : i32
    %c0_i32_0 = arith.constant 0 : i32
    return %arg0, %c0_i32 : i32, i32
  }
  func.func @transform_1(%arg0: i32, %arg1: i32) -> (i32, i32) {
    %c0_i32 = arith.constant 0 : i32
    %c0_i32_0 = arith.constant 0 : i32
    %c0_i32_1 = arith.constant 0 : i32
    return %c0_i32, %c0_i32_0 : i32, i32
  }
  func.func @transform_2(%arg0: i32, %arg1: i32) -> (i32, i32) {
    %c0_i32 = arith.constant 0 : i32
    %c0_i32_0 = arith.constant 0 : i32
    %c0_i32_1 = arith.constant 0 : i32
    return %c0_i32, %c0_i32_0 : i32, i32
  }
  func.func @transform_3(%arg0: i32, %arg1: i32) -> (i32, i32, i32) {
    %c0_i32 = arith.constant 0 : i32
    %c0_i32_0 = arith.constant 0 : i32
    %c0_i32_1 = arith.constant 0 : i32
    return %arg1, %c0_i32, %c0_i32_0 : i32, i32, i32
  }
  func.func @transform_4(%arg0: i32, %arg1: i32) -> (i32, i32, i32, i32) {
    %c0_i32 = arith.constant 0 : i32
    %c0_i32_0 = arith.constant 0 : i32
    %c0_i32_1 = arith.constant 0 : i32
    %c0_i32_2 = arith.constant 0 : i32
    return %arg1, %c0_i32, %c0_i32_0, %c0_i32_1 : i32, i32, i32, i32
  }
  func.func @transform_5(%arg0: i32, %arg1: i32) -> (i32, i32, i32, i32) {
    %c0_i32 = arith.constant 0 : i32
    %c0_i32_0 = arith.constant 0 : i32
    %c0_i32_1 = arith.constant 0 : i32
    %c0_i32_2 = arith.constant 0 : i32
    return %arg1, %c0_i32, %c0_i32_0, %c0_i32_1 : i32, i32, i32, i32
  }
  func.func @transform_6(%arg0: i32, %arg1: i32) -> (i32, i32, i32, i32) {
    %c0_i32 = arith.constant 0 : i32
    %c0_i32_0 = arith.constant 0 : i32
    %c0_i32_1 = arith.constant 0 : i32
    %c0_i32_2 = arith.constant 0 : i32
    return %arg1, %c0_i32, %c0_i32_0, %c0_i32_1 : i32, i32, i32, i32
  }
  func.func @transform_7(%arg0: i32, %arg1: i32) -> (i32, i32, i32) {
    %c0_i32 = arith.constant 0 : i32
    %c0_i32_0 = arith.constant 0 : i32
    %c0_i32_1 = arith.constant 0 : i32
    return %arg1, %c0_i32, %c0_i32_0 : i32, i32, i32
  }
  func.func @transform_8(%arg0: i32, %arg1: i32) -> (i32, i32) {
    %c0_i32 = arith.constant 0 : i32
    %c0_i32_0 = arith.constant 0 : i32
    %c0_i32_1 = arith.constant 0 : i32
    return %c0_i32, %c0_i32_0 : i32, i32
  }
  func.func @transform_9(%arg0: i32, %arg1: i32) -> (i32, i32) {
    %c0_i32 = arith.constant 0 : i32
    %c0_i32_0 = arith.constant 0 : i32
    %c0_i32_1 = arith.constant 0 : i32
    return %c0_i32, %c0_i32_0 : i32, i32
  }
  func.func @transform_10(%arg0: i32, %arg1: i32) -> (i32, i32) {
    %c0_i32 = arith.constant 0 : i32
    %c0_i32_0 = arith.constant 0 : i32
    %c0_i32_1 = arith.constant 0 : i32
    return %c0_i32, %c0_i32_0 : i32, i32
  }
  func.func @transform_11(%arg0: i32, %arg1: i32) -> (i32, i32) {
    %c0_i32 = arith.constant 0 : i32
    %c0_i32_0 = arith.constant 0 : i32
    return %arg0, %c0_i32 : i32, i32
  }
}

</mosaic_0001>

<bundles_post_ra>
// kernel: tpu_custom_call.1
= control target key start
LH: loop header
LB: loop body
LE: loop exit
PB: predicated region body
PF: predicated region fallthrough
CT: control target
= control target key end

     0   :  { %s11714_s0 = inlined_call_operand.vmem [shape: bf16[1024,48], index: 0, kind: input, shape index: {}]   ;;  %s11715_s1 = inlined_call_operand.vmem [shape: bf16[48,128], index: 1, kind: input, shape index: {}]   ;;  %s11716_s2 = inlined_call_operand.vmem [shape: f32[1,128], index: 2, kind: input, shape index: {}]   ;;  %s11717_s3 = inlined_call_operand.vmem [shape: f32[2,4,128], index: 3, kind: input, shape index: {}]   ;;  %s11718_s4 = inlined_call_operand.vmem [shape: bf16[2,2,64,64], index: 4, kind: input, shape index: {}]   ;;  %s11719_s5 = inlined_call_operand.vmem [shape: f32[2,2,64,1], index: 5, kind: input, shape index: {}]   ;;  %s11720_s6 = inlined_call_operand.vmem [shape: bf16[2,2,128,128], index: 6, kind: input, shape index: {}]   ;;  %s11721_s7 = inlined_call_operand.vmem [shape: f32[2,2,128], index: 7, kind: input, shape index: {}]   ;;  %s11722_s8 = inlined_call_operand.vmem [shape: f32[2,128], index: 8, kind: input, shape index: {}]   ;;  %s11723_s9 = inlined_call_operand.vmem [shape: bf16[128,128], index: 9, kind: input, shape index: {}]   ;;  %s11724_s10 = inlined_call_operand.vmem [shape: f32[1,128], index: 10, kind: input, shape index: {}]   ;;  %s11725_s11 = inlined_call_operand.hbm [shape: f32[16,128], index: 11, kind: output, shape index: {}]  }
   0x1   :  { %11925 = sst [smem:[#allocation121_spill]] %s11714_s0 }
   0x2   :  { %11926 = sst [smem:[#allocation122_spill]] %s11725_s11 }
   0x3   :  { %16 = vsyncpa [#allocation4], 0 }
   0x4   :  { %18 = vsyncpa [#allocation4 + $0x1], 0  ;;  %s8255_s17 = smov 0   ;;  %s8257_s18 = smov 0  }
   0x5   :  { %s8259_s19 = smov 0   ;;  %s8261_s20 = smov 0  }
   0x6   :  { %s8263_s21 = smov 0   ;;  %s8265_s22 = smov 0  }
   0x7   :  { %s8267_s23 = smov 0   ;;  %s8269_s24 = smov 0  }
   0x8 LB: > { %11927 = sst [smem:[#allocation6_spill]] %s8161_s17  ;;  %s6707_s25 = sadd.s32 4294967295, %s8189_s24   ;;  %s8189_s24 = sphi %s8269_s24, %s24_s24   ;;  %s8185_s23 = sphi %s8267_s23, %s12313_s23   ;;  %s8181_s22 = sphi %s8265_s22, %s12312_s22   ;;  %s8177_s21 = sphi %s8263_s21, %s12311_s21   ;;  %s8173_s20 = sphi %s8261_s20, %s12310_s20   ;;  %s8169_s19 = sphi %s8259_s19, %s12309_s19   ;;  %s8165_s18 = sphi %s8257_s18, %s12308_s18   ;;  %s8161_s17 = sphi %s8255_s17, %s12307_s17  }
   0x9   : > { %11928 = sst [smem:[#allocation7_spill]] %s8165_s18  ;;  %s6708_s26 = sadd.s32 4294967294, %s8189_s24  }
   0xa   : > { %11929 = sst [smem:[#allocation8_spill]] %s8169_s19  ;;  %s33_s27 = sadd.s32 1, %s8181_s22 }
   0xb   : > { %11930 = sst [smem:[#allocation9_spill]] %s8181_s22  ;;  %p34_p0 = scmp.ge.s32.totalorder %s33_s27, 2 }
   0xc   : > { %11931 = sst [smem:[#allocation10_spill]] %s8185_s23  ;;  %s36_s28 = sadd.s32 1, %s8185_s23 }
   0xd   : > { %11932 = sst [smem:[#allocation11_spill]] %s8189_s24  ;;  %p314_p1 = scmp.ne.s32.totalorder %s8169_s19, %s8165_s18 }
   0xe   : > { %p315_p2 = scmp.eq.s32.totalorder %s6707_s25, 3  ;;  %s12315_s27 = smov (%p34_p0, %s33_s27), 0 }
   0xf   : > { %11933 = sst [smem:[#allocation12_spill]] %s12315_s27  ;;  %s12317_s28 = smov (!%p34_p0, %s36_s28), %s8185_s23 }
  0x10   : > { %p8304_p3 = por %p315_p2, %p314_p1  ;;  %p320_p4 = scmp.ne.s32.totalorder %s8165_s18, %s8161_s17 }
  0x11   : > { %p38_p5 = scmp.ge.s32.totalorder %s12317_s28, 2  ;;  %p321_p6 = scmp.eq.s32.totalorder %s6708_s26, 3 }
  0x12   : > { %s11934_s29 = scalar_select %p8304_p3, 1, 0 }
  0x13   : > { %p6711_p7 = scmp.ge.s32.totalorder %s8189_s24, 1  ;;  %p401_p8 = scmp.lt.s32.totalorder %s8189_s24, 5 }
  0x14   : > { %11935 = sst [smem:[#allocation13_spill]] %s11934_s29  ;;  %s12319_s28 = smov (%p38_p5, %s12317_s28), 0 }
  0x15   : > { %11936 = sst [smem:[#allocation14_spill]] %s12319_s28  ;;  %p8314_p9 = por %p321_p6, %p320_p4 }
  0x16   : > { %p402_p10 = pnand %p6711_p7, %p401_p8  ;;  %s301_s12 = ssub.s32 %s8185_s23, %s12319_s28 }
  0x17   : > { %s11937_s30 = scalar_select %p8314_p9, 1, 0 }
  0x18   : > { %s304_s13 = sadd.s32 1, %s8169_s19  ;;  %p302_p11 = scmp.eq.s32.totalorder %s301_s12, 0 }
  0x19   : > { %11938 = sst [smem:[#allocation15_spill]] %s11937_s30  ;;  %405 = sbr.rel (%p402_p10) target bundleno = 2909 (0xb5d), region = 64 }
  0x1a   : > { %s8322_s14 = scalar_select %p302_p11, %s8169_s19, %s304_s13  }
  0x1c   : > { %11939 = sst [smem:[#allocation16_spill]] %s8322_s14 }
  0x20   : > { %s11731_s15 = sand.u32 1, %s8165_s18   ;;  %s6713_s16 = sshll.u32 %s8177_s21, 6 }
  0x21   : > { %s8328_s25 = sshll.u32 %s11731_s15, 3  ;;  %p465_p12 = scmp.lt.s32.totalorder %s6713_s16, 127 }
  0x22   : > { %p470_p13 = scmp.lt.s32.totalorder %s8173_s20, 1  ;;  %s11940_s0 = sld [smem:[#allocation121_spill]] }
  0x23   : > { %s12321_s16 = smov (!%p465_p12, %s6713_s16), 127  ;;  %s463_s17 = scalar_lea.vmem [#allocation3], %s8328_s25 }
  0x24   : > { %s471_s26 = scalar_select %p470_p13, %s8173_s20, 1 }
  0x25   : > { %s6714_s28 = sshll.u32 %s12321_s16, 2  ;;  %p6723_p0 = scmp.ne.s32.totalorder %s8173_s20, 0 }
  0x26   : > { %s6715_s23 = sshll.u32 %s471_s26, 2  ;;  %s6863_s30 = sshll.u32 %s471_s26, 6  ;;  %v7320_v0 = vld [vmem:[%s11715_s1] sm:$0xff] (!%p6723_p0)   ;;  %v7321_v1 = vld [vmem:[%s11715_s1 + $0x8] sm:$0xff] (!%p6723_p0)   ;;  %v7322_v2 = vld [vmem:[%s11715_s1 + $0x10] sm:$0xff] (!%p6723_p0)   ;;  %vm753_vm0 = vcmask (!%p6723_p0), 392192  }
  0x27   : > { %s8340_s19 = scalar_lea.vmem %s11717_s3, %s6715_s23  ;;  %s8345_s24 = scalar_lea.vmem %s11718_s4, %s6863_s30  ;;  %6990 = vmatprep.subr.bf16.mxu0 (!%p6723_p0), %v7320_v0  ;;  %7240 = vmatprep.subr.bf16.mxu1 (!%p6723_p0), %v7320_v0  ;;  %v8440_v35 = vld [vmem:[%s11716_s2] ss:$0 sm:$0xff] (!%p6723_p0) }
  0x28   : > { %s8335_s27 = scalar_lea.vmem %s11940_s0, %s6714_s28  ;;  %s6864_s11 = sshll.u32 %s471_s26, 7  ;;  %6991 = vmatpush3.bf16.msra.mxu0 (!%p6723_p0), %v7320_v0  ;;  %7243 = vmatpush3.bf16.msra.mxu1 (!%p6723_p0), %v7320_v0 }
  0x29   : > { %s8350_s18 = scalar_lea.vmem %s11719_s5, %s6864_s11  ;;  %s8355_s13 = scalar_lea.vmem %s11720_s6, %s6864_s11  ;;  %v7323_v3 = vld [vmem:[%s8335_s27] sm:$0xff] (!%p6723_p0)   ;;  %6992 = vmatprep.subr.bf16.mxu0 (!%p6723_p0), %v7321_v1  ;;  %7241 = vmatprep.subr.bf16.mxu1 (!%p6723_p0), %v7321_v1  ;;  %v7325_v5 = vld [vmem:[%s8335_s27 + $0x8] sm:$0xff] (!%p6723_p0)   ;;  %v7327_v7 = vld [vmem:[%s8335_s27 + $0x10] sm:$0xff] (!%p6723_p0)  }
  0x2a   : > { %s6722_s22 = sshll.u32 %s471_s26, 1  ;;  %497 = sbr.rel (%p6723_p0) target bundleno = 325 (0x145), region = 68  ;;  %v7324_v4 = vld [vmem:[%s8335_s27 + $0x80] sm:$0xff] (!%p6723_p0)   ;;  %6996 = vmatprep.mubr.msk.bf16.mxu0 (!%p6723_p0), %vm753_vm0, %v7323_v3  ;;  %v7326_v6 = vld [vmem:[%s8335_s27 + $0x88] sm:$0xff] (!%p6723_p0)   ;;  %v7328_v8 = vld [vmem:[%s8335_s27 + $0x90] sm:$0xff] (!%p6723_p0)  }
  0x2b   : > { %s8360_s0 = scalar_lea.vmem %s11721_s7, %s6722_s22  ;;  %7028 = vmatprep.mubr.msk.bf16.mxu1 (!%p6723_p0), %vm753_vm0, %v7324_v4  ;;  %v7329_v9 = vld [vmem:[%s8335_s27 + $0x18] sm:$0xff] (!%p6723_p0)   ;;  %v7331_v11 = vld [vmem:[%s8335_s27 + $0x20] sm:$0xff] (!%p6723_p0)   ;;  %v7333_v13 = vld [vmem:[%s8335_s27 + $0x28] sm:$0xff] (!%p6723_p0)  }
  0x2c   : > { %6993 = vmatpush3.bf16.msra.mxu0 (!%p6723_p0), %v7321_v1  ;;  %7244 = vmatpush3.bf16.msra.mxu1 (!%p6723_p0), %v7321_v1  ;;  %v7330_v10 = vld [vmem:[%s8335_s27 + $0x98] sm:$0xff] (!%p6723_p0)   ;;  %v7332_v12 = vld [vmem:[%s8335_s27 + $0xa0] sm:$0xff] (!%p6723_p0)   ;;  %v7334_v14 = vld [vmem:[%s8335_s27 + $0xa8] sm:$0xff] (!%p6723_p0)  }
  0x2d   : > { %6994 = vmatprep.subr.bf16.mxu0 (!%p6723_p0), %v7322_v2  ;;  %7242 = vmatprep.subr.bf16.mxu1 (!%p6723_p0), %v7322_v2  ;;  %v7335_v15 = vld [vmem:[%s8335_s27 + $0x30] sm:$0xff] (!%p6723_p0)   ;;  %v7337_v17 = vld [vmem:[%s8335_s27 + $0x38] sm:$0xff] (!%p6723_p0)   ;;  %v7339_v19 = vld [vmem:[%s8335_s27 + $0x40] sm:$0xff] (!%p6723_p0)  }
  0x2e   : > { %v7336_v16 = vld [vmem:[%s8335_s27 + $0xb0] sm:$0xff] (!%p6723_p0)   ;;  %v7338_v18 = vld [vmem:[%s8335_s27 + $0xb8] sm:$0xff] (!%p6723_p0)   ;;  %v7340_v20 = vld [vmem:[%s8335_s27 + $0xc0] sm:$0xff] (!%p6723_p0)  }
  0x2f   : > { %v7341_v21 = vld [vmem:[%s8335_s27 + $0x48] sm:$0xff] (!%p6723_p0)   ;;  %v7343_v23 = vld [vmem:[%s8335_s27 + $0x50] sm:$0xff] (!%p6723_p0)   ;;  %v7345_v25 = vld [vmem:[%s8335_s27 + $0x58] sm:$0xff] (!%p6723_p0)  }
  0x30   : > { %6995 = vmatpush3.bf16.msra.mxu0 (!%p6723_p0), %v7322_v2  ;;  %7245 = vmatpush3.bf16.msra.mxu1 (!%p6723_p0), %v7322_v2  ;;  %v7342_v22 = vld [vmem:[%s8335_s27 + $0xc8] sm:$0xff] (!%p6723_p0)   ;;  %v7344_v24 = vld [vmem:[%s8335_s27 + $0xd0] sm:$0xff] (!%p6723_p0)   ;;  %v7346_v26 = vld [vmem:[%s8335_s27 + $0xd8] sm:$0xff] (!%p6723_p0)  }
  0x31   : > { %v7347_v27 = vld [vmem:[%s8335_s27 + $0x60] sm:$0xff]   ;;  %v7349_v29 = vld [vmem:[%s8335_s27 + $0x68] sm:$0xff]   ;;  %v7351_v31 = vld [vmem:[%s8335_s27 + $0x70] sm:$0xff]  }
  0x32   : > { %v7348_v28 = vld [vmem:[%s8335_s27 + $0xe0] sm:$0xff]   ;;  %v7350_v30 = vld [vmem:[%s8335_s27 + $0xe8] sm:$0xff]   ;;  %v7352_v32 = vld [vmem:[%s8335_s27 + $0xf0] sm:$0xff]  }
  0x33   : > { %6997 = vmatmul.mubr.msk.bf16.vlgmr.msra.gmra.mrb[0].mxu0 %vm753_vm0, %v7325_v5  ;;  %7029 = vmatmul.mubr.msk.bf16.vlgmr.msra.gmra.mrb[0].mxu1 %vm753_vm0, %v7326_v6  ;;  %v7353_v33 = vld [vmem:[%s8335_s27 + $0x78] sm:$0xff]  }
  0x34   : > { %7000 = vmatprep.mubr.msk.bf16.mxu0 %vm753_vm0, %v7327_v7  ;;  %7032 = vmatprep.mubr.msk.bf16.mxu1 %vm753_vm0, %v7328_v8  ;;  %v7354_v34 = vld [vmem:[%s8335_s27 + $0xf8] sm:$0xff]  }
  0x3b   : > { %7001 = vmatmul.mubr.msk.bf16.gmra.mrb[4].mxu0 %vm753_vm0, %v7329_v9  ;;  %7033 = vmatmul.mubr.msk.bf16.gmra.mrb[4].mxu1 %vm753_vm0, %v7330_v10 }
  0x3c   : > { %7004 = vmatprep.mubr.msk.bf16.mxu0 %vm753_vm0, %v7331_v11  ;;  %7036 = vmatprep.mubr.msk.bf16.mxu1 %vm753_vm0, %v7332_v12 }
  0x43   : > { %7005 = vmatmul.mubr.msk.bf16.gmra.mrb[8].mxu0 %vm753_vm0, %v7333_v13  ;;  %7037 = vmatmul.mubr.msk.bf16.gmra.mrb[8].mxu1 %vm753_vm0, %v7334_v14 }
  0x44   : > { %7008 = vmatprep.mubr.msk.bf16.mxu0 %vm753_vm0, %v7335_v15  ;;  %7040 = vmatprep.mubr.msk.bf16.mxu1 %vm753_vm0, %v7336_v16 }
  0x4b   : > { %7009 = vmatmul.mubr.msk.bf16.gmra.mrb[12].mxu0 %vm753_vm0, %v7337_v17  ;;  %7041 = vmatmul.mubr.msk.bf16.gmra.mrb[12].mxu1 %vm753_vm0, %v7338_v18 }
  0x4c   : > { %7012 = vmatprep.mubr.msk.bf16.mxu0 %vm753_vm0, %v7339_v19  ;;  %7044 = vmatprep.mubr.msk.bf16.mxu1 %vm753_vm0, %v7340_v20 }
  0x53   : > { %7013 = vmatmul.mubr.msk.bf16.gmra.mrb[16].mxu0 %vm753_vm0, %v7341_v21  ;;  %7045 = vmatmul.mubr.msk.bf16.gmra.mrb[16].mxu1 %vm753_vm0, %v7342_v22 }
  0x54   : > { %7016 = vmatprep.mubr.msk.bf16.mxu0 %vm753_vm0, %v7343_v23  ;;  %7048 = vmatprep.mubr.msk.bf16.mxu1 %vm753_vm0, %v7344_v24 }
  0x5b   : > { %7017 = vmatmul.mubr.msk.bf16.gmra.mrb[20].mxu0 %vm753_vm0, %v7345_v25  ;;  %7049 = vmatmul.mubr.msk.bf16.gmra.mrb[20].mxu1 %vm753_vm0, %v7346_v26 }
  0x5c   : > { %7020 = vmatprep.mubr.msk.bf16.mxu0 %vm753_vm0, %v7347_v27  ;;  %7052 = vmatprep.mubr.msk.bf16.mxu1 %vm753_vm0, %v7348_v28 }
  0x63   : > { %7021 = vmatmul.mubr.msk.bf16.gmra.mrb[24].mxu0 %vm753_vm0, %v7349_v29  ;;  %7053 = vmatmul.mubr.msk.bf16.gmra.mrb[24].mxu1 %vm753_vm0, %v7350_v30 }
  0x64   : > { %7024 = vmatprep.mubr.msk.bf16.mxu0 %vm753_vm0, %v7351_v31  ;;  %7056 = vmatprep.mubr.msk.bf16.mxu1 %vm753_vm0, %v7352_v32 }
  0x6b   : > { %7025 = vmatmul.mubr.msk.bf16.gmra.mrb[28].mxu0 %vm753_vm0, %v7353_v33  ;;  %7057 = vmatmul.mubr.msk.bf16.gmra.mrb[28].mxu1 %vm753_vm0, %v7354_v34 }
 0x106   : > { %v6998_v36 = vpop.f32.mrb[0].mxu0  ;;  %v7030_v37 = vpop.f32.mrb[0].mxu1 }
 0x107   : > { %v893_v38 = vadd.f32 %v6998_v36, %v8440_v35  ;;  %v1021_v39 = vadd.f32 %v7030_v37, %v8440_v35  ;;  %v884_v40 = vpop.f32.mrb[1].mxu0  ;;  %v1012_v41 = vpop.f32.mrb[1].mxu1 }
 0x108   : > { %v885_v42 = vadd.f32 %v8440_v35, %v884_v40  ;;  %v1013_v43 = vadd.f32 %v8440_v35, %v1012_v41  ;;  %v6999_v44 = vpop.f32.mrb[2].mxu0  ;;  %v7031_v45 = vpop.f32.mrb[2].mxu1 }
 0x109   : > { %1141 = vst [vmem:[#allocation2 + $0x10] sm:$0xff] %v893_v38  ;;  %1173 = vst [vmem:[#allocation2 + $0x110] sm:$0xff] %v1021_v39  ;;  %v896_v46 = vadd.f32 %v6999_v44, %v8440_v35  ;;  %v1024_v47 = vadd.f32 %v7031_v45, %v8440_v35  ;;  %v887_v48 = vpop.f32.mrb[3].mxu0  ;;  %v1015_v49 = vpop.f32.mrb[3].mxu1 }
 0x10a   : > { %1139 = vst [vmem:[#allocation2] sm:$0xff] %v885_v42  ;;  %1171 = vst [vmem:[#allocation2 + $0x100] sm:$0xff] %v1013_v43  ;;  %v888_v50 = vadd.f32 %v8440_v35, %v887_v48  ;;  %v1016_v51 = vadd.f32 %v8440_v35, %v1015_v49 }
 0x10b   : > { %1142 = vst [vmem:[#allocation2 + $0x18] sm:$0xff] %v896_v46  ;;  %1174 = vst [vmem:[#allocation2 + $0x118] sm:$0xff] %v1024_v47 }
 0x10c   : > { %1140 = vst [vmem:[#allocation2 + $0x8] sm:$0xff] %v888_v50  ;;  %1172 = vst [vmem:[#allocation2 + $0x108] sm:$0xff] %v1016_v51 }
 0x10e   : > { %v7002_v52 = vpop.f32.mrb[4].mxu0  ;;  %v7034_v53 = vpop.f32.mrb[4].mxu1 }
 0x10f   : > { %v909_v54 = vadd.f32 %v7002_v52, %v8440_v35  ;;  %v1037_v55 = vadd.f32 %v7034_v53, %v8440_v35  ;;  %v900_v56 = vpop.f32.mrb[5].mxu0  ;;  %v1028_v57 = vpop.f32.mrb[5].mxu1 }
 0x110   : > { %v901_v58 = vadd.f32 %v8440_v35, %v900_v56  ;;  %v1029_v59 = vadd.f32 %v8440_v35, %v1028_v57  ;;  %v7003_v60 = vpop.f32.mrb[6].mxu0  ;;  %v7035_v61 = vpop.f32.mrb[6].mxu1 }
 0x111   : > { %1145 = vst [vmem:[#allocation2 + $0x30] sm:$0xff] %v909_v54  ;;  %1177 = vst [vmem:[#allocation2 + $0x130] sm:$0xff] %v1037_v55  ;;  %v912_v62 = vadd.f32 %v7003_v60, %v8440_v35  ;;  %v1040_v63 = vadd.f32 %v7035_v61, %v8440_v35  ;;  %v903_v0 = vpop.f32.mrb[7].mxu0  ;;  %v1031_v1 = vpop.f32.mrb[7].mxu1 }
 0x112   : > { %1143 = vst [vmem:[#allocation2 + $0x20] sm:$0xff] %v901_v58  ;;  %1175 = vst [vmem:[#allocation2 + $0x120] sm:$0xff] %v1029_v59  ;;  %v904_v2 = vadd.f32 %v8440_v35, %v903_v0  ;;  %v1032_v3 = vadd.f32 %v8440_v35, %v1031_v1 }
 0x113   : > { %1146 = vst [vmem:[#allocation2 + $0x38] sm:$0xff] %v912_v62  ;;  %1178 = vst [vmem:[#allocation2 + $0x138] sm:$0xff] %v1040_v63 }
 0x114   : > { %1144 = vst [vmem:[#allocation2 + $0x28] sm:$0xff] %v904_v2  ;;  %1176 = vst [vmem:[#allocation2 + $0x128] sm:$0xff] %v1032_v3 }
 0x116   : > { %v7006_v4 = vpop.f32.mrb[8].mxu0  ;;  %v7038_v5 = vpop.f32.mrb[8].mxu1 }
 0x117   : > { %v925_v6 = vadd.f32 %v7006_v4, %v8440_v35  ;;  %v1053_v7 = vadd.f32 %v7038_v5, %v8440_v35  ;;  %v916_v8 = vpop.f32.mrb[9].mxu0  ;;  %v1044_v9 = vpop.f32.mrb[9].mxu1 }
 0x118   : > { %v917_v10 = vadd.f32 %v8440_v35, %v916_v8  ;;  %v1045_v11 = vadd.f32 %v8440_v35, %v1044_v9  ;;  %v7007_v12 = vpop.f32.mrb[10].mxu0  ;;  %v7039_v13 = vpop.f32.mrb[10].mxu1 }
 0x119   : > { %1149 = vst [vmem:[#allocation2 + $0x50] sm:$0xff] %v925_v6  ;;  %1181 = vst [vmem:[#allocation2 + $0x150] sm:$0xff] %v1053_v7  ;;  %v928_v14 = vadd.f32 %v7007_v12, %v8440_v35  ;;  %v1056_v15 = vadd.f32 %v7039_v13, %v8440_v35  ;;  %v919_v16 = vpop.f32.mrb[11].mxu0  ;;  %v1047_v17 = vpop.f32.mrb[11].mxu1 }
 0x11a   : > { %1147 = vst [vmem:[#allocation2 + $0x40] sm:$0xff] %v917_v10  ;;  %1179 = vst [vmem:[#allocation2 + $0x140] sm:$0xff] %v1045_v11  ;;  %v920_v18 = vadd.f32 %v8440_v35, %v919_v16  ;;  %v1048_v19 = vadd.f32 %v8440_v35, %v1047_v17 }
 0x11b   : > { %1150 = vst [vmem:[#allocation2 + $0x58] sm:$0xff] %v928_v14  ;;  %1182 = vst [vmem:[#allocation2 + $0x158] sm:$0xff] %v1056_v15 }
 0x11c   : > { %1148 = vst [vmem:[#allocation2 + $0x48] sm:$0xff] %v920_v18  ;;  %1180 = vst [vmem:[#allocation2 + $0x148] sm:$0xff] %v1048_v19 }
 0x11e   : > { %v7010_v20 = vpop.f32.mrb[12].mxu0  ;;  %v7042_v21 = vpop.f32.mrb[12].mxu1 }
 0x11f   : > { %v941_v22 = vadd.f32 %v7010_v20, %v8440_v35  ;;  %v1069_v23 = vadd.f32 %v7042_v21, %v8440_v35  ;;  %v932_v24 = vpop.f32.mrb[13].mxu0  ;;  %v1060_v25 = vpop.f32.mrb[13].mxu1 }
 0x120   : > { %v933_v26 = vadd.f32 %v8440_v35, %v932_v24  ;;  %v1061_v27 = vadd.f32 %v8440_v35, %v1060_v25  ;;  %v7011_v28 = vpop.f32.mrb[14].mxu0  ;;  %v7043_v29 = vpop.f32.mrb[14].mxu1 }
 0x121   : > { %1153 = vst [vmem:[#allocation2 + $0x70] sm:$0xff] %v941_v22  ;;  %1185 = vst [vmem:[#allocation2 + $0x170] sm:$0xff] %v1069_v23  ;;  %v944_v30 = vadd.f32 %v7011_v28, %v8440_v35  ;;  %v1072_v31 = vadd.f32 %v7043_v29, %v8440_v35  ;;  %v935_v32 = vpop.f32.mrb[15].mxu0  ;;  %v1063_v33 = vpop.f32.mrb[15].mxu1 }
 0x122   : > { %1151 = vst [vmem:[#allocation2 + $0x60] sm:$0xff] %v933_v26  ;;  %1183 = vst [vmem:[#allocation2 + $0x160] sm:$0xff] %v1061_v27  ;;  %v936_v34 = vadd.f32 %v8440_v35, %v935_v32  ;;  %v1064_v36 = vadd.f32 %v8440_v35, %v1063_v33 }
 0x123   : > { %1154 = vst [vmem:[#allocation2 + $0x78] sm:$0xff] %v944_v30  ;;  %1186 = vst [vmem:[#allocation2 + $0x178] sm:$0xff] %v1072_v31 }
 0x124   : > { %1152 = vst [vmem:[#allocation2 + $0x68] sm:$0xff] %v936_v34  ;;  %1184 = vst [vmem:[#allocation2 + $0x168] sm:$0xff] %v1064_v36 }
 0x126   : > { %v7014_v37 = vpop.f32.mrb[16].mxu0  ;;  %v7046_v38 = vpop.f32.mrb[16].mxu1 }
 0x127   : > { %v957_v39 = vadd.f32 %v7014_v37, %v8440_v35  ;;  %v1085_v40 = vadd.f32 %v7046_v38, %v8440_v35  ;;  %v948_v41 = vpop.f32.mrb[17].mxu0  ;;  %v1076_v42 = vpop.f32.mrb[17].mxu1 }
 0x128   : > { %v949_v43 = vadd.f32 %v8440_v35, %v948_v41  ;;  %v1077_v44 = vadd.f32 %v8440_v35, %v1076_v42  ;;  %v7015_v45 = vpop.f32.mrb[18].mxu0  ;;  %v7047_v46 = vpop.f32.mrb[18].mxu1 }
 0x129   : > { %1157 = vst [vmem:[#allocation2 + $0x90] sm:$0xff] %v957_v39  ;;  %1189 = vst [vmem:[#allocation2 + $0x190] sm:$0xff] %v1085_v40  ;;  %v960_v47 = vadd.f32 %v7015_v45, %v8440_v35  ;;  %v1088_v48 = vadd.f32 %v7047_v46, %v8440_v35  ;;  %v951_v49 = vpop.f32.mrb[19].mxu0  ;;  %v1079_v50 = vpop.f32.mrb[19].mxu1 }
 0x12a   : > { %1155 = vst [vmem:[#allocation2 + $0x80] sm:$0xff] %v949_v43  ;;  %1187 = vst [vmem:[#allocation2 + $0x180] sm:$0xff] %v1077_v44  ;;  %v952_v51 = vadd.f32 %v8440_v35, %v951_v49  ;;  %v1080_v52 = vadd.f32 %v8440_v35, %v1079_v50 }
 0x12b   : > { %1158 = vst [vmem:[#allocation2 + $0x98] sm:$0xff] %v960_v47  ;;  %1190 = vst [vmem:[#allocation2 + $0x198] sm:$0xff] %v1088_v48 }
 0x12c   : > { %1156 = vst [vmem:[#allocation2 + $0x88] sm:$0xff] %v952_v51  ;;  %1188 = vst [vmem:[#allocation2 + $0x188] sm:$0xff] %v1080_v52 }
 0x12e   : > { %v7018_v53 = vpop.f32.mrb[20].mxu0  ;;  %v7050_v54 = vpop.f32.mrb[20].mxu1 }
 0x12f   : > { %v973_v55 = vadd.f32 %v7018_v53, %v8440_v35  ;;  %v1101_v56 = vadd.f32 %v7050_v54, %v8440_v35  ;;  %v964_v57 = vpop.f32.mrb[21].mxu0  ;;  %v1092_v58 = vpop.f32.mrb[21].mxu1 }
 0x130   : > { %v965_v59 = vadd.f32 %v8440_v35, %v964_v57  ;;  %v1093_v60 = vadd.f32 %v8440_v35, %v1092_v58  ;;  %v7019_v61 = vpop.f32.mrb[22].mxu0  ;;  %v7051_v62 = vpop.f32.mrb[22].mxu1 }
 0x131   : > { %1161 = vst [vmem:[#allocation2 + $0xb0] sm:$0xff] %v973_v55  ;;  %1193 = vst [vmem:[#allocation2 + $0x1b0] sm:$0xff] %v1101_v56  ;;  %v976_v63 = vadd.f32 %v7019_v61, %v8440_v35  ;;  %v1104_v0 = vadd.f32 %v7051_v62, %v8440_v35  ;;  %v967_v1 = vpop.f32.mrb[23].mxu0  ;;  %v1095_v2 = vpop.f32.mrb[23].mxu1 }
 0x132   : > { %1159 = vst [vmem:[#allocation2 + $0xa0] sm:$0xff] %v965_v59  ;;  %1191 = vst [vmem:[#allocation2 + $0x1a0] sm:$0xff] %v1093_v60  ;;  %v968_v3 = vadd.f32 %v8440_v35, %v967_v1  ;;  %v1096_v4 = vadd.f32 %v8440_v35, %v1095_v2 }
 0x133   : > { %1162 = vst [vmem:[#allocation2 + $0xb8] sm:$0xff] %v976_v63  ;;  %1194 = vst [vmem:[#allocation2 + $0x1b8] sm:$0xff] %v1104_v0 }
 0x134   : > { %1160 = vst [vmem:[#allocation2 + $0xa8] sm:$0xff] %v968_v3  ;;  %1192 = vst [vmem:[#allocation2 + $0x1a8] sm:$0xff] %v1096_v4 }
 0x136   : > { %v7022_v5 = vpop.f32.mrb[24].mxu0  ;;  %v7054_v6 = vpop.f32.mrb[24].mxu1 }
 0x137   : > { %v989_v7 = vadd.f32 %v7022_v5, %v8440_v35  ;;  %v1117_v8 = vadd.f32 %v7054_v6, %v8440_v35  ;;  %v980_v9 = vpop.f32.mrb[25].mxu0  ;;  %v1108_v10 = vpop.f32.mrb[25].mxu1 }
 0x138   : > { %v981_v11 = vadd.f32 %v8440_v35, %v980_v9  ;;  %v1109_v12 = vadd.f32 %v8440_v35, %v1108_v10  ;;  %v7023_v13 = vpop.f32.mrb[26].mxu0  ;;  %v7055_v14 = vpop.f32.mrb[26].mxu1 }
 0x139   : > { %1165 = vst [vmem:[#allocation2 + $0xd0] sm:$0xff] %v989_v7  ;;  %1197 = vst [vmem:[#allocation2 + $0x1d0] sm:$0xff] %v1117_v8  ;;  %v992_v15 = vadd.f32 %v7023_v13, %v8440_v35  ;;  %v1120_v16 = vadd.f32 %v7055_v14, %v8440_v35  ;;  %v983_v17 = vpop.f32.mrb[27].mxu0  ;;  %v1111_v18 = vpop.f32.mrb[27].mxu1 }
 0x13a   : > { %1163 = vst [vmem:[#allocation2 + $0xc0] sm:$0xff] %v981_v11  ;;  %1195 = vst [vmem:[#allocation2 + $0x1c0] sm:$0xff] %v1109_v12  ;;  %v984_v19 = vadd.f32 %v8440_v35, %v983_v17  ;;  %v1112_v20 = vadd.f32 %v8440_v35, %v1111_v18 }
 0x13b   : > { %1166 = vst [vmem:[#allocation2 + $0xd8] sm:$0xff] %v992_v15  ;;  %1198 = vst [vmem:[#allocation2 + $0x1d8] sm:$0xff] %v1120_v16 }
 0x13c   : > { %1164 = vst [vmem:[#allocation2 + $0xc8] sm:$0xff] %v984_v19  ;;  %1196 = vst [vmem:[#allocation2 + $0x1c8] sm:$0xff] %v1112_v20 }
 0x13e   : > { %v7026_v21 = vpop.f32.mrb[28].mxu0  ;;  %v7058_v22 = vpop.f32.mrb[28].mxu1 }
 0x13f   : > { %v1005_v23 = vadd.f32 %v7026_v21, %v8440_v35  ;;  %v1133_v24 = vadd.f32 %v7058_v22, %v8440_v35  ;;  %v996_v25 = vpop.f32.mrb[29].mxu0  ;;  %v1124_v26 = vpop.f32.mrb[29].mxu1 }
 0x140   : > { %v997_v27 = vadd.f32 %v8440_v35, %v996_v25  ;;  %v1125_v28 = vadd.f32 %v8440_v35, %v1124_v26  ;;  %v7027_v29 = vpop.f32.mrb[30].mxu0  ;;  %v7059_v30 = vpop.f32.mrb[30].mxu1 }
 0x141   : > { %1169 = vst [vmem:[#allocation2 + $0xf0] sm:$0xff] %v1005_v23  ;;  %1201 = vst [vmem:[#allocation2 + $0x1f0] sm:$0xff] %v1133_v24  ;;  %v1008_v31 = vadd.f32 %v7027_v29, %v8440_v35  ;;  %v1136_v32 = vadd.f32 %v7059_v30, %v8440_v35  ;;  %v999_v33 = vpop.f32.mrb[31].mxu0  ;;  %v1127_v34 = vpop.f32.mrb[31].mxu1 }
 0x142   : > { %1167 = vst [vmem:[#allocation2 + $0xe0] sm:$0xff] %v997_v27  ;;  %1199 = vst [vmem:[#allocation2 + $0x1e0] sm:$0xff] %v1125_v28  ;;  %v1000_v36 = vadd.f32 %v8440_v35, %v999_v33  ;;  %v1128_v37 = vadd.f32 %v8440_v35, %v1127_v34 }
 0x143   : > { %1170 = vst [vmem:[#allocation2 + $0xf8] sm:$0xff] %v1008_v31  ;;  %1202 = vst [vmem:[#allocation2 + $0x1f8] sm:$0xff] %v1136_v32 }
 0x144   : > { %1168 = vst [vmem:[#allocation2 + $0xe8] sm:$0xff] %v1000_v36  ;;  %1200 = vst [vmem:[#allocation2 + $0x1e8] sm:$0xff] %v1128_v37 }
 0x145 PF: > { %v8506_v38 = vld [vmem:[#allocation2 + $0x40] sm:$0xff]  ;;  %v8512_v40 = vld [vmem:[#allocation2 + $0x48] sm:$0xff]  ;;  %v8518_v35 = vld [vmem:[#allocation2 + $0x50] sm:$0xff]  ;;  %vm2266_vm1 = vcmask 523264   ;;  %p6848_p1 = scmp.ge.s32.totalorder %s8173_s20, 1 }
 0x146   : > { %v8508_v39 = vld [vmem:[#allocation2] sm:$0xff]  ;;  %1349 = vadd.xlane.f32.xlu0 %v8506_v38  ;;  %v8514_v41 = vld [vmem:[#allocation2 + $0x8] sm:$0xff]  ;;  %v8520_v42 = vld [vmem:[#allocation2 + $0x58] sm:$0xff] }
 0x147   : > { %1333 = vadd.xlane.f32.xlu1 %v8508_v39  ;;  %v8524_v43 = vld [vmem:[#allocation2 + $0x10] sm:$0xff]  ;;  %v8526_v44 = vld [vmem:[#allocation2 + $0x18] sm:$0xff]  ;;  %v8530_v45 = vld [vmem:[#allocation2 + $0x60] sm:$0xff] }
 0x148   : > { %v8532_v46 = vld [vmem:[#allocation2 + $0x68] sm:$0xff]  ;;  %v8536_v47 = vld [vmem:[#allocation2 + $0x20] sm:$0xff]  ;;  %v8540_v49 = vld [vmem:[#allocation2 + $0x70] sm:$0xff] }
 0x149   : > { %v8538_v48 = vld [vmem:[#allocation2 + $0x28] sm:$0xff]  ;;  %v8542_v50 = vld [vmem:[#allocation2 + $0x78] sm:$0xff]  ;;  %v8546_v51 = vld [vmem:[#allocation2 + $0x30] sm:$0xff] }
 0x14a   : > { %1351 = vadd.xlane.f32.xlu0 %v8512_v40  ;;  %v8548_v52 = vld [vmem:[#allocation2 + $0x38] sm:$0xff]  ;;  %v8552_v53 = vld [vmem:[#allocation2 + $0xc0] sm:$0xff]  ;;  %v8554_v54 = vld [vmem:[#allocation2 + $0xc8] sm:$0xff] }
 0x14b   : > { %1335 = vadd.xlane.f32.xlu1 %v8514_v41  ;;  %v8558_v55 = vld [vmem:[#allocation2 + $0x80] sm:$0xff]  ;;  %v8560_v56 = vld [vmem:[#allocation2 + $0x88] sm:$0xff]  ;;  %v8566_v57 = vld [vmem:[#allocation2 + $0xd0] sm:$0xff] }
 0x14c   : > { %v8568_v58 = vld [vmem:[#allocation2 + $0xd8] sm:$0xff]  ;;  %v8572_v59 = vld [vmem:[#allocation2 + $0x90] sm:$0xff]  ;;  %v8578_v61 = vld [vmem:[#allocation2 + $0xe0] sm:$0xff] }
 0x14d   : > { %v8574_v60 = vld [vmem:[#allocation2 + $0x98] sm:$0xff]  ;;  %v8580_v62 = vld [vmem:[#allocation2 + $0xe8] sm:$0xff]  ;;  %v8584_v63 = vld [vmem:[#allocation2 + $0xa0] sm:$0xff] }
 0x14e   : > { %1353 = vadd.xlane.f32.xlu0 %v8518_v35  ;;  %v8586_v0 = vld [vmem:[#allocation2 + $0xa8] sm:$0xff]  ;;  %v8590_v1 = vld [vmem:[#allocation2 + $0xf0] sm:$0xff]  ;;  %v8592_v2 = vld [vmem:[#allocation2 + $0xf8] sm:$0xff] }
 0x14f   : > { %1355 = vadd.xlane.f32.xlu1 %v8520_v42  ;;  %v8596_v3 = vld [vmem:[#allocation2 + $0xb0] sm:$0xff]  ;;  %v8598_v4 = vld [vmem:[#allocation2 + $0xb8] sm:$0xff]  ;;  %v8602_v5 = vld [vmem:[#allocation2 + $0x140] sm:$0xff] }
 0x150   : > { %v8604_v6 = vld [vmem:[#allocation2 + $0x148] sm:$0xff]  ;;  %v8608_v7 = vld [vmem:[#allocation2 + $0x100] sm:$0xff]  ;;  %v8614_v9 = vld [vmem:[#allocation2 + $0x150] sm:$0xff] }
 0x151   : > { %v8610_v8 = vld [vmem:[#allocation2 + $0x108] sm:$0xff]  ;;  %v8616_v10 = vld [vmem:[#allocation2 + $0x158] sm:$0xff]  ;;  %v8620_v11 = vld [vmem:[#allocation2 + $0x110] sm:$0xff] }
 0x152   : > { %1337 = vadd.xlane.f32.xlu0 %v8524_v43  ;;  %v8622_v12 = vld [vmem:[#allocation2 + $0x118] sm:$0xff]  ;;  %v8626_v13 = vld [vmem:[#allocation2 + $0x160] sm:$0xff]  ;;  %v8628_v14 = vld [vmem:[#allocation2 + $0x168] sm:$0xff] }
 0x153   : > { %1339 = vadd.xlane.f32.xlu1 %v8526_v44  ;;  %v8632_v15 = vld [vmem:[#allocation2 + $0x120] sm:$0xff]  ;;  %v8634_v16 = vld [vmem:[#allocation2 + $0x128] sm:$0xff]  ;;  %v8638_v17 = vld [vmem:[#allocation2 + $0x170] sm:$0xff] }
 0x154   : > { %v8640_v18 = vld [vmem:[#allocation2 + $0x178] sm:$0xff]  ;;  %v8644_v19 = vld [vmem:[#allocation2 + $0x130] sm:$0xff]  ;;  %v8650_v21 = vld [vmem:[#allocation2 + $0x1c0] sm:$0xff] }
 0x155   : > { %v8646_v20 = vld [vmem:[#allocation2 + $0x138] sm:$0xff]  ;;  %v8652_v22 = vld [vmem:[#allocation2 + $0x1c8] sm:$0xff]  ;;  %v8656_v23 = vld [vmem:[#allocation2 + $0x180] sm:$0xff] }
 0x156   : > { %1357 = vadd.xlane.f32.xlu0 %v8530_v45  ;;  %v8658_v24 = vld [vmem:[#allocation2 + $0x188] sm:$0xff]  ;;  %v8662_v25 = vld [vmem:[#allocation2 + $0x1d0] sm:$0xff]  ;;  %v8664_v26 = vld [vmem:[#allocation2 + $0x1d8] sm:$0xff] }
 0x157   : > { %1359 = vadd.xlane.f32.xlu1 %v8532_v46  ;;  %11941 = vst [vmem:[#allocation17_spill] sm:$0xff] %v8658_v24  ;;  %11942 = vst [vmem:[#allocation18_spill] sm:$0xff] %v8662_v25  ;;  %v8668_v27 = vld [vmem:[#allocation2 + $0x190] sm:$0xff]  ;;  %v8670_v28 = vld [vmem:[#allocation2 + $0x198] sm:$0xff] }
 0x158   : > { %11943 = vst [vmem:[#allocation19_spill] sm:$0xff] %v8664_v26  ;;  %11944 = vst [vmem:[#allocation20_spill] sm:$0xff] %v8668_v27  ;;  %v8674_v29 = vld [vmem:[#allocation2 + $0x1e0] sm:$0xff]  ;;  %v8676_v30 = vld [vmem:[#allocation2 + $0x1e8] sm:$0xff] }
 0x159   : > { %11945 = vst [vmem:[#allocation21_spill] sm:$0xff] %v8670_v28  ;;  %11946 = vst [vmem:[#allocation22_spill] sm:$0xff] %v8674_v29  ;;  %v8680_v31 = vld [vmem:[#allocation2 + $0x1a0] sm:$0xff]  ;;  %v8682_v32 = vld [vmem:[#allocation2 + $0x1a8] sm:$0xff] }
 0x15a   : > { %1341 = vadd.xlane.f32.xlu0 %v8536_v47  ;;  %11947 = vst [vmem:[#allocation23_spill] sm:$0xff] %v8676_v30  ;;  %11948 = vst [vmem:[#allocation24_spill] sm:$0xff] %v8682_v32 }
 0x15b   : > { %1343 = vadd.xlane.f32.xlu1 %v8538_v48 }
 0x15e   : > { %1361 = vadd.xlane.f32.xlu0 %v8540_v49 }
 0x15f   : > { %1363 = vadd.xlane.f32.xlu1 %v8542_v50 }
 0x162   : > { %1345 = vadd.xlane.f32.xlu0 %v8546_v51 }
 0x163   : > { %1347 = vadd.xlane.f32.xlu1 %v8548_v52 }
 0x166   : > { %1381 = vadd.xlane.f32.xlu0 %v8552_v53 }
 0x167   : > { %1383 = vadd.xlane.f32.xlu1 %v8554_v54 }
 0x16a   : > { %1365 = vadd.xlane.f32.xlu0 %v8558_v55 }
 0x16b   : > { %1367 = vadd.xlane.f32.xlu1 %v8560_v56 }
 0x16e   : > { %1385 = vadd.xlane.f32.xlu0 %v8566_v57 }
 0x16f   : > { %1387 = vadd.xlane.f32.xlu1 %v8568_v58 }
 0x172   : > { %1369 = vadd.xlane.f32.xlu0 %v8572_v59 }
 0x173   : > { %1371 = vadd.xlane.f32.xlu1 %v8574_v60 }
 0x176   : > { %1389 = vadd.xlane.f32.xlu0 %v8578_v61 }
 0x177   : > { %1391 = vadd.xlane.f32.xlu1 %v8580_v62 }
 0x17a   : > { %1373 = vadd.xlane.f32.xlu0 %v8584_v63 }
 0x17b   : > { %1375 = vadd.xlane.f32.xlu1 %v8586_v0 }
 0x17e   : > { %1393 = vadd.xlane.f32.xlu0 %v8590_v1 }
 0x17f   : > { %1395 = vadd.xlane.f32.xlu1 %v8592_v2 }
 0x182   : > { %1377 = vadd.xlane.f32.xlu0 %v8596_v3 }
 0x183   : > { %1379 = vadd.xlane.f32.xlu1 %v8598_v4 }
 0x186   : > { %1413 = vadd.xlane.f32.xlu0 %v8602_v5 }
 0x187   : > { %1415 = vadd.xlane.f32.xlu1 %v8604_v6 }
 0x18a   : > { %1397 = vadd.xlane.f32.xlu0 %v8608_v7 }
 0x18b   : > { %1399 = vadd.xlane.f32.xlu1 %v8610_v8 }
 0x18e   : > { %1417 = vadd.xlane.f32.xlu0 %v8614_v9 }
 0x18f   : > { %1419 = vadd.xlane.f32.xlu1 %v8616_v10 }
 0x192   : > { %1401 = vadd.xlane.f32.xlu0 %v8620_v11 }
 0x193   : > { %1403 = vadd.xlane.f32.xlu1 %v8622_v12 }
 0x196   : > { %1421 = vadd.xlane.f32.xlu0 %v8626_v13 }
 0x197   : > { %1423 = vadd.xlane.f32.xlu1 %v8628_v14 }
 0x19a   : > { %1405 = vadd.xlane.f32.xlu0 %v8632_v15 }
 0x19b   : > { %1407 = vadd.xlane.f32.xlu1 %v8634_v16 }
 0x19e   : > { %1425 = vadd.xlane.f32.xlu0 %v8638_v17 }
 0x19f   : > { %1427 = vadd.xlane.f32.xlu1 %v8640_v18 }
 0x1a2   : > { %1409 = vadd.xlane.f32.xlu0 %v8644_v19 }
 0x1a3   : > { %1411 = vadd.xlane.f32.xlu1 %v8646_v20 }
 0x1a6   : > { %1445 = vadd.xlane.f32.xlu0 %v8650_v21 }
 0x1a7   : > { %1447 = vadd.xlane.f32.xlu1 %v8652_v22 }
 0x1aa   : > { %1429 = vadd.xlane.f32.xlu0 %v8656_v23 }
 0x1ab   : > { %1431 = vadd.xlane.f32.xlu1 %v8658_v24 }
 0x1ae   : > { %1449 = vadd.xlane.f32.xlu0 %v8662_v25 }
 0x1af   : > { %1451 = vadd.xlane.f32.xlu1 %v8664_v26 }
 0x1b2   : > { %1433 = vadd.xlane.f32.xlu0 %v8668_v27 }
 0x1b3   : > { %1435 = vadd.xlane.f32.xlu1 %v8670_v28 }
 0x1b6   : > { %1453 = vadd.xlane.f32.xlu0 %v8674_v29 }
 0x1b7   : > { %1455 = vadd.xlane.f32.xlu1 %v8676_v30 }
 0x1ba   : > { %1437 = vadd.xlane.f32.xlu0 %v8680_v31 }
 0x1bb   : > { %1439 = vadd.xlane.f32.xlu1 %v8682_v32 }
 0x1d3   : > { %v1350_v33 = vpop.xlane.xlu0 %1349 }
 0x1d4   : > { %v1334_v34 = vpop.xlane.xlu1 %1333  ;;  %v1470_v36 = vmul.f32 0.0078125, %v1350_v33 }
 0x1d5   : > { %v1462_v37 = vmul.f32 0.0078125, %v1334_v34 }
 0x1d6   : > { %v8687_v28 = vsub.f32 %v8506_v38, %v1470_v36 }
 0x1d7   : > { %v8690_v27 = vsub.f32 %v8508_v39, %v1462_v37  ;;  %v1352_v29 = vpop.xlane.xlu0 %1351 }
 0x1d8   : > { %v1336_v30 = vpop.xlane.xlu1 %1335  ;;  %v1471_v26 = vmul.f32 0.0078125, %v1352_v29  ;;  %v1598_v24 = vmul.f32 %v8687_v28, %v8687_v28 }
 0x1d9   : > { %11949 = vst [vmem:[#allocation25_spill] sm:$0xff] %v8690_v27  ;;  %v1463_v25 = vmul.f32 0.0078125, %v1336_v30  ;;  %v1590_v33 = vmul.f32 %v8690_v27, %v8690_v27 }
 0x1da   : > { %1670 = vadd.xlane.f32.xlu0 %v1598_v24  ;;  %v8695_v32 = vsub.f32 %v8512_v40, %v1471_v26 }
 0x1db   : > { %v8700_v38 = vsub.f32 %v8514_v41, %v1463_v25  ;;  %v1354_v34 = vpop.xlane.xlu0 %1353 }
 0x1dc   : > { %v1356_v39 = vpop.xlane.xlu1 %1355  ;;  %v1472_v36 = vmul.f32 0.0078125, %v1354_v34  ;;  %v1599_v29 = vmul.f32 %v8695_v32, %v8695_v32 }
 0x1dd   : > { %v1473_v37 = vmul.f32 0.0078125, %v1356_v39  ;;  %v1591_v40 = vmul.f32 %v8700_v38, %v8700_v38 }
 0x1de   : > { %1672 = vadd.xlane.f32.xlu1 %v1599_v29  ;;  %1654 = vadd.xlane.f32.xlu0 %v1590_v33  ;;  %v8705_v24 = vsub.f32 %v8518_v35, %v1472_v36 }
 0x1df   : > { %v8710_v26 = vsub.f32 %v8520_v42, %v1473_v37  ;;  %v1338_v41 = vpop.xlane.xlu0 %1337 }
 0x1e0   : > { %v1340_v25 = vpop.xlane.xlu1 %1339  ;;  %v1464_v30 = vmul.f32 0.0078125, %v1338_v41  ;;  %v1600_v34 = vmul.f32 %v8705_v24, %v8705_v24 }
 0x1e1   : > { %v1465_v27 = vmul.f32 0.0078125, %v1340_v25  ;;  %v1601_v35 = vmul.f32 %v8710_v26, %v8710_v26 }
 0x1e2   : > { %1674 = vadd.xlane.f32.xlu0 %v1600_v34  ;;  %1656 = vadd.xlane.f32.xlu1 %v1591_v40  ;;  %v8715_v33 = vsub.f32 %v8524_v43, %v1464_v30 }
 0x1e3   : > { %v8720_v39 = vsub.f32 %v8526_v44, %v1465_v27  ;;  %v1358_v42 = vpop.xlane.xlu0 %1357 }
 0x1e4   : > { %v1360_v36 = vpop.xlane.xlu1 %1359  ;;  %v1474_v29 = vmul.f32 0.0078125, %v1358_v42  ;;  %v1592_v37 = vmul.f32 %v8715_v33, %v8715_v33 }
 0x1e5   : > { %v1475_v41 = vmul.f32 0.0078125, %v1360_v36  ;;  %v1593_v43 = vmul.f32 %v8720_v39, %v8720_v39 }
 0x1e6   : > { %1658 = vadd.xlane.f32.xlu0 %v1592_v37  ;;  %1676 = vadd.xlane.f32.xlu1 %v1601_v35  ;;  %v8725_v40 = vsub.f32 %v8530_v45, %v1474_v29 }
 0x1e7   : > { %v8730_v25 = vsub.f32 %v8532_v46, %v1475_v41  ;;  %v1342_v44 = vpop.xlane.xlu0 %1341 }
 0x1e8   : > { %v1344_v27 = vpop.xlane.xlu1 %1343  ;;  %v1466_v30 = vmul.f32 0.0078125, %v1342_v44  ;;  %v1602_v34 = vmul.f32 %v8725_v40, %v8725_v40 }
 0x1e9   : > { %v1467_v42 = vmul.f32 0.0078125, %v1344_v27  ;;  %v1603_v45 = vmul.f32 %v8730_v25, %v8730_v25 }
 0x1ea   : > { %1678 = vadd.xlane.f32.xlu0 %v1602_v34  ;;  %1660 = vadd.xlane.f32.xlu1 %v1593_v43  ;;  %v8735_v35 = vsub.f32 %v8536_v47, %v1466_v30 }
 0x1eb   : > { %v8740_v36 = vsub.f32 %v8538_v48, %v1467_v42  ;;  %v1362_v46 = vpop.xlane.xlu0 %1361 }
 0x1ec   : > { %v1364_v29 = vpop.xlane.xlu1 %1363  ;;  %v1476_v37 = vmul.f32 0.0078125, %v1362_v46  ;;  %v1594_v41 = vmul.f32 %v8735_v35, %v8735_v35 }
 0x1ed   : > { %11950 = vst [vmem:[#allocation26_spill] sm:$0xff] %v8740_v36  ;;  %v1477_v44 = vmul.f32 0.0078125, %v1364_v29  ;;  %v1595_v47 = vmul.f32 %v8740_v36, %v8740_v36 }
 0x1ee   : > { %1662 = vadd.xlane.f32.xlu0 %v1594_v41  ;;  %1680 = vadd.xlane.f32.xlu1 %v1603_v45  ;;  %v8745_v43 = vsub.f32 %v8540_v49, %v1476_v37 }
 0x1ef   : > { %v8750_v27 = vsub.f32 %v8542_v50, %v1477_v44  ;;  %v1346_v48 = vpop.xlane.xlu0 %1345 }
 0x1f0   : > { %11951 = vst [vmem:[#allocation27_spill] sm:$0xff] %v8745_v43  ;;  %v1348_v30 = vpop.xlane.xlu1 %1347  ;;  %v1468_v34 = vmul.f32 0.0078125, %v1346_v48  ;;  %v1604_v42 = vmul.f32 %v8745_v43, %v8745_v43  ;;  %v8766_v48 = vld [vmem:[#allocation2 + $0x1f0] sm:$0xff] }
 0x1f1   : > { %11952 = vst [vmem:[#allocation28_spill] sm:$0xff] %v8750_v27  ;;  %v1469_v46 = vmul.f32 0.0078125, %v1348_v30  ;;  %v1605_v49 = vmul.f32 %v8750_v27, %v8750_v27 }
 0x1f2   : > { %1682 = vadd.xlane.f32.xlu0 %v1604_v42  ;;  %1664 = vadd.xlane.f32.xlu1 %v1595_v47  ;;  %v8755_v45 = vsub.f32 %v8546_v51, %v1468_v34 }
 0x1f3   : > { %v8760_v29 = vsub.f32 %v8548_v52, %v1469_v46  ;;  %v1382_v50 = vpop.xlane.xlu0 %1381  ;;  %v8772_v46 = vld [vmem:[#allocation2 + $0x1b0] sm:$0xff] }
 0x1f4   : > { %11953 = vst [vmem:[#allocation29_spill] sm:$0xff] %v8755_v45  ;;  %v1384_v37 = vpop.xlane.xlu1 %1383  ;;  %v1596_v41 = vmul.f32 %v8755_v45, %v8755_v45  ;;  %v1486_v47 = vmul.f32 0.0078125, %v1382_v50 }
 0x1f5   : > { %11954 = vst [vmem:[#allocation30_spill] sm:$0xff] %v8760_v29  ;;  %v1597_v44 = vmul.f32 %v8760_v29, %v8760_v29  ;;  %v1487_v34 = vmul.f32 0.0078125, %v1384_v37 }
 0x1f6   : > { %1666 = vadd.xlane.f32.xlu0 %v1596_v41  ;;  %1684 = vadd.xlane.f32.xlu1 %v1605_v49  ;;  %v8770_v42 = vsub.f32 %v8552_v53, %v1486_v47  ;;  %v8774_v41 = vld [vmem:[#allocation2 + $0x1f8] sm:$0xff] }
 0x1f7   : > { %v1366_v51 = vpop.xlane.xlu0 %1365  ;;  %11956 = vst [vmem:[#allocation32_spill] sm:$0xff] %v8774_v41  ;;  %v8777_v50 = vsub.f32 %v8554_v54, %v1487_v34  ;;  %v8786_v47 = vld [vmem:[#allocation2 + $0x1b8] sm:$0xff] }
 0x1f8   : > { %v1368_v30 = vpop.xlane.xlu1 %1367  ;;  %v1478_v52 = vmul.f32 0.0078125, %v1366_v51  ;;  %11955 = vst [vmem:[#allocation31_spill] sm:$0xff] %v8770_v42  ;;  %v1614_v37 = vmul.f32 %v8770_v42, %v8770_v42 }
 0x1f9   : > { %v1479_v51 = vmul.f32 0.0078125, %v1368_v30  ;;  %v1615_v54 = vmul.f32 %v8777_v50, %v8777_v50 }
 0x1fa   : > { %1457 = vadd.xlane.f32.xlu0 %v8766_v48  ;;  %1668 = vadd.xlane.f32.xlu1 %v1597_v44  ;;  %v8784_v53 = vsub.f32 %v8558_v55, %v1478_v52 }
 0x1fb   : > { %v1386_v49 = vpop.xlane.xlu0 %1385  ;;  %v8797_v55 = vsub.f32 %v8560_v56, %v1479_v51 }
 0x1fc   : > { %v1388_v27 = vpop.xlane.xlu1 %1387  ;;  %v1488_v44 = vmul.f32 0.0078125, %v1386_v49  ;;  %v1606_v43 = vmul.f32 %v8784_v53, %v8784_v53 }
 0x1fd   : > { %v1489_v34 = vmul.f32 0.0078125, %v1388_v27  ;;  %11957 = vst [vmem:[#allocation33_spill] sm:$0xff] %v8797_v55 }
 0x1fe   : > { %1441 = vadd.xlane.f32.xlu0 %v8772_v46  ;;  %1459 = vadd.xlane.f32.xlu1 %v8774_v41  ;;  %v8794_v30 = vsub.f32 %v8566_v57, %v1488_v44 }
 0x1ff   : > { %v1370_v29 = vpop.xlane.xlu0 %1369  ;;  %v8800_v41 = vsub.f32 %v8568_v58, %v1489_v34 }
 0x200   : > { %v1372_v45 = vpop.xlane.xlu1 %1371  ;;  %v1480_v42 = vmul.f32 0.0078125, %v1370_v29  ;;  %v1616_v27 = vmul.f32 %v8794_v30, %v8794_v30  ;;  %v1607_v29 = vmul.f32 %v8797_v55, %v8797_v55 }
 0x201   : > { %v1481_v36 = vmul.f32 0.0078125, %v1372_v45  ;;  %v1617_v45 = vmul.f32 %v8800_v41, %v8800_v41 }
 0x202   : > { %1702 = vadd.xlane.f32.xlu0 %v1614_v37  ;;  %1443 = vadd.xlane.f32.xlu1 %v8786_v47  ;;  %v8807_v57 = vsub.f32 %v8572_v59, %v1480_v42 }
 0x203   : > { %v1390_v52 = vpop.xlane.xlu0 %1389  ;;  %v8812_v58 = vsub.f32 %v8574_v60, %v1481_v36 }
 0x204   : > { %v1392_v49 = vpop.xlane.xlu1 %1391  ;;  %v1490_v37 = vmul.f32 0.0078125, %v1390_v52 }
 0x205   : > { %v1609_v52 = vmul.f32 %v8812_v58, %v8812_v58 }
 0x206   : > { %1686 = vadd.xlane.f32.xlu0 %v1606_v43  ;;  %1704 = vadd.xlane.f32.xlu1 %v1615_v54  ;;  %v1608_v43 = vmul.f32 %v8807_v57, %v8807_v57  ;;  %v1491_v54 = vmul.f32 0.0078125, %v1392_v49  ;;  %v8817_v34 = vsub.f32 %v8578_v61, %v1490_v37 }
 0x207   : > { %v1374_v56 = vpop.xlane.xlu0 %1373 }
 0x208   : > { %v1376_v44 = vpop.xlane.xlu1 %1375  ;;  %v1482_v51 = vmul.f32 0.0078125, %v1374_v56  ;;  %v1618_v60 = vmul.f32 %v8817_v34, %v8817_v34  ;;  %v8827_v49 = vsub.f32 %v8580_v62, %v1491_v54 }
 0x209   : > { %v1483_v55 = vmul.f32 0.0078125, %v1376_v44 }
 0x20a   : > { %1706 = vadd.xlane.f32.xlu0 %v1616_v27  ;;  %1688 = vadd.xlane.f32.xlu1 %v1607_v29  ;;  %v8824_v27 = vsub.f32 %v8584_v63, %v1482_v51 }
 0x20b   : > { %v1394_v59 = vpop.xlane.xlu0 %1393  ;;  %v8830_v56 = vsub.f32 %v8586_v0, %v1483_v55 }
 0x20c   : > { %v1396_v42 = vpop.xlane.xlu1 %1395  ;;  %v1492_v36 = vmul.f32 0.0078125, %v1394_v59  ;;  %v1610_v44 = vmul.f32 %v8824_v27, %v8824_v27 }
 0x20d   : > { %v1493_v37 = vmul.f32 0.0078125, %v1396_v42  ;;  %v1611_v54 = vmul.f32 %v8830_v56, %v8830_v56 }
 0x20e   : > { %1690 = vadd.xlane.f32.xlu0 %v1608_v43  ;;  %1708 = vadd.xlane.f32.xlu1 %v1617_v45  ;;  %v1619_v45 = vmul.f32 %v8827_v49, %v8827_v49  ;;  %v8837_v63 = vsub.f32 %v8590_v1, %v1492_v36 }
 0x20f   : > { %v1378_v61 = vpop.xlane.xlu0 %1377  ;;  %v8842_v0 = vsub.f32 %v8592_v2, %v1493_v37 }
 0x210   : > { %v1380_v29 = vpop.xlane.xlu1 %1379  ;;  %v1484_v43 = vmul.f32 0.0078125, %v1378_v61  ;;  %v1620_v55 = vmul.f32 %v8837_v63, %v8837_v63 }
 0x211   : > { %v1485_v42 = vmul.f32 0.0078125, %v1380_v29  ;;  %v1621_v36 = vmul.f32 %v8842_v0, %v8842_v0 }
 0x212   : > { %1710 = vadd.xlane.f32.xlu0 %v1618_v60  ;;  %1692 = vadd.xlane.f32.xlu1 %v1609_v52  ;;  %v8847_v52 = vsub.f32 %v8596_v3, %v1484_v43 }
 0x213   : > { %v1414_v62 = vpop.xlane.xlu0 %1413  ;;  %v8857_v29 = vsub.f32 %v8598_v4, %v1485_v42 }
 0x214   : > { %v1416_v51 = vpop.xlane.xlu1 %1415  ;;  %v1502_v59 = vmul.f32 0.0078125, %v1414_v62  ;;  %v1612_v2 = vmul.f32 %v8847_v52, %v8847_v52 }
 0x215   : > { %v1503_v61 = vmul.f32 0.0078125, %v1416_v51 }
 0x216   : > { %1694 = vadd.xlane.f32.xlu0 %v1610_v44  ;;  %1712 = vadd.xlane.f32.xlu1 %v1619_v45  ;;  %v8854_v44 = vsub.f32 %v8602_v5, %v1502_v59  ;;  %v1613_v5 = vmul.f32 %v8857_v29, %v8857_v29 }
 0x217   : > { %v1398_v1 = vpop.xlane.xlu0 %1397  ;;  %v8860_v62 = vsub.f32 %v8604_v6, %v1503_v61 }
 0x218   : > { %v1400_v60 = vpop.xlane.xlu1 %1399  ;;  %v1494_v37 = vmul.f32 0.0078125, %v1398_v1 }
 0x219   : > { %v1495_v43 = vmul.f32 0.0078125, %v1400_v60  ;;  %v1631_v6 = vmul.f32 %v8860_v62, %v8860_v62 }
 0x21a   : > { %1714 = vadd.xlane.f32.xlu0 %v1620_v55  ;;  %1696 = vadd.xlane.f32.xlu1 %v1611_v54  ;;  %v8863_v51 = vsub.f32 %v8608_v7, %v1494_v37  ;;  %v1630_v54 = vmul.f32 %v8854_v44, %v8854_v44  ;;  %v11756_v37 = vmov 0  }
 0x21b   : > { %v1418_v3 = vpop.xlane.xlu0 %1417  ;;  %v8870_v42 = vsub.f32 %v8610_v8, %v1495_v43  ;;  %2311 = vmatprep.mubr.bf16.mxu0 %v11756_v37  ;;  %2384 = vmatprep.mubr.bf16.mxu1 %v11756_v37 }
 0x21c   : > { %v1420_v45 = vpop.xlane.xlu1 %1419  ;;  %v1504_v55 = vmul.f32 0.0078125, %v1418_v3  ;;  %v1622_v60 = vmul.f32 %v8863_v51, %v8863_v51  ;;  %7356 = vset.pattern.permute.xlu1 %v11756_v37  ;;  %7355 = vset.pattern.permute.xlu0 %v11756_v37 }
 0x21d   : > { %v1505_v1 = vmul.f32 0.0078125, %v1420_v45 }
 0x21e   : > { %1698 = vadd.xlane.f32.xlu0 %v1612_v2  ;;  %1716 = vadd.xlane.f32.xlu1 %v1621_v36  ;;  %v8875_v7 = vsub.f32 %v8614_v9, %v1504_v55  ;;  %v1623_v9 = vmul.f32 %v8870_v42, %v8870_v42 }
 0x21f   : > { %v1402_v4 = vpop.xlane.xlu0 %1401  ;;  %v8884_v8 = vsub.f32 %v8616_v10, %v1505_v1 }
 0x220   : > { %v1404_v59 = vpop.xlane.xlu1 %1403  ;;  %v1496_v36 = vmul.f32 0.0078125, %v1402_v4  ;;  %v1632_v45 = vmul.f32 %v8875_v7, %v8875_v7 }
 0x221   : > { %v1633_v4 = vmul.f32 %v8884_v8, %v8884_v8 }
 0x222   : > { %1734 = vadd.xlane.f32.xlu0 %v1630_v54  ;;  %1700 = vadd.xlane.f32.xlu1 %v1613_v5  ;;  %v8889_v3 = vsub.f32 %v8620_v11, %v1496_v36  ;;  %v1497_v54 = vmul.f32 0.0078125, %v1404_v59 }
 0x223   : > { %v1422_v61 = vpop.xlane.xlu0 %1421 }
 0x224   : > { %v1424_v2 = vpop.xlane.xlu1 %1423  ;;  %v1506_v43 = vmul.f32 0.0078125, %v1422_v61  ;;  %v1624_v11 = vmul.f32 %v8889_v3, %v8889_v3 }
 0x225   : > { %v1507_v10 = vmul.f32 0.0078125, %v1424_v2 }
 0x226   : > { %1718 = vadd.xlane.f32.xlu0 %v1622_v60  ;;  %1736 = vadd.xlane.f32.xlu1 %v1631_v6  ;;  %v8896_v1 = vsub.f32 %v8626_v13, %v1506_v43  ;;  %v8899_v6 = vsub.f32 %v8622_v12, %v1497_v54 }
 0x227   : > { %v1406_v5 = vpop.xlane.xlu0 %1405  ;;  %v8904_v61 = vsub.f32 %v8628_v14, %v1507_v10 }
 0x228   : > { %v1408_v55 = vpop.xlane.xlu1 %1407  ;;  %v1498_v60 = vmul.f32 0.0078125, %v1406_v5  ;;  %v1634_v13 = vmul.f32 %v8896_v1, %v8896_v1  ;;  %v1625_v12 = vmul.f32 %v8899_v6, %v8899_v6 }
 0x229   : > { %v1499_v37 = vmul.f32 0.0078125, %v1408_v55  ;;  %v1635_v14 = vmul.f32 %v8904_v61, %v8904_v61 }
 0x22a   : > { %1738 = vadd.xlane.f32.xlu0 %v1632_v45  ;;  %1720 = vadd.xlane.f32.xlu1 %v1623_v9  ;;  %v8907_v2 = vsub.f32 %v8632_v15, %v1498_v60 }
 0x22b   : > { %v1426_v36 = vpop.xlane.xlu0 %1425  ;;  %v8914_v54 = vsub.f32 %v8634_v16, %v1499_v37 }
 0x22c   : > { %v1428_v59 = vpop.xlane.xlu1 %1427  ;;  %v1508_v9 = vmul.f32 0.0078125, %v1426_v36  ;;  %v1626_v5 = vmul.f32 %v8907_v2, %v8907_v2 }
 0x22d   : > { %v1627_v60 = vmul.f32 %v8914_v54, %v8914_v54 }
 0x22e   : > { %1722 = vadd.xlane.f32.xlu0 %v1624_v11  ;;  %1740 = vadd.xlane.f32.xlu1 %v1633_v4  ;;  %v8919_v15 = vsub.f32 %v8638_v17, %v1508_v9  ;;  %v1509_v4 = vmul.f32 0.0078125, %v1428_v59 }
 0x22f   : > { %v1410_v45 = vpop.xlane.xlu0 %1409 }
 0x230   : > { %v1412_v43 = vpop.xlane.xlu1 %1411  ;;  %v1500_v55 = vmul.f32 0.0078125, %v1410_v45  ;;  %v8929_v36 = vsub.f32 %v8640_v18, %v1509_v4  ;;  %v1636_v17 = vmul.f32 %v8919_v15, %v8919_v15 }
 0x231   : > { %v1501_v16 = vmul.f32 0.0078125, %v1412_v43 }
 0x232   : > { %1742 = vadd.xlane.f32.xlu0 %v1634_v13  ;;  %1724 = vadd.xlane.f32.xlu1 %v1625_v12  ;;  %v8926_v37 = vsub.f32 %v8644_v19, %v1500_v55  ;;  %v1637_v18 = vmul.f32 %v8929_v36, %v8929_v36 }
 0x233   : > { %v1446_v10 = vpop.xlane.xlu0 %1445  ;;  %v8934_v9 = vsub.f32 %v8646_v20, %v1501_v16 }
 0x234   : > { %v1448_v11 = vpop.xlane.xlu1 %1447  ;;  %11958 = vst [vmem:[#allocation34_spill] sm:$0xff] %v8926_v37  ;;  %v1518_v13 = vmul.f32 0.0078125, %v1446_v10  ;;  %v1628_v19 = vmul.f32 %v8926_v37, %v8926_v37 }
 0x235   : > { %11959 = vst [vmem:[#allocation35_spill] sm:$0xff] %v8934_v9  ;;  %v1519_v45 = vmul.f32 0.0078125, %v1448_v11  ;;  %v1629_v20 = vmul.f32 %v8934_v9, %v8934_v9 }
 0x236   : > { %1726 = vadd.xlane.f32.xlu0 %v1626_v5  ;;  %1744 = vadd.xlane.f32.xlu1 %v1635_v14  ;;  %v8937_v43 = vsub.f32 %v8650_v21, %v1518_v13 }
 0x237   : > { %v1430_v12 = vpop.xlane.xlu0 %1429  ;;  %v8944_v4 = vsub.f32 %v8652_v22, %v1519_v45 }
 0x238   : > { %v1432_v59 = vpop.xlane.xlu1 %1431  ;;  %11960 = vst [vmem:[#allocation36_spill] sm:$0xff] %v8937_v43  ;;  %v1510_v14 = vmul.f32 0.0078125, %v1430_v12  ;;  %v1646_v10 = vmul.f32 %v8937_v43, %v8937_v43  ;;  %v11963_v12 = vld [vmem:[#allocation18_spill] sm:$0xff] }
 0x239   : > { %11961 = vst [vmem:[#allocation37_spill] sm:$0xff] %v8944_v4  ;;  %v1647_v13 = vmul.f32 %v8944_v4, %v8944_v4 }
 0x23a   : > { %1746 = vadd.xlane.f32.xlu0 %v1636_v17  ;;  %1728 = vadd.xlane.f32.xlu1 %v1627_v60  ;;  %v8949_v21 = vsub.f32 %v8656_v23, %v1510_v14  ;;  %v1511_v60 = vmul.f32 0.0078125, %v1432_v59  ;;  %v11967_v59 = vld [vmem:[#allocation19_spill] sm:$0xff] }
 0x23b   : > { %v1450_v5 = vpop.xlane.xlu0 %1449 }
 0x23c   : > { %v1452_v55 = vpop.xlane.xlu1 %1451  ;;  %11962 = vst [vmem:[#allocation38_spill] sm:$0xff] %v8949_v21  ;;  %v1520_v11 = vmul.f32 0.0078125, %v1450_v5  ;;  %v1638_v23 = vmul.f32 %v8949_v21, %v8949_v21 }
 0x23d   : > { %v1521_v22 = vmul.f32 0.0078125, %v1452_v55  ;;  %v11969_v55 = vld [vmem:[#allocation20_spill] sm:$0xff] }
 0x23e   : > { %1730 = vadd.xlane.f32.xlu0 %v1628_v19  ;;  %1748 = vadd.xlane.f32.xlu1 %v1637_v18  ;;  %v8956_v45 = vsub.f32 %v11963_v12, %v1520_v11  ;;  %v11965_v19 = vld [vmem:[#allocation17_spill] sm:$0xff] }
 0x23f   : > { %v1434_v16 = vpop.xlane.xlu0 %1433  ;;  %v8959_v18 = vsub.f32 %v11965_v19, %v1511_v60  ;;  %v8964_v9 = vsub.f32 %v11967_v59, %v1521_v22 }
 0x240   : > { %v1436_v17 = vpop.xlane.xlu1 %1435  ;;  %11964 = vst [vmem:[#allocation18_spill] sm:$0xff] %v8956_v45  ;;  %v1512_v14 = vmul.f32 0.0078125, %v1434_v16  ;;  %v11971_v16 = vld [vmem:[#allocation21_spill] sm:$0xff] }
 0x241   : > { %11966 = vst [vmem:[#allocation17_spill] sm:$0xff] %v8959_v18  ;;  %11968 = vst [vmem:[#allocation19_spill] sm:$0xff] %v8964_v9  ;;  %v1513_v43 = vmul.f32 0.0078125, %v1436_v17  ;;  %v1639_v11 = vmul.f32 %v8959_v18, %v8959_v18  ;;  %v1649_v17 = vmul.f32 %v8964_v9, %v8964_v9 }
 0x242   : > { %1766 = vadd.xlane.f32.xlu0 %v1646_v10  ;;  %1732 = vadd.xlane.f32.xlu1 %v1629_v20  ;;  %v8967_v20 = vsub.f32 %v11969_v55, %v1512_v14  ;;  %v1648_v10 = vmul.f32 %v8956_v45, %v8956_v45 }
 0x243   : > { %v1454_v5 = vpop.xlane.xlu0 %1453  ;;  %v8974_v19 = vsub.f32 %v11971_v16, %v1513_v43  ;;  %v11976_v16 = vld [vmem:[#allocation23_spill] sm:$0xff] }
 0x244   : > { %v1456_v37 = vpop.xlane.xlu1 %1455  ;;  %11970 = vst [vmem:[#allocation20_spill] sm:$0xff] %v8967_v20  ;;  %v1522_v60 = vmul.f32 0.0078125, %v1454_v5 }
 0x245   : > { %11972 = vst [vmem:[#allocation21_spill] sm:$0xff] %v8974_v19  ;;  %v1523_v59 = vmul.f32 0.0078125, %v1456_v37  ;;  %v1641_v5 = vmul.f32 %v8974_v19, %v8974_v19 }
 0x246   : > { %1750 = vadd.xlane.f32.xlu0 %v1638_v23  ;;  %1768 = vadd.xlane.f32.xlu1 %v1647_v13  ;;  %v11973_v13 = vld [vmem:[#allocation22_spill] sm:$0xff]  ;;  %v1640_v23 = vmul.f32 %v8967_v20, %v8967_v20 }
 0x247   : > { %v1438_v12 = vpop.xlane.xlu0 %1437  ;;  %v8979_v22 = vsub.f32 %v11973_v13, %v1522_v60 }
 0x248   : > { %v1514_v14 = vmul.f32 0.0078125, %v1438_v12  ;;  %v1440_v55 = vpop.xlane.xlu1 %1439  ;;  %v11978_v12 = vld [vmem:[#allocation24_spill] sm:$0xff] }
 0x249   : > { %11974 = vst [vmem:[#allocation22_spill] sm:$0xff] %v8979_v22  ;;  %v1515_v60 = vmul.f32 0.0078125, %v1440_v55 }
 0x24a   : > { %1770 = vadd.xlane.f32.xlu0 %v1648_v10  ;;  %1752 = vadd.xlane.f32.xlu1 %v1639_v11  ;;  %v8986_v43 = vsub.f32 %v8680_v31, %v1514_v14  ;;  %v8989_v10 = vsub.f32 %v11976_v16, %v1523_v59  ;;  %v1650_v11 = vmul.f32 %v8979_v22, %v8979_v22  ;;  %v2038_v16 = vlaneseq }
 0x24b   : > { %v8994_v37 = vsub.f32 %v11978_v12, %v1515_v60 }
 0x24c   : > { %11975 = vst [vmem:[#allocation39_spill] sm:$0xff] %v8986_v43  ;;  %11977 = vst [vmem:[#allocation23_spill] sm:$0xff] %v8989_v10  ;;  %v1642_v13 = vmul.f32 %v8986_v43, %v8986_v43 }
 0x24d   : > { %11979 = vst [vmem:[#allocation24_spill] sm:$0xff] %v8994_v37  ;;  %v1643_v31 = vmul.f32 %v8994_v37, %v8994_v37 }
 0x24e   : > { %1754 = vadd.xlane.f32.xlu0 %v1640_v23  ;;  %1772 = vadd.xlane.f32.xlu1 %v1649_v17  ;;  %v1651_v17 = vmul.f32 %v8989_v10, %v8989_v10 }
 0x252   : > { %1774 = vadd.xlane.f32.xlu0 %v1650_v11  ;;  %1756 = vadd.xlane.f32.xlu1 %v1641_v5 }
 0x256   : > { %1758 = vadd.xlane.f32.xlu0 %v1642_v13  ;;  %1776 = vadd.xlane.f32.xlu1 %v1651_v17  ;;  %v9002_v13 = vshrl.u32 %v2038_v16, 7 }
 0x258   : > { %11980 = vst [vmem:[#allocation40_spill] sm:$0xff] %v9002_v13  ;;  %v9005_v9 = vsub.s32 0, %v9002_v13 }
 0x25a   : > { %1760 = vadd.xlane.f32.xlu1 %v1643_v31  ;;  %11981 = vst [vmem:[#allocation41_spill] sm:$0xff] %v9005_v9 }
 0x267   : > { %v1671_v23 = vpop.xlane.xlu0 %1670 }
 0x268   : > { %v1790_v14 = vmul.f32 0.0078125, %v1671_v23 }
 0x26a   : > { %v1854_v59 = vadd.f32 1e-05, %v1790_v14 }
 0x26b   : > { %v1655_v55 = vpop.xlane.xlu0 %1654  ;;  %v1673_v5 = vpop.xlane.xlu1 %1672 }
 0x26c   : > { %7381 = vrsqrt.f32 %v1854_v59  ;;  %v1782_v11 = vmul.f32 0.0078125, %v1655_v55  ;;  %v1791_v60 = vmul.f32 0.0078125, %v1673_v5  ;;  %v1267_v5 = vld [vmem:[%s8340_s19] sm:$0xf] }
 0x26e   : > { %v1846_v12 = vadd.f32 1e-05, %v1782_v11  ;;  %v1855_v43 = vadd.f32 1e-05, %v1791_v60 }
 0x26f   : > { %v1675_v22 = vpop.xlane.xlu0 %1674  ;;  %v1657_v10 = vpop.xlane.xlu1 %1656 }
 0x270   : > { %7383 = vrsqrt.f32 %v1846_v12  ;;  %v1792_v17 = vmul.f32 0.0078125, %v1675_v22  ;;  %v1783_v37 = vmul.f32 0.0078125, %v1657_v10  ;;  %v9013_v10 = vsub.s32 1, %v9002_v13 }
 0x271   : > { %7385 = vrsqrt.f32 %v1855_v43  ;;  %v9010_v43 = vrot.slane %v1267_v5, %v9005_v9 }
 0x272   : > { %v1856_v31 = vadd.f32 1e-05, %v1792_v17  ;;  %v1847_v23 = vadd.f32 1e-05, %v1783_v37  ;;  %11982 = vst [vmem:[#allocation42_spill] sm:$0xff] %v9013_v10 }
 0x273   : > { %v1659_v14 = vpop.xlane.xlu0 %1658  ;;  %v1677_v19 = vpop.xlane.xlu1 %1676 }
 0x274   : > { %7387 = vrsqrt.f32 %v1856_v31  ;;  %v1784_v59 = vmul.f32 0.0078125, %v1659_v14  ;;  %v1793_v55 = vmul.f32 0.0078125, %v1677_v19 }
 0x275   : > { %7389 = vrsqrt.f32 %v1847_v23 }
 0x276   : > { %v7382_v11 = vpop.eup %7381  ;;  %v1848_v60 = vadd.f32 1e-05, %v1784_v59  ;;  %v1857_v16 = vadd.f32 1e-05, %v1793_v55 }
 0x277   : > { %v1679_v20 = vpop.xlane.xlu0 %1678  ;;  %v1661_v12 = vpop.xlane.xlu1 %1660  ;;  %v1982_v22 = vmul.f32 %v7382_v11, %v8687_v28  ;;  %v9017_v28 = vrot.slane %v1267_v5, %v9013_v10 }
 0x278   : > { %7391 = vrsqrt.f32 %v1848_v60  ;;  %v1794_v37 = vmul.f32 0.0078125, %v1679_v20  ;;  %v1785_v17 = vmul.f32 0.0078125, %v1661_v12  ;;  %v11983_v20 = vld [vmem:[#allocation25_spill] sm:$0xff] }
 0x279   : > { %7393 = vrsqrt.f32 %v1857_v16  ;;  %v2050_v18 = vmul.f32 %v9010_v43, %v1982_v22 }
 0x27a   : > { %v7384_v19 = vpop.eup %7383  ;;  %v1858_v31 = vadd.f32 1e-05, %v1794_v37  ;;  %v1849_v23 = vadd.f32 1e-05, %v1785_v17 }
 0x27b   : > { %v7386_v14 = vpop.eup %7385  ;;  %v1663_v59 = vpop.xlane.xlu0 %1662  ;;  %v1974_v60 = vmul.f32 %v7384_v19, %v11983_v20  ;;  %v2118_v22 = vadd.f32 %v9017_v28, %v2050_v18 }
 0x27c   : > { %v1681_v55 = vpop.xlane.xlu1 %1680  ;;  %7395 = vrsqrt.f32 %v1858_v31  ;;  %v1786_v11 = vmul.f32 0.0078125, %v1663_v59  ;;  %v1983_v13 = vmul.f32 %v7386_v14, %v8695_v32 }
 0x27d   : > { %v1795_v9 = vmul.f32 0.0078125, %v1681_v55  ;;  %7397 = vrsqrt.f32 %v1849_v23  ;;  %v2042_v23 = vmul.f32 %v9010_v43, %v1974_v60 }
 0x27e   : > { %v7388_v16 = vpop.eup %7387  ;;  %v1850_v12 = vadd.f32 1e-05, %v1786_v11  ;;  %v2051_v17 = vmul.f32 %v9010_v43, %v1983_v13 }
 0x27f   : > { %v1859_v37 = vadd.f32 1e-05, %v1795_v9  ;;  %v7390_v45 = vpop.eup %7389  ;;  %v1683_v4 = vpop.xlane.xlu0 %1682  ;;  %v1984_v5 = vmul.f32 %v7388_v16, %v8705_v24 }
 0x280   : > { %v1665_v21 = vpop.xlane.xlu1 %1664  ;;  %7399 = vrsqrt.f32 %v1850_v12  ;;  %v1796_v31 = vmul.f32 0.0078125, %v1683_v4  ;;  %v2119_v32 = vadd.f32 %v9017_v28, %v2051_v17  ;;  %v1975_v19 = vmul.f32 %v7390_v45, %v8700_v38 }
 0x281   : > { %v1787_v59 = vmul.f32 0.0078125, %v1665_v21  ;;  %7401 = vrsqrt.f32 %v1859_v37  ;;  %v2052_v24 = vmul.f32 %v9010_v43, %v1984_v5  ;;  %v2110_v38 = vadd.f32 %v9017_v28, %v2042_v23 }
 0x282   : > { %v7392_v9 = vpop.eup %7391  ;;  %v1860_v14 = vadd.f32 1e-05, %v1796_v31  ;;  %v2178_v55 = vpack.c.bf16 %v2119_v32, %v2118_v22  ;;  %v2043_v18 = vmul.f32 %v9010_v43, %v1975_v19 }
 0x283   : > { %v1851_v13 = vadd.f32 1e-05, %v1787_v59  ;;  %v7394_v11 = vpop.eup %7393  ;;  %v1667_v20 = vpop.xlane.xlu0 %1666  ;;  %v1976_v60 = vmul.f32 %v7392_v9, %v8715_v33 }
 0x284   : > { %v1685_v10 = vpop.xlane.xlu1 %1684  ;;  %7403 = vrsqrt.f32 %v1860_v14  ;;  %v1788_v4 = vmul.f32 0.0078125, %v1667_v20  ;;  %2279 = vmatprep.subr.bf16.mxu0 %v2178_v55  ;;  %v1985_v16 = vmul.f32 %v7394_v11, %v8710_v26  ;;  %v2111_v45 = vadd.f32 %v9017_v28, %v2043_v18 }
 0x285   : > { %v1797_v21 = vmul.f32 0.0078125, %v1685_v10  ;;  %7405 = vrsqrt.f32 %v1851_v13  ;;  %v2120_v10 = vadd.f32 %v9017_v28, %v2052_v24  ;;  %v2044_v9 = vmul.f32 %v9010_v43, %v1976_v60 }
 0x286   : > { %v7396_v12 = vpop.eup %7395  ;;  %v1852_v37 = vadd.f32 1e-05, %v1788_v4  ;;  %v2053_v22 = vmul.f32 %v9010_v43, %v1985_v16  ;;  %v2174_v59 = vpack.c.bf16 %v2111_v45, %v2110_v38 }
 0x287   : > { %v1861_v17 = vadd.f32 1e-05, %v1797_v21  ;;  %v7398_v31 = vpop.eup %7397  ;;  %v1458_v5 = vpop.xlane.xlu0 %1457  ;;  %v1986_v26 = vmul.f32 %v7396_v12, %v8725_v40  ;;  %v2112_v45 = vadd.f32 %v9017_v28, %v2044_v9 }
 0x288   : > { %v1669_v32 = vpop.xlane.xlu1 %1668  ;;  %7407 = vrsqrt.f32 %v1852_v37  ;;  %v1524_v19 = vmul.f32 0.0078125, %v1458_v5  ;;  %v2121_v14 = vadd.f32 %v9017_v28, %v2053_v22  ;;  %2280 = vmatpush1.bf16.msra.mxu0 %v2174_v59  ;;  %v1977_v33 = vmul.f32 %v7398_v31, %v8720_v39  ;;  %v11984_v22 = vld [vmem:[#allocation32_spill] sm:$0xff] }
 0x289   : > { %v1789_v23 = vmul.f32 0.0078125, %v1669_v32  ;;  %7409 = vrsqrt.f32 %v1861_v17  ;;  %v2054_v21 = vmul.f32 %v9010_v43, %v1986_v26 }
 0x28a   : > { %v7400_v13 = vpop.eup %7399  ;;  %v9040_v55 = vsub.f32 %v8766_v48, %v1524_v19  ;;  %v2179_v20 = vpack.c.bf16 %v2121_v14, %v2120_v10  ;;  %v2045_v4 = vmul.f32 %v9010_v43, %v1977_v33  ;;  %v11985_v33 = vld [vmem:[#allocation26_spill] sm:$0xff] }
 0x28b   : > { %v1853_v11 = vadd.f32 1e-05, %v1789_v23  ;;  %v7402_v18 = vpop.eup %7401  ;;  %v1442_v24 = vpop.xlane.xlu0 %1441  ;;  %v1978_v12 = vmul.f32 %v7400_v13, %v8735_v35  ;;  %v2122_v19 = vadd.f32 %v9017_v28, %v2054_v21 }
 0x28c   : > { %v1460_v40 = vpop.xlane.xlu1 %1459  ;;  %v1516_v16 = vmul.f32 0.0078125, %v1442_v24  ;;  %2281 = vmatprep.subr.bf16.mxu0 %v2179_v20  ;;  %v1652_v39 = vmul.f32 %v9040_v55, %v9040_v55  ;;  %v2113_v48 = vadd.f32 %v9017_v28, %v2045_v4  ;;  %v1987_v60 = vmul.f32 %v7402_v18, %v8730_v25 }
 0x28d   : > { %7411 = vrsqrt.f32 %v1853_v11  ;;  %v1525_v38 = vmul.f32 0.0078125, %v1460_v40  ;;  %v2046_v13 = vmul.f32 %v9010_v43, %v1978_v12  ;;  %v11986_v11 = vld [vmem:[#allocation27_spill] sm:$0xff] }
 0x28e   : > { %v7404_v37 = vpop.eup %7403  ;;  %v9051_v17 = vsub.f32 %v8772_v46, %v1516_v16  ;;  %1778 = vadd.xlane.f32.xlu0 %v1652_v39  ;;  %v2175_v32 = vpack.c.bf16 %v2113_v48, %v2112_v45  ;;  %v2055_v26 = vmul.f32 %v9010_v43, %v1987_v60  ;;  %v11987_v45 = vld [vmem:[#allocation29_spill] sm:$0xff] }
 0x28f   : > { %v9054_v31 = vsub.f32 %v11984_v22, %v1525_v38  ;;  %v7406_v5 = vpop.eup %7405  ;;  %v1703_v59 = vpop.xlane.xlu0 %1702  ;;  %v1988_v20 = vmul.f32 %v7404_v37, %v11986_v11 }
 0x290   : > { %v1444_v10 = vpop.xlane.xlu1 %1443  ;;  %v1806_v23 = vmul.f32 0.0078125, %v1703_v59  ;;  %v1644_v35 = vmul.f32 %v9051_v17, %v9051_v17  ;;  %2282 = vmatpush1.bf16.msra.mxu0 %v2175_v32  ;;  %v2123_v14 = vadd.f32 %v9017_v28, %v2055_v26  ;;  %v1979_v9 = vmul.f32 %v7406_v5, %v11985_v33  ;;  %v11988_v5 = vld [vmem:[#allocation28_spill] sm:$0xff] }
 0x291   : > { %v1517_v25 = vmul.f32 0.0078125, %v1444_v10  ;;  %v1653_v46 = vmul.f32 %v9054_v31, %v9054_v31  ;;  %v2056_v32 = vmul.f32 %v9010_v43, %v1988_v20 }
 0x292   : > { %v7408_v18 = vpop.eup %7407  ;;  %v1870_v24 = vadd.f32 1e-05, %v1806_v23  ;;  %1762 = vadd.xlane.f32.xlu0 %v1644_v35  ;;  %v2180_v16 = vpack.c.bf16 %v2123_v14, %v2122_v19  ;;  %v2047_v39 = vmul.f32 %v9010_v43, %v1979_v9  ;;  %v11989_v14 = vld [vmem:[#allocation30_spill] sm:$0xff] }
 0x293   : > { %v9067_v40 = vsub.f32 %v8786_v47, %v1517_v25  ;;  %1780 = vadd.xlane.f32.xlu1 %v1653_v46  ;;  %v7410_v4 = vpop.eup %7409  ;;  %v1687_v21 = vpop.xlane.xlu0 %1686  ;;  %v1980_v48 = vmul.f32 %v7408_v18, %v11987_v45  ;;  %v2114_v47 = vadd.f32 %v9017_v28, %v2046_v13  ;;  %v2124_v20 = vadd.f32 %v9017_v28, %v2056_v32 }
 0x294   : > { %v1705_v38 = vpop.xlane.xlu1 %1704  ;;  %7413 = vrsqrt.f32 %v1870_v24  ;;  %v1798_v60 = vmul.f32 0.0078125, %v1687_v21  ;;  %2283 = vmatprep.subr.bf16.mxu0 %v2180_v16  ;;  %v2115_v22 = vadd.f32 %v9017_v28, %v2047_v39  ;;  %v1989_v59 = vmul.f32 %v7410_v4, %v11988_v5 }
 0x295   : > { %v1807_v12 = vmul.f32 0.0078125, %v1705_v38  ;;  %v1645_v37 = vmul.f32 %v9067_v40, %v9067_v40  ;;  %v2048_v9 = vmul.f32 %v9010_v43, %v1980_v48 }
 0x296   : > { %v1862_v26 = vadd.f32 1e-05, %v1798_v60  ;;  %v2176_v25 = vpack.c.bf16 %v2115_v22, %v2114_v47  ;;  %v2057_v46 = vmul.f32 %v9010_v43, %v1989_v59  ;;  %v9086_v59 = vld [vmem:[%s8345_s24] sm:$0xff]  }
 0x297   : > { %v7412_v10 = vpop.eup %7411  ;;  %v1871_v19 = vadd.f32 1e-05, %v1807_v12  ;;  %1764 = vadd.xlane.f32.xlu1 %v1645_v37  ;;  %v1707_v23 = vpop.xlane.xlu0 %1706  ;;  %v2116_v45 = vadd.f32 %v9017_v28, %v2048_v9 }
 0x298   : > { %v1689_v35 = vpop.xlane.xlu1 %1688  ;;  %v1981_v33 = vmul.f32 %v7412_v10, %v11989_v14  ;;  %7415 = vrsqrt.f32 %v1862_v26  ;;  %v1808_v13 = vmul.f32 0.0078125, %v1707_v23  ;;  %2284 = vmatpush1.bf16.msra.mxu0 %v2176_v25  ;;  %v2125_v18 = vadd.f32 %v9017_v28, %v2057_v46  ;;  %v11990_v26 = vld [vmem:[#allocation31_spill] sm:$0xff] }
 0x299   : > { %v1799_v11 = vmul.f32 0.0078125, %v1689_v35  ;;  %7417 = vrsqrt.f32 %v1871_v19 }
 0x29a   : > { %v2049_v24 = vmul.f32 %v9010_v43, %v1981_v33  ;;  %v1872_v4 = vadd.f32 1e-05, %v1808_v13  ;;  %v2181_v38 = vpack.c.bf16 %v2125_v18, %v2124_v20 }
 0x29b   : > { %v1863_v21 = vadd.f32 1e-05, %v1799_v11  ;;  %v1691_v16 = vpop.xlane.xlu0 %1690  ;;  %v11991_v11 = vmov 0  }
 0x29c   : > { %v1709_v39 = vpop.xlane.xlu1 %1708  ;;  %v2117_v48 = vadd.f32 %v9017_v28, %v2049_v24  ;;  %7419 = vrsqrt.f32 %v1872_v4  ;;  %v1800_v60 = vmul.f32 0.0078125, %v1691_v16  ;;  %2285 = vmatprep.subr.bf16.mxu0 %v2181_v38  ;;  %v1284_v38 = vld [vmem:[%s8350_s18] sm:$0xff] }
 0x29d   : > { %v1809_v12 = vmul.f32 0.0078125, %v1709_v39  ;;  %7421 = vrsqrt.f32 %v1863_v21  ;;  %v1285_v21 = vld [vmem:[%s8350_s18 + $0x8] sm:$0xff] }
 0x29e   : > { %v2177_v37 = vpack.c.bf16 %v2117_v48, %v2116_v45  ;;  %v7414_v47 = vpop.eup %7413  ;;  %v1864_v22 = vadd.f32 1e-05, %v1800_v60  ;;  %v9098_v60 = vld [vmem:[%s8345_s24 + $0x8] sm:$0xff]  }
 0x29f   : > { %v1873_v5 = vadd.f32 1e-05, %v1809_v12  ;;  %v1711_v32 = vpop.xlane.xlu0 %1710  ;;  %v1998_v19 = vmul.f32 %v7414_v47, %v11990_v26  ;;  %v1286_v26 = vld [vmem:[%s8350_s18 + $0x10] sm:$0xff] }
 0x2a0   : > { %2286 = vmatpush1.bf16.msra.mxu0 %v2177_v37  ;;  %v1693_v10 = vpop.xlane.xlu1 %1692  ;;  %7423 = vrsqrt.f32 %v1864_v22  ;;  %v1810_v23 = vmul.f32 0.0078125, %v1711_v32 }
 0x2a1   : > { %v1801_v25 = vmul.f32 0.0078125, %v1693_v10  ;;  %7425 = vrsqrt.f32 %v1873_v5  ;;  %v2066_v20 = vmul.f32 %v9010_v43, %v1998_v19  ;;  %v11992_v19 = vld [vmem:[#allocation33_spill] sm:$0xff] }
 0x2a2   : > { %v7416_v35 = vpop.eup %7415  ;;  %v1874_v46 = vadd.f32 1e-05, %v1810_v23 }
 0x2a3   : > { %v1865_v14 = vadd.f32 1e-05, %v1801_v25  ;;  %6796 = vmatmul.mubr.msk.bf16.vlgmr.msra.gmra.mrb[0].mxu0 %vm2266_vm1, %v9086_v59  ;;  %v7418_v33 = vpop.eup %7417  ;;  %v1695_v9 = vpop.xlane.xlu0 %1694  ;;  %v1990_v16 = vmul.f32 %v7416_v35, %v8784_v53  ;;  %v2134_v5 = vadd.f32 %v9017_v28, %v2066_v20  ;;  %v1293_v35 = vld [vmem:[%s8350_s18 + $0x48] sm:$0xff] }
 0x2a4   : > { %v1713_v13 = vpop.xlane.xlu1 %1712  ;;  %2321 = vmatprep.mubr.bf16.mxu0 %v11991_v11  ;;  %7427 = vrsqrt.f32 %v1874_v46  ;;  %v1802_v18 = vmul.f32 0.0078125, %v1695_v9  ;;  %v1999_v4 = vmul.f32 %v7418_v33, %v8777_v50 }
 0x2a5   : > { %v1811_v24 = vmul.f32 0.0078125, %v1713_v13  ;;  %7429 = vrsqrt.f32 %v1865_v14  ;;  %v2058_v25 = vmul.f32 %v9010_v43, %v1990_v16 }
 0x2a6   : > { %v7420_v39 = vpop.eup %7419  ;;  %v1866_v45 = vadd.f32 1e-05, %v1802_v18  ;;  %v2067_v12 = vmul.f32 %v9010_v43, %v1999_v4 }
 0x2a7   : > { %v1875_v48 = vadd.f32 1e-05, %v1811_v24  ;;  %v7422_v37 = vpop.eup %7421  ;;  %v1715_v47 = vpop.xlane.xlu0 %1714  ;;  %v2000_v50 = vmul.f32 %v7420_v39, %v8794_v30  ;;  %v2126_v39 = vadd.f32 %v9017_v28, %v2058_v25 }
 0x2a8   : > { %v1697_v22 = vpop.xlane.xlu1 %1696  ;;  %2213 = vperm.xlu1 %7356, %v1285_v21   ;;  %7431 = vrsqrt.f32 %v1866_v45  ;;  %v1812_v53 = vmul.f32 0.0078125, %v1715_v47  ;;  %v2135_v10 = vadd.f32 %v9017_v28, %v2067_v12  ;;  %2208 = vperm.xlu0 %7355, %v1284_v38   ;;  %v1991_v23 = vmul.f32 %v7422_v37, %v11992_v19  ;;  %v1287_v38 = vld [vmem:[%s8350_s18 + $0x18] sm:$0xff] }
 0x2a9   : > { %v1803_v32 = vmul.f32 0.0078125, %v1697_v22  ;;  %7433 = vrsqrt.f32 %v1875_v48  ;;  %v2068_v24 = vmul.f32 %v9010_v43, %v2000_v50  ;;  %v1295_v12 = vld [vmem:[%s8350_s18 + $0x58] sm:$0xff] }
 0x2aa   : > { %v7424_v46 = vpop.eup %7423  ;;  %v1876_v14 = vadd.f32 1e-05, %v1812_v53  ;;  %v2186_v30 = vpack.c.bf16 %v2135_v10, %v2134_v5  ;;  %v2059_v18 = vmul.f32 %v9010_v43, %v1991_v23  ;;  %v9120_v5 = vld [vmem:[%s8345_s24 + $0x10] sm:$0xff]  }
 0x2ab   : > { %v1867_v33 = vadd.f32 1e-05, %v1803_v32  ;;  %6797 = vmatmul.mubr.msk.bf16.gmra.mrb[4].mxu0 %vm2266_vm1, %v9098_v60  ;;  %v7426_v9 = vpop.eup %7425  ;;  %v1699_v13 = vpop.xlane.xlu0 %1698  ;;  %v1992_v48 = vmul.f32 %v7424_v46, %v8807_v57 }
 0x2ac   : > { %v1717_v20 = vpop.xlane.xlu1 %1716  ;;  %2331 = vmatprep.mubr.bf16.mxu0 %v11991_v11  ;;  %2218 = vperm.xlu1 %7356, %v1286_v26   ;;  %7435 = vrsqrt.f32 %v1876_v14  ;;  %v1804_v4 = vmul.f32 0.0078125, %v1699_v13  ;;  %v2001_v16 = vmul.f32 %v7426_v9, %v8800_v41  ;;  %v2127_v45 = vadd.f32 %v9017_v28, %v2059_v18 }
 0x2ad   : > { %2352 = vmatprep.subr.bf16.mxu1 %v2186_v30  ;;  %v1813_v21 = vmul.f32 0.0078125, %v1717_v20  ;;  %2930 = vperm.xlu0 %7355, %v1293_v35   ;;  %7437 = vrsqrt.f32 %v1867_v33  ;;  %v2136_v26 = vadd.f32 %v9017_v28, %v2068_v24  ;;  %v1288_v35 = vld [vmem:[%s8350_s18 + $0x20] sm:$0xff]  ;;  %v2060_v14 = vmul.f32 %v9010_v43, %v1992_v48  ;;  %v1297_v33 = vld [vmem:[%s8350_s18 + $0x68] sm:$0xff] }
 0x2ae   : > { %v7428_v37 = vpop.eup %7427  ;;  %v1868_v47 = vadd.f32 1e-05, %v1804_v4  ;;  %v2069_v50 = vmul.f32 %v9010_v43, %v2001_v16  ;;  %v2182_v32 = vpack.c.bf16 %v2127_v45, %v2126_v39  ;;  %v1289_v39 = vld [vmem:[%s8350_s18 + $0x28] sm:$0xff] }
 0x2af   : > { %v1877_v22 = vadd.f32 1e-05, %v1813_v21  ;;  %v7430_v53 = vpop.eup %7429  ;;  %v1735_v41 = vpop.xlane.xlu0 %1734  ;;  %v2002_v19 = vmul.f32 %v7428_v37, %v8817_v34  ;;  %v2128_v45 = vadd.f32 %v9017_v28, %v2060_v14  ;;  %v1299_v37 = vld [vmem:[%s8350_s18 + $0x78] sm:$0xff] }
 0x2b0   : > { %v1701_v10 = vpop.xlane.xlu1 %1700  ;;  %2223 = vperm.xlu1 %7356, %v1287_v38   ;;  %7439 = vrsqrt.f32 %v1868_v47  ;;  %v1822_v57 = vmul.f32 0.0078125, %v1735_v41  ;;  %v2137_v25 = vadd.f32 %v9017_v28, %v2069_v50  ;;  %2353 = vmatpush1.bf16.msra.mxu1 %v2182_v32  ;;  %v1993_v46 = vmul.f32 %v7430_v53, %v8812_v58  ;;  %v9142_v53 = vld [vmem:[%s8345_s24 + $0x18] sm:$0xff]  }
 0x2b1   : > { %v1805_v23 = vmul.f32 0.0078125, %v1701_v10  ;;  %2940 = vperm.xlu0 %7355, %v1295_v12   ;;  %7441 = vrsqrt.f32 %v1877_v22  ;;  %v2070_v58 = vmul.f32 %v9010_v43, %v2002_v19 }
 0x2b2   : > { %v7432_v30 = vpop.eup %7431  ;;  %v1886_v9 = vadd.f32 1e-05, %v1822_v57  ;;  %v2187_v34 = vpack.c.bf16 %v2137_v25, %v2136_v26  ;;  %v2061_v4 = vmul.f32 %v9010_v43, %v1993_v46 }
 0x2b3   : > { %v1869_v13 = vadd.f32 1e-05, %v1805_v23  ;;  %6798 = vmatmul.mubr.msk.bf16.gmra.mrb[8].mxu0 %vm2266_vm1, %v9120_v5  ;;  %v7434_v20 = vpop.eup %7433  ;;  %v1719_v18 = vpop.xlane.xlu0 %1718  ;;  %v1994_v12 = vmul.f32 %v7432_v30, %v8824_v27  ;;  %v2138_v19 = vadd.f32 %v9017_v28, %v2070_v58 }
 0x2b4   : > { %v1737_v24 = vpop.xlane.xlu1 %1736  ;;  %2341 = vmatprep.mubr.bf16.mxu0 %v11991_v11  ;;  %2228 = vperm.xlu1 %7356, %v1288_v35   ;;  %7443 = vrsqrt.f32 %v1886_v9  ;;  %v1814_v21 = vmul.f32 0.0078125, %v1719_v18  ;;  %v2003_v38 = vmul.f32 %v7434_v20, %v8827_v49  ;;  %v2129_v48 = vadd.f32 %v9017_v28, %v2061_v4  ;;  %v1290_v35 = vld [vmem:[%s8350_s18 + $0x30] sm:$0xff] }
 0x2b5   : > { %2354 = vmatprep.subr.bf16.mxu1 %v2187_v34  ;;  %v1823_v16 = vmul.f32 0.0078125, %v1737_v24  ;;  %2950 = vperm.xlu0 %7355, %v1297_v33   ;;  %7445 = vrsqrt.f32 %v1869_v13  ;;  %v2062_v14 = vmul.f32 %v9010_v43, %v1994_v12 }
 0x2b6   : > { %v7436_v47 = vpop.eup %7435  ;;  %v1878_v22 = vadd.f32 1e-05, %v1814_v21  ;;  %v2071_v41 = vmul.f32 %v9010_v43, %v2003_v38  ;;  %v2183_v10 = vpack.c.bf16 %v2129_v48, %v2128_v45  ;;  %v1291_v21 = vld [vmem:[%s8350_s18 + $0x38] sm:$0xff] }
 0x2b7   : > { %v1887_v50 = vadd.f32 1e-05, %v1823_v16  ;;  %v7438_v32 = vpop.eup %7437  ;;  %v1739_v49 = vpop.xlane.xlu0 %1738  ;;  %v2004_v57 = vmul.f32 %v7436_v47, %v8837_v63  ;;  %v2130_v16 = vadd.f32 %v9017_v28, %v2062_v14 }
 0x2b8   : > { %v1721_v26 = vpop.xlane.xlu1 %1720  ;;  %2233 = vperm.xlu1 %7356, %v1289_v39   ;;  %7447 = vrsqrt.f32 %v1878_v22  ;;  %v1824_v27 = vmul.f32 0.0078125, %v1739_v49  ;;  %v2139_v25 = vadd.f32 %v9017_v28, %v2071_v41  ;;  %2355 = vmatpush1.bf16.msra.mxu1 %v2183_v10  ;;  %v1995_v46 = vmul.f32 %v7438_v32, %v8830_v56 }
 0x2b9   : > { %v1815_v23 = vmul.f32 0.0078125, %v1721_v26  ;;  %2960 = vperm.xlu0 %7355, %v1299_v37   ;;  %7449 = vrsqrt.f32 %v1887_v50  ;;  %v2072_v24 = vmul.f32 %v9010_v43, %v2004_v57  ;;  %v1292_v26 = vld [vmem:[%s8350_s18 + $0x40] sm:$0xff] }
 0x2ba   : > { %v7440_v33 = vpop.eup %7439  ;;  %v1888_v30 = vadd.f32 1e-05, %v1824_v27  ;;  %v2188_v63 = vpack.c.bf16 %v2139_v25, %v2138_v19  ;;  %v2063_v18 = vmul.f32 %v9010_v43, %v1995_v46 }
 0x2bb   : > { %v1879_v9 = vadd.f32 1e-05, %v1815_v23  ;;  %6799 = vmatmul.mubr.msk.bf16.gmra.mrb[12].mxu0 %vm2266_vm1, %v9142_v53  ;;  %v7442_v13 = vpop.eup %7441  ;;  %v1723_v34 = vpop.xlane.xlu0 %1722  ;;  %v1996_v39 = vmul.f32 %v7440_v33, %v8847_v52 }
 0x2bc   : > { %v1741_v20 = vpop.xlane.xlu1 %1740  ;;  %2457 = vmatprep.mubr.bf16.mxu0 %v11991_v11  ;;  %2238 = vperm.xlu1 %7356, %v1290_v35   ;;  %7451 = vrsqrt.f32 %v1888_v30  ;;  %v1816_v56 = vmul.f32 0.0078125, %v1723_v34  ;;  %v2005_v58 = vmul.f32 %v7442_v13, %v8842_v0  ;;  %v2131_v38 = vadd.f32 %v9017_v28, %v2063_v18  ;;  %v1294_v13 = vld [vmem:[%s8350_s18 + $0x50] sm:$0xff] }
 0x2bd   : > { %2356 = vmatprep.subr.bf16.mxu1 %v2188_v63  ;;  %v1825_v4 = vmul.f32 0.0078125, %v1741_v20  ;;  %7453 = vrsqrt.f32 %v1879_v9  ;;  %v2140_v0 = vadd.f32 %v9017_v28, %v2072_v24  ;;  %v2064_v57 = vmul.f32 %v9010_v43, %v1996_v39 }
 0x2be   : > { %v7444_v45 = vpop.eup %7443  ;;  %v1880_v48 = vadd.f32 1e-05, %v1816_v56  ;;  %v2073_v37 = vmul.f32 %v9010_v43, %v2005_v58  ;;  %v2184_v50 = vpack.c.bf16 %v2131_v38, %v2130_v16 }
 0x2bf   : > { %v1889_v12 = vadd.f32 1e-05, %v1825_v4  ;;  %v7446_v47 = vpop.eup %7445  ;;  %v1743_v22 = vpop.xlane.xlu0 %1742  ;;  %v2014_v32 = vmul.f32 %v7444_v45, %v8854_v44  ;;  %v2132_v34 = vadd.f32 %v9017_v28, %v2064_v57 }
 0x2c0   : > { %v1725_v41 = vpop.xlane.xlu1 %1724  ;;  %2243 = vperm.xlu1 %7356, %v1291_v21   ;;  %7455 = vrsqrt.f32 %v1880_v48  ;;  %v1826_v49 = vmul.f32 0.0078125, %v1743_v22  ;;  %v2141_v52 = vadd.f32 %v9017_v28, %v2073_v37  ;;  %2357 = vmatpush1.bf16.msra.mxu1 %v2184_v50  ;;  %v1997_v19 = vmul.f32 %v7446_v47, %v8857_v29  ;;  %v1296_v37 = vld [vmem:[%s8350_s18 + $0x60] sm:$0xff] }
 0x2c1   : > { %v1817_v10 = vmul.f32 0.0078125, %v1725_v41  ;;  %7457 = vrsqrt.f32 %v1889_v12  ;;  %v2082_v30 = vmul.f32 %v9010_v43, %v2014_v32 }
 0x2c2   : > { %v7448_v27 = vpop.eup %7447  ;;  %v1890_v23 = vadd.f32 1e-05, %v1826_v49  ;;  %v2189_v35 = vpack.c.bf16 %v2141_v52, %v2140_v0  ;;  %v2065_v33 = vmul.f32 %v9010_v43, %v1997_v19 }
 0x2c3   : > { %v1881_v25 = vadd.f32 1e-05, %v1817_v10  ;;  %v7450_v46 = vpop.eup %7449  ;;  %v1727_v44 = vpop.xlane.xlu0 %1726  ;;  %v2006_v18 = vmul.f32 %v7448_v27, %v8863_v51  ;;  %v1298_v27 = vld [vmem:[%s8350_s18 + $0x70] sm:$0xff] }
 0x2c4   : > { %v1745_v14 = vpop.xlane.xlu1 %1744  ;;  %2925 = vperm.xlu1 %7356, %v1292_v26   ;;  %7459 = vrsqrt.f32 %v1890_v23  ;;  %v1818_v9 = vmul.f32 0.0078125, %v1727_v44  ;;  %2358 = vmatprep.subr.bf16.mxu1 %v2189_v35  ;;  %v2015_v29 = vmul.f32 %v7450_v46, %v8860_v62  ;;  %v2133_v20 = vadd.f32 %v9017_v28, %v2065_v33 }
 0x2c5   : > { %v1827_v63 = vmul.f32 0.0078125, %v1745_v14  ;;  %7461 = vrsqrt.f32 %v1881_v25  ;;  %v2150_v62 = vadd.f32 %v9017_v28, %v2082_v30  ;;  %v2074_v22 = vmul.f32 %v9010_v43, %v2006_v18 }
 0x2c6   : > { %v7452_v24 = vpop.eup %7451  ;;  %v1882_v56 = vadd.f32 1e-05, %v1818_v9  ;;  %v2083_v58 = vmul.f32 %v9010_v43, %v2015_v29  ;;  %v2185_v38 = vpack.c.bf16 %v2133_v20, %v2132_v34 }
 0x2c7   : > { %v1891_v4 = vadd.f32 1e-05, %v1827_v63  ;;  %v7454_v21 = vpop.eup %7453  ;;  %v1747_v16 = vpop.xlane.xlu0 %1746  ;;  %v2016_v45 = vmul.f32 %v7452_v24, %v8875_v7  ;;  %v2142_v23 = vadd.f32 %v9017_v28, %v2074_v22 }
 0x2c8   : > { %v1729_v39 = vpop.xlane.xlu1 %1728  ;;  %2935 = vperm.xlu1 %7356, %v1294_v13   ;;  %7463 = vrsqrt.f32 %v1882_v56  ;;  %v1828_v48 = vmul.f32 0.0078125, %v1747_v16  ;;  %v2151_v51 = vadd.f32 %v9017_v28, %v2083_v58  ;;  %2359 = vmatpush1.bf16.msra.mxu1 %v2185_v38  ;;  %v2007_v47 = vmul.f32 %v7454_v21, %v8870_v42 }
 0x2c9   : > { %v1819_v12 = vmul.f32 0.0078125, %v1729_v39  ;;  %7465 = vrsqrt.f32 %v1891_v4  ;;  %v2084_v26 = vmul.f32 %v9010_v43, %v2016_v45 }
 0x2ca   : > { %v7456_v50 = vpop.eup %7455  ;;  %v1892_v41 = vadd.f32 1e-05, %v1828_v48  ;;  %v2194_v32 = vpack.c.bf16 %v2151_v51, %v2150_v62  ;;  %v2075_v52 = vmul.f32 %v9010_v43, %v2007_v47 }
 0x2cb   : > { %v1883_v0 = vadd.f32 1e-05, %v1819_v12  ;;  %v7458_v49 = vpop.eup %7457  ;;  %v1731_v7 = vpop.xlane.xlu0 %1730  ;;  %6800 = vmatmul.mubr.msk.bf16.vlgmr.msra.gmra.mrb[0].mxu1 %vm2266_vm1, %v9086_v59  ;;  %v2008_v35 = vmul.f32 %v7456_v50, %v8889_v3 }
 0x2cc   : > { %v1749_v10 = vpop.xlane.xlu1 %1748  ;;  %2945 = vperm.xlu1 %7356, %v1296_v37   ;;  %7467 = vrsqrt.f32 %v1892_v41  ;;  %v1820_v42 = vmul.f32 0.0078125, %v1731_v7  ;;  %2425 = vmatprep.subr.bf16.mxu0 %v2194_v32  ;;  %v2017_v57 = vmul.f32 %v7458_v49, %v8884_v8  ;;  %v2143_v25 = vadd.f32 %v9017_v28, %v2075_v52 }
 0x2cd   : > { %v1829_v19 = vmul.f32 0.0078125, %v1749_v10  ;;  %7469 = vrsqrt.f32 %v1883_v0  ;;  %2394 = vmatprep.mubr.bf16.mxu1 %v11991_v11  ;;  %v2152_v8 = vadd.f32 %v9017_v28, %v2084_v26  ;;  %v2076_v24 = vmul.f32 %v9010_v43, %v2008_v35 }
 0x2ce   : > { %v7460_v46 = vpop.eup %7459  ;;  %v1884_v44 = vadd.f32 1e-05, %v1820_v42  ;;  %v2085_v33 = vmul.f32 %v9010_v43, %v2017_v57  ;;  %v2190_v63 = vpack.c.bf16 %v2143_v25, %v2142_v23 }
 0x2cf   : > { %v1893_v14 = vadd.f32 1e-05, %v1829_v19  ;;  %v7462_v30 = vpop.eup %7461  ;;  %v1767_v9 = vpop.xlane.xlu0 %1766  ;;  %v2018_v13 = vmul.f32 %v7460_v46, %v8896_v1  ;;  %v2144_v12 = vadd.f32 %v9017_v28, %v2076_v24 }
 0x2d0   : > { %v1733_v29 = vpop.xlane.xlu1 %1732  ;;  %2955 = vperm.xlu1 %7356, %v1298_v27   ;;  %7471 = vrsqrt.f32 %v1884_v44  ;;  %v1838_v34 = vmul.f32 0.0078125, %v1767_v9  ;;  %v2153_v18 = vadd.f32 %v9017_v28, %v2085_v33  ;;  %2426 = vmatpush1.bf16.msra.mxu0 %v2190_v63  ;;  %v2009_v3 = vmul.f32 %v7462_v30, %v8899_v6 }
 0x2d1   : > { %v1821_v20 = vmul.f32 0.0078125, %v1733_v29  ;;  %7473 = vrsqrt.f32 %v1893_v14  ;;  %v2086_v62 = vmul.f32 %v9010_v43, %v2018_v13  ;;  %v11993_v29 = vld [vmem:[#allocation34_spill] sm:$0xff] }
 0x2d2   : > { %v7464_v56 = vpop.eup %7463  ;;  %v1902_v4 = vadd.f32 1e-05, %v1838_v34  ;;  %v2195_v21 = vpack.c.bf16 %v2153_v18, %v2152_v8  ;;  %v2077_v1 = vmul.f32 %v9010_v43, %v2009_v3 }
 0x2d3   : > { %v1885_v58 = vadd.f32 1e-05, %v1821_v20  ;;  %v7466_v16 = vpop.eup %7465  ;;  %v1751_v38 = vpop.xlane.xlu0 %1750  ;;  %6801 = vmatmul.mubr.msk.bf16.gmra.mrb[4].mxu1 %vm2266_vm1, %v9098_v60  ;;  %v2010_v37 = vmul.f32 %v7464_v56, %v8907_v2 }
 0x2d4   : > { %v1769_v39 = vpop.xlane.xlu1 %1768  ;;  %7475 = vrsqrt.f32 %v1902_v4  ;;  %v1830_v45 = vmul.f32 0.0078125, %v1751_v38  ;;  %2427 = vmatprep.subr.bf16.mxu0 %v2195_v21  ;;  %v2019_v48 = vmul.f32 %v7466_v16, %v8904_v61  ;;  %v2145_v51 = vadd.f32 %v9017_v28, %v2077_v1  ;;  %2404 = vmatprep.mubr.bf16.mxu1 %v11991_v11  ;;  %v11995_v1 = vld [vmem:[#allocation35_spill] sm:$0xff] }
 0x2d5   : > { %v1839_v6 = vmul.f32 0.0078125, %v1769_v39  ;;  %7477 = vrsqrt.f32 %v1885_v58  ;;  %v2154_v61 = vadd.f32 %v9017_v28, %v2086_v62  ;;  %v2078_v19 = vmul.f32 %v9010_v43, %v2010_v37  ;;  %v11994_v58 = vld [vmem:[#allocation36_spill] sm:$0xff] }
 0x2d6   : > { %v7468_v47 = vpop.eup %7467  ;;  %v1894_v22 = vadd.f32 1e-05, %v1830_v45  ;;  %v2087_v41 = vmul.f32 %v9010_v43, %v2019_v48  ;;  %v2191_v49 = vpack.c.bf16 %v2145_v51, %v2144_v12 }
 0x2d7   : > { %v1903_v50 = vadd.f32 1e-05, %v1839_v6  ;;  %v7470_v0 = vpop.eup %7469  ;;  %v1771_v32 = vpop.xlane.xlu0 %1770  ;;  %v2020_v10 = vmul.f32 %v7468_v47, %v8919_v15  ;;  %v2146_v9 = vadd.f32 %v9017_v28, %v2078_v19 }
 0x2d8   : > { %v1753_v7 = vpop.xlane.xlu1 %1752  ;;  %7479 = vrsqrt.f32 %v1894_v22  ;;  %v1840_v52 = vmul.f32 0.0078125, %v1771_v32  ;;  %v2155_v42 = vadd.f32 %v9017_v28, %v2087_v41  ;;  %2428 = vmatpush1.bf16.msra.mxu0 %v2191_v49  ;;  %v2011_v2 = vmul.f32 %v7470_v0, %v8914_v54  ;;  %v11996_v0 = vld [vmem:[#allocation38_spill] sm:$0xff] }
 0x2d9   : > { %v1831_v26 = vmul.f32 0.0078125, %v1753_v7  ;;  %7481 = vrsqrt.f32 %v1903_v50  ;;  %v2088_v14 = vmul.f32 %v9010_v43, %v2020_v10 }
 0x2da   : > { %v7472_v57 = vpop.eup %7471  ;;  %v1904_v27 = vadd.f32 1e-05, %v1840_v52  ;;  %v2196_v25 = vpack.c.bf16 %v2155_v42, %v2154_v61  ;;  %v2079_v15 = vmul.f32 %v9010_v43, %v2011_v2  ;;  %v11997_v61 = vld [vmem:[#allocation37_spill] sm:$0xff] }
 0x2db   : > { %v1895_v23 = vadd.f32 1e-05, %v1831_v26  ;;  %v7474_v35 = vpop.eup %7473  ;;  %v1755_v46 = vpop.xlane.xlu0 %1754  ;;  %6802 = vmatmul.mubr.msk.bf16.gmra.mrb[8].mxu1 %vm2266_vm1, %v9120_v5  ;;  %v2012_v8 = vmul.f32 %v7472_v57, %v11993_v29 }
 0x2dc   : > { %v1773_v44 = vpop.xlane.xlu1 %1772  ;;  %7483 = vrsqrt.f32 %v1904_v27  ;;  %v1832_v33 = vmul.f32 0.0078125, %v1755_v46  ;;  %2429 = vmatprep.subr.bf16.mxu0 %v2196_v25  ;;  %v2021_v30 = vmul.f32 %v7474_v35, %v8929_v36  ;;  %v2147_v63 = vadd.f32 %v9017_v28, %v2079_v15  ;;  %2414 = vmatprep.mubr.bf16.mxu1 %v11991_v11 }
 0x2dd   : > { %v1841_v54 = vmul.f32 0.0078125, %v1773_v44  ;;  %7485 = vrsqrt.f32 %v1895_v23  ;;  %v2156_v36 = vadd.f32 %v9017_v28, %v2088_v14  ;;  %v2080_v45 = vmul.f32 %v9010_v43, %v2012_v8  ;;  %v11998_v44 = vld [vmem:[#allocation18_spill] sm:$0xff] }
 0x2de   : > { %v7476_v13 = vpop.eup %7475  ;;  %v1896_v34 = vadd.f32 1e-05, %v1832_v33  ;;  %v2089_v18 = vmul.f32 %v9010_v43, %v2021_v30  ;;  %v2192_v56 = vpack.c.bf16 %v2147_v63, %v2146_v9 }
 0x2df   : > { %v1905_v20 = vadd.f32 1e-05, %v1841_v54  ;;  %v7478_v3 = vpop.eup %7477  ;;  %v1775_v24 = vpop.xlane.xlu0 %1774  ;;  %v2030_v21 = vmul.f32 %v7476_v13, %v11994_v58  ;;  %v2148_v52 = vadd.f32 %v9017_v28, %v2080_v45  ;;  %v11999_v54 = vld [vmem:[#allocation17_spill] sm:$0xff] }
 0x2e0   : > { %v1757_v4 = vpop.xlane.xlu1 %1756  ;;  %7487 = vrsqrt.f32 %v1896_v34  ;;  %v1842_v16 = vmul.f32 0.0078125, %v1775_v24  ;;  %v2157_v39 = vadd.f32 %v9017_v28, %v2089_v18  ;;  %2430 = vmatpush1.bf16.msra.mxu0 %v2192_v56  ;;  %v2013_v62 = vmul.f32 %v7478_v3, %v11995_v1  ;;  %v12001_v24 = vld [vmem:[#allocation19_spill] sm:$0xff] }
 0x2e1   : > { %v1833_v38 = vmul.f32 0.0078125, %v1757_v4  ;;  %7489 = vrsqrt.f32 %v1905_v20  ;;  %v2098_v41 = vmul.f32 %v9010_v43, %v2030_v21  ;;  %v12000_v20 = vld [vmem:[#allocation20_spill] sm:$0xff] }
 0x2e2   : > { %v7480_v6 = vpop.eup %7479  ;;  %v1906_v48 = vadd.f32 1e-05, %v1842_v16  ;;  %v2197_v51 = vpack.c.bf16 %v2157_v39, %v2156_v36  ;;  %v2081_v50 = vmul.f32 %v9010_v43, %v2013_v62  ;;  %v12002_v62 = vld [vmem:[#allocation21_spill] sm:$0xff] }
 0x2e3   : > { %v1897_v12 = vadd.f32 1e-05, %v1833_v38  ;;  %v7482_v37 = vpop.eup %7481  ;;  %v1759_v47 = vpop.xlane.xlu0 %1758  ;;  %v2022_v32 = vmul.f32 %v7480_v6, %v11996_v0  ;;  %6803 = vmatmul.mubr.msk.bf16.gmra.mrb[12].mxu1 %vm2266_vm1, %v9142_v53  ;;  %v2166_v35 = vadd.f32 %v9017_v28, %v2098_v41  ;;  %v12003_v6 = vld [vmem:[#allocation22_spill] sm:$0xff] }
 0x2e4   : > { %v1777_v22 = vpop.xlane.xlu1 %1776  ;;  %7491 = vrsqrt.f32 %v1906_v48  ;;  %v1834_v49 = vmul.f32 0.0078125, %v1759_v47  ;;  %2431 = vmatprep.subr.bf16.mxu0 %v2197_v51  ;;  %v2031_v10 = vmul.f32 %v7482_v37, %v11997_v61  ;;  %v2149_v26 = vadd.f32 %v9017_v28, %v2081_v50  ;;  %2530 = vmatprep.mubr.bf16.mxu1 %v11991_v11  ;;  %v12004_v50 = vld [vmem:[#allocation39_spill] sm:$0xff] }
 0x2e5   : > { %v1843_v7 = vmul.f32 0.0078125, %v1777_v22  ;;  %7493 = vrsqrt.f32 %v1897_v12  ;;  %v2090_v46 = vmul.f32 %v9010_v43, %v2022_v32  ;;  %v12005_v32 = vld [vmem:[#allocation23_spill] sm:$0xff] }
 0x2e6   : > { %v7484_v42 = vpop.eup %7483  ;;  %v1898_v2 = vadd.f32 1e-05, %v1834_v49  ;;  %v2099_v57 = vmul.f32 %v9010_v43, %v2031_v10  ;;  %v2193_v23 = vpack.c.bf16 %v2149_v26, %v2148_v52  ;;  %v12006_v26 = vld [vmem:[#allocation24_spill] sm:$0xff] }
 0x2e7   : > { %v1907_v19 = vadd.f32 1e-05, %v1843_v7  ;;  %v7486_v27 = vpop.eup %7485  ;;  %v2032_v15 = vmul.f32 %v7484_v42, %v11998_v44  ;;  %v2158_v34 = vadd.f32 %v9017_v28, %v2090_v46 }
 0x2e8   : > { %v1761_v25 = vpop.xlane.xlu1 %1760  ;;  %7495 = vrsqrt.f32 %v1898_v2  ;;  %v2167_v33 = vadd.f32 %v9017_v28, %v2099_v57  ;;  %v2023_v30 = vmul.f32 %v7486_v27, %v11999_v54  ;;  %2432 = vmatpush1.bf16.msra.mxu0 %v2193_v23 }
 0x2e9   : > { %v1835_v14 = vmul.f32 0.0078125, %v1761_v25  ;;  %7497 = vrsqrt.f32 %v1907_v19  ;;  %v2100_v4 = vmul.f32 %v9010_v43, %v2032_v15 }
 0x2ea   : > { %v7488_v9 = vpop.eup %7487  ;;  %v2202_v29 = vpack.c.bf16 %v2167_v33, %v2166_v35  ;;  %v2091_v8 = vmul.f32 %v9010_v43, %v2023_v30 }
 0x2eb   : > { %v1899_v63 = vadd.f32 1e-05, %v1835_v14  ;;  %v7490_v13 = vpop.eup %7489  ;;  %v2024_v18 = vmul.f32 %v7488_v9, %v12000_v20  ;;  %6804 = vmatmul.mubr.msk.bf16.vlgmr.msra.gmra.mrb[16].mxu0 %vm2266_vm1, %v9086_v59  ;;  %v2168_v39 = vadd.f32 %v9017_v28, %v2100_v4 }
 0x2ec   : > { %2498 = vmatprep.subr.bf16.mxu1 %v2202_v29  ;;  %v2159_v3 = vadd.f32 %v9017_v28, %v2091_v8  ;;  %v2033_v56 = vmul.f32 %v7490_v13, %v12001_v24  ;;  %2467 = vmatprep.mubr.bf16.mxu0 %v11991_v11 }
 0x2ed   : > { %7499 = vrsqrt.f32 %v1899_v63  ;;  %v2092_v38 = vmul.f32 %v9010_v43, %v2024_v18 }
 0x2ee   : > { %v7492_v36 = vpop.eup %7491  ;;  %v2198_v58 = vpack.c.bf16 %v2159_v3, %v2158_v34  ;;  %v2101_v21 = vmul.f32 %v9010_v43, %v2033_v56 }
 0x2ef   : > { %v7494_v16 = vpop.eup %7493  ;;  %v2034_v48 = vmul.f32 %v7492_v36, %v12003_v6  ;;  %v2160_v22 = vadd.f32 %v9017_v28, %v2092_v38 }
 0x2f0   : > { %2499 = vmatpush1.bf16.msra.mxu1 %v2198_v58  ;;  %v2169_v1 = vadd.f32 %v9017_v28, %v2101_v21  ;;  %v2025_v45 = vmul.f32 %v7494_v16, %v12002_v62 }
 0x2f1   : > { %v2102_v7 = vmul.f32 %v9010_v43, %v2034_v48 }
 0x2f2   : > { %v7496_v12 = vpop.eup %7495  ;;  %v2203_v51 = vpack.c.bf16 %v2169_v1, %v2168_v39  ;;  %v2093_v37 = vmul.f32 %v9010_v43, %v2025_v45 }
 0x2f3   : > { %v7498_v47 = vpop.eup %7497  ;;  %v2026_v41 = vmul.f32 %v7496_v12, %v12004_v50  ;;  %6805 = vmatmul.mubr.msk.bf16.gmra.mrb[20].mxu0 %vm2266_vm1, %v9098_v60  ;;  %v2170_v19 = vadd.f32 %v9017_v28, %v2102_v7 }
 0x2f4   : > { %2500 = vmatprep.subr.bf16.mxu1 %v2203_v51  ;;  %v2161_v0 = vadd.f32 %v9017_v28, %v2093_v37  ;;  %v2035_v49 = vmul.f32 %v7498_v47, %v12005_v32  ;;  %2477 = vmatprep.mubr.bf16.mxu0 %v11991_v11 }
 0x2f5   : > { %v2094_v2 = vmul.f32 %v9010_v43, %v2026_v41 }
 0x2f6   : > { %v2199_v10 = vpack.c.bf16 %v2161_v0, %v2160_v22  ;;  %v2103_v52 = vmul.f32 %v9010_v43, %v2035_v49 }
 0x2f7   : > { %v7500_v61 = vpop.eup %7499  ;;  %v2162_v25 = vadd.f32 %v9017_v28, %v2094_v2 }
 0x2f8   : > { %v2027_v42 = vmul.f32 %v7500_v61, %v12006_v26  ;;  %2501 = vmatpush1.bf16.msra.mxu1 %v2199_v10  ;;  %v2171_v57 = vadd.f32 %v9017_v28, %v2103_v52 }
 0x2fa   : > { %v2095_v27 = vmul.f32 %v9010_v43, %v2027_v42  ;;  %v2204_v23 = vpack.c.bf16 %v2171_v57, %v2170_v19 }
 0x2fb   : > { %6806 = vmatmul.mubr.msk.bf16.gmra.mrb[24].mxu0 %vm2266_vm1, %v9120_v5 }
 0x2fc   : > { %v2163_v35 = vadd.f32 %v9017_v28, %v2095_v27  ;;  %2502 = vmatprep.subr.bf16.mxu1 %v2204_v23  ;;  %2487 = vmatprep.mubr.bf16.mxu0 %v11991_v11 }
 0x2fe   : > { %v2200_v46 = vpack.c.bf16 %v2163_v35, %v2162_v25 }
 0x300   : > { %2503 = vmatpush1.bf16.msra.mxu1 %v2200_v46 }
 0x303   : > { %6807 = vmatmul.mubr.msk.bf16.gmra.mrb[28].mxu0 %vm2266_vm1, %v9142_v53 }
 0x304   : > { %3027 = vmatprep.mubr.bf16.mxu0 %v11991_v11 }
 0x31b   : > { %v1779_v44 = vpop.xlane.xlu0 %1778 }
 0x31c   : > { %v1844_v15 = vmul.f32 0.0078125, %v1779_v44 }
 0x31e   : > { %v1908_v14 = vadd.f32 1e-05, %v1844_v15 }
 0x31f   : > { %v1763_v33 = vpop.xlane.xlu0 %1762 }
 0x320   : > { %v1781_v54 = vpop.xlane.xlu1 %1780  ;;  %7501 = vrsqrt.f32 %v1908_v14  ;;  %v1836_v30 = vmul.f32 0.0078125, %v1763_v33 }
 0x321   : > { %v1845_v9 = vmul.f32 0.0078125, %v1781_v54 }
 0x322   : > { %v1900_v63 = vadd.f32 1e-05, %v1836_v30 }
 0x323   : > { %v1909_v29 = vadd.f32 1e-05, %v1845_v9 }
 0x324   : > { %v1765_v8 = vpop.xlane.xlu1 %1764  ;;  %7503 = vrsqrt.f32 %v1900_v63 }
 0x325   : > { %v1837_v13 = vmul.f32 0.0078125, %v1765_v8  ;;  %7505 = vrsqrt.f32 %v1909_v29 }
 0x327   : > { %v1901_v34 = vadd.f32 1e-05, %v1837_v13 }
 0x329   : > { %7507 = vrsqrt.f32 %v1901_v34 }
 0x32a   : > { %v7502_v20 = vpop.eup %7501 }
 0x32b   : > { %v2036_v18 = vmul.f32 %v7502_v20, %v9040_v55 }
 0x32d   : > { %v2104_v36 = vmul.f32 %v9010_v43, %v2036_v18 }
 0x32e   : > { %v7504_v3 = vpop.eup %7503 }
 0x32f   : > { %v7506_v24 = vpop.eup %7505  ;;  %v2028_v56 = vmul.f32 %v7504_v3, %v9051_v17  ;;  %v2172_v39 = vadd.f32 %v9017_v28, %v2104_v36 }
 0x330   : > { %v2037_v4 = vmul.f32 %v7506_v24, %v9054_v31 }
 0x331   : > { %v2096_v38 = vmul.f32 %v9010_v43, %v2028_v56 }
 0x332   : > { %v2105_v21 = vmul.f32 %v9010_v43, %v2037_v4 }
 0x333   : > { %v7508_v58 = vpop.eup %7507  ;;  %v2164_v17 = vadd.f32 %v9017_v28, %v2096_v38 }
 0x334   : > { %v2029_v16 = vmul.f32 %v7508_v58, %v9067_v40  ;;  %v2173_v1 = vadd.f32 %v9017_v28, %v2105_v21  ;;  %v9309_v40 = vpop.permute.xlu0 %2208 }
 0x336   : > { %v2097_v55 = vmul.f32 %v9010_v43, %v2029_v16  ;;  %v2205_v62 = vpack.c.bf16 %v2173_v1, %v2172_v39  ;;  %v9305_v43 = vpop.permute.xlu1 %2213 }
 0x338   : > { %v2165_v31 = vadd.f32 %v9017_v28, %v2097_v55  ;;  %2504 = vmatprep.subr.bf16.mxu1 %v2205_v62 }
 0x33a   : > { %v2201_v45 = vpack.c.bf16 %v2165_v31, %v2164_v17  ;;  %v9307_v28 = vpop.permute.xlu1 %2218 }
 0x33c   : > { %2505 = vmatpush1.bf16.msra.mxu1 %v2201_v45 }
 0x33f   : > { %6808 = vmatmul.mubr.msk.bf16.vlgmr.msra.gmra.mrb[16].mxu1 %vm2266_vm1, %v9086_v59 }
 0x340   : > { %2540 = vmatprep.mubr.bf16.mxu1 %v11991_v11 }
 0x347   : > { %6809 = vmatmul.mubr.msk.bf16.gmra.mrb[20].mxu1 %vm2266_vm1, %v9098_v60  ;;  %v9311_v60 = vpop.permute.xlu1 %2223 }
 0x348   : > { %2550 = vmatprep.mubr.bf16.mxu1 %v11991_v11 }
 0x34b   : > { %v9317_v0 = vpop.permute.xlu1 %2228 }
 0x34f   : > { %6810 = vmatmul.mubr.msk.bf16.gmra.mrb[24].mxu1 %vm2266_vm1, %v9120_v5  ;;  %v9323_v27 = vpop.permute.xlu1 %2233 }
 0x350   : > { %2560 = vmatprep.mubr.bf16.mxu1 %v11991_v11 }
 0x353   : > { %v9328_v4 = vpop.permute.xlu1 %2238 }
 0x357   : > { %6811 = vmatmul.mubr.msk.bf16.gmra.mrb[28].mxu1 %vm2266_vm1, %v9142_v53 }
 0x358   : > { %3100 = vmatprep.mubr.bf16.mxu1 %v11991_v11 }
 0x376   : > { %v2313_v59 = vpop.f32.mrb[0].mxu0 }
 0x377   : > { %v2315_v6 = vpop.f32.mrb[1].mxu0  ;;  %v2314_v48 = vadd.f32 %v2313_v59, %v9309_v40 }
 0x378   : > { %v2317_v5 = vpop.f32.mrb[2].mxu0  ;;  %v2316_v12 = vadd.f32 %v2315_v6, %v9309_v40 }
 0x379   : > { %v2318_v51 = vadd.f32 %v2317_v5, %v9305_v43  ;;  %v2319_v53 = vpop.f32.mrb[3].mxu0  ;;  %v2635_v37 = vmul.f32 0.70710677, %v2314_v48  ;;  %v2571_v35 = vmul.f32 0.5, %v2314_v48 }
 0x37a   : > { %v2320_v47 = vadd.f32 %v2319_v53, %v9305_v43  ;;  %v2636_v22 = vmul.f32 0.70710677, %v2316_v12  ;;  %v2572_v34 = vmul.f32 0.5, %v2316_v12 }
 0x37b   : > { %v2643_v50 = vmul.f32 0.70710677, %v2318_v51  ;;  %7509 = verf.f32 %v2635_v37  ;;  %v2579_v44 = vmul.f32 0.5, %v2318_v51 }
 0x37c   : > { %v2644_v41 = vmul.f32 0.70710677, %v2320_v47  ;;  %7511 = verf.f32 %v2636_v22  ;;  %v2580_v54 = vmul.f32 0.5, %v2320_v47 }
 0x37d   : > { %7513 = verf.f32 %v2643_v50  ;;  %v9332_v50 = vpop.permute.xlu1 %2243 }
 0x37e   : > { %7515 = verf.f32 %v2644_v41  ;;  %v2323_v32 = vpop.f32.mrb[4].mxu0 }
 0x37f   : > { %v2324_v49 = vadd.f32 %v2323_v32, %v9307_v28  ;;  %v2325_v7 = vpop.f32.mrb[5].mxu0 }
 0x380   : > { %v2326_v61 = vadd.f32 %v2325_v7, %v9307_v28  ;;  %v2327_v10 = vpop.f32.mrb[6].mxu0 }
 0x381   : > { %v2651_v52 = vmul.f32 0.70710677, %v2324_v49  ;;  %v2328_v26 = vadd.f32 %v2327_v10, %v9311_v60  ;;  %v2329_v42 = vpop.f32.mrb[7].mxu0  ;;  %v2587_v1 = vmul.f32 0.5, %v2324_v49 }
 0x382   : > { %v2652_v2 = vmul.f32 0.70710677, %v2326_v61  ;;  %v2330_v19 = vadd.f32 %v2329_v42, %v9311_v60  ;;  %v2588_v31 = vmul.f32 0.5, %v2326_v61 }
 0x383   : > { %7517 = verf.f32 %v2651_v52  ;;  %v2659_v57 = vmul.f32 0.70710677, %v2328_v26  ;;  %v2595_v48 = vmul.f32 0.5, %v2328_v26 }
 0x384   : > { %7519 = verf.f32 %v2652_v2  ;;  %v2660_v23 = vmul.f32 0.70710677, %v2330_v19  ;;  %v2596_v37 = vmul.f32 0.5, %v2330_v19 }
 0x385   : > { %v7510_v25 = vpop.eup %7509  ;;  %7521 = verf.f32 %v2659_v57 }
 0x386   : > { %v7512_v46 = vpop.eup %7511  ;;  %7523 = verf.f32 %v2660_v23  ;;  %v2333_v15 = vpop.f32.mrb[8].mxu0  ;;  %v2763_v14 = vadd.f32 1.0, %v7510_v25 }
 0x387   : > { %v7514_v33 = vpop.eup %7513  ;;  %v2334_v30 = vadd.f32 %v2333_v15, %v9317_v0  ;;  %v2335_v9 = vpop.f32.mrb[9].mxu0  ;;  %v2764_v20 = vadd.f32 1.0, %v7512_v46 }
 0x388   : > { %v7516_v63 = vpop.eup %7515  ;;  %v2771_v29 = vadd.f32 1.0, %v7514_v33  ;;  %v2336_v8 = vadd.f32 %v2335_v9, %v9317_v0  ;;  %v2337_v13 = vpop.f32.mrb[10].mxu0  ;;  %v2827_v36 = vmul.f32 %v2763_v14, %v2571_v35 }
 0x389   : > { %v2772_v18 = vadd.f32 1.0, %v7516_v63  ;;  %v2667_v3 = vmul.f32 0.70710677, %v2334_v30  ;;  %v2338_v24 = vadd.f32 %v2337_v13, %v9323_v27  ;;  %v2339_v56 = vpop.f32.mrb[11].mxu0  ;;  %v2828_v62 = vmul.f32 %v2764_v20, %v2572_v34 }
 0x38a   : > { %v2835_v58 = vmul.f32 %v2771_v29, %v2579_v44  ;;  %v2668_v21 = vmul.f32 0.70710677, %v2336_v8  ;;  %v2340_v16 = vadd.f32 %v2339_v56, %v9323_v27  ;;  %v2603_v46 = vmul.f32 0.5, %v2334_v30 }
 0x38b   : > { %v2836_v38 = vmul.f32 %v2772_v18, %v2580_v54  ;;  %7525 = verf.f32 %v2667_v3  ;;  %v2675_v39 = vmul.f32 0.70710677, %v2338_v24  ;;  %v2604_v14 = vmul.f32 0.5, %v2336_v8 }
 0x38c   : > { %7527 = verf.f32 %v2668_v21  ;;  %v2676_v55 = vmul.f32 0.70710677, %v2340_v16  ;;  %v2891_v45 = vpack.c.bf16 %v2835_v58, %v2827_v36  ;;  %v2611_v29 = vmul.f32 0.5, %v2338_v24 }
 0x38d   : > { %v7518_v17 = vpop.eup %7517  ;;  %7529 = verf.f32 %v2675_v39  ;;  %v2892_v12 = vpack.c.bf16 %v2836_v38, %v2828_v62  ;;  %v2612_v20 = vmul.f32 0.5, %v2340_v16 }
 0x38e   : > { %v7520_v59 = vpop.eup %7519  ;;  %v2779_v6 = vadd.f32 1.0, %v7518_v17  ;;  %7531 = verf.f32 %v2676_v55  ;;  %v2343_v5 = vpop.f32.mrb[12].mxu0 }
 0x38f   : > { %v7522_v51 = vpop.eup %7521  ;;  %v2780_v53 = vadd.f32 1.0, %v7520_v59  ;;  %v2344_v47 = vadd.f32 %v2343_v5, %v9328_v4  ;;  %v2345_v22 = vpop.f32.mrb[13].mxu0  ;;  %2995 = vmatprep.subr.bf16.mxu0 %v2892_v12 }
 0x390   : > { %v7524_v41 = vpop.eup %7523  ;;  %v2843_v32 = vmul.f32 %v2779_v6, %v2587_v1  ;;  %v2787_v49 = vadd.f32 1.0, %v7522_v51  ;;  %v2346_v7 = vadd.f32 %v2345_v22, %v9328_v4  ;;  %v2347_v61 = vpop.f32.mrb[14].mxu0  ;;  %2996 = vmatpush1.bf16.msra.mxu0 %v2891_v45 }
 0x391   : > { %v2844_v10 = vmul.f32 %v2780_v53, %v2588_v31  ;;  %v2788_v52 = vadd.f32 1.0, %v7524_v41  ;;  %v2683_v26 = vmul.f32 0.70710677, %v2344_v47  ;;  %v2349_v42 = vpop.f32.mrb[15].mxu0  ;;  %v2348_v25 = vadd.f32 %v2347_v61, %v9332_v50 }
 0x392   : > { %v2851_v2 = vmul.f32 %v2787_v49, %v2595_v48  ;;  %v2684_v57 = vmul.f32 0.70710677, %v2346_v7  ;;  %v2350_v19 = vadd.f32 %v2349_v42, %v9332_v50  ;;  %v2620_v39 = vmul.f32 0.5, %v2346_v7 }
 0x393   : > { %v2852_v23 = vmul.f32 %v2788_v52, %v2596_v37  ;;  %7533 = verf.f32 %v2683_v26  ;;  %v2691_v54 = vmul.f32 0.70710677, %v2348_v25  ;;  %v2619_v24 = vmul.f32 0.5, %v2344_v47 }
 0x394   : > { %v2899_v35 = vpack.c.bf16 %v2851_v2, %v2843_v32  ;;  %7535 = verf.f32 %v2684_v57  ;;  %v2692_v44 = vmul.f32 0.70710677, %v2350_v19  ;;  %v2628_v16 = vmul.f32 0.5, %v2350_v19  ;;  %v9342_v19 = vld [vmem:[%s8345_s24 + $0x20] sm:$0xff]  }
 0x395   : > { %v7526_v15 = vpop.eup %7525  ;;  %v2900_v33 = vpack.c.bf16 %v2852_v23, %v2844_v10  ;;  %v2627_v59 = vmul.f32 0.5, %v2348_v25 }
 0x396   : > { %v7528_v9 = vpop.eup %7527  ;;  %v2795_v63 = vadd.f32 1.0, %v7526_v15  ;;  %7537 = verf.f32 %v2692_v44 }
 0x397   : > { %v7530_v13 = vpop.eup %7529  ;;  %v2796_v34 = vadd.f32 1.0, %v7528_v9  ;;  %2997 = vmatprep.subr.bf16.mxu0 %v2900_v33  ;;  %7539 = verf.f32 %v2691_v54 }
 0x398   : > { %v7532_v18 = vpop.eup %7531  ;;  %v2859_v3 = vmul.f32 %v2795_v63, %v2603_v46  ;;  %v2803_v56 = vadd.f32 1.0, %v7530_v13  ;;  %2998 = vmatpush1.bf16.msra.mxu0 %v2899_v35 }
 0x399   : > { %v2860_v30 = vmul.f32 %v2796_v34, %v2604_v14  ;;  %v2804_v36 = vadd.f32 1.0, %v7532_v18  ;;  %v9358_v34 = vld [vmem:[%s8345_s24 + $0x28] sm:$0xff]  }
 0x39a   : > { %v2867_v58 = vmul.f32 %v2803_v56, %v2611_v29 }
 0x39b   : > { %v2868_v21 = vmul.f32 %v2804_v36, %v2612_v20 }
 0x39c   : > { %v2907_v8 = vpack.c.bf16 %v2867_v58, %v2859_v3 }
 0x39d   : > { %v7534_v38 = vpop.eup %7533  ;;  %v2908_v1 = vpack.c.bf16 %v2868_v21, %v2860_v30 }
 0x39e   : > { %v7536_v55 = vpop.eup %7535  ;;  %v2811_v62 = vadd.f32 1.0, %v7534_v38  ;;  %v2386_v45 = vpop.f32.mrb[0].mxu1 }
 0x39f   : > { %v2812_v17 = vadd.f32 1.0, %v7536_v55  ;;  %2999 = vmatprep.subr.bf16.mxu0 %v2908_v1  ;;  %v2387_v5 = vadd.f32 %v2386_v45, %v9309_v40  ;;  %v2388_v12 = vpop.f32.mrb[1].mxu1 }
 0x3a0   : > { %v7538_v31 = vpop.eup %7537  ;;  %3000 = vmatpush1.bf16.msra.mxu0 %v2907_v8  ;;  %v2875_v53 = vmul.f32 %v2811_v62, %v2619_v24  ;;  %v2389_v37 = vadd.f32 %v2388_v12, %v9309_v40  ;;  %v2390_v22 = vpop.f32.mrb[2].mxu1 }
 0x3a1   : > { %v7540_v6 = vpop.eup %7539  ;;  %v2876_v48 = vmul.f32 %v2812_v17, %v2620_v39  ;;  %v2820_v51 = vadd.f32 1.0, %v7538_v31  ;;  %v2637_v47 = vmul.f32 0.70710677, %v2387_v5  ;;  %v2391_v32 = vadd.f32 %v2390_v22, %v9305_v43  ;;  %v2392_v49 = vpop.f32.mrb[3].mxu1 }
 0x3a2   : > { %v2819_v41 = vadd.f32 1.0, %v7540_v6  ;;  %v2638_v61 = vmul.f32 0.70710677, %v2389_v37  ;;  %v2393_v10 = vadd.f32 %v2392_v49, %v9305_v43  ;;  %v2573_v8 = vmul.f32 0.5, %v2387_v5 }
 0x3a3   : > { %v2884_v7 = vmul.f32 %v2820_v51, %v2628_v16  ;;  %7541 = verf.f32 %v2637_v47  ;;  %v2645_v26 = vmul.f32 0.70710677, %v2391_v32  ;;  %v2581_v38 = vmul.f32 0.5, %v2391_v32  ;;  %v9380_v32 = vld [vmem:[%s8345_s24 + $0x30] sm:$0xff]  }
 0x3a4   : > { %v2883_v52 = vmul.f32 %v2819_v41, %v2627_v59  ;;  %7543 = verf.f32 %v2638_v61  ;;  %v2646_v2 = vmul.f32 0.70710677, %v2393_v10  ;;  %v2574_v24 = vmul.f32 0.5, %v2389_v37 }
 0x3a5   : > { %v2916_v42 = vpack.c.bf16 %v2884_v7, %v2876_v48  ;;  %7545 = verf.f32 %v2645_v26  ;;  %v2582_v62 = vmul.f32 0.5, %v2393_v10 }
 0x3a6   : > { %v2915_v57 = vpack.c.bf16 %v2883_v52, %v2875_v53  ;;  %7547 = verf.f32 %v2646_v2  ;;  %v2396_v23 = vpop.f32.mrb[4].mxu1 }
 0x3a7   : > { %3001 = vmatprep.subr.bf16.mxu0 %v2916_v42  ;;  %v9345_v25 = vadd.f32 %v2396_v23, %v9307_v28  ;;  %v2398_v35 = vpop.f32.mrb[5].mxu1 }
 0x3a8   : > { %3002 = vmatpush1.bf16.msra.mxu0 %v2915_v57  ;;  %v9348_v46 = vadd.f32 %v2398_v35, %v9307_v28  ;;  %v2400_v44 = vpop.f32.mrb[6].mxu1 }
 0x3a9   : > { %v2653_v15 = vmul.f32 0.70710677, %v9345_v25  ;;  %v2401_v14 = vadd.f32 %v2400_v44, %v9311_v60  ;;  %v2402_v33 = vpop.f32.mrb[7].mxu1  ;;  %v2589_v57 = vmul.f32 0.5, %v9345_v25 }
 0x3aa   : > { %v2654_v54 = vmul.f32 0.70710677, %v9348_v46  ;;  %v2403_v9 = vadd.f32 %v2402_v33, %v9311_v60  ;;  %v2590_v33 = vmul.f32 0.5, %v9348_v46 }
 0x3ab   : > { %6816 = vmatmul.mubr.msk.bf16.vlgmr.msra.gmra.mrb[32].mxu0 %vm2266_vm1, %v9342_v19  ;;  %7549 = verf.f32 %v2653_v15  ;;  %v2661_v63 = vmul.f32 0.70710677, %v2401_v14  ;;  %v2597_v23 = vmul.f32 0.5, %v2401_v14 }
 0x3ac   : > { %3037 = vmatprep.mubr.bf16.mxu0 %v11991_v11  ;;  %7551 = verf.f32 %v2654_v54  ;;  %v2662_v29 = vmul.f32 0.70710677, %v2403_v9  ;;  %v2598_v54 = vmul.f32 0.5, %v2403_v9 }
 0x3ad   : > { %v7542_v13 = vpop.eup %7541  ;;  %7553 = verf.f32 %v2661_v63 }
 0x3ae   : > { %v7544_v20 = vpop.eup %7543  ;;  %v2765_v18 = vadd.f32 1.0, %v7542_v13  ;;  %7555 = verf.f32 %v2662_v29  ;;  %v2406_v3 = vpop.f32.mrb[8].mxu1 }
 0x3af   : > { %v7546_v56 = vpop.eup %7545  ;;  %v2766_v30 = vadd.f32 1.0, %v7544_v20  ;;  %v9361_v36 = vadd.f32 %v2406_v3, %v9317_v0  ;;  %v2408_v58 = vpop.f32.mrb[9].mxu1 }
 0x3b0   : > { %v7548_v21 = vpop.eup %7547  ;;  %v2773_v39 = vadd.f32 1.0, %v7546_v56  ;;  %v9364_v1 = vadd.f32 %v2408_v58, %v9317_v0  ;;  %v2410_v55 = vpop.f32.mrb[10].mxu1  ;;  %v2829_v45 = vmul.f32 %v2765_v18, %v2573_v8 }
 0x3b1   : > { %v2774_v17 = vadd.f32 1.0, %v7548_v21  ;;  %v2669_v16 = vmul.f32 0.70710677, %v9361_v36  ;;  %v2412_v31 = vpop.f32.mrb[11].mxu1  ;;  %v9371_v48 = vadd.f32 %v2410_v55, %v9323_v27  ;;  %v2830_v5 = vmul.f32 %v2766_v30, %v2574_v24 }
 0x3b2   : > { %v2837_v59 = vmul.f32 %v2773_v39, %v2581_v38  ;;  %v2670_v6 = vmul.f32 0.70710677, %v9364_v1  ;;  %v9375_v51 = vadd.f32 %v2412_v31, %v9323_v27  ;;  %v9404_v38 = vld [vmem:[%s8345_s24 + $0x38] sm:$0xff]   ;;  %v2605_v31 = vmul.f32 0.5, %v9361_v36 }
 0x3b3   : > { %6817 = vmatmul.mubr.msk.bf16.gmra.mrb[36].mxu0 %vm2266_vm1, %v9358_v34  ;;  %v2838_v12 = vmul.f32 %v2774_v17, %v2582_v62  ;;  %7557 = verf.f32 %v2669_v16  ;;  %v2677_v37 = vmul.f32 0.70710677, %v9371_v48 }
 0x3b4   : > { %3047 = vmatprep.mubr.bf16.mxu0 %v11991_v11  ;;  %v2893_v53 = vpack.c.bf16 %v2837_v59, %v2829_v45  ;;  %7559 = verf.f32 %v2670_v6  ;;  %v2678_v41 = vmul.f32 0.70710677, %v9375_v51  ;;  %v2614_v36 = vmul.f32 0.5, %v9375_v51 }
 0x3b5   : > { %v7550_v22 = vpop.eup %7549  ;;  %v2894_v47 = vpack.c.bf16 %v2838_v12, %v2830_v5  ;;  %7561 = verf.f32 %v2677_v37  ;;  %v2606_v12 = vmul.f32 0.5, %v9364_v1 }
 0x3b6   : > { %v7552_v49 = vpop.eup %7551  ;;  %v2781_v7 = vadd.f32 1.0, %v7550_v22  ;;  %v2416_v61 = vpop.f32.mrb[12].mxu1  ;;  %7563 = verf.f32 %v2678_v41 }
 0x3b7   : > { %v7554_v10 = vpop.eup %7553  ;;  %v2782_v52 = vadd.f32 1.0, %v7552_v49  ;;  %v9383_v26 = vadd.f32 %v2416_v61, %v9328_v4  ;;  %v2418_v42 = vpop.f32.mrb[13].mxu1  ;;  %3068 = vmatprep.subr.bf16.mxu1 %v2894_v47 }
 0x3b8   : > { %v7556_v2 = vpop.eup %7555  ;;  %v2789_v35 = vadd.f32 1.0, %v7554_v10  ;;  %v9387_v44 = vadd.f32 %v2418_v42, %v9328_v4  ;;  %v2420_v15 = vpop.f32.mrb[14].mxu1  ;;  %3069 = vmatpush1.bf16.msra.mxu1 %v2893_v53  ;;  %v2845_v20 = vmul.f32 %v2781_v7, %v2589_v57  ;;  %v2613_v53 = vmul.f32 0.5, %v9371_v48 }
 0x3b9   : > { %v2790_v63 = vadd.f32 1.0, %v7556_v2  ;;  %v2685_v29 = vmul.f32 0.70710677, %v9383_v26  ;;  %v2422_v13 = vpop.f32.mrb[15].mxu1  ;;  %v9395_v18 = vadd.f32 %v2420_v15, %v9332_v50  ;;  %v2846_v3 = vmul.f32 %v2782_v52, %v2590_v33 }
 0x3ba   : > { %v2853_v25 = vmul.f32 %v2789_v35, %v2597_v23  ;;  %v2686_v14 = vmul.f32 0.70710677, %v9387_v44  ;;  %v9399_v9 = vadd.f32 %v2422_v13, %v9332_v50  ;;  %v2621_v13 = vmul.f32 0.5, %v9383_v26 }
 0x3bb   : > { %6818 = vmatmul.mubr.msk.bf16.gmra.mrb[40].mxu0 %vm2266_vm1, %v9380_v32  ;;  %v2854_v46 = vmul.f32 %v2790_v63, %v2598_v54  ;;  %7565 = verf.f32 %v2685_v29  ;;  %v2693_v30 = vmul.f32 0.70710677, %v9395_v18 }
 0x3bc   : > { %3057 = vmatprep.mubr.bf16.mxu0 %v11991_v11  ;;  %v2901_v56 = vpack.c.bf16 %v2853_v25, %v2845_v20  ;;  %7567 = verf.f32 %v2686_v14  ;;  %v2694_v21 = vmul.f32 0.70710677, %v9399_v9 }
 0x3bd   : > { %v7558_v58 = vpop.eup %7557  ;;  %v2902_v8 = vpack.c.bf16 %v2854_v46, %v2846_v3  ;;  %7569 = verf.f32 %v2693_v30  ;;  %v2622_v46 = vmul.f32 0.5, %v9387_v44 }
 0x3be   : > { %v7560_v39 = vpop.eup %7559  ;;  %v2459_v55 = vpop.f32.mrb[16].mxu0  ;;  %v2797_v24 = vadd.f32 1.0, %v7558_v58  ;;  %7571 = verf.f32 %v2694_v21 }
 0x3bf   : > { %v9407_v62 = vadd.f32 %v2459_v55, %v9309_v40  ;;  %v2461_v17 = vpop.f32.mrb[17].mxu0  ;;  %3070 = vmatprep.subr.bf16.mxu1 %v2902_v8  ;;  %v7562_v16 = vpop.eup %7561  ;;  %v2798_v45 = vadd.f32 1.0, %v7560_v39  ;;  %v2630_v8 = vmul.f32 0.5, %v9399_v9 }
 0x3c0   : > { %v9411_v59 = vadd.f32 %v2461_v17, %v9309_v40  ;;  %v2463_v6 = vpop.f32.mrb[18].mxu0  ;;  %3071 = vmatpush1.bf16.msra.mxu1 %v2901_v56  ;;  %v7564_v5 = vpop.eup %7563  ;;  %v2805_v37 = vadd.f32 1.0, %v7562_v16  ;;  %v2861_v1 = vmul.f32 %v2797_v24, %v2605_v31  ;;  %v2629_v56 = vmul.f32 0.5, %v9395_v18 }
 0x3c1   : > { %v2639_v22 = vmul.f32 0.70710677, %v9407_v62  ;;  %v2465_v41 = vpop.f32.mrb[19].mxu0  ;;  %v2806_v47 = vadd.f32 1.0, %v7564_v5  ;;  %v9421_v7 = vadd.f32 %v2463_v6, %v9305_v43  ;;  %v2862_v10 = vmul.f32 %v2798_v45, %v2606_v12 }
 0x3c2   : > { %v2640_v49 = vmul.f32 0.70710677, %v9411_v59  ;;  %v2869_v61 = vmul.f32 %v2805_v37, %v2613_v53  ;;  %v9425_v48 = vadd.f32 %v2465_v41, %v9305_v43 }
 0x3c3   : > { %6819 = vmatmul.mubr.msk.bf16.gmra.mrb[44].mxu0 %vm2266_vm1, %v9404_v38  ;;  %7573 = verf.f32 %v2639_v22  ;;  %v2870_v52 = vmul.f32 %v2806_v47, %v2614_v36  ;;  %v2647_v42 = vmul.f32 0.70710677, %v9421_v7  ;;  %v2575_v47 = vmul.f32 0.5, %v9407_v62 }
 0x3c4   : > { %3173 = vmatprep.mubr.bf16.mxu0 %v11991_v11  ;;  %7575 = verf.f32 %v2640_v49  ;;  %v2909_v2 = vpack.c.bf16 %v2869_v61, %v2861_v1  ;;  %v2648_v57 = vmul.f32 0.70710677, %v9425_v48 }
 0x3c5   : > { %v7566_v51 = vpop.eup %7565  ;;  %7577 = verf.f32 %v2647_v42  ;;  %v2910_v15 = vpack.c.bf16 %v2870_v52, %v2862_v10  ;;  %v2576_v52 = vmul.f32 0.5, %v9411_v59  ;;  %v2583_v42 = vmul.f32 0.5, %v9421_v7 }
 0x3c6   : > { %v7568_v23 = vpop.eup %7567  ;;  %v2469_v35 = vpop.f32.mrb[20].mxu0  ;;  %v2813_v33 = vadd.f32 1.0, %v7566_v51  ;;  %7579 = verf.f32 %v2648_v57 }
 0x3c7   : > { %v9430_v54 = vadd.f32 %v2469_v35, %v9307_v28  ;;  %v2471_v63 = vpop.f32.mrb[21].mxu0  ;;  %v7570_v29 = vpop.eup %7569  ;;  %v2814_v20 = vadd.f32 1.0, %v7568_v23  ;;  %3072 = vmatprep.subr.bf16.mxu1 %v2910_v15  ;;  %v2584_v23 = vmul.f32 0.5, %v9425_v48 }
 0x3c8   : > { %v9434_v25 = vadd.f32 %v2471_v63, %v9307_v28  ;;  %v2473_v14 = vpop.f32.mrb[22].mxu0  ;;  %v7572_v3 = vpop.eup %7571  ;;  %v2821_v30 = vadd.f32 1.0, %v7570_v29  ;;  %3073 = vmatpush1.bf16.msra.mxu1 %v2909_v2  ;;  %v2877_v24 = vmul.f32 %v2813_v33, %v2621_v13 }
 0x3c9   : > { %v2655_v58 = vmul.f32 0.70710677, %v9430_v54  ;;  %v2475_v21 = vpop.f32.mrb[23].mxu0  ;;  %v2822_v39 = vadd.f32 1.0, %v7572_v3  ;;  %v9442_v55 = vadd.f32 %v2473_v14, %v9311_v60  ;;  %v2878_v18 = vmul.f32 %v2814_v20, %v2622_v46 }
 0x3ca   : > { %v2656_v26 = vmul.f32 0.70710677, %v9434_v25  ;;  %v2885_v17 = vmul.f32 %v2821_v30, %v2629_v56  ;;  %v9445_v44 = vadd.f32 %v2475_v21, %v9311_v60 }
 0x3cb   : > { %7581 = verf.f32 %v2655_v58  ;;  %v2886_v16 = vmul.f32 %v2822_v39, %v2630_v8  ;;  %v2663_v31 = vmul.f32 0.70710677, %v9442_v55  ;;  %v2591_v39 = vmul.f32 0.5, %v9430_v54 }
 0x3cc   : > { %7583 = verf.f32 %v2656_v26  ;;  %v2917_v6 = vpack.c.bf16 %v2885_v17, %v2877_v24  ;;  %v2664_v9 = vmul.f32 0.70710677, %v9445_v44 }
 0x3cd   : > { %v7574_v45 = vpop.eup %7573  ;;  %7585 = verf.f32 %v2663_v31  ;;  %v2918_v53 = vpack.c.bf16 %v2886_v16, %v2878_v18  ;;  %v2592_v16 = vmul.f32 0.5, %v9434_v25  ;;  %v2599_v31 = vmul.f32 0.5, %v9442_v55 }
 0x3ce   : > { %v7576_v5 = vpop.eup %7575  ;;  %v2479_v12 = vpop.f32.mrb[24].mxu0  ;;  %v2767_v37 = vadd.f32 1.0, %v7574_v45  ;;  %7587 = verf.f32 %v2664_v9 }
 0x3cf   : > { %v9450_v22 = vadd.f32 %v2479_v12, %v9317_v0  ;;  %v2481_v41 = vpop.f32.mrb[25].mxu0  ;;  %v7578_v36 = vpop.eup %7577  ;;  %v2768_v49 = vadd.f32 1.0, %v7576_v5  ;;  %3074 = vmatprep.subr.bf16.mxu1 %v2918_v53  ;;  %v2600_v5 = vmul.f32 0.5, %v9445_v44 }
 0x3d0   : > { %v9454_v1 = vadd.f32 %v2481_v41, %v9317_v0  ;;  %v2483_v61 = vpop.f32.mrb[26].mxu0  ;;  %v7580_v10 = vpop.eup %7579  ;;  %v2775_v51 = vadd.f32 1.0, %v7578_v36  ;;  %3075 = vmatpush1.bf16.msra.mxu1 %v2917_v6  ;;  %v2831_v33 = vmul.f32 %v2767_v37, %v2575_v47 }
 0x3d1   : > { %v2671_v2 = vmul.f32 0.70710677, %v9450_v22  ;;  %v2485_v57 = vpop.f32.mrb[27].mxu0  ;;  %v2776_v35 = vadd.f32 1.0, %v7580_v10  ;;  %v2484_v15 = vadd.f32 %v2483_v61, %v9323_v27  ;;  %v2832_v59 = vmul.f32 %v2768_v49, %v2576_v52 }
 0x3d2   : > { %v2672_v62 = vmul.f32 0.70710677, %v9454_v1  ;;  %v2839_v63 = vmul.f32 %v2775_v51, %v2583_v42  ;;  %v2486_v29 = vadd.f32 %v2485_v57, %v9323_v27 }
 0x3d3   : > { %7589 = verf.f32 %v2671_v2  ;;  %v2840_v13 = vmul.f32 %v2776_v35, %v2584_v23  ;;  %v2679_v7 = vmul.f32 0.70710677, %v2484_v15  ;;  %6820 = vmatmul.mubr.msk.bf16.vlgmr.msra.gmra.mrb[32].mxu1 %vm2266_vm1, %v9342_v19  ;;  %v2607_v23 = vmul.f32 0.5, %v9450_v22 }
 0x3d4   : > { %7591 = verf.f32 %v2672_v62  ;;  %v2895_v14 = vpack.c.bf16 %v2839_v63, %v2831_v33  ;;  %v2680_v48 = vmul.f32 0.70710677, %v2486_v29  ;;  %3110 = vmatprep.mubr.bf16.mxu1 %v11991_v11  ;;  %v2615_v35 = vmul.f32 0.5, %v2484_v15 }
 0x3d5   : > { %v7582_v20 = vpop.eup %7581  ;;  %7593 = verf.f32 %v2679_v7  ;;  %v2896_v56 = vpack.c.bf16 %v2840_v13, %v2832_v59  ;;  %v2608_v33 = vmul.f32 0.5, %v9454_v1  ;;  %v2616_v63 = vmul.f32 0.5, %v2486_v29 }
 0x3d6   : > { %v7584_v3 = vpop.eup %7583  ;;  %v2489_v46 = vpop.f32.mrb[28].mxu0  ;;  %v2783_v30 = vadd.f32 1.0, %v7582_v20  ;;  %7595 = verf.f32 %v2680_v48 }
 0x3d7   : > { %v2490_v58 = vadd.f32 %v2489_v46, %v9328_v4  ;;  %v2491_v21 = vpop.f32.mrb[29].mxu0  ;;  %v7586_v8 = vpop.eup %7585  ;;  %v2784_v26 = vadd.f32 1.0, %v7584_v3  ;;  %3141 = vmatprep.subr.bf16.mxu0 %v2896_v56 }
 0x3d8   : > { %v2492_v24 = vadd.f32 %v2491_v21, %v9328_v4  ;;  %v2493_v17 = vpop.f32.mrb[30].mxu0  ;;  %v7588_v18 = vpop.eup %7587  ;;  %v2791_v45 = vadd.f32 1.0, %v7586_v8  ;;  %3142 = vmatpush1.bf16.msra.mxu0 %v2895_v14  ;;  %v2847_v37 = vmul.f32 %v2783_v30, %v2591_v39 }
 0x3d9   : > { %v2687_v6 = vmul.f32 0.70710677, %v2490_v58  ;;  %v2495_v9 = vpop.f32.mrb[31].mxu0  ;;  %v2792_v12 = vadd.f32 1.0, %v7588_v18  ;;  %v2494_v54 = vadd.f32 %v2493_v17, %v9332_v50  ;;  %v2848_v47 = vmul.f32 %v2784_v26, %v2592_v16 }
 0x3da   : > { %v2688_v53 = vmul.f32 0.70710677, %v2492_v24  ;;  %v2855_v41 = vmul.f32 %v2791_v45, %v2599_v31  ;;  %v2496_v36 = vadd.f32 %v2495_v9, %v9332_v50  ;;  %v2623_v29 = vmul.f32 0.5, %v2490_v58 }
 0x3db   : > { %7597 = verf.f32 %v2687_v6  ;;  %v2856_v49 = vmul.f32 %v2792_v12, %v2600_v5  ;;  %v2695_v25 = vmul.f32 0.70710677, %v2494_v54  ;;  %6821 = vmatmul.mubr.msk.bf16.gmra.mrb[36].mxu1 %vm2266_vm1, %v9358_v34  ;;  %v2631_v21 = vmul.f32 0.5, %v2494_v54 }
 0x3dc   : > { %7599 = verf.f32 %v2688_v53  ;;  %v2903_v61 = vpack.c.bf16 %v2855_v41, %v2847_v37  ;;  %v2696_v10 = vmul.f32 0.70710677, %v2496_v36  ;;  %3120 = vmatprep.mubr.bf16.mxu1 %v11991_v11  ;;  %v2624_v39 = vmul.f32 0.5, %v2492_v24 }
 0x3dd   : > { %v7590_v55 = vpop.eup %7589  ;;  %7601 = verf.f32 %v2695_v25  ;;  %v2904_v52 = vpack.c.bf16 %v2856_v49, %v2848_v47  ;;  %v2632_v26 = vmul.f32 0.5, %v2496_v36 }
 0x3de   : > { %v7592_v44 = vpop.eup %7591  ;;  %v2799_v42 = vadd.f32 1.0, %v7590_v55  ;;  %7603 = verf.f32 %v2696_v10 }
 0x3df   : > { %v7594_v51 = vpop.eup %7593  ;;  %v2800_v2 = vadd.f32 1.0, %v7592_v44  ;;  %3143 = vmatprep.subr.bf16.mxu0 %v2904_v52 }
 0x3e0   : > { %v7596_v57 = vpop.eup %7595  ;;  %v2807_v62 = vadd.f32 1.0, %v7594_v51  ;;  %3144 = vmatpush1.bf16.msra.mxu0 %v2903_v61  ;;  %v2863_v13 = vmul.f32 %v2799_v42, %v2607_v23 }
 0x3e1   : > { %v2808_v59 = vadd.f32 1.0, %v7596_v57  ;;  %v2864_v20 = vmul.f32 %v2800_v2, %v2608_v33 }
 0x3e2   : > { %v2871_v7 = vmul.f32 %v2807_v62, %v2615_v35 }
 0x3e3   : > { %v2872_v14 = vmul.f32 %v2808_v59, %v2616_v63  ;;  %6822 = vmatmul.mubr.msk.bf16.gmra.mrb[40].mxu1 %vm2266_vm1, %v9380_v32 }
 0x3e4   : > { %v2911_v3 = vpack.c.bf16 %v2871_v7, %v2863_v13  ;;  %3130 = vmatprep.mubr.bf16.mxu1 %v11991_v11 }
 0x3e5   : > { %v7598_v48 = vpop.eup %7597  ;;  %v2912_v22 = vpack.c.bf16 %v2872_v14, %v2864_v20 }
 0x3e6   : > { %v7600_v46 = vpop.eup %7599  ;;  %v2815_v15 = vadd.f32 1.0, %v7598_v48 }
 0x3e7   : > { %v7602_v56 = vpop.eup %7601  ;;  %v2816_v30 = vadd.f32 1.0, %v7600_v46  ;;  %3145 = vmatprep.subr.bf16.mxu0 %v2912_v22 }
 0x3e8   : > { %v7604_v1 = vpop.eup %7603  ;;  %v2823_v8 = vadd.f32 1.0, %v7602_v56  ;;  %3146 = vmatpush1.bf16.msra.mxu0 %v2911_v3  ;;  %v2879_v18 = vmul.f32 %v2815_v15, %v2623_v29 }
 0x3e9   : > { %v2824_v17 = vadd.f32 1.0, %v7604_v1  ;;  %v2880_v31 = vmul.f32 %v2816_v30, %v2624_v39 }
 0x3ea   : > { %v2887_v16 = vmul.f32 %v2823_v8, %v2631_v21 }
 0x3eb   : > { %v2888_v45 = vmul.f32 %v2824_v17, %v2632_v26  ;;  %6823 = vmatmul.mubr.msk.bf16.gmra.mrb[44].mxu1 %vm2266_vm1, %v9404_v38 }
 0x3ec   : > { %v2919_v6 = vpack.c.bf16 %v2887_v16, %v2879_v18  ;;  %3246 = vmatprep.mubr.bf16.mxu1 %v11991_v11 }
 0x3ed   : > { %v2920_v9 = vpack.c.bf16 %v2888_v45, %v2880_v31 }
 0x3ef   : > { %3147 = vmatprep.subr.bf16.mxu0 %v2920_v9 }
 0x3f0   : > { %3148 = vmatpush1.bf16.msra.mxu0 %v2919_v6 }
 0x3f3   : > { %6824 = vmatmul.mubr.msk.bf16.vlgmr.msra.gmra.mrb[48].mxu0 %vm2266_vm1, %v9342_v19 }
 0x3f4   : > { %3183 = vmatprep.mubr.bf16.mxu0 %v11991_v11 }
 0x3fb   : > { %6825 = vmatmul.mubr.msk.bf16.gmra.mrb[52].mxu0 %vm2266_vm1, %v9358_v34 }
 0x3fc   : > { %3193 = vmatprep.mubr.bf16.mxu0 %v11991_v11 }
 0x403   : > { %6826 = vmatmul.mubr.msk.bf16.gmra.mrb[56].mxu0 %vm2266_vm1, %v9380_v32 }
 0x404   : > { %3203 = vmatprep.mubr.bf16.mxu0 %v11991_v11 }
 0x40b   : > { %6827 = vmatmul.mubr.msk.bf16.gmra.mrb[60].mxu0 %vm2266_vm1, %v9404_v38 }
 0x412   : > { %v2532_v58 = vpop.f32.mrb[16].mxu1 }
 0x413   : > { %v2533_v24 = vadd.f32 %v2532_v58, %v9309_v40  ;;  %v2534_v5 = vpop.f32.mrb[17].mxu1 }
 0x414   : > { %v2535_v12 = vadd.f32 %v2534_v5, %v9309_v40  ;;  %v2536_v53 = vpop.f32.mrb[18].mxu1 }
 0x415   : > { %v2641_v54 = vmul.f32 0.70710677, %v2533_v24  ;;  %v2537_v37 = vadd.f32 %v2536_v53, %v9305_v43  ;;  %v2538_v41 = vpop.f32.mrb[19].mxu1  ;;  %v2577_v14 = vmul.f32 0.5, %v2533_v24 }
 0x416   : > { %v2642_v36 = vmul.f32 0.70710677, %v2535_v12  ;;  %v2539_v47 = vadd.f32 %v2538_v41, %v9305_v43  ;;  %v2578_v22 = vmul.f32 0.5, %v2535_v12 }
 0x417   : > { %7605 = verf.f32 %v2641_v54  ;;  %v2649_v49 = vmul.f32 0.70710677, %v2537_v37  ;;  %v2585_v48 = vmul.f32 0.5, %v2537_v37 }
 0x418   : > { %7607 = verf.f32 %v2642_v36  ;;  %v2650_v25 = vmul.f32 0.70710677, %v2539_v47  ;;  %v2586_v15 = vmul.f32 0.5, %v2539_v47 }
 0x419   : > { %7609 = verf.f32 %v2649_v49 }
 0x41a   : > { %7611 = verf.f32 %v2650_v25  ;;  %v2542_v55 = vpop.f32.mrb[20].mxu1 }
 0x41b   : > { %v2543_v61 = vadd.f32 %v2542_v55, %v9307_v28  ;;  %v2544_v10 = vpop.f32.mrb[21].mxu1 }
 0x41c   : > { %v2545_v40 = vadd.f32 %v2544_v10, %v9307_v28  ;;  %v2546_v44 = vpop.f32.mrb[22].mxu1 }
 0x41d   : > { %v2657_v52 = vmul.f32 0.70710677, %v2543_v61  ;;  %v2547_v42 = vadd.f32 %v2546_v44, %v9311_v60  ;;  %v2548_v51 = vpop.f32.mrb[23].mxu1  ;;  %v2593_v41 = vmul.f32 0.5, %v2543_v61 }
 0x41e   : > { %v2658_v2 = vmul.f32 0.70710677, %v2545_v40  ;;  %v2549_v43 = vadd.f32 %v2548_v51, %v9311_v60  ;;  %v2594_v25 = vmul.f32 0.5, %v2545_v40 }
 0x41f   : > { %7613 = verf.f32 %v2657_v52  ;;  %v2665_v57 = vmul.f32 0.70710677, %v2547_v42 }
 0x420   : > { %7615 = verf.f32 %v2658_v2  ;;  %v2666_v23 = vmul.f32 0.70710677, %v2549_v43  ;;  %v2602_v55 = vmul.f32 0.5, %v2549_v43 }
 0x421   : > { %v7606_v35 = vpop.eup %7605  ;;  %7617 = verf.f32 %v2665_v57 }
 0x422   : > { %v7608_v62 = vpop.eup %7607  ;;  %v2769_v33 = vadd.f32 1.0, %v7606_v35  ;;  %7619 = verf.f32 %v2666_v23  ;;  %v2552_v63 = vpop.f32.mrb[24].mxu1 }
 0x423   : > { %v7610_v59 = vpop.eup %7609  ;;  %v2770_v28 = vadd.f32 1.0, %v7608_v62  ;;  %v9505_v13 = vadd.f32 %v2552_v63, %v9317_v0  ;;  %v2554_v7 = vpop.f32.mrb[25].mxu1 }
 0x424   : > { %v7612_v20 = vpop.eup %7611  ;;  %v2777_v60 = vadd.f32 1.0, %v7610_v59  ;;  %v9508_v3 = vadd.f32 %v2554_v7, %v9317_v0  ;;  %v2556_v46 = vpop.f32.mrb[26].mxu1  ;;  %v2833_v29 = vmul.f32 %v2769_v33, %v2577_v14 }
 0x425   : > { %v2778_v56 = vadd.f32 1.0, %v7612_v20  ;;  %v2673_v30 = vmul.f32 0.70710677, %v9505_v13  ;;  %v2558_v1 = vpop.f32.mrb[27].mxu1  ;;  %v2557_v39 = vadd.f32 %v2556_v46, %v9323_v27  ;;  %v2834_v26 = vmul.f32 %v2770_v28, %v2578_v22 }
 0x426   : > { %v2841_v21 = vmul.f32 %v2777_v60, %v2585_v48  ;;  %v2674_v8 = vmul.f32 0.70710677, %v9508_v3  ;;  %v2559_v18 = vadd.f32 %v2558_v1, %v9323_v27  ;;  %v2601_v27 = vmul.f32 0.5, %v2547_v42 }
 0x427   : > { %v2842_v17 = vmul.f32 %v2778_v56, %v2586_v15  ;;  %7621 = verf.f32 %v2673_v30  ;;  %v2681_v16 = vmul.f32 0.70710677, %v2557_v39  ;;  %v2609_v14 = vmul.f32 0.5, %v9505_v13 }
 0x428   : > { %v2897_v0 = vpack.c.bf16 %v2841_v21, %v2833_v29  ;;  %7623 = verf.f32 %v2674_v8  ;;  %v2682_v45 = vmul.f32 0.70710677, %v2559_v18  ;;  %v2617_v48 = vmul.f32 0.5, %v2557_v39 }
 0x429   : > { %v7614_v31 = vpop.eup %7613  ;;  %v2898_v6 = vpack.c.bf16 %v2842_v17, %v2834_v26  ;;  %7625 = verf.f32 %v2681_v16  ;;  %v2618_v46 = vmul.f32 0.5, %v2559_v18 }
 0x42a   : > { %v7616_v9 = vpop.eup %7615  ;;  %v2785_v58 = vadd.f32 1.0, %v7614_v31  ;;  %v2562_v24 = vpop.f32.mrb[28].mxu1  ;;  %7627 = verf.f32 %v2682_v45 }
 0x42b   : > { %v7618_v5 = vpop.eup %7617  ;;  %v2786_v12 = vadd.f32 1.0, %v7616_v9  ;;  %v2563_v53 = vadd.f32 %v2562_v24, %v9328_v4  ;;  %v2564_v54 = vpop.f32.mrb[29].mxu1  ;;  %3214 = vmatprep.subr.bf16.mxu1 %v2898_v6 }
 0x42c   : > { %v7620_v37 = vpop.eup %7619  ;;  %v2793_v36 = vadd.f32 1.0, %v7618_v5  ;;  %v2565_v47 = vadd.f32 %v2564_v54, %v9328_v4  ;;  %v2566_v49 = vpop.f32.mrb[30].mxu1  ;;  %3215 = vmatpush1.bf16.msra.mxu1 %v2897_v0  ;;  %v2849_v51 = vmul.f32 %v2785_v58, %v2593_v41 }
 0x42d   : > { %v2794_v10 = vadd.f32 1.0, %v7620_v37  ;;  %v2689_v44 = vmul.f32 0.70710677, %v2563_v53  ;;  %v2568_v52 = vpop.f32.mrb[31].mxu1  ;;  %v2567_v23 = vadd.f32 %v2566_v49, %v9332_v50  ;;  %v2850_v35 = vmul.f32 %v2786_v12, %v2594_v25 }
 0x42e   : > { %v2857_v2 = vmul.f32 %v2793_v36, %v2601_v27  ;;  %v2690_v57 = vmul.f32 0.70710677, %v2565_v47  ;;  %v2569_v61 = vadd.f32 %v2568_v52, %v9332_v50  ;;  %v2610_v50 = vmul.f32 0.5, %v9508_v3  ;;  %v7893_v36 = vld [vmem:[#allocation2] sm:$0xff] }
 0x42f   : > { %v2858_v62 = vmul.f32 %v2794_v10, %v2602_v55  ;;  %7629 = verf.f32 %v2689_v44  ;;  %v2697_v4 = vmul.f32 0.70710677, %v2567_v23  ;;  %v2625_v13 = vmul.f32 0.5, %v2563_v53  ;;  %v9531_v53 = vpop.permute.xlu1 %2925 }
 0x430   : > { %v2905_v42 = vpack.c.bf16 %v2857_v2, %v2849_v51  ;;  %7631 = verf.f32 %v2690_v57  ;;  %v2698_v63 = vmul.f32 0.70710677, %v2569_v61  ;;  %v2633_v39 = vmul.f32 0.5, %v2567_v23 }
 0x431   : > { %v7622_v33 = vpop.eup %7621  ;;  %v2906_v40 = vpack.c.bf16 %v2858_v62, %v2850_v35  ;;  %7633 = verf.f32 %v2697_v4  ;;  %v2626_v3 = vmul.f32 0.5, %v2565_v47  ;;  %v2634_v18 = vmul.f32 0.5, %v2569_v61  ;;  %v9556_v61 = vpop.permute.xlu0 %2930 }
 0x432   : > { %v7624_v43 = vpop.eup %7623  ;;  %v2801_v59 = vadd.f32 1.0, %v7622_v33  ;;  %7635 = verf.f32 %v2698_v63  ;;  %v7894_v33 = vld [vmem:[#allocation2 + $0x80] sm:$0xff] }
 0x433   : > { %3216 = vmatprep.subr.bf16.mxu1 %v2906_v40  ;;  %v7626_v28 = vpop.eup %7625  ;;  %v2802_v7 = vadd.f32 1.0, %v7624_v43 }
 0x434   : > { %3217 = vmatpush1.bf16.msra.mxu1 %v2905_v42  ;;  %v7628_v20 = vpop.eup %7627  ;;  %v2809_v60 = vadd.f32 1.0, %v7626_v28  ;;  %v2865_v15 = vmul.f32 %v2801_v59, %v2609_v14  ;;  %v7895_v28 = vld [vmem:[#allocation2 + $0x88] sm:$0xff] }
 0x435   : > { %v2810_v22 = vadd.f32 1.0, %v7628_v20  ;;  %v2866_v30 = vmul.f32 %v2802_v7, %v2610_v50  ;;  %v7896_v20 = vld [vmem:[#allocation2 + $0x40] sm:$0xff]  ;;  %v7897_v50 = vld [vmem:[#allocation2 + $0x48] sm:$0xff] }
 0x436   : > { %v2873_v56 = vmul.f32 %v2809_v60, %v2617_v48 }
 0x437   : > { %v2874_v1 = vmul.f32 %v2810_v22, %v2618_v46 }
 0x438   : > { %v2913_v21 = vpack.c.bf16 %v2873_v56, %v2865_v15 }
 0x439   : > { %v7630_v29 = vpop.eup %7629  ;;  %v2914_v26 = vpack.c.bf16 %v2874_v1, %v2866_v30  ;;  %v7898_v1 = vld [vmem:[#allocation2 + $0xc0] sm:$0xff] }
 0x43a   : > { %v7632_v8 = vpop.eup %7631  ;;  %v2817_v17 = vadd.f32 1.0, %v7630_v29 }
 0x43b   : > { %v7634_v0 = vpop.eup %7633  ;;  %v2818_v16 = vadd.f32 1.0, %v7632_v8  ;;  %3218 = vmatprep.subr.bf16.mxu1 %v2914_v26  ;;  %v9578_v8 = vpop.permute.xlu0 %2940 }
 0x43c   : > { %v7636_v31 = vpop.eup %7635  ;;  %v2825_v45 = vadd.f32 1.0, %v7634_v0  ;;  %3219 = vmatpush1.bf16.msra.mxu1 %v2913_v21  ;;  %v2881_v9 = vmul.f32 %v2817_v17, %v2625_v13  ;;  %v7899_v17 = vld [vmem:[#allocation2 + $0xc8] sm:$0xff] }
 0x43d   : > { %v2826_v6 = vadd.f32 1.0, %v7636_v31  ;;  %v2882_v24 = vmul.f32 %v2818_v16, %v2626_v3  ;;  %v9584_v16 = vpop.permute.xlu1 %2935  ;;  %v7900_v31 = vld [vmem:[#allocation2 + $0x8] sm:$0xff]  ;;  %v7901_v3 = vld [vmem:[#allocation2 + $0x18] sm:$0xff] }
 0x43e   : > { %v2889_v58 = vmul.f32 %v2825_v45, %v2633_v39 }
 0x43f   : > { %v2890_v5 = vmul.f32 %v2826_v6, %v2634_v18 }
 0x440   : > { %v2921_v12 = vpack.c.bf16 %v2889_v58, %v2881_v9 }
 0x441   : > { %v2922_v54 = vpack.c.bf16 %v2890_v5, %v2882_v24  ;;  %v7902_v24 = vld [vmem:[#allocation2 + $0x10] sm:$0xff] }
 0x443   : > { %3220 = vmatprep.subr.bf16.mxu1 %v2922_v54 }
 0x444   : > { %3221 = vmatpush1.bf16.msra.mxu1 %v2921_v12 }
 0x447   : > { %6828 = vmatmul.mubr.msk.bf16.vlgmr.msra.gmra.mrb[48].mxu1 %vm2266_vm1, %v9342_v19 }
 0x448   : > { %3256 = vmatprep.mubr.bf16.mxu1 %v11991_v11 }
 0x44f   : > { %6829 = vmatmul.mubr.msk.bf16.gmra.mrb[52].mxu1 %vm2266_vm1, %v9358_v34 }
 0x450   : > { %3266 = vmatprep.mubr.bf16.mxu1 %v11991_v11 }
 0x457   : > { %6830 = vmatmul.mubr.msk.bf16.gmra.mrb[56].mxu1 %vm2266_vm1, %v9380_v32 }
 0x458   : > { %3276 = vmatprep.mubr.bf16.mxu1 %v11991_v11 }
 0x45f   : > { %6831 = vmatmul.mubr.msk.bf16.gmra.mrb[60].mxu1 %vm2266_vm1, %v9404_v38 }
 0x47e   : > { %v3029_v37 = vpop.f32.mrb[32].mxu0 }
 0x47f   : > { %v3030_v19 = vadd.f32 %v3029_v37, %v9531_v53  ;;  %v3031_v41 = vpop.f32.mrb[33].mxu0 }
 0x480   : > { %v3033_v27 = vpop.f32.mrb[34].mxu0  ;;  %v3032_v4 = vadd.f32 %v3031_v41, %v9531_v53 }
 0x481   : > { %v9534_v47 = vadd.f32 %v7893_v36, %v3030_v19  ;;  %v3035_v34 = vpop.f32.mrb[35].mxu0  ;;  %v3034_v30 = vadd.f32 %v3033_v27, %v9556_v61  ;;  %v7903_v19 = vld [vmem:[#allocation2 + $0x98] sm:$0xff]  ;;  %v7904_v36 = vld [vmem:[#allocation2 + $0x90] sm:$0xff] }
 0x482   : > { %v3036_v59 = vadd.f32 %v3035_v34, %v9556_v61  ;;  %v9566_v14 = vadd.f32 %v7896_v20, %v3032_v4  ;;  %v9630_v20 = vpop.permute.xlu1 %2945 }
 0x483   : > { %12007 = vst [vmem:[#allocation25_spill] sm:$0xff] %v9534_v47  ;;  %3351 = vadd.xlane.f32.xlu1 %v9534_v47  ;;  %v9586_v13 = vadd.f32 %v7900_v31, %v3034_v30 }
 0x484   : > { %12010 = vst [vmem:[#allocation27_spill] sm:$0xff] %v9566_v14  ;;  %v9570_v46 = vadd.f32 %v7897_v50, %v3036_v59  ;;  %v7907_v59 = vld [vmem:[#allocation2 + $0xd8] sm:$0xff] }
 0x485   : > { %12014 = vst [vmem:[#allocation31_spill] sm:$0xff] %v9586_v13 }
 0x486   : > { %v3039_v49 = vpop.f32.mrb[36].mxu0  ;;  %12011 = vst [vmem:[#allocation29_spill] sm:$0xff] %v9570_v46 }
 0x487   : > { %v9537_v32 = vpop.f32.mrb[37].mxu0  ;;  %v3040_v39 = vadd.f32 %v3039_v49, %v9584_v16 }
 0x488   : > { %v3043_v11 = vpop.f32.mrb[38].mxu0  ;;  %v3042_v27 = vadd.f32 %v9537_v32, %v9584_v16 }
 0x489   : > { %v3045_v25 = vpop.f32.mrb[39].mxu0  ;;  %v3044_v26 = vadd.f32 %v3043_v11, %v9578_v8  ;;  %v9596_v5 = vadd.f32 %v7902_v24, %v3040_v39  ;;  %v7905_v11 = vld [vmem:[#allocation2 + $0x58] sm:$0xff]  ;;  %v7911_v39 = vld [vmem:[#allocation2 + $0xa8] sm:$0xff] }
 0x48a   : > { %v3046_v37 = vadd.f32 %v3045_v25, %v9578_v8 }
 0x48b   : > { %v9590_v18 = vadd.f32 %v7901_v3, %v3044_v26  ;;  %12016 = vst [vmem:[#allocation34_spill] sm:$0xff] %v9596_v5 }
 0x48d   : > { %12015 = vst [vmem:[#allocation33_spill] sm:$0xff] %v9590_v18 }
 0x48e   : > { %v9539_v55 = vpop.f32.mrb[40].mxu0 }
 0x48f   : > { %v9541_v38 = vpop.f32.mrb[41].mxu0 }
 0x490   : > { %v9543_v10 = vpop.f32.mrb[42].mxu0 }
 0x491   : > { %v9545_v44 = vpop.f32.mrb[43].mxu0 }
 0x496   : > { %v9547_v52 = vpop.f32.mrb[44].mxu0 }
 0x497   : > { %v9549_v51 = vpop.f32.mrb[45].mxu0 }
 0x498   : > { %v9551_v2 = vpop.f32.mrb[46].mxu0 }
 0x499   : > { %v9553_v57 = vpop.f32.mrb[47].mxu0 }
 0x4a6   : > { %v3102_v23 = vpop.f32.mrb[32].mxu1 }
 0x4a7   : > { %v3103_v35 = vadd.f32 %v3102_v23, %v9531_v53  ;;  %v3104_v62 = vpop.f32.mrb[33].mxu1  ;;  %v9611_v23 = vadd.f32 %v7905_v11, %v3046_v37 }
 0x4a8   : > { %v3106_v42 = vpop.f32.mrb[34].mxu1  ;;  %v3105_v48 = vadd.f32 %v3104_v62, %v9531_v53 }
 0x4a9   : > { %v9559_v63 = vadd.f32 %v7894_v33, %v3103_v35  ;;  %v3107_v40 = vadd.f32 %v3106_v42, %v9556_v61  ;;  %v3108_v43 = vpop.f32.mrb[35].mxu1  ;;  %12019 = vst [vmem:[#allocation38_spill] sm:$0xff] %v9611_v23  ;;  %v7906_v42 = vld [vmem:[#allocation2 + $0x50] sm:$0xff] }
 0x4aa   : > { %v3109_v22 = vadd.f32 %v3108_v43, %v9556_v61  ;;  %v9575_v29 = vadd.f32 %v7898_v1, %v3105_v48  ;;  %v9617_v4 = vadd.f32 %v7906_v42, %v3042_v27  ;;  %v3050_v48 = vadd.f32 %v9539_v55, %v9630_v20 }
 0x4ab   : > { %12008 = vst [vmem:[#allocation32_spill] sm:$0xff] %v9559_v63  ;;  %v9563_v7 = vadd.f32 %v7895_v28, %v3107_v40  ;;  %3383 = vadd.xlane.f32.xlu0 %v9559_v63  ;;  %v9623_v40 = vpop.permute.xlu0 %2950 }
 0x4ac   : > { %12012 = vst [vmem:[#allocation28_spill] sm:$0xff] %v9575_v29  ;;  %v9581_v0 = vadd.f32 %v7899_v17, %v3109_v22  ;;  %12020 = vst [vmem:[#allocation37_spill] sm:$0xff] %v9617_v4  ;;  %v3054_v43 = vadd.f32 %v9543_v10, %v9623_v40  ;;  %v3056_v31 = vadd.f32 %v9545_v44, %v9623_v40 }
 0x4ad   : > { %12009 = vst [vmem:[#allocation26_spill] sm:$0xff] %v9563_v7  ;;  %3385 = vadd.xlane.f32.xlu1 %v9563_v7 }
 0x4ae   : > { %v3112_v60 = vpop.f32.mrb[36].mxu1  ;;  %12013 = vst [vmem:[#allocation30_spill] sm:$0xff] %v9581_v0 }
 0x4af   : > { %v3114_v15 = vpop.f32.mrb[37].mxu1  ;;  %3367 = vadd.xlane.f32.xlu0 %v9566_v14  ;;  %v3113_v12 = vadd.f32 %v3112_v60, %v9584_v16  ;;  %v7908_v60 = vld [vmem:[#allocation2 + $0xd0] sm:$0xff]  ;;  %v9680_v42 = vpop.permute.xlu0 %2960 }
 0x4b0   : > { %v3116_v56 = vpop.f32.mrb[38].mxu1  ;;  %v3115_v32 = vadd.f32 %v3114_v15, %v9584_v16  ;;  %v7909_v15 = vld [vmem:[#allocation2 + $0x28] sm:$0xff] }
 0x4b1   : > { %v3118_v21 = vpop.f32.mrb[39].mxu1  ;;  %3369 = vadd.xlane.f32.xlu1 %v9570_v46  ;;  %v3117_v6 = vadd.f32 %v3116_v56, %v9578_v8  ;;  %v9606_v34 = vadd.f32 %v7904_v36, %v3113_v12  ;;  %v9639_v56 = vadd.f32 %v7909_v15, %v3054_v43  ;;  %v7913_v12 = vld [vmem:[#allocation2 + $0x68] sm:$0xff]  ;;  %v7914_v36 = vld [vmem:[#allocation2 + $0x60] sm:$0xff] }
 0x4b2   : > { %v3119_v25 = vadd.f32 %v3118_v21, %v9578_v8  ;;  %v9634_v50 = vadd.f32 %v7908_v60, %v3115_v32  ;;  %v7910_v21 = vld [vmem:[#allocation2 + $0x20] sm:$0xff]  ;;  %v9665_v37 = vadd.f32 %v7913_v12, %v3056_v31  ;;  %v7915_v32 = vld [vmem:[#allocation2 + $0xe8] sm:$0xff]  ;;  %v3066_v12 = vadd.f32 %v9553_v57, %v9680_v42 }
 0x4b3   : > { %3399 = vadd.xlane.f32.xlu0 %v9575_v29  ;;  %v9601_v41 = vadd.f32 %v7903_v19, %v3117_v6  ;;  %12018 = vst [vmem:[#allocation35_spill] sm:$0xff] %v9606_v34  ;;  %12023 = vst [vmem:[#allocation20_spill] sm:$0xff] %v9639_v56  ;;  %v9647_v55 = vadd.f32 %v7910_v21, %v3050_v48  ;;  %v3052_v6 = vadd.f32 %v9541_v38, %v9630_v20 }
 0x4b4   : > { %v9627_v28 = vadd.f32 %v7907_v59, %v3119_v25  ;;  %12022 = vst [vmem:[#allocation17_spill] sm:$0xff] %v9634_v50  ;;  %12027 = vst [vmem:[#allocation39_spill] sm:$0xff] %v9665_v37  ;;  %v9687_v59 = vpop.permute.xlu1 %2955 }
 0x4b5   : > { %3401 = vadd.xlane.f32.xlu1 %v9581_v0  ;;  %12017 = vst [vmem:[#allocation36_spill] sm:$0xff] %v9601_v41  ;;  %12024 = vst [vmem:[#allocation19_spill] sm:$0xff] %v9647_v55  ;;  %v9673_v38 = vadd.f32 %v7914_v36, %v3052_v6  ;;  %v3060_v48 = vadd.f32 %v9547_v52, %v9687_v59  ;;  %v3062_v36 = vadd.f32 %v9549_v51, %v9687_v59  ;;  %v7922_v51 = vld [vmem:[#allocation2 + $0x70] sm:$0xff] }
 0x4b6   : > { %v3122_v45 = vpop.f32.mrb[40].mxu1  ;;  %12021 = vst [vmem:[#allocation18_spill] sm:$0xff] %v9627_v28 }
 0x4b7   : > { %v9593_v9 = vpop.f32.mrb[41].mxu1  ;;  %3353 = vadd.xlane.f32.xlu0 %v9586_v13  ;;  %v3123_v26 = vadd.f32 %v3122_v45, %v9630_v20  ;;  %12028 = vst [vmem:[#allocation23_spill] sm:$0xff] %v9673_v38 }
 0x4b8   : > { %v3126_v58 = vpop.f32.mrb[42].mxu1  ;;  %v3125_v11 = vadd.f32 %v9593_v9, %v9630_v20  ;;  %v7916_v9 = vld [vmem:[#allocation2 + $0xe0] sm:$0xff] }
 0x4b9   : > { %v3128_v54 = vpop.f32.mrb[43].mxu1  ;;  %3357 = vadd.xlane.f32.xlu1 %v9590_v18  ;;  %v3127_v10 = vadd.f32 %v3126_v58, %v9623_v40  ;;  %v7912_v58 = vld [vmem:[#allocation2 + $0xa0] sm:$0xff] }
 0x4ba   : > { %v9660_v24 = vadd.f32 %v7912_v58, %v3123_v26  ;;  %v3129_v44 = vadd.f32 %v3128_v54, %v9623_v40  ;;  %v3064_v54 = vadd.f32 %v9551_v2, %v9680_v42  ;;  %v9691_v60 = vadd.f32 %v7916_v9, %v3125_v11  ;;  %v7920_v11 = vld [vmem:[#allocation2 + $0xb0] sm:$0xff] }
 0x4bb   : > { %3355 = vadd.xlane.f32.xlu0 %v9596_v5  ;;  %v9655_v3 = vadd.f32 %v7911_v39, %v3127_v10  ;;  %v7917_v10 = vld [vmem:[#allocation2 + $0x38] sm:$0xff]  ;;  %v7918_v39 = vld [vmem:[#allocation2 + $0x30] sm:$0xff] }
 0x4bc   : > { %12026 = vst [vmem:[#allocation22_spill] sm:$0xff] %v9660_v24  ;;  %v9684_v43 = vadd.f32 %v7915_v32, %v3129_v44  ;;  %12030 = vst [vmem:[#allocation43_spill] sm:$0xff] %v9691_v60  ;;  %v9696_v21 = vadd.f32 %v7917_v10, %v3064_v54  ;;  %v9704_v52 = vadd.f32 %v7918_v39, %v3060_v48  ;;  %v7921_v32 = vld [vmem:[#allocation2 + $0x78] sm:$0xff] }
 0x4bd   : > { %3389 = vadd.xlane.f32.xlu1 %v9601_v41  ;;  %12025 = vst [vmem:[#allocation21_spill] sm:$0xff] %v9655_v3  ;;  %v9723_v48 = vadd.f32 %v7921_v32, %v3066_v12  ;;  %v7923_v12 = vld [vmem:[#allocation2 + $0xf8] sm:$0xff] }
 0x4be   : > { %v9609_v49 = vpop.f32.mrb[44].mxu1  ;;  %12029 = vst [vmem:[#allocation24_spill] sm:$0xff] %v9684_v43  ;;  %12031 = vst [vmem:[#allocation44_spill] sm:$0xff] %v9696_v21 }
 0x4bf   : > { %v9614_v35 = vpop.f32.mrb[45].mxu1  ;;  %3387 = vadd.xlane.f32.xlu0 %v9606_v34  ;;  %12032 = vst [vmem:[#allocation45_spill] sm:$0xff] %v9704_v52  ;;  %v3133_v6 = vadd.f32 %v9609_v49, %v9687_v59  ;;  %12035 = vst [vmem:[#allocation48_spill] sm:$0xff] %v9723_v48 }
 0x4c0   : > { %v3136_v62 = vpop.f32.mrb[46].mxu1  ;;  %v3135_v39 = vadd.f32 %v9614_v35, %v9687_v59  ;;  %v7925_v35 = vld [vmem:[#allocation2 + $0x108] sm:$0xff] }
 0x4c1   : > { %v9620_v33 = vpop.f32.mrb[47].mxu1  ;;  %3373 = vadd.xlane.f32.xlu1 %v9611_v23  ;;  %v3137_v2 = vadd.f32 %v3136_v62, %v9680_v42  ;;  %v7919_v62 = vld [vmem:[#allocation2 + $0xb8] sm:$0xff]  ;;  %v9718_v54 = vadd.f32 %v7920_v11, %v3133_v6  ;;  %v7924_v11 = vld [vmem:[#allocation2 + $0xf0] sm:$0xff] }
 0x4c2   : > { %v3139_v57 = vadd.f32 %v9620_v33, %v9680_v42  ;;  %v9744_v32 = vadd.f32 %v7924_v11, %v3135_v39 }
 0x4c3   : > { %3371 = vadd.xlane.f32.xlu0 %v9617_v4  ;;  %v9713_v44 = vadd.f32 %v7919_v62, %v3137_v2  ;;  %12034 = vst [vmem:[#allocation47_spill] sm:$0xff] %v9718_v54  ;;  %v9732_v2 = vadd.f32 %v7922_v51, %v3062_v36 }
 0x4c4   : > { %v9739_v62 = vadd.f32 %v7923_v12, %v3139_v57  ;;  %12038 = vst [vmem:[#allocation51_spill] sm:$0xff] %v9744_v32  ;;  %v7926_v57 = vld [vmem:[#allocation2 + $0x100] sm:$0xff] }
 0x4c5   : > { %3405 = vadd.xlane.f32.xlu1 %v9627_v28  ;;  %12033 = vst [vmem:[#allocation46_spill] sm:$0xff] %v9713_v44  ;;  %12036 = vst [vmem:[#allocation49_spill] sm:$0xff] %v9732_v2 }
 0x4c6   : > { %v9637_v22 = vpop.f32.mrb[48].mxu0  ;;  %12037 = vst [vmem:[#allocation50_spill] sm:$0xff] %v9739_v62 }
 0x4c7   : > { %v9642_v30 = vpop.f32.mrb[49].mxu0  ;;  %3403 = vadd.xlane.f32.xlu0 %v9634_v50  ;;  %v3176_v36 = vadd.f32 %v9637_v22, %v9531_v53  ;;  %v7945_v50 = vld [vmem:[#allocation2 + $0x1b0] sm:$0xff] }
 0x4c8   : > { %v9645_v1 = vpop.f32.mrb[50].mxu0 }
 0x4c9   : > { %v9650_v17 = vpop.f32.mrb[51].mxu0  ;;  %3361 = vadd.xlane.f32.xlu1 %v9639_v56  ;;  %v3180_v33 = vadd.f32 %v9645_v1, %v9556_v61  ;;  %v9752_v12 = vadd.f32 %v7926_v57, %v3176_v36 }
 0x4ca   : > { %v3182_v57 = vadd.f32 %v9650_v17, %v9556_v61 }
 0x4cb   : > { %3359 = vadd.xlane.f32.xlu0 %v9647_v55  ;;  %v9749_v51 = vadd.f32 %v7925_v35, %v3180_v33  ;;  %12040 = vst [vmem:[#allocation53_spill] sm:$0xff] %v9752_v12  ;;  %v7927_v33 = vld [vmem:[#allocation2 + $0x180] sm:$0xff] }
 0x4cd   : > { %3393 = vadd.xlane.f32.xlu1 %v9655_v3  ;;  %12039 = vst [vmem:[#allocation52_spill] sm:$0xff] %v9749_v51 }
 0x4ce   : > { %v9663_v45 = vpop.f32.mrb[52].mxu0 }
 0x4cf   : > { %v9668_v19 = vpop.f32.mrb[53].mxu0  ;;  %3391 = vadd.xlane.f32.xlu0 %v9660_v24 }
 0x4d0   : > { %v9671_v27 = vpop.f32.mrb[54].mxu0 }
 0x4d1   : > { %v9677_v25 = vpop.f32.mrb[55].mxu0  ;;  %3377 = vadd.xlane.f32.xlu1 %v9665_v37  ;;  %v3190_v17 = vadd.f32 %v9671_v27, %v9578_v8  ;;  %v3188_v27 = vadd.f32 %v9668_v19, %v9584_v16 }
 0x4d3   : > { %3375 = vadd.xlane.f32.xlu0 %v9673_v38 }
 0x4d5   : > { %3409 = vadd.xlane.f32.xlu1 %v9684_v43 }
 0x4d6   : > { %v9694_v15 = vpop.f32.mrb[56].mxu0 }
 0x4d7   : > { %v9699_v26 = vpop.f32.mrb[57].mxu0  ;;  %3407 = vadd.xlane.f32.xlu0 %v9691_v60  ;;  %v3196_v19 = vadd.f32 %v9694_v15, %v9630_v20 }
 0x4d8   : > { %v9702_v31 = vpop.f32.mrb[58].mxu0 }
 0x4d9   : > { %v9708_v58 = vpop.f32.mrb[59].mxu0  ;;  %3365 = vadd.xlane.f32.xlu1 %v9696_v21 }
 0x4db   : > { %3363 = vadd.xlane.f32.xlu0 %v9704_v52 }
 0x4dd   : > { %3397 = vadd.xlane.f32.xlu1 %v9713_v44 }
 0x4de   : > { %v9721_v49 = vpop.f32.mrb[60].mxu0 }
 0x4df   : > { %v9727_v9 = vpop.f32.mrb[61].mxu0  ;;  %3395 = vadd.xlane.f32.xlu0 %v9718_v54 }
 0x4e0   : > { %v9730_v10 = vpop.f32.mrb[62].mxu0 }
 0x4e1   : > { %v9736_v6 = vpop.f32.mrb[63].mxu0  ;;  %3381 = vadd.xlane.f32.xlu1 %v9723_v48 }
 0x4e3   : > { %3379 = vadd.xlane.f32.xlu0 %v9732_v2 }
 0x4e5   : > { %3413 = vadd.xlane.f32.xlu1 %v9739_v62  ;;  %v3178_v62 = vadd.f32 %v9642_v30, %v9531_v53  ;;  %v3186_v30 = vadd.f32 %v9663_v45, %v9584_v16 }
 0x4e7   : > { %3411 = vadd.xlane.f32.xlu0 %v9744_v32 }
 0x4e9   : > { %3417 = vadd.xlane.f32.xlu1 %v9749_v51 }
 0x4eb   : > { %3415 = vadd.xlane.f32.xlu0 %v9752_v12  ;;  %v7928_v12 = vld [vmem:[#allocation2 + $0x188] sm:$0xff] }
 0x51a   : > { %v3248_v1 = vpop.f32.mrb[48].mxu1 }
 0x51b   : > { %v3249_v39 = vadd.f32 %v3248_v1, %v9531_v53  ;;  %v9757_v11 = vpop.f32.mrb[49].mxu1  ;;  %v7929_v1 = vld [vmem:[#allocation2 + $0x140] sm:$0xff] }
 0x51c   : > { %v3252_v22 = vpop.f32.mrb[50].mxu1  ;;  %v9771_v60 = vadd.f32 %v7929_v1, %v3178_v62 }
 0x51d   : > { %v9761_v35 = vadd.f32 %v7927_v33, %v3249_v39  ;;  %v3253_v32 = vadd.f32 %v3252_v22, %v9556_v61  ;;  %v9764_v36 = vpop.f32.mrb[51].mxu1  ;;  %v7930_v22 = vld [vmem:[#allocation2 + $0x148] sm:$0xff] }
 0x51e   : > { %12043 = vst [vmem:[#allocation56_spill] sm:$0xff] %v9771_v60  ;;  %v9776_v33 = vadd.f32 %v7930_v22, %v3182_v57 }
 0x51f   : > { %12041 = vst [vmem:[#allocation54_spill] sm:$0xff] %v9761_v35  ;;  %v9768_v51 = vadd.f32 %v7928_v12, %v3253_v32  ;;  %3447 = vadd.xlane.f32.xlu0 %v9761_v35  ;;  %v7931_v12 = vld [vmem:[#allocation2 + $0x110] sm:$0xff] }
 0x520   : > { %12044 = vst [vmem:[#allocation57_spill] sm:$0xff] %v9776_v33  ;;  %v9783_v62 = vadd.f32 %v7931_v12, %v3186_v30  ;;  %v7933_v35 = vld [vmem:[#allocation2 + $0x190] sm:$0xff]  ;;  %v7934_v12 = vld [vmem:[#allocation2 + $0x198] sm:$0xff] }
 0x521   : > { %12042 = vst [vmem:[#allocation55_spill] sm:$0xff] %v9768_v51  ;;  %3449 = vadd.xlane.f32.xlu1 %v9768_v51  ;;  %v7932_v51 = vld [vmem:[#allocation2 + $0x118] sm:$0xff] }
 0x522   : > { %v3258_v39 = vpop.f32.mrb[52].mxu1  ;;  %12045 = vst [vmem:[#allocation58_spill] sm:$0xff] %v9783_v62  ;;  %v9789_v57 = vadd.f32 %v7932_v51, %v3190_v17 }
 0x523   : > { %v9780_v43 = vpop.f32.mrb[53].mxu1  ;;  %3431 = vadd.xlane.f32.xlu0 %v9771_v60  ;;  %v3259_v1 = vadd.f32 %v3258_v39, %v9584_v16  ;;  %v3192_v39 = vadd.f32 %v9677_v25, %v9578_v8 }
 0x524   : > { %v3262_v32 = vpop.f32.mrb[54].mxu1  ;;  %12046 = vst [vmem:[#allocation59_spill] sm:$0xff] %v9789_v57 }
 0x525   : > { %v9786_v45 = vpop.f32.mrb[55].mxu1  ;;  %3433 = vadd.xlane.f32.xlu1 %v9776_v33  ;;  %v3263_v22 = vadd.f32 %v3262_v32, %v9578_v8  ;;  %v9795_v60 = vadd.f32 %v7933_v35, %v3259_v1  ;;  %v7935_v32 = vld [vmem:[#allocation2 + $0x150] sm:$0xff]  ;;  %v7936_v1 = vld [vmem:[#allocation2 + $0x158] sm:$0xff] }
 0x526   : > { %v9812_v25 = vadd.f32 %v7936_v1, %v3192_v39  ;;  %v3198_v1 = vadd.f32 %v9699_v26, %v9630_v20  ;;  %v3206_v26 = vadd.f32 %v9721_v49, %v9687_v59 }
 0x527   : > { %3419 = vadd.xlane.f32.xlu0 %v9783_v62  ;;  %12047 = vst [vmem:[#allocation60_spill] sm:$0xff] %v9795_v60  ;;  %v9800_v33 = vadd.f32 %v7934_v12, %v3263_v22  ;;  %v9805_v62 = vadd.f32 %v7935_v32, %v3188_v27  ;;  %v3200_v22 = vadd.f32 %v9702_v31, %v9623_v40  ;;  %v7937_v12 = vld [vmem:[#allocation2 + $0x120] sm:$0xff]  ;;  %v7938_v32 = vld [vmem:[#allocation2 + $0x128] sm:$0xff] }
 0x528   : > { %12050 = vst [vmem:[#allocation63_spill] sm:$0xff] %v9812_v25 }
 0x529   : > { %3421 = vadd.xlane.f32.xlu1 %v9789_v57  ;;  %12048 = vst [vmem:[#allocation61_spill] sm:$0xff] %v9800_v33  ;;  %12049 = vst [vmem:[#allocation62_spill] sm:$0xff] %v9805_v62  ;;  %v9821_v57 = vadd.f32 %v7938_v32, %v3200_v22  ;;  %v3202_v22 = vadd.f32 %v9708_v58, %v9623_v40  ;;  %v7940_v32 = vld [vmem:[#allocation2 + $0x1a8] sm:$0xff]  ;;  %v3210_v58 = vadd.f32 %v9730_v10, %v9680_v42 }
 0x52a   : > { %v3268_v30 = vpop.f32.mrb[56].mxu1  ;;  %v3208_v10 = vadd.f32 %v9727_v9, %v9687_v59 }
 0x52b   : > { %v9802_v51 = vpop.f32.mrb[57].mxu1  ;;  %3451 = vadd.xlane.f32.xlu0 %v9795_v60  ;;  %v9817_v60 = vadd.f32 %v7937_v12, %v3196_v19  ;;  %v3269_v27 = vadd.f32 %v3268_v30, %v9630_v20  ;;  %12052 = vst [vmem:[#allocation65_spill] sm:$0xff] %v9821_v57  ;;  %v7939_v19 = vld [vmem:[#allocation2 + $0x1a0] sm:$0xff] }
 0x52c   : > { %v3272_v17 = vpop.f32.mrb[58].mxu1 }
 0x52d   : > { %v9809_v35 = vpop.f32.mrb[59].mxu1  ;;  %3453 = vadd.xlane.f32.xlu1 %v9800_v33  ;;  %12051 = vst [vmem:[#allocation64_spill] sm:$0xff] %v9817_v60  ;;  %v3273_v33 = vadd.f32 %v3272_v17, %v9623_v40  ;;  %v9829_v12 = vadd.f32 %v7939_v19, %v3269_v27  ;;  %v7942_v19 = vld [vmem:[#allocation2 + $0x168] sm:$0xff] }
 0x52f   : > { %3435 = vadd.xlane.f32.xlu0 %v9805_v62  ;;  %12053 = vst [vmem:[#allocation66_spill] sm:$0xff] %v9829_v12  ;;  %v9836_v17 = vadd.f32 %v7940_v32, %v3273_v33  ;;  %v7941_v62 = vld [vmem:[#allocation2 + $0x160] sm:$0xff]  ;;  %v7943_v32 = vld [vmem:[#allocation2 + $0x130] sm:$0xff] }
 0x531   : > { %3437 = vadd.xlane.f32.xlu1 %v9812_v25  ;;  %12054 = vst [vmem:[#allocation67_spill] sm:$0xff] %v9836_v17  ;;  %v3352_v25 = vpop.xlane.xlu1 %3351 }
 0x532   : > { %v3278_v15 = vpop.f32.mrb[60].mxu1 }
 0x533   : > { %v9824_v39 = vpop.f32.mrb[61].mxu1  ;;  %3423 = vadd.xlane.f32.xlu0 %v9817_v60  ;;  %v9839_v60 = vadd.f32 %v7941_v62, %v3198_v1  ;;  %v3279_v62 = vadd.f32 %v3278_v15, %v9687_v59  ;;  %v7944_v1 = vld [vmem:[#allocation2 + $0x138] sm:$0xff] }
 0x534   : > { %v3282_v31 = vpop.f32.mrb[62].mxu1 }
 0x535   : > { %v9831_v30 = vpop.f32.mrb[63].mxu1  ;;  %3425 = vadd.xlane.f32.xlu1 %v9821_v57  ;;  %12055 = vst [vmem:[#allocation68_spill] sm:$0xff] %v9839_v60  ;;  %v9844_v57 = vadd.f32 %v7942_v19, %v3202_v22  ;;  %v3283_v22 = vadd.f32 %v3282_v31, %v9680_v42 }
 0x537   : > { %3455 = vadd.xlane.f32.xlu0 %v9829_v12  ;;  %12056 = vst [vmem:[#allocation69_spill] sm:$0xff] %v9844_v57  ;;  %v9849_v12 = vadd.f32 %v7943_v32, %v3206_v26  ;;  %v9859_v26 = vadd.f32 %v7945_v50, %v3279_v62  ;;  %v7946_v32 = vld [vmem:[#allocation2 + $0x1b8] sm:$0xff] }
 0x538   : > { %v3384_v27 = vpop.xlane.xlu0 %3383 }
 0x539   : > { %3457 = vadd.xlane.f32.xlu1 %v9836_v17  ;;  %12057 = vst [vmem:[#allocation70_spill] sm:$0xff] %v9849_v12  ;;  %v9853_v17 = vadd.f32 %v7944_v1, %v3210_v58  ;;  %12059 = vst [vmem:[#allocation72_spill] sm:$0xff] %v9859_v26  ;;  %v3212_v58 = vadd.f32 %v9736_v6, %v9680_v42  ;;  %v9866_v1 = vadd.f32 %v7946_v32, %v3283_v22 }
 0x53a   : > { %v3386_v33 = vpop.xlane.xlu1 %3385 }
 0x53b   : > { %3439 = vadd.xlane.f32.xlu0 %v9839_v60  ;;  %12058 = vst [vmem:[#allocation71_spill] sm:$0xff] %v9853_v17  ;;  %v3479_v60 = vmul.f32 0.0078125, %v3352_v25  ;;  %v3495_v25 = vmul.f32 0.0078125, %v3384_v27  ;;  %v3496_v6 = vmul.f32 0.0078125, %v3386_v33 }
 0x53c   : > { %v3368_v49 = vpop.xlane.xlu0 %3367 }
 0x53d   : > { %3441 = vadd.xlane.f32.xlu1 %v9844_v57  ;;  %v7947_v57 = vld [vmem:[#allocation2 + $0x170] sm:$0xff]  ;;  %v9874_v50 = vsub.f32 %v9534_v47, %v3479_v60 }
 0x53e   : > { %v3370_v19 = vpop.xlane.xlu1 %3369  ;;  %v9871_v9 = vadd.f32 %v7947_v57, %v3208_v10  ;;  %v3487_v57 = vmul.f32 0.0078125, %v3368_v49 }
 0x53f   : > { %3427 = vadd.xlane.f32.xlu0 %v9849_v12  ;;  %v3607_v60 = vmul.f32 %v9874_v50, %v9874_v50  ;;  %v3488_v33 = vmul.f32 0.0078125, %v3370_v19 }
 0x540   : > { %v9862_v15 = vpop.xlane.xlu0 %3399  ;;  %12060 = vst [vmem:[#allocation73_spill] sm:$0xff] %v9871_v9  ;;  %v9897_v49 = vsub.f32 %v9566_v14, %v3487_v57 }
 0x541   : > { %3429 = vadd.xlane.f32.xlu1 %v9853_v17  ;;  %v7948_v17 = vld [vmem:[#allocation2 + $0x178] sm:$0xff] }
 0x542   : > { %v9869_v31 = vpop.xlane.xlu1 %3401  ;;  %v9877_v12 = vadd.f32 %v7948_v17, %v3212_v58  ;;  %v9890_v17 = vsub.f32 %v9563_v7, %v3496_v6  ;;  %v9904_v6 = vsub.f32 %v9570_v46, %v3488_v33  ;;  %v3615_v57 = vmul.f32 %v9897_v49, %v9897_v49 }
 0x543   : > { %3459 = vadd.xlane.f32.xlu0 %v9859_v26  ;;  %v9881_v26 = vsub.f32 %v9559_v63, %v3495_v25 }
 0x544   : > { %v3354_v62 = vpop.xlane.xlu0 %3353  ;;  %12061 = vst [vmem:[#allocation74_spill] sm:$0xff] %v9877_v12  ;;  %12063 = vst [vmem:[#allocation76_spill] sm:$0xff] %v9890_v17 }
 0x545   : > { %3461 = vadd.xlane.f32.xlu1 %v9866_v1  ;;  %v3480_v22 = vmul.f32 0.0078125, %v3354_v62  ;;  %12062 = vst [vmem:[#allocation75_spill] sm:$0xff] %v9881_v26 }
 0x546   : > { %v3358_v32 = vpop.xlane.xlu1 %3357 }
 0x547   : > { %3443 = vadd.xlane.f32.xlu0 %v9871_v9  ;;  %v9884_v10 = vsub.f32 %v9586_v13, %v3480_v22  ;;  %v3623_v22 = vmul.f32 %v9881_v26, %v9881_v26  ;;  %v3482_v19 = vmul.f32 0.0078125, %v3358_v32  ;;  %v3616_v32 = vmul.f32 %v9904_v6, %v9904_v6 }
 0x548   : > { %v3356_v27 = vpop.xlane.xlu0 %3355 }
 0x549   : > { %3445 = vadd.xlane.f32.xlu1 %v9877_v12  ;;  %v3608_v58 = vmul.f32 %v9884_v10, %v9884_v10  ;;  %v3481_v62 = vmul.f32 0.0078125, %v3356_v27 }
 0x54a   : > { %v9894_v25 = vpop.xlane.xlu1 %3389 }
 0x54b   : > { %3671 = vadd.xlane.f32.xlu0 %v3607_v60  ;;  %v3624_v60 = vmul.f32 %v9890_v17, %v9890_v17  ;;  %v9909_v13 = vsub.f32 %v9596_v5, %v3481_v62 }
 0x54c   : > { %v9901_v63 = vpop.xlane.xlu0 %3387 }
 0x54d   : > { %3673 = vadd.xlane.f32.xlu1 %v3608_v58  ;;  %v9914_v58 = vsub.f32 %v9590_v18, %v3482_v19  ;;  %v3609_v62 = vmul.f32 %v9909_v13, %v9909_v13 }
 0x54e   : > { %v3374_v7 = vpop.xlane.xlu1 %3373 }
 0x54f   : > { %3703 = vadd.xlane.f32.xlu0 %v3623_v22  ;;  %v3490_v14 = vmul.f32 0.0078125, %v3374_v7  ;;  %v3610_v7 = vmul.f32 %v9914_v58, %v9914_v58 }
 0x550   : > { %v3372_v27 = vpop.xlane.xlu0 %3371 }
 0x551   : > { %3705 = vadd.xlane.f32.xlu1 %v3624_v60  ;;  %v3489_v33 = vmul.f32 0.0078125, %v3372_v27  ;;  %v9928_v19 = vsub.f32 %v9611_v23, %v3490_v14 }
 0x552   : > { %v9918_v22 = vpop.xlane.xlu1 %3405 }
 0x553   : > { %3687 = vadd.xlane.f32.xlu0 %v3615_v57  ;;  %v9921_v46 = vsub.f32 %v9617_v4, %v3489_v33  ;;  %v3618_v14 = vmul.f32 %v9928_v19, %v9928_v19 }
 0x554   : > { %v9925_v60 = vpop.xlane.xlu0 %3403 }
 0x555   : > { %12064 = vst [vmem:[#allocation77_spill] sm:$0xff] %v9921_v46  ;;  %3689 = vadd.xlane.f32.xlu1 %v3616_v32  ;;  %v3617_v33 = vmul.f32 %v9921_v46, %v9921_v46 }
 0x556   : > { %v3362_v57 = vpop.xlane.xlu1 %3361 }
 0x557   : > { %3675 = vadd.xlane.f32.xlu0 %v3609_v62  ;;  %v3484_v27 = vmul.f32 0.0078125, %v3362_v57  ;;  %v7365_v57 = vld [vmem:[%s8355_s13] sm:$0xff]  }
 0x558   : > { %v3360_v32 = vpop.xlane.xlu0 %3359  ;;  %7060 = vmatprep.subr.bf16.mxu0 %v7365_v57 }
 0x559   : > { %3677 = vadd.xlane.f32.xlu1 %v3610_v7  ;;  %v9935_v4 = vsub.f32 %v9639_v56, %v3484_v27  ;;  %v3483_v18 = vmul.f32 0.0078125, %v3360_v32  ;;  %7061 = vmatpush3.bf16.msra.mxu0 %v7365_v57 }
 0x55a   : > { %v9939_v62 = vpop.xlane.xlu1 %3393 }
 0x55b   : > { %3691 = vadd.xlane.f32.xlu0 %v3617_v33  ;;  %v9942_v23 = vsub.f32 %v9647_v55, %v3483_v18  ;;  %v3612_v27 = vmul.f32 %v9935_v4, %v9935_v4  ;;  %v7366_v18 = vld [vmem:[%s8355_s13 + $0x8] sm:$0xff]  }
 0x55c   : > { %v9944_v7 = vpop.xlane.xlu0 %3391  ;;  %7062 = vmatprep.subr.bf16.mxu0 %v7366_v18 }
 0x55d   : > { %3693 = vadd.xlane.f32.xlu1 %v3618_v14  ;;  %v3611_v47 = vmul.f32 %v9942_v23, %v9942_v23  ;;  %7063 = vmatpush3.bf16.msra.mxu0 %v7366_v18 }
 0x55e   : > { %v3378_v33 = vpop.xlane.xlu1 %3377 }
 0x55f   : > { %v3492_v32 = vmul.f32 0.0078125, %v3378_v33  ;;  %3679 = vadd.xlane.f32.xlu0 %v3611_v47  ;;  %v7367_v47 = vld [vmem:[%s8355_s13 + $0x10] sm:$0xff]  }
 0x560   : > { %v3376_v56 = vpop.xlane.xlu0 %3375  ;;  %7064 = vmatprep.subr.bf16.mxu0 %v7367_v47 }
 0x561   : > { %3681 = vadd.xlane.f32.xlu1 %v3612_v27  ;;  %v9953_v14 = vsub.f32 %v9665_v37, %v3492_v32  ;;  %v3491_v55 = vmul.f32 0.0078125, %v3376_v56  ;;  %v3498_v56 = vmul.f32 0.0078125, %v9894_v25  ;;  %7065 = vmatpush3.bf16.msra.mxu0 %v7367_v47  ;;  %v7368_v37 = vld [vmem:[%s8355_s13 + $0x18] sm:$0xff]  }
 0x562   : > { %v9955_v5 = vpop.xlane.xlu1 %3409  ;;  %7066 = vmatprep.subr.bf16.mxu0 %v7368_v37 }
 0x563   : > { %12065 = vst [vmem:[#allocation78_spill] sm:$0xff] %v9953_v14  ;;  %v9958_v26 = vsub.f32 %v9673_v38, %v3491_v55  ;;  %v3620_v17 = vmul.f32 %v9953_v14, %v9953_v14  ;;  %v3497_v38 = vmul.f32 0.0078125, %v9901_v63  ;;  %v9974_v46 = vsub.f32 %v9601_v41, %v3498_v56 }
 0x564   : > { %v9962_v33 = vpop.xlane.xlu0 %3407  ;;  %v3255_v56 = vadd.f32 %v9764_v36, %v9556_v61  ;;  %v3265_v61 = vadd.f32 %v9786_v45, %v9578_v8  ;;  %v3500_v8 = vmul.f32 0.0078125, %v9939_v62  ;;  %v7372_v45 = vld [vmem:[%s8355_s13 + $0x38] sm:$0xff]  }
 0x565   : > { %3697 = vadd.xlane.f32.xlu1 %v3620_v17  ;;  %v3619_v57 = vmul.f32 %v9958_v26, %v9958_v26  ;;  %7067 = vmatpush3.bf16.msra.mxu0 %v7368_v37  ;;  %v9983_v63 = vsub.f32 %v9606_v34, %v3497_v38  ;;  %v7370_v37 = vld [vmem:[%s8355_s13 + $0x28] sm:$0xff]  }
 0x566   : > { %v3366_v27 = vpop.xlane.xlu1 %3365 }
 0x567   : > { %v3486_v32 = vmul.f32 0.0078125, %v3366_v27  ;;  %3695 = vadd.xlane.f32.xlu0 %v3619_v57  ;;  %v7369_v27 = vld [vmem:[%s8355_s13 + $0x20] sm:$0xff]   ;;  %v3625_v38 = vmul.f32 %v9983_v63, %v9983_v63 }
 0x568   : > { %v3364_v55 = vpop.xlane.xlu0 %3363  ;;  %7068 = vmatprep.subr.bf16.mxu0 %v7369_v27 }
 0x569   : > { %v9971_v14 = vsub.f32 %v9696_v21, %v3486_v32  ;;  %v3485_v18 = vmul.f32 0.0078125, %v3364_v55  ;;  %v3626_v55 = vmul.f32 %v9974_v46, %v9974_v46  ;;  %7069 = vmatpush3.bf16.msra.mxu0 %v7369_v27  ;;  %v7371_v27 = vld [vmem:[%s8355_s13 + $0x30] sm:$0xff]  }
 0x56a   : > { %v3398_v17 = vpop.xlane.xlu1 %3397  ;;  %7070 = vmatprep.subr.bf16.mxu0 %v7370_v37 }
 0x56b   : > { %v9977_v25 = vsub.f32 %v9704_v52, %v3485_v18  ;;  %v3614_v57 = vmul.f32 %v9971_v14, %v9971_v14  ;;  %v3502_v62 = vmul.f32 0.0078125, %v3398_v17 }
 0x56c   : > { %v3396_v47 = vpop.xlane.xlu0 %3395 }
 0x56d   : > { %3685 = vadd.xlane.f32.xlu1 %v3614_v57  ;;  %v3613_v32 = vmul.f32 %v9977_v25, %v9977_v25  ;;  %v7949_v57 = vld [vmem:[#allocation2 + $0x1c8] sm:$0xff]  ;;  %7071 = vmatpush3.bf16.msra.mxu0 %v7370_v37 }
 0x56e   : > { %v3382_v18 = vpop.xlane.xlu1 %3381  ;;  %v9994_v34 = vadd.f32 %v7949_v57, %v3255_v56  ;;  %7072 = vmatprep.subr.bf16.mxu0 %v7371_v27 }
 0x56f   : > { %3683 = vadd.xlane.f32.xlu0 %v3613_v32  ;;  %v3494_v36 = vmul.f32 0.0078125, %v3382_v18  ;;  %v7951_v18 = vld [vmem:[#allocation2 + $0x1c0] sm:$0xff] }
 0x570   : > { %v3380_v41 = vpop.xlane.xlu0 %3379 }
 0x571   : > { %v3493_v21 = vmul.f32 0.0078125, %v3380_v41  ;;  %3709 = vadd.xlane.f32.xlu1 %v3626_v55  ;;  %v3251_v41 = vadd.f32 %v9757_v11, %v9531_v53  ;;  %v7950_v55 = vld [vmem:[#allocation2 + $0x1d8] sm:$0xff]  ;;  %7073 = vmatpush3.bf16.msra.mxu0 %v7371_v27  ;;  %v3261_v53 = vadd.f32 %v9780_v43, %v9584_v16  ;;  %v3499_v11 = vmul.f32 0.0078125, %v9944_v7 }
 0x572   : > { %v10007_v57 = vadd.f32 %v7950_v55, %v3265_v61  ;;  %7074 = vmatprep.subr.bf16.mxu0 %v7372_v45  ;;  %v3501_v43 = vmul.f32 0.0078125, %v3396_v47  ;;  %v10032_v7 = vsub.f32 %v9713_v44, %v3502_v62  ;;  %v3275_v55 = vadd.f32 %v9809_v35, %v9623_v40  ;;  %v7954_v40 = vld [vmem:[#allocation2 + $0x1e0] sm:$0xff]  ;;  %v12082_v44 = vld [vmem:[#allocation64_spill] sm:$0xff] }
 0x573   : > { %v9999_v32 = vsub.f32 %v9732_v2, %v3493_v21  ;;  %3707 = vadd.xlane.f32.xlu0 %v3625_v38  ;;  %v10011_v21 = vsub.f32 %v9723_v48, %v3494_v36  ;;  %v10014_v37 = vadd.f32 %v7951_v18, %v3251_v41  ;;  %v10021_v38 = vsub.f32 %v9655_v3, %v3500_v8  ;;  %v7952_v36 = vld [vmem:[#allocation2 + $0x1d0] sm:$0xff]  ;;  %v7953_v18 = vld [vmem:[#allocation2 + $0x1e8] sm:$0xff] }
 0x574   : > { %v10026_v27 = vadd.f32 %v7952_v36, %v3261_v53  ;;  %v10029_v16 = vsub.f32 %v9660_v24, %v3499_v11  ;;  %v10038_v41 = vsub.f32 %v9718_v54, %v3501_v43  ;;  %v3630_v47 = vmul.f32 %v10032_v7, %v10032_v7  ;;  %v12084_v54 = vld [vmem:[#allocation65_spill] sm:$0xff] }
 0x575   : > { %3465 = vadd.xlane.f32.xlu1 %v9994_v34  ;;  %v3621_v56 = vmul.f32 %v9999_v32, %v9999_v32  ;;  %v3622_v61 = vmul.f32 %v10011_v21, %v10011_v21  ;;  %7075 = vmatpush3.bf16.msra.mxu0 %v7372_v45  ;;  %v3628_v17 = vmul.f32 %v10021_v38, %v10021_v38  ;;  %v3504_v62 = vmul.f32 0.0078125, %v9869_v31 }
 0x576   : > { %v3271_v8 = vadd.f32 %v9802_v51, %v9630_v20  ;;  %v3629_v45 = vmul.f32 %v10038_v41, %v10038_v41  ;;  %v10050_v53 = vadd.f32 %v7953_v18, %v3275_v55  ;;  %v3285_v11 = vadd.f32 %v9831_v30, %v9680_v42  ;;  %v7955_v51 = vld [vmem:[#allocation2 + $0x1f8] sm:$0xff]  ;;  %v7956_v30 = vld [vmem:[#allocation2 + $0x1f0] sm:$0xff]  ;;  %v3412_v55 = vpop.xlane.xlu0 %3411  ;;  %v12067_v18 = vld [vmem:[#allocation24_spill] sm:$0xff] }
 0x577   : > { %3699 = vadd.xlane.f32.xlu0 %v3621_v56  ;;  %v3627_v56 = vmul.f32 %v10029_v16, %v10029_v16  ;;  %v3503_v20 = vmul.f32 0.0078125, %v9862_v15  ;;  %v10064_v43 = vsub.f32 %v9581_v0, %v3504_v62  ;;  %v3506_v42 = vmul.f32 0.0078125, %v9918_v22 }
 0x578   : > { %v10055_v35 = vadd.f32 %v7954_v40, %v3271_v8  ;;  %v10061_v36 = vadd.f32 %v7955_v51, %v3285_v11  ;;  %v3509_v51 = vmul.f32 0.0078125, %v3412_v55 }
 0x579   : > { %3469 = vadd.xlane.f32.xlu1 %v10007_v57  ;;  %v10076_v15 = vsub.f32 %v9627_v28, %v3506_v42  ;;  %v3632_v22 = vmul.f32 %v10064_v43, %v10064_v43 }
 0x57a   : > { %v3416_v42 = vpop.xlane.xlu0 %3415 }
 0x57b   : > { %3463 = vadd.xlane.f32.xlu0 %v10014_v37 }
 0x57d   : > { %3701 = vadd.xlane.f32.xlu1 %v3622_v61  ;;  %v3281_v61 = vadd.f32 %v9824_v39, %v9687_v59  ;;  %v3505_v59 = vmul.f32 0.0078125, %v9925_v60  ;;  %v3414_v39 = vpop.xlane.xlu1 %3413 }
 0x57e   : > { %v3510_v62 = vmul.f32 0.0078125, %v3414_v39 }
 0x57f   : > { %3467 = vadd.xlane.f32.xlu0 %v10026_v27  ;;  %v10068_v31 = vadd.f32 %v7956_v30, %v3281_v61  ;;  %v12068_v61 = vld [vmem:[#allocation43_spill] sm:$0xff]  ;;  %v12070_v30 = vld [vmem:[#allocation50_spill] sm:$0xff] }
 0x581   : > { %3713 = vadd.xlane.f32.xlu1 %v3628_v17  ;;  %v10071_v17 = vsub.f32 %v9575_v29, %v3503_v20  ;;  %v3418_v40 = vpop.xlane.xlu1 %3417 }
 0x583   : > { %3711 = vadd.xlane.f32.xlu0 %v3627_v56  ;;  %v3508_v56 = vmul.f32 0.0078125, %v9955_v5  ;;  %v3631_v60 = vmul.f32 %v10071_v17, %v10071_v17  ;;  %v3634_v5 = vmul.f32 %v10076_v15, %v10076_v15 }
 0x585   : > { %3717 = vadd.xlane.f32.xlu1 %v3630_v47  ;;  %v12066_v47 = vld [vmem:[#allocation17_spill] sm:$0xff]  ;;  %v10089_v11 = vsub.f32 %v12067_v18, %v3508_v56  ;;  %v3512_v56 = vmul.f32 0.0078125, %v3418_v40  ;;  %v3511_v18 = vmul.f32 0.0078125, %v3416_v42 }
 0x586   : > { %v10083_v8 = vsub.f32 %v12066_v47, %v3505_v59  ;;  %v10099_v59 = vsub.f32 %v12070_v30, %v3510_v62  ;;  %v12076_v40 = vld [vmem:[#allocation53_spill] sm:$0xff] }
 0x587   : > { %3715 = vadd.xlane.f32.xlu0 %v3629_v45  ;;  %v3507_v45 = vmul.f32 0.0078125, %v9962_v33  ;;  %v3636_v39 = vmul.f32 %v10089_v11, %v10089_v11 }
 0x588   : > { %v3633_v33 = vmul.f32 %v10083_v8, %v10083_v8  ;;  %12071 = vst [vmem:[#allocation80_spill] sm:$0xff] %v10099_v59  ;;  %v3638_v62 = vmul.f32 %v10099_v59, %v10099_v59  ;;  %v12090_v59 = vld [vmem:[#allocation71_spill] sm:$0xff] }
 0x589   : > { %3473 = vadd.xlane.f32.xlu1 %v10050_v53  ;;  %v10094_v20 = vsub.f32 %v12068_v61, %v3507_v45  ;;  %v12074_v45 = vld [vmem:[#allocation52_spill] sm:$0xff]  ;;  %v12078_v61 = vld [vmem:[#allocation58_spill] sm:$0xff] }
 0x58b   : > { %3471 = vadd.xlane.f32.xlu0 %v10055_v35  ;;  %12069 = vst [vmem:[#allocation79_spill] sm:$0xff] %v10094_v20  ;;  %v3635_v55 = vmul.f32 %v10094_v20, %v10094_v20 }
 0x58d   : > { %3477 = vadd.xlane.f32.xlu1 %v10061_v36 }
 0x58f   : > { %3475 = vadd.xlane.f32.xlu0 %v10068_v31 }
 0x591   : > { %3721 = vadd.xlane.f32.xlu1 %v3632_v22  ;;  %v12072_v22 = vld [vmem:[#allocation51_spill] sm:$0xff] }
 0x593   : > { %3719 = vadd.xlane.f32.xlu0 %v3631_v60  ;;  %v10104_v60 = vsub.f32 %v12072_v22, %v3509_v51 }
 0x595   : > { %3725 = vadd.xlane.f32.xlu1 %v3634_v5  ;;  %12073 = vst [vmem:[#allocation81_spill] sm:$0xff] %v10104_v60  ;;  %v10109_v5 = vsub.f32 %v12074_v45, %v3512_v56  ;;  %v3637_v51 = vmul.f32 %v10104_v60, %v10104_v60 }
 0x597   : > { %3723 = vadd.xlane.f32.xlu0 %v3633_v33  ;;  %12075 = vst [vmem:[#allocation82_spill] sm:$0xff] %v10109_v5  ;;  %v10114_v33 = vsub.f32 %v12076_v40, %v3511_v18  ;;  %v3640_v42 = vmul.f32 %v10109_v5, %v10109_v5 }
 0x599   : > { %3729 = vadd.xlane.f32.xlu1 %v3636_v39  ;;  %12077 = vst [vmem:[#allocation83_spill] sm:$0xff] %v10114_v33  ;;  %v3639_v56 = vmul.f32 %v10114_v33, %v10114_v33  ;;  %v12086_v33 = vld [vmem:[#allocation70_spill] sm:$0xff] }
 0x59b   : > { %3727 = vadd.xlane.f32.xlu0 %v3635_v55 }
 0x59d   : > { %3733 = vadd.xlane.f32.xlu1 %v3638_v62 }
 0x59f   : > { %3731 = vadd.xlane.f32.xlu0 %v3637_v51 }
 0x5a1   : > { %3737 = vadd.xlane.f32.xlu1 %v3640_v42  ;;  %v12080_v42 = vld [vmem:[#allocation59_spill] sm:$0xff] }
 0x5a3   : > { %3735 = vadd.xlane.f32.xlu0 %v3639_v56 }
 0x5ac   : > { %v10122_v39 = vpop.xlane.xlu0 %3447 }
 0x5ae   : > { %v10124_v55 = vpop.xlane.xlu1 %3449 }
 0x5b0   : > { %v3432_v45 = vpop.xlane.xlu0 %3431 }
 0x5b2   : > { %v3434_v18 = vpop.xlane.xlu1 %3433 }
 0x5b4   : > { %v3420_v40 = vpop.xlane.xlu0 %3419 }
 0x5b5   : > { %v3513_v62 = vmul.f32 0.0078125, %v3420_v40 }
 0x5b6   : > { %v3422_v30 = vpop.xlane.xlu1 %3421 }
 0x5b7   : > { %v10127_v22 = vsub.f32 %v12078_v61, %v3513_v62  ;;  %v3514_v51 = vmul.f32 0.0078125, %v3422_v30 }
 0x5b8   : > { %v10129_v0 = vpop.xlane.xlu0 %3451 }
 0x5b9   : > { %12079 = vst [vmem:[#allocation84_spill] sm:$0xff] %v10127_v22  ;;  %v10132_v28 = vsub.f32 %v12080_v42, %v3514_v51  ;;  %v3641_v56 = vmul.f32 %v10127_v22, %v10127_v22  ;;  %v3520_v22 = vmul.f32 0.0078125, %v3434_v18  ;;  %v12092_v18 = vld [vmem:[#allocation57_spill] sm:$0xff] }
 0x5ba   : > { %v10136_v29 = vpop.xlane.xlu1 %3453 }
 0x5bb   : > { %12081 = vst [vmem:[#allocation85_spill] sm:$0xff] %v10132_v28  ;;  %3739 = vadd.xlane.f32.xlu0 %v3641_v56  ;;  %v3642_v47 = vmul.f32 %v10132_v28, %v10132_v28  ;;  %v10170_v20 = vsub.f32 %v12092_v18, %v3520_v22  ;;  %v12098_v18 = vld [vmem:[#allocation68_spill] sm:$0xff] }
 0x5bc   : > { %v3436_v40 = vpop.xlane.xlu0 %3435 }
 0x5bd   : > { %3741 = vadd.xlane.f32.xlu1 %v3642_v47  ;;  %12093 = vst [vmem:[#allocation91_spill] sm:$0xff] %v10170_v20  ;;  %v3648_v22 = vmul.f32 %v10170_v20, %v10170_v20 }
 0x5be   : > { %v3438_v3 = vpop.xlane.xlu1 %3437 }
 0x5c0   : > { %v3424_v62 = vpop.xlane.xlu0 %3423 }
 0x5c1   : > { %v3515_v61 = vmul.f32 0.0078125, %v3424_v62 }
 0x5c2   : > { %v3426_v30 = vpop.xlane.xlu1 %3425 }
 0x5c3   : > { %v10141_v24 = vsub.f32 %v12082_v44, %v3515_v61  ;;  %v3516_v51 = vmul.f32 0.0078125, %v3426_v30  ;;  %v3519_v44 = vmul.f32 0.0078125, %v3432_v45  ;;  %v3522_v45 = vmul.f32 0.0078125, %v3438_v3 }
 0x5c4   : > { %v10143_v42 = vpop.xlane.xlu0 %3455 }
 0x5c5   : > { %12083 = vst [vmem:[#allocation86_spill] sm:$0xff] %v10141_v24  ;;  %v10146_v48 = vsub.f32 %v12084_v54, %v3516_v51  ;;  %v3643_v56 = vmul.f32 %v10141_v24, %v10141_v24  ;;  %v12088_v24 = vld [vmem:[#allocation56_spill] sm:$0xff] }
 0x5c6   : > { %v10150_v2 = vpop.xlane.xlu1 %3457  ;;  %v10160_v60 = vsub.f32 %v12088_v24, %v3519_v44  ;;  %v12094_v44 = vld [vmem:[#allocation62_spill] sm:$0xff] }
 0x5c7   : > { %12085 = vst [vmem:[#allocation87_spill] sm:$0xff] %v10146_v48  ;;  %3743 = vadd.xlane.f32.xlu0 %v3643_v56  ;;  %v3644_v47 = vmul.f32 %v10146_v48, %v10146_v48  ;;  %v3521_v56 = vmul.f32 0.0078125, %v3436_v40 }
 0x5c8   : > { %v3440_v62 = vpop.xlane.xlu0 %3439  ;;  %12089 = vst [vmem:[#allocation89_spill] sm:$0xff] %v10160_v60 }
 0x5c9   : > { %3745 = vadd.xlane.f32.xlu1 %v3644_v47  ;;  %v10175_v24 = vsub.f32 %v12094_v44, %v3521_v56  ;;  %v3523_v40 = vmul.f32 0.0078125, %v3440_v62 }
 0x5ca   : > { %v3442_v52 = vpop.xlane.xlu1 %3441 }
 0x5cb   : > { %12095 = vst [vmem:[#allocation92_spill] sm:$0xff] %v10175_v24  ;;  %v3649_v62 = vmul.f32 %v10175_v24, %v10175_v24  ;;  %v12112_v24 = vld [vmem:[#allocation66_spill] sm:$0xff] }
 0x5cc   : > { %v3428_v61 = vpop.xlane.xlu0 %3427 }
 0x5cd   : > { %v3517_v30 = vmul.f32 0.0078125, %v3428_v61 }
 0x5ce   : > { %v3430_v28 = vpop.xlane.xlu1 %3429 }
 0x5cf   : > { %v10155_v51 = vsub.f32 %v12086_v33, %v3517_v30  ;;  %v3518_v54 = vmul.f32 0.0078125, %v3430_v28 }
 0x5d0   : > { %v10157_v5 = vpop.xlane.xlu0 %3459 }
 0x5d1   : > { %12087 = vst [vmem:[#allocation88_spill] sm:$0xff] %v10155_v51  ;;  %v10163_v48 = vsub.f32 %v12090_v59, %v3518_v54  ;;  %v3645_v47 = vmul.f32 %v10155_v51, %v10155_v51  ;;  %v3647_v54 = vmul.f32 %v10160_v60, %v10160_v60  ;;  %v12096_v59 = vld [vmem:[#allocation63_spill] sm:$0xff]  ;;  %v3524_v51 = vmul.f32 0.0078125, %v3442_v52 }
 0x5d2   : > { %v10167_v61 = vpop.xlane.xlu1 %3461  ;;  %v10180_v3 = vsub.f32 %v12096_v59, %v3522_v45  ;;  %v12100_v59 = vld [vmem:[#allocation69_spill] sm:$0xff] }
 0x5d3   : > { %12091 = vst [vmem:[#allocation90_spill] sm:$0xff] %v10163_v48  ;;  %3747 = vadd.xlane.f32.xlu0 %v3645_v47  ;;  %v3646_v28 = vmul.f32 %v10163_v48, %v10163_v48  ;;  %v10185_v48 = vsub.f32 %v12098_v18, %v3523_v40  ;;  %v10192_v52 = vsub.f32 %v12100_v59, %v3524_v51  ;;  %v3527_v40 = vmul.f32 0.0078125, %v10122_v39 }
 0x5d4   : > { %v3444_v30 = vpop.xlane.xlu0 %3443  ;;  %12097 = vst [vmem:[#allocation93_spill] sm:$0xff] %v10180_v3  ;;  %v3650_v45 = vmul.f32 %v10180_v3, %v10180_v3  ;;  %v3528_v51 = vmul.f32 0.0078125, %v10124_v55 }
 0x5d5   : > { %3749 = vadd.xlane.f32.xlu1 %v3646_v28  ;;  %12099 = vst [vmem:[#allocation94_spill] sm:$0xff] %v10185_v48  ;;  %v3525_v56 = vmul.f32 0.0078125, %v3444_v30  ;;  %12101 = vst [vmem:[#allocation95_spill] sm:$0xff] %v10192_v52  ;;  %v3652_v39 = vmul.f32 %v10192_v52, %v10192_v52 }
 0x5d6   : > { %v3446_v33 = vpop.xlane.xlu1 %3445 }
 0x5d7   : > { %3751 = vadd.xlane.f32.xlu0 %v3647_v54  ;;  %v3526_v54 = vmul.f32 0.0078125, %v3446_v33  ;;  %v10198_v30 = vsub.f32 %v9871_v9, %v3525_v56 }
 0x5d8   : > { %v3672_v47 = vpop.xlane.xlu0 %3671 }
 0x5d9   : > { %v3799_v44 = vmul.f32 0.0078125, %v3672_v47  ;;  %3753 = vadd.xlane.f32.xlu1 %v3648_v22  ;;  %12102 = vst [vmem:[#allocation96_spill] sm:$0xff] %v10198_v30  ;;  %v3651_v47 = vmul.f32 %v10185_v48, %v10185_v48  ;;  %v10206_v33 = vsub.f32 %v9877_v12, %v3526_v54  ;;  %v3653_v55 = vmul.f32 %v10198_v30, %v10198_v30  ;;  %v12109_v12 = vld [vmem:[#allocation60_spill] sm:$0xff] }
 0x5da   : > { %v3674_v28 = vpop.xlane.xlu1 %3673 }
 0x5db   : > { %v3863_v60 = vadd.f32 1e-05, %v3799_v44  ;;  %v3800_v20 = vmul.f32 0.0078125, %v3674_v28  ;;  %3755 = vadd.xlane.f32.xlu0 %v3649_v62  ;;  %12103 = vst [vmem:[#allocation97_spill] sm:$0xff] %v10206_v33  ;;  %v3529_v44 = vmul.f32 0.0078125, %v10129_v0  ;;  %v12106_v62 = vld [vmem:[#allocation40_spill] sm:$0xff]  ;;  %v3654_v0 = vmul.f32 %v10206_v33, %v10206_v33 }
 0x5dc   : > { %v10195_v18 = vpop.xlane.xlu0 %3703  ;;  %v4057_v28 = vsub.s32 2, %v12106_v62 }
 0x5dd   : > { %7637 = vrsqrt.f32 %v3863_v60  ;;  %v3864_v22 = vadd.f32 1e-05, %v3800_v20  ;;  %3757 = vadd.xlane.f32.xlu1 %v3650_v45  ;;  %v12104_v20 = vld [vmem:[#allocation54_spill] sm:$0xff]  ;;  %v12107_v45 = vld [vmem:[#allocation55_spill] sm:$0xff]  ;;  %v10224_v9 = vsub.f32 %v12109_v12, %v3529_v44  ;;  %v12111_v44 = vld [vmem:[#allocation61_spill] sm:$0xff] }
 0x5de   : > { %v10203_v59 = vpop.xlane.xlu1 %3705  ;;  %v10212_v56 = vsub.f32 %v12104_v20, %v3527_v40  ;;  %v10218_v54 = vsub.f32 %v12107_v45, %v3528_v51  ;;  %v7957_v51 = vld [vmem:[%s8340_s19] sm:$0xf] }
 0x5df   : > { %7639 = vrsqrt.f32 %v3864_v22  ;;  %3759 = vadd.xlane.f32.xlu0 %v3651_v47  ;;  %v3530_v47 = vmul.f32 0.0078125, %v10136_v29  ;;  %12110 = vst [vmem:[#allocation99_spill] sm:$0xff] %v10224_v9  ;;  %v10230_v45 = vrot.slane %v7957_v51, %v4057_v28  ;;  %v3657_v28 = vmul.f32 %v10224_v9, %v10224_v9 }
 0x5e0   : > { %v3688_v60 = vpop.xlane.xlu0 %3687  ;;  %12105 = vst [vmem:[#allocation98_spill] sm:$0xff] %v10212_v56  ;;  %12108 = vst [vmem:[#allocation40_spill] sm:$0xff] %v10218_v54  ;;  %v3655_v30 = vmul.f32 %v10212_v56, %v10212_v56  ;;  %v3656_v29 = vmul.f32 %v10218_v54, %v10218_v54 }
 0x5e1   : > { %3761 = vadd.xlane.f32.xlu1 %v3652_v39  ;;  %v3531_v39 = vmul.f32 0.0078125, %v10143_v42  ;;  %v10236_v12 = vsub.f32 %v12111_v44, %v3530_v47  ;;  %v3532_v42 = vmul.f32 0.0078125, %v10150_v2 }
 0x5e2   : > { %v3690_v22 = vpop.xlane.xlu1 %3689 }
 0x5e3   : > { %3763 = vadd.xlane.f32.xlu0 %v3653_v55  ;;  %v4125_v55 = vsub.s32 3, %v12106_v62  ;;  %v10243_v54 = vsub.f32 %v12112_v24, %v3531_v39  ;;  %v3533_v62 = vmul.f32 0.0078125, %v10157_v5  ;;  %v3658_v5 = vmul.f32 %v10236_v12, %v10236_v12  ;;  %v12114_v39 = vld [vmem:[#allocation72_spill] sm:$0xff] }
 0x5e4   : > { %v3676_v40 = vpop.xlane.xlu0 %3675 }
 0x5e5   : > { %v3801_v20 = vmul.f32 0.0078125, %v3676_v40  ;;  %3765 = vadd.xlane.f32.xlu1 %v3654_v0 }
 0x5e6   : > { %v3678_v52 = vpop.xlane.xlu1 %3677 }
 0x5e7   : > { %v7638_v33 = vpop.eup %7637  ;;  %v3865_v40 = vadd.f32 1e-05, %v3801_v20  ;;  %v3802_v0 = vmul.f32 0.0078125, %v3678_v52  ;;  %3767 = vadd.xlane.f32.xlu0 %v3655_v30  ;;  %v10248_v30 = vrot.slane %v7957_v51, %v4125_v55  ;;  %v12113_v20 = vld [vmem:[#allocation67_spill] sm:$0xff] }
 0x5e8   : > { %v3692_v48 = vpop.xlane.xlu0 %3691  ;;  %v3991_v56 = vmul.f32 %v7638_v33, %v9874_v50  ;;  %v10251_v9 = vsub.f32 %v12113_v20, %v3532_v42  ;;  %v3534_v50 = vmul.f32 0.0078125, %v10167_v61 }
 0x5e9   : > { %v7640_v3 = vpop.eup %7639  ;;  %7641 = vrsqrt.f32 %v3865_v40  ;;  %v3866_v47 = vadd.f32 1e-05, %v3802_v0  ;;  %3769 = vadd.xlane.f32.xlu1 %v3656_v29  ;;  %v10258_v29 = vsub.f32 %v12114_v39, %v3533_v62  ;;  %v3807_v62 = vmul.f32 0.0078125, %v3688_v60 }
 0x5ea   : > { %v3694_v44 = vpop.xlane.xlu1 %3693  ;;  %v3992_v2 = vmul.f32 %v7640_v3, %v9884_v10  ;;  %v4059_v52 = vmul.f32 %v10230_v45, %v3991_v56  ;;  %v3659_v10 = vmul.f32 %v10243_v54, %v10243_v54  ;;  %v10265_v55 = vsub.f32 %v9866_v1, %v3534_v50 }
 0x5eb   : > { %7643 = vrsqrt.f32 %v3866_v47  ;;  %3771 = vadd.xlane.f32.xlu0 %v3657_v28  ;;  %v3660_v0 = vmul.f32 %v10251_v9, %v10251_v9 }
 0x5ec   : > { %v4060_v33 = vmul.f32 %v10230_v45, %v3992_v2  ;;  %v3680_v3 = vpop.xlane.xlu0 %3679  ;;  %v4127_v51 = vadd.f32 %v10248_v30, %v4059_v52  ;;  %v3662_v50 = vmul.f32 %v10265_v55, %v10265_v55 }
 0x5ed   : > { %3773 = vadd.xlane.f32.xlu1 %v3658_v5  ;;  %v3803_v42 = vmul.f32 0.0078125, %v3680_v3  ;;  %v3661_v5 = vmul.f32 %v10258_v29, %v10258_v29 }
 0x5ee   : > { %v3682_v56 = vpop.xlane.xlu1 %3681  ;;  %v4128_v61 = vadd.f32 %v10248_v30, %v4060_v33  ;;  %v3808_v33 = vmul.f32 0.0078125, %v3690_v22  ;;  %v3810_v22 = vmul.f32 0.0078125, %v3694_v44 }
 0x5ef   : > { %v3804_v40 = vmul.f32 0.0078125, %v3682_v56  ;;  %3775 = vadd.xlane.f32.xlu0 %v3659_v10  ;;  %v3867_v47 = vadd.f32 1e-05, %v3803_v42  ;;  %v3871_v56 = vadd.f32 1e-05, %v3807_v62 }
 0x5f0   : > { %v4191_v28 = vpack.c.bf16 %v4128_v61, %v4127_v51  ;;  %v3872_v61 = vadd.f32 1e-05, %v3808_v33  ;;  %v3874_v62 = vadd.f32 1e-05, %v3810_v22 }
 0x5f1   : > { %v3868_v2 = vadd.f32 1e-05, %v3804_v40  ;;  %3777 = vadd.xlane.f32.xlu1 %v3660_v0  ;;  %7645 = vrsqrt.f32 %v3867_v47 }
 0x5f2   : > { %7076 = vmatprep.mubr.bf16.mxu0 %v4191_v28  ;;  %v3698_v0 = vpop.xlane.xlu1 %3697 }
 0x5f3   : > { %v7642_v52 = vpop.eup %7641  ;;  %3779 = vadd.xlane.f32.xlu0 %v3661_v5  ;;  %7647 = vrsqrt.f32 %v3868_v2  ;;  %v3809_v2 = vmul.f32 0.0078125, %v3692_v48 }
 0x5f4   : > { %v3993_v10 = vmul.f32 %v7642_v52, %v9909_v13  ;;  %v3696_v42 = vpop.xlane.xlu0 %3695  ;;  %7649 = vrsqrt.f32 %v3871_v56 }
 0x5f5   : > { %v7644_v3 = vpop.eup %7643  ;;  %3781 = vadd.xlane.f32.xlu1 %v3662_v50  ;;  %v3811_v28 = vmul.f32 0.0078125, %v3696_v42  ;;  %7651 = vrsqrt.f32 %v3872_v61  ;;  %v3873_v42 = vadd.f32 1e-05, %v3809_v2 }
 0x5f6   : > { %v4061_v60 = vmul.f32 %v10230_v45, %v3993_v10  ;;  %v3994_v51 = vmul.f32 %v7644_v3, %v9914_v58  ;;  %v3812_v10 = vmul.f32 0.0078125, %v3698_v0  ;;  %7653 = vrsqrt.f32 %v3874_v62 }
 0x5f7   : > { %v3875_v3 = vadd.f32 1e-05, %v3811_v28 }
 0x5f8   : > { %v4062_v40 = vmul.f32 %v10230_v45, %v3994_v51  ;;  %v4129_v47 = vadd.f32 %v10248_v30, %v4061_v60 }
 0x5fa   : > { %v4130_v13 = vadd.f32 %v10248_v30, %v4062_v40  ;;  %v3686_v5 = vpop.xlane.xlu1 %3685  ;;  %v3876_v40 = vadd.f32 1e-05, %v3812_v10 }
 0x5fb   : > { %v7646_v50 = vpop.eup %7645  ;;  %v3806_v58 = vmul.f32 0.0078125, %v3686_v5 }
 0x5fc   : > { %v4192_v52 = vpack.c.bf16 %v4130_v13, %v4129_v47  ;;  %v3684_v20 = vpop.xlane.xlu0 %3683  ;;  %v3995_v44 = vmul.f32 %v7646_v50, %v9942_v23  ;;  %v3816_v13 = vmul.f32 0.0078125, %v10203_v59 }
 0x5fd   : > { %v7648_v33 = vpop.eup %7647  ;;  %v3870_v56 = vadd.f32 1e-05, %v3806_v58  ;;  %v3805_v51 = vmul.f32 0.0078125, %v3684_v20  ;;  %v3815_v20 = vmul.f32 0.0078125, %v10195_v18 }
 0x5fe   : > { %7077 = vmatmul.mubr.bf16.vlgmr.msra.gmra.mrb[64].mxu0 %v4192_v52  ;;  %v3996_v60 = vmul.f32 %v7648_v33, %v9935_v4  ;;  %v3710_v61 = vpop.xlane.xlu1 %3709  ;;  %v4063_v48 = vmul.f32 %v10230_v45, %v3995_v44  ;;  %v7650_v47 = vpop.eup %7649  ;;  %v3880_v58 = vadd.f32 1e-05, %v3816_v13 }
 0x5ff   : > { %7655 = vrsqrt.f32 %v3870_v56  ;;  %v3869_v22 = vadd.f32 1e-05, %v3805_v51  ;;  %v7652_v62 = vpop.eup %7651  ;;  %v3999_v10 = vmul.f32 %v7650_v47, %v9897_v49 }
 0x600   : > { %v4064_v0 = vmul.f32 %v10230_v45, %v3996_v60  ;;  %7657 = vrsqrt.f32 %v3875_v3  ;;  %v3708_v28 = vpop.xlane.xlu0 %3707  ;;  %v4131_v23 = vadd.f32 %v10248_v30, %v4063_v48  ;;  %v3879_v3 = vadd.f32 1e-05, %v3815_v20 }
 0x601   : > { %7659 = vrsqrt.f32 %v3869_v22  ;;  %v4000_v56 = vmul.f32 %v7652_v62, %v9904_v6  ;;  %v3817_v22 = vmul.f32 0.0078125, %v3708_v28  ;;  %v3818_v6 = vmul.f32 0.0078125, %v3710_v61 }
 0x602   : > { %v4132_v4 = vadd.f32 %v10248_v30, %v4064_v0  ;;  %7661 = vrsqrt.f32 %v3873_v42  ;;  %v3466_v2 = vpop.xlane.xlu1 %3465  ;;  %v7654_v42 = vpop.eup %7653 }
 0x603   : > { %7663 = vrsqrt.f32 %v3876_v40  ;;  %v3536_v5 = vmul.f32 0.0078125, %v3466_v2  ;;  %v4067_v40 = vmul.f32 %v10230_v45, %v3999_v10  ;;  %v4068_v20 = vmul.f32 %v10230_v45, %v4000_v56 }
 0x604   : > { %v4193_v52 = vpack.c.bf16 %v4132_v4, %v4131_v23  ;;  %v3700_v50 = vpop.xlane.xlu0 %3699  ;;  %7665 = vrsqrt.f32 %v3880_v58 }
 0x605   : > { %v10289_v33 = vsub.f32 %v9994_v34, %v3536_v5  ;;  %v3813_v59 = vmul.f32 0.0078125, %v3700_v50  ;;  %7667 = vrsqrt.f32 %v3879_v3  ;;  %v4135_v58 = vadd.f32 %v10248_v30, %v4067_v40 }
 0x606   : > { %7080 = vmatprep.mubr.bf16.mxu0 %v4193_v52  ;;  %v3470_v44 = vpop.xlane.xlu1 %3469 }
 0x607   : > { %v3877_v18 = vadd.f32 1e-05, %v3813_v59  ;;  %v3538_v51 = vmul.f32 0.0078125, %v3470_v44  ;;  %v3664_v60 = vmul.f32 %v10289_v33, %v10289_v33  ;;  %v3881_v59 = vadd.f32 1e-05, %v3817_v22 }
 0x608   : > { %v3464_v48 = vpop.xlane.xlu0 %3463 }
 0x609   : > { %v7656_v49 = vpop.eup %7655  ;;  %v10296_v0 = vsub.f32 %v10007_v57, %v3538_v51  ;;  %v3535_v47 = vmul.f32 0.0078125, %v3464_v48  ;;  %3785 = vadd.xlane.f32.xlu1 %v3664_v60  ;;  %7669 = vrsqrt.f32 %v3877_v18  ;;  %v4136_v60 = vadd.f32 %v10248_v30, %v4068_v20 }
 0x60a   : > { %v7658_v13 = vpop.eup %7657  ;;  %v3702_v23 = vpop.xlane.xlu1 %3701  ;;  %v3998_v4 = vmul.f32 %v7656_v49, %v9971_v14  ;;  %v4002_v48 = vmul.f32 %v7654_v42, %v9928_v19  ;;  %v3882_v49 = vadd.f32 1e-05, %v3818_v6 }
 0x60b   : > { %v7660_v2 = vpop.eup %7659  ;;  %v10301_v62 = vsub.f32 %v10014_v37, %v3535_v47  ;;  %v3814_v5 = vmul.f32 0.0078125, %v3702_v23  ;;  %v3666_v28 = vmul.f32 %v10296_v0, %v10296_v0 }
 0x60c   : > { %v7662_v52 = vpop.eup %7661  ;;  %v3468_v50 = vpop.xlane.xlu0 %3467  ;;  %v3997_v10 = vmul.f32 %v7660_v2, %v9977_v25  ;;  %v4066_v61 = vmul.f32 %v10230_v45, %v3998_v4  ;;  %v4003_v25 = vmul.f32 %v7658_v13, %v9958_v26  ;;  %v12115_v2 = vld [vmem:[#allocation77_spill] sm:$0xff] }
 0x60d   : > { %v7664_v14 = vpop.eup %7663  ;;  %v3878_v3 = vadd.f32 1e-05, %v3814_v5  ;;  %v3537_v44 = vmul.f32 0.0078125, %v3468_v50  ;;  %3789 = vadd.xlane.f32.xlu1 %v3666_v28  ;;  %v3663_v56 = vmul.f32 %v10301_v62, %v10301_v62  ;;  %v4001_v5 = vmul.f32 %v7662_v52, %v12115_v2  ;;  %v12116_v28 = vld [vmem:[#allocation78_spill] sm:$0xff] }
 0x60e   : > { %v3714_v18 = vpop.xlane.xlu1 %3713  ;;  %v4065_v51 = vmul.f32 %v10230_v45, %v3997_v10  ;;  %v4134_v4 = vadd.f32 %v10248_v30, %v4066_v61  ;;  %v4004_v20 = vmul.f32 %v7664_v14, %v12116_v28  ;;  %v4070_v50 = vmul.f32 %v10230_v45, %v4002_v48 }
 0x60f   : > { %7671 = vrsqrt.f32 %v3878_v3  ;;  %v10315_v40 = vsub.f32 %v10026_v27, %v3537_v44  ;;  %v3820_v22 = vmul.f32 0.0078125, %v3714_v18  ;;  %3783 = vadd.xlane.f32.xlu0 %v3663_v56  ;;  %v4071_v10 = vmul.f32 %v10230_v45, %v4003_v25  ;;  %v7666_v3 = vpop.eup %7665 }
 0x610   : > { %v3712_v47 = vpop.xlane.xlu0 %3711  ;;  %v4133_v23 = vadd.f32 %v10248_v30, %v4065_v51  ;;  %7673 = vrsqrt.f32 %v3881_v59  ;;  %v4195_v52 = vpack.c.bf16 %v4136_v60, %v4135_v58  ;;  %v7668_v56 = vpop.eup %7667  ;;  %v4069_v59 = vmul.f32 %v10230_v45, %v4001_v5 }
 0x611   : > { %v3884_v19 = vadd.f32 1e-05, %v3820_v22  ;;  %v3819_v42 = vmul.f32 0.0078125, %v3712_v47  ;;  %v3665_v26 = vmul.f32 %v10315_v40, %v10315_v40  ;;  %7675 = vrsqrt.f32 %v3882_v49  ;;  %v12117_v47 = vld [vmem:[#allocation76_spill] sm:$0xff] }
 0x612   : > { %v3718_v13 = vpop.xlane.xlu1 %3717  ;;  %v4194_v6 = vpack.c.bf16 %v4134_v4, %v4133_v23  ;;  %v4072_v18 = vmul.f32 %v10230_v45, %v4004_v20  ;;  %v4138_v25 = vadd.f32 %v10248_v30, %v4070_v50  ;;  %v4139_v49 = vadd.f32 %v10248_v30, %v4071_v10 }
 0x613   : > { %v3883_v44 = vadd.f32 1e-05, %v3819_v42  ;;  %v3822_v61 = vmul.f32 0.0078125, %v3718_v13  ;;  %3787 = vadd.xlane.f32.xlu0 %v3665_v26  ;;  %7677 = vrsqrt.f32 %v3884_v19  ;;  %v7670_v51 = vpop.eup %7669  ;;  %v4008_v23 = vmul.f32 %v7666_v3, %v12117_v47  ;;  %v12118_v19 = vld [vmem:[#allocation75_spill] sm:$0xff] }
 0x614   : > { %v3716_v14 = vpop.xlane.xlu0 %3715  ;;  %7081 = vmatmul.mubr.bf16.gmra.mrb[68].mxu0 %v4194_v6  ;;  %v4137_v28 = vadd.f32 %v10248_v30, %v4069_v59  ;;  %v4140_v5 = vadd.f32 %v10248_v30, %v4072_v18  ;;  %v4005_v20 = vmul.f32 %v7670_v51, %v9999_v32  ;;  %v4007_v42 = vmul.f32 %v7668_v56, %v12118_v19 }
 0x615   : > { %7679 = vrsqrt.f32 %v3883_v44  ;;  %v3821_v22 = vmul.f32 0.0078125, %v3716_v14  ;;  %7084 = vmatprep.mubr.bf16.mxu0 %v4195_v52  ;;  %v3886_v58 = vadd.f32 1e-05, %v3822_v61  ;;  %v4076_v61 = vmul.f32 %v10230_v45, %v4008_v23 }
 0x616   : > { %v3474_v48 = vpop.xlane.xlu1 %3473  ;;  %v4196_v10 = vpack.c.bf16 %v4138_v25, %v4137_v28  ;;  %v4197_v3 = vpack.c.bf16 %v4140_v5, %v4139_v49  ;;  %v4073_v18 = vmul.f32 %v10230_v45, %v4005_v20 }
 0x617   : > { %v3885_v60 = vadd.f32 1e-05, %v3821_v22  ;;  %v3540_v4 = vmul.f32 0.0078125, %v3474_v48  ;;  %v4075_v22 = vmul.f32 %v10230_v45, %v4007_v42 }
 0x618   : > { %v3472_v2 = vpop.xlane.xlu0 %3471  ;;  %v4141_v42 = vadd.f32 %v10248_v30, %v4073_v18 }
 0x619   : > { %v7672_v26 = vpop.eup %7671  ;;  %7681 = vrsqrt.f32 %v3885_v60  ;;  %v10335_v13 = vsub.f32 %v10050_v53, %v3540_v4  ;;  %v3539_v6 = vmul.f32 0.0078125, %v3472_v2  ;;  %v4144_v60 = vadd.f32 %v10248_v30, %v4076_v61 }
 0x61a   : > { %v3478_v50 = vpop.xlane.xlu1 %3477  ;;  %v4006_v44 = vmul.f32 %v7672_v26, %v10011_v21  ;;  %v7674_v52 = vpop.eup %7673  ;;  %7683 = vrsqrt.f32 %v3886_v58  ;;  %v4143_v26 = vadd.f32 %v10248_v30, %v4075_v22 }
 0x61b   : > { %v10340_v14 = vsub.f32 %v10055_v35, %v3539_v6  ;;  %v3542_v32 = vmul.f32 0.0078125, %v3478_v50  ;;  %v3668_v56 = vmul.f32 %v10335_v13, %v10335_v13  ;;  %v7676_v21 = vpop.eup %7675  ;;  %v4009_v4 = vmul.f32 %v7674_v52, %v9983_v63 }
 0x61c   : > { %v3476_v59 = vpop.xlane.xlu0 %3475  ;;  %7085 = vmatmul.mubr.bf16.gmra.mrb[72].mxu0 %v4196_v10  ;;  %v4074_v51 = vmul.f32 %v10230_v45, %v4006_v44  ;;  %v4010_v6 = vmul.f32 %v7676_v21, %v9974_v46 }
 0x61d   : > { %v10348_v48 = vsub.f32 %v10061_v36, %v3542_v32  ;;  %v3541_v25 = vmul.f32 0.0078125, %v3476_v59  ;;  %7088 = vmatprep.mubr.bf16.mxu0 %v4197_v3  ;;  %3793 = vadd.xlane.f32.xlu1 %v3668_v56  ;;  %v3667_v49 = vmul.f32 %v10340_v14, %v10340_v14  ;;  %v7678_v47 = vpop.eup %7677  ;;  %v4199_v32 = vpack.c.bf16 %v4144_v60, %v4143_v26 }
 0x61e   : > { %v3722_v23 = vpop.xlane.xlu1 %3721  ;;  %v4142_v58 = vadd.f32 %v10248_v30, %v4074_v51  ;;  %v4012_v44 = vmul.f32 %v7678_v47, %v10021_v38  ;;  %v4077_v56 = vmul.f32 %v10230_v45, %v4009_v4  ;;  %v4078_v22 = vmul.f32 %v10230_v45, %v4010_v6 }
 0x61f   : > { %v7680_v2 = vpop.eup %7679  ;;  %v10356_v28 = vsub.f32 %v10068_v31, %v3541_v25  ;;  %v3824_v5 = vmul.f32 0.0078125, %v3722_v23  ;;  %3791 = vadd.xlane.f32.xlu0 %v3667_v49  ;;  %v3670_v20 = vmul.f32 %v10348_v48, %v10348_v48 }
 0x620   : > { %v3720_v19 = vpop.xlane.xlu0 %3719  ;;  %v4011_v50 = vmul.f32 %v7680_v2, %v10029_v16  ;;  %v4198_v52 = vpack.c.bf16 %v4142_v58, %v4141_v42  ;;  %v4080_v49 = vmul.f32 %v10230_v45, %v4012_v44  ;;  %v4145_v23 = vadd.f32 %v10248_v30, %v4077_v56 }
 0x621   : > { %v3888_v10 = vadd.f32 1e-05, %v3824_v5  ;;  %v3823_v63 = vmul.f32 0.0078125, %v3720_v19  ;;  %3797 = vadd.xlane.f32.xlu1 %v3670_v20  ;;  %v3669_v3 = vmul.f32 %v10356_v28, %v10356_v28  ;;  %v4146_v20 = vadd.f32 %v10248_v30, %v4078_v22 }
 0x622   : > { %v3726_v61 = vpop.xlane.xlu1 %3725  ;;  %v4079_v46 = vmul.f32 %v10230_v45, %v4011_v50  ;;  %v4148_v6 = vadd.f32 %v10248_v30, %v4080_v49 }
 0x623   : > { %v7682_v59 = vpop.eup %7681  ;;  %7685 = vrsqrt.f32 %v3888_v10  ;;  %v3887_v18 = vadd.f32 1e-05, %v3823_v63  ;;  %v3826_v51 = vmul.f32 0.0078125, %v3726_v61  ;;  %3795 = vadd.xlane.f32.xlu0 %v3669_v3  ;;  %v4200_v10 = vpack.c.bf16 %v4146_v20, %v4145_v23 }
 0x624   : > { %v3724_v16 = vpop.xlane.xlu0 %3723  ;;  %7089 = vmatmul.mubr.bf16.gmra.mrb[76].mxu0 %v4198_v52  ;;  %v7684_v21 = vpop.eup %7683  ;;  %v4013_v58 = vmul.f32 %v7682_v59, %v10038_v41  ;;  %v4147_v2 = vadd.f32 %v10248_v30, %v4079_v46 }
 0x625   : > { %7687 = vrsqrt.f32 %v3887_v18  ;;  %v3890_v25 = vadd.f32 1e-05, %v3826_v51  ;;  %v3825_v38 = vmul.f32 0.0078125, %v3724_v16  ;;  %7092 = vmatprep.mubr.bf16.mxu0 %v4199_v32  ;;  %v4014_v19 = vmul.f32 %v7684_v21, %v10032_v7 }
 0x626   : > { %v3730_v47 = vpop.xlane.xlu1 %3729  ;;  %v4081_v63 = vmul.f32 %v10230_v45, %v4013_v58  ;;  %v4201_v44 = vpack.c.bf16 %v4148_v6, %v4147_v2 }
 0x627   : > { %7689 = vrsqrt.f32 %v3890_v25  ;;  %v3889_v60 = vadd.f32 1e-05, %v3825_v38  ;;  %v3828_v4 = vmul.f32 0.0078125, %v3730_v47  ;;  %v4082_v52 = vmul.f32 %v10230_v45, %v4014_v19 }
 0x628   : > { %v3728_v5 = vpop.xlane.xlu0 %3727  ;;  %v4149_v18 = vadd.f32 %v10248_v30, %v4081_v63 }
 0x629   : > { %7691 = vrsqrt.f32 %v3889_v60  ;;  %v3892_v42 = vadd.f32 1e-05, %v3828_v4  ;;  %v3827_v26 = vmul.f32 0.0078125, %v3728_v5  ;;  %v4150_v25 = vadd.f32 %v10248_v30, %v4082_v52 }
 0x62a   : > { %v3734_v50 = vpop.xlane.xlu1 %3733 }
 0x62b   : > { %7693 = vrsqrt.f32 %v3892_v42  ;;  %v3891_v41 = vadd.f32 1e-05, %v3827_v26  ;;  %v3830_v3 = vmul.f32 0.0078125, %v3734_v50  ;;  %v4202_v60 = vpack.c.bf16 %v4150_v25, %v4149_v18 }
 0x62c   : > { %v3732_v61 = vpop.xlane.xlu0 %3731  ;;  %7093 = vmatmul.mubr.bf16.gmra.mrb[80].mxu0 %v4200_v10 }
 0x62d   : > { %v7686_v32 = vpop.eup %7685  ;;  %7695 = vrsqrt.f32 %v3891_v41  ;;  %v3894_v7 = vadd.f32 1e-05, %v3830_v3  ;;  %v3829_v56 = vmul.f32 0.0078125, %v3732_v61  ;;  %7096 = vmatprep.mubr.bf16.mxu0 %v4201_v44  ;;  %v12119_v3 = vld [vmem:[#allocation79_spill] sm:$0xff] }
 0x62e   : > { %v3738_v59 = vpop.xlane.xlu1 %3737  ;;  %v4016_v51 = vmul.f32 %v7686_v32, %v10064_v43 }
 0x62f   : > { %v7688_v46 = vpop.eup %7687  ;;  %7697 = vrsqrt.f32 %v3894_v7  ;;  %v3893_v16 = vadd.f32 1e-05, %v3829_v56  ;;  %v3832_v22 = vmul.f32 0.0078125, %v3738_v59  ;;  %v12120_v7 = vld [vmem:[#allocation80_spill] sm:$0xff] }
 0x630   : > { %v3736_v21 = vpop.xlane.xlu0 %3735  ;;  %v4015_v38 = vmul.f32 %v7688_v46, %v10071_v17  ;;  %v4084_v49 = vmul.f32 %v10230_v45, %v4016_v51  ;;  %v12121_v51 = vld [vmem:[#allocation81_spill] sm:$0xff] }
 0x631   : > { %v7690_v47 = vpop.eup %7689  ;;  %7699 = vrsqrt.f32 %v3893_v16  ;;  %v3896_v23 = vadd.f32 1e-05, %v3832_v22  ;;  %v3831_v58 = vmul.f32 0.0078125, %v3736_v21 }
 0x632   : > { %v4083_v4 = vmul.f32 %v10230_v45, %v4015_v38  ;;  %v4018_v43 = vmul.f32 %v7690_v47, %v10076_v15  ;;  %v4152_v19 = vadd.f32 %v10248_v30, %v4084_v49  ;;  %v12122_v38 = vld [vmem:[#allocation82_spill] sm:$0xff] }
 0x633   : > { %v7692_v2 = vpop.eup %7691  ;;  %7701 = vrsqrt.f32 %v3896_v23  ;;  %v3895_v5 = vadd.f32 1e-05, %v3831_v58 }
 0x634   : > { %7097 = vmatmul.mubr.bf16.gmra.mrb[84].mxu0 %v4202_v60  ;;  %v4151_v20 = vadd.f32 %v10248_v30, %v4083_v4  ;;  %v4017_v17 = vmul.f32 %v7692_v2, %v10083_v8  ;;  %v4086_v42 = vmul.f32 %v10230_v45, %v4018_v43  ;;  %v12123_v60 = vld [vmem:[#allocation83_spill] sm:$0xff] }
 0x635   : > { %v7694_v26 = vpop.eup %7693  ;;  %7703 = vrsqrt.f32 %v3895_v5 }
 0x636   : > { %v4203_v6 = vpack.c.bf16 %v4152_v19, %v4151_v20  ;;  %v4085_v50 = vmul.f32 %v10230_v45, %v4017_v17  ;;  %v4020_v10 = vmul.f32 %v7694_v26, %v10089_v11  ;;  %v4154_v41 = vadd.f32 %v10248_v30, %v4086_v42 }
 0x637   : > { %v7696_v15 = vpop.eup %7695 }
 0x638   : > { %7100 = vmatprep.mubr.bf16.mxu0 %v4203_v6  ;;  %v4153_v63 = vadd.f32 %v10248_v30, %v4085_v50  ;;  %v4019_v44 = vmul.f32 %v7696_v15, %v12119_v3  ;;  %v4088_v61 = vmul.f32 %v10230_v45, %v4020_v10  ;;  %v7373_v50 = vld [vmem:[%s8355_s13 + $0x40] sm:$0xff]   ;;  %v7374_v10 = vld [vmem:[%s8355_s13 + $0x48] sm:$0xff]   ;;  %v7375_v3 = vld [vmem:[%s8355_s13 + $0x50] sm:$0xff]  }
 0x639   : > { %v7698_v8 = vpop.eup %7697  ;;  %7140 = vmatprep.subr.bf16.mxu1 %v7373_v50 }
 0x63a   : > { %v4204_v52 = vpack.c.bf16 %v4154_v41, %v4153_v63  ;;  %v4087_v32 = vmul.f32 %v10230_v45, %v4019_v44  ;;  %v4022_v56 = vmul.f32 %v7698_v8, %v12120_v7  ;;  %v4156_v18 = vadd.f32 %v10248_v30, %v4088_v61  ;;  %7141 = vmatpush3.bf16.msra.mxu1 %v7373_v50 }
 0x63b   : > { %v7700_v59 = vpop.eup %7699  ;;  %7142 = vmatprep.subr.bf16.mxu1 %v7374_v10 }
 0x63c   : > { %7101 = vmatmul.mubr.bf16.gmra.mrb[88].mxu0 %v4204_v52  ;;  %v4155_v11 = vadd.f32 %v10248_v30, %v4087_v32  ;;  %v4021_v46 = vmul.f32 %v7700_v59, %v12121_v51  ;;  %v4090_v16 = vmul.f32 %v10230_v45, %v4022_v56  ;;  %v7376_v56 = vld [vmem:[%s8355_s13 + $0x58] sm:$0xff]   ;;  %v12124_v59 = vld [vmem:[#allocation84_spill] sm:$0xff] }
 0x63d   : > { %v7702_v22 = vpop.eup %7701 }
 0x63e   : > { %v4205_v21 = vpack.c.bf16 %v4156_v18, %v4155_v11  ;;  %v4089_v25 = vmul.f32 %v10230_v45, %v4021_v46  ;;  %v4024_v49 = vmul.f32 %v7702_v22, %v12122_v38  ;;  %v4158_v58 = vadd.f32 %v10248_v30, %v4090_v16  ;;  %7143 = vmatpush3.bf16.msra.mxu1 %v7374_v10  ;;  %v12125_v46 = vld [vmem:[#allocation85_spill] sm:$0xff] }
 0x63f   : > { %v7704_v47 = vpop.eup %7703  ;;  %7144 = vmatprep.subr.bf16.mxu1 %v7375_v3 }
 0x640   : > { %7104 = vmatprep.mubr.bf16.mxu0 %v4205_v21  ;;  %v4157_v23 = vadd.f32 %v10248_v30, %v4089_v25  ;;  %v4023_v4 = vmul.f32 %v7704_v47, %v12123_v60  ;;  %v4092_v43 = vmul.f32 %v10230_v45, %v4024_v49  ;;  %v7377_v21 = vld [vmem:[%s8355_s13 + $0x60] sm:$0xff]   ;;  %v7378_v47 = vld [vmem:[%s8355_s13 + $0x68] sm:$0xff]  }
 0x642   : > { %v4206_v2 = vpack.c.bf16 %v4158_v58, %v4157_v23  ;;  %v4091_v5 = vmul.f32 %v10230_v45, %v4023_v4  ;;  %v4160_v19 = vadd.f32 %v10248_v30, %v4092_v43  ;;  %7145 = vmatpush3.bf16.msra.mxu1 %v7375_v3 }
 0x643   : > { %7146 = vmatprep.subr.bf16.mxu1 %v7376_v56 }
 0x644   : > { %7105 = vmatmul.mubr.bf16.gmra.mrb[92].mxu0 %v4206_v2  ;;  %v4159_v20 = vadd.f32 %v10248_v30, %v4091_v5 }
 0x646   : > { %v4207_v42 = vpack.c.bf16 %v4160_v19, %v4159_v20  ;;  %7147 = vmatpush3.bf16.msra.mxu1 %v7376_v56  ;;  %v7379_v20 = vld [vmem:[%s8355_s13 + $0x70] sm:$0xff]  }
 0x647   : > { %7148 = vmatprep.subr.bf16.mxu1 %v7377_v21 }
 0x648   : > { %v3740_v17 = vpop.xlane.xlu0 %3739  ;;  %7108 = vmatprep.mubr.bf16.mxu0 %v4207_v42 }
 0x649   : > { %v3833_v26 = vmul.f32 0.0078125, %v3740_v17  ;;  %v12126_v17 = vld [vmem:[#allocation86_spill] sm:$0xff] }
 0x64a   : > { %v3742_v6 = vpop.xlane.xlu1 %3741  ;;  %7149 = vmatpush3.bf16.msra.mxu1 %v7377_v21 }
 0x64b   : > { %v3897_v15 = vadd.f32 1e-05, %v3833_v26  ;;  %v3834_v63 = vmul.f32 0.0078125, %v3742_v6  ;;  %7150 = vmatprep.subr.bf16.mxu1 %v7378_v47 }
 0x64d   : > { %7705 = vrsqrt.f32 %v3897_v15  ;;  %v3898_v41 = vadd.f32 1e-05, %v3834_v63  ;;  %v12127_v15 = vld [vmem:[#allocation87_spill] sm:$0xff] }
 0x64e   : > { %7151 = vmatpush3.bf16.msra.mxu1 %v7378_v47 }
 0x64f   : > { %7707 = vrsqrt.f32 %v3898_v41  ;;  %7152 = vmatprep.subr.bf16.mxu1 %v7379_v20 }
 0x652   : > { %7153 = vmatpush3.bf16.msra.mxu1 %v7379_v20  ;;  %v12129_v20 = vld [vmem:[#allocation90_spill] sm:$0xff] }
 0x654   : > { %v3744_v44 = vpop.xlane.xlu0 %3743 }
 0x655   : > { %v3835_v61 = vmul.f32 0.0078125, %v3744_v44 }
 0x656   : > { %v3746_v8 = vpop.xlane.xlu1 %3745 }
 0x657   : > { %v7706_v52 = vpop.eup %7705  ;;  %v3899_v32 = vadd.f32 1e-05, %v3835_v61  ;;  %v3836_v7 = vmul.f32 0.0078125, %v3746_v8  ;;  %v7380_v61 = vld [vmem:[%s8355_s13 + $0x78] sm:$0xff]  }
 0x658   : > { %v4025_v11 = vmul.f32 %v7706_v52, %v12124_v59  ;;  %7154 = vmatprep.subr.bf16.mxu1 %v7380_v61 }
 0x659   : > { %v7708_v18 = vpop.eup %7707  ;;  %7709 = vrsqrt.f32 %v3899_v32  ;;  %v3900_v51 = vadd.f32 1e-05, %v3836_v7  ;;  %7155 = vmatpush3.bf16.msra.mxu1 %v7380_v61 }
 0x65a   : > { %v4026_v16 = vmul.f32 %v7708_v18, %v12125_v46  ;;  %v4093_v22 = vmul.f32 %v10230_v45, %v4025_v11 }
 0x65b   : > { %7711 = vrsqrt.f32 %v3900_v51 }
 0x65c   : > { %v4094_v25 = vmul.f32 %v10230_v45, %v4026_v16  ;;  %v4161_v38 = vadd.f32 %v10248_v30, %v4093_v22 }
 0x65e   : > { %v4162_v49 = vadd.f32 %v10248_v30, %v4094_v25 }
 0x660   : > { %v3748_v23 = vpop.xlane.xlu0 %3747  ;;  %v4208_v58 = vpack.c.bf16 %v4162_v49, %v4161_v38 }
 0x661   : > { %v3837_v60 = vmul.f32 0.0078125, %v3748_v23 }
 0x662   : > { %7109 = vmatmul.mubr.bf16.gmra.mrb[96].mxu0 %v4208_v58  ;;  %v3750_v4 = vpop.xlane.xlu1 %3749  ;;  %v12128_v58 = vld [vmem:[#allocation88_spill] sm:$0xff] }
 0x663   : > { %v7710_v43 = vpop.eup %7709  ;;  %v3901_v2 = vadd.f32 1e-05, %v3837_v60  ;;  %v3838_v5 = vmul.f32 0.0078125, %v3750_v4 }
 0x664   : > { %v3752_v19 = vpop.xlane.xlu0 %3751  ;;  %v4027_v42 = vmul.f32 %v7710_v43, %v12126_v17 }
 0x665   : > { %v7712_v26 = vpop.eup %7711  ;;  %7713 = vrsqrt.f32 %v3901_v2  ;;  %v3902_v6 = vadd.f32 1e-05, %v3838_v5  ;;  %v3839_v50 = vmul.f32 0.0078125, %v3752_v19 }
 0x666   : > { %v3754_v10 = vpop.xlane.xlu1 %3753  ;;  %v4028_v63 = vmul.f32 %v7712_v26, %v12127_v15  ;;  %v4095_v41 = vmul.f32 %v10230_v45, %v4027_v42  ;;  %v12130_v15 = vld [vmem:[#allocation89_spill] sm:$0xff] }
 0x667   : > { %7715 = vrsqrt.f32 %v3902_v6  ;;  %v3903_v3 = vadd.f32 1e-05, %v3839_v50  ;;  %v3840_v44 = vmul.f32 0.0078125, %v3754_v10 }
 0x668   : > { %v3756_v8 = vpop.xlane.xlu0 %3755  ;;  %v4096_v52 = vmul.f32 %v10230_v45, %v4028_v63  ;;  %v4163_v59 = vadd.f32 %v10248_v30, %v4095_v41 }
 0x669   : > { %7717 = vrsqrt.f32 %v3903_v3  ;;  %v3904_v32 = vadd.f32 1e-05, %v3840_v44  ;;  %v3841_v7 = vmul.f32 0.0078125, %v3756_v8 }
 0x66a   : > { %v3758_v56 = vpop.xlane.xlu1 %3757  ;;  %v4164_v11 = vadd.f32 %v10248_v30, %v4096_v52 }
 0x66b   : > { %7719 = vrsqrt.f32 %v3904_v32  ;;  %v3905_v18 = vadd.f32 1e-05, %v3841_v7  ;;  %v3842_v51 = vmul.f32 0.0078125, %v3758_v56  ;;  %v12131_v32 = vld [vmem:[#allocation91_spill] sm:$0xff] }
 0x66c   : > { %v3760_v46 = vpop.xlane.xlu0 %3759  ;;  %v4209_v16 = vpack.c.bf16 %v4164_v11, %v4163_v59 }
 0x66d   : > { %7721 = vrsqrt.f32 %v3905_v18  ;;  %v3906_v22 = vadd.f32 1e-05, %v3842_v51  ;;  %v3843_v21 = vmul.f32 0.0078125, %v3760_v46 }
 0x66e   : > { %7112 = vmatprep.mubr.bf16.mxu0 %v4209_v16  ;;  %v3762_v25 = vpop.xlane.xlu1 %3761 }
 0x66f   : > { %v7714_v38 = vpop.eup %7713  ;;  %7723 = vrsqrt.f32 %v3906_v22  ;;  %v3907_v49 = vadd.f32 1e-05, %v3843_v21  ;;  %v3844_v47 = vmul.f32 0.0078125, %v3762_v25  ;;  %v12132_v22 = vld [vmem:[#allocation92_spill] sm:$0xff] }
 0x670   : > { %v3764_v23 = vpop.xlane.xlu0 %3763  ;;  %v4029_v60 = vmul.f32 %v7714_v38, %v12128_v58 }
 0x671   : > { %v7716_v4 = vpop.eup %7715  ;;  %7725 = vrsqrt.f32 %v3907_v49  ;;  %v3908_v43 = vadd.f32 1e-05, %v3844_v47  ;;  %v3845_v2 = vmul.f32 0.0078125, %v3764_v23 }
 0x672   : > { %v3766_v5 = vpop.xlane.xlu1 %3765  ;;  %v4030_v19 = vmul.f32 %v7716_v4, %v12129_v20  ;;  %v4097_v17 = vmul.f32 %v10230_v45, %v4029_v60  ;;  %v12133_v60 = vld [vmem:[#allocation93_spill] sm:$0xff] }
 0x673   : > { %v7718_v42 = vpop.eup %7717  ;;  %7727 = vrsqrt.f32 %v3908_v43  ;;  %v3909_v26 = vadd.f32 1e-05, %v3845_v2  ;;  %v3846_v6 = vmul.f32 0.0078125, %v3766_v5 }
 0x674   : > { %v3768_v50 = vpop.xlane.xlu0 %3767  ;;  %v4098_v10 = vmul.f32 %v10230_v45, %v4030_v19  ;;  %v4031_v63 = vmul.f32 %v7718_v42, %v12130_v15  ;;  %v4165_v8 = vadd.f32 %v10248_v30, %v4097_v17 }
 0x675   : > { %v7720_v41 = vpop.eup %7719  ;;  %7729 = vrsqrt.f32 %v3909_v26  ;;  %v3910_v3 = vadd.f32 1e-05, %v3846_v6  ;;  %v3847_v44 = vmul.f32 0.0078125, %v3768_v50  ;;  %v12134_v26 = vld [vmem:[#allocation94_spill] sm:$0xff] }
 0x676   : > { %v3770_v61 = vpop.xlane.xlu1 %3769  ;;  %v4166_v52 = vadd.f32 %v10248_v30, %v4098_v10  ;;  %v4032_v7 = vmul.f32 %v7720_v41, %v12131_v32  ;;  %v4099_v56 = vmul.f32 %v10230_v45, %v4031_v63 }
 0x677   : > { %v7722_v59 = vpop.eup %7721  ;;  %7731 = vrsqrt.f32 %v3910_v3  ;;  %v3911_v11 = vadd.f32 1e-05, %v3847_v44  ;;  %v3848_v18 = vmul.f32 0.0078125, %v3770_v61  ;;  %v12135_v44 = vld [vmem:[#allocation95_spill] sm:$0xff] }
 0x678   : > { %v3772_v51 = vpop.xlane.xlu0 %3771  ;;  %v4210_v46 = vpack.c.bf16 %v4166_v52, %v4165_v8  ;;  %v4100_v16 = vmul.f32 %v10230_v45, %v4032_v7  ;;  %v4033_v21 = vmul.f32 %v7722_v59, %v12132_v22  ;;  %v4167_v23 = vadd.f32 %v10248_v30, %v4099_v56 }
 0x679   : > { %v7724_v25 = vpop.eup %7723  ;;  %7733 = vrsqrt.f32 %v3911_v11  ;;  %v3912_v38 = vadd.f32 1e-05, %v3848_v18  ;;  %v3849_v49 = vmul.f32 0.0078125, %v3772_v51  ;;  %v12136_v18 = vld [vmem:[#allocation96_spill] sm:$0xff] }
 0x67a   : > { %7113 = vmatmul.mubr.bf16.gmra.mrb[100].mxu0 %v4210_v46  ;;  %v3774_v47 = vpop.xlane.xlu1 %3773  ;;  %v4168_v58 = vadd.f32 %v10248_v30, %v4100_v16  ;;  %v4034_v4 = vmul.f32 %v7724_v25, %v12133_v60  ;;  %v4101_v43 = vmul.f32 %v10230_v45, %v4033_v21 }
 0x67b   : > { %v7726_v2 = vpop.eup %7725  ;;  %7735 = vrsqrt.f32 %v3912_v38  ;;  %v3913_v5 = vadd.f32 1e-05, %v3849_v49  ;;  %v3850_v20 = vmul.f32 0.0078125, %v3774_v47  ;;  %v12137_v49 = vld [vmem:[#allocation97_spill] sm:$0xff] }
 0x67c   : > { %v3776_v19 = vpop.xlane.xlu0 %3775  ;;  %v4211_v17 = vpack.c.bf16 %v4168_v58, %v4167_v23  ;;  %v4102_v42 = vmul.f32 %v10230_v45, %v4034_v4  ;;  %v4035_v6 = vmul.f32 %v7726_v2, %v12134_v26  ;;  %v4169_v41 = vadd.f32 %v10248_v30, %v4101_v43 }
 0x67d   : > { %v7728_v50 = vpop.eup %7727  ;;  %7737 = vrsqrt.f32 %v3913_v5  ;;  %v3914_v10 = vadd.f32 1e-05, %v3850_v20  ;;  %v3851_v15 = vmul.f32 0.0078125, %v3776_v19  ;;  %v12138_v5 = vld [vmem:[#allocation98_spill] sm:$0xff] }
 0x67e   : > { %7116 = vmatprep.mubr.bf16.mxu0 %v4211_v17  ;;  %v3778_v63 = vpop.xlane.xlu1 %3777  ;;  %v4170_v3 = vadd.f32 %v10248_v30, %v4102_v42  ;;  %v4036_v61 = vmul.f32 %v7728_v50, %v12135_v44  ;;  %v4103_v8 = vmul.f32 %v10230_v45, %v4035_v6  ;;  %v12139_v6 = vld [vmem:[#allocation40_spill] sm:$0xff] }
 0x67f   : > { %v7730_v52 = vpop.eup %7729  ;;  %7739 = vrsqrt.f32 %v3914_v10  ;;  %v3915_v32 = vadd.f32 1e-05, %v3851_v15  ;;  %v3852_v7 = vmul.f32 0.0078125, %v3778_v63 }
 0x680   : > { %v3780_v56 = vpop.xlane.xlu0 %3779  ;;  %v4212_v59 = vpack.c.bf16 %v4170_v3, %v4169_v41  ;;  %v4104_v11 = vmul.f32 %v10230_v45, %v4036_v61  ;;  %v4037_v51 = vmul.f32 %v7730_v52, %v12136_v18  ;;  %v4171_v25 = vadd.f32 %v10248_v30, %v4103_v8  ;;  %v12140_v3 = vld [vmem:[#allocation99_spill] sm:$0xff] }
 0x681   : > { %v7732_v46 = vpop.eup %7731  ;;  %7741 = vrsqrt.f32 %v3915_v32  ;;  %v3916_v16 = vadd.f32 1e-05, %v3852_v7  ;;  %v3853_v22 = vmul.f32 0.0078125, %v3780_v56 }
 0x682   : > { %7117 = vmatmul.mubr.bf16.gmra.mrb[104].mxu0 %v4212_v59  ;;  %v3782_v21 = vpop.xlane.xlu1 %3781  ;;  %v4172_v38 = vadd.f32 %v10248_v30, %v4104_v11  ;;  %v4038_v47 = vmul.f32 %v7732_v46, %v12137_v49  ;;  %v4105_v23 = vmul.f32 %v10230_v45, %v4037_v51 }
 0x683   : > { %v7734_v58 = vpop.eup %7733  ;;  %7743 = vrsqrt.f32 %v3916_v16  ;;  %v3917_v60 = vadd.f32 1e-05, %v3853_v22  ;;  %v3854_v4 = vmul.f32 0.0078125, %v3782_v21 }
 0x684   : > { %v4213_v43 = vpack.c.bf16 %v4172_v38, %v4171_v25  ;;  %v4106_v2 = vmul.f32 %v10230_v45, %v4038_v47  ;;  %v4039_v20 = vmul.f32 %v7734_v58, %v12138_v5  ;;  %v4173_v42 = vadd.f32 %v10248_v30, %v4105_v23 }
 0x685   : > { %v7736_v19 = vpop.eup %7735  ;;  %7745 = vrsqrt.f32 %v3917_v60  ;;  %v3918_v17 = vadd.f32 1e-05, %v3854_v4 }
 0x686   : > { %7120 = vmatprep.mubr.bf16.mxu0 %v4213_v43  ;;  %v4174_v26 = vadd.f32 %v10248_v30, %v4106_v2  ;;  %v4040_v50 = vmul.f32 %v7736_v19, %v12139_v6  ;;  %v4107_v10 = vmul.f32 %v10230_v45, %v4039_v20 }
 0x687   : > { %v7738_v15 = vpop.eup %7737  ;;  %7747 = vrsqrt.f32 %v3918_v17 }
 0x688   : > { %v4214_v63 = vpack.c.bf16 %v4174_v26, %v4173_v42  ;;  %v4108_v41 = vmul.f32 %v10230_v45, %v4040_v50  ;;  %v4041_v44 = vmul.f32 %v7738_v15, %v12140_v3  ;;  %v4175_v8 = vadd.f32 %v10248_v30, %v4107_v10 }
 0x689   : > { %v7740_v61 = vpop.eup %7739 }
 0x68a   : > { %7121 = vmatmul.mubr.bf16.gmra.mrb[108].mxu0 %v4214_v63  ;;  %v4176_v52 = vadd.f32 %v10248_v30, %v4108_v41  ;;  %v4042_v32 = vmul.f32 %v7740_v61, %v10236_v12  ;;  %v4109_v7 = vmul.f32 %v10230_v45, %v4041_v44 }
 0x68b   : > { %v7742_v56 = vpop.eup %7741 }
 0x68c   : > { %v4215_v59 = vpack.c.bf16 %v4176_v52, %v4175_v8  ;;  %v4110_v11 = vmul.f32 %v10230_v45, %v4042_v32  ;;  %v4043_v18 = vmul.f32 %v7742_v56, %v10243_v54  ;;  %v4177_v46 = vadd.f32 %v10248_v30, %v4109_v7 }
 0x68d   : > { %v7744_v51 = vpop.eup %7743 }
 0x68e   : > { %7124 = vmatprep.mubr.bf16.mxu0 %v4215_v59  ;;  %v4178_v16 = vadd.f32 %v10248_v30, %v4110_v11  ;;  %v4044_v22 = vmul.f32 %v7744_v51, %v10251_v9  ;;  %v4111_v21 = vmul.f32 %v10230_v45, %v4043_v18 }
 0x68f   : > { %v7746_v25 = vpop.eup %7745 }
 0x690   : > { %v4216_v12 = vpack.c.bf16 %v4178_v16, %v4177_v46  ;;  %v4112_v38 = vmul.f32 %v10230_v45, %v4044_v22  ;;  %v4045_v49 = vmul.f32 %v7746_v25, %v10258_v29  ;;  %v4179_v54 = vadd.f32 %v10248_v30, %v4111_v21 }
 0x691   : > { %v7748_v47 = vpop.eup %7747 }
 0x692   : > { %7125 = vmatmul.mubr.bf16.gmra.mrb[112].mxu0 %v4216_v12  ;;  %v4180_v23 = vadd.f32 %v10248_v30, %v4112_v38  ;;  %v4046_v58 = vmul.f32 %v7748_v47, %v10265_v55  ;;  %v4113_v60 = vmul.f32 %v10230_v45, %v4045_v49 }
 0x694   : > { %v4217_v4 = vpack.c.bf16 %v4180_v23, %v4179_v54  ;;  %v4114_v9 = vmul.f32 %v10230_v45, %v4046_v58  ;;  %v4181_v43 = vadd.f32 %v10248_v30, %v4113_v60 }
 0x696   : > { %7128 = vmatprep.mubr.bf16.mxu0 %v4217_v4  ;;  %v4182_v2 = vadd.f32 %v10248_v30, %v4114_v9  ;;  %v3786_v5 = vpop.xlane.xlu1 %3785 }
 0x697   : > { %v3856_v20 = vmul.f32 0.0078125, %v3786_v5 }
 0x698   : > { %v4218_v29 = vpack.c.bf16 %v4182_v2, %v4181_v43 }
 0x699   : > { %v3920_v19 = vadd.f32 1e-05, %v3856_v20 }
 0x69a   : > { %7129 = vmatmul.mubr.bf16.gmra.mrb[116].mxu0 %v4218_v29  ;;  %v3790_v17 = vpop.xlane.xlu1 %3789 }
 0x69b   : > { %7749 = vrsqrt.f32 %v3920_v19  ;;  %v3858_v42 = vmul.f32 0.0078125, %v3790_v17 }
 0x69c   : > { %v3784_v26 = vpop.xlane.xlu0 %3783 }
 0x69d   : > { %v3922_v55 = vadd.f32 1e-05, %v3858_v42  ;;  %v3855_v6 = vmul.f32 0.0078125, %v3784_v26 }
 0x69f   : > { %7751 = vrsqrt.f32 %v3922_v55  ;;  %v3919_v50 = vadd.f32 1e-05, %v3855_v6 }
 0x6a0   : > { %v3788_v10 = vpop.xlane.xlu0 %3787 }
 0x6a1   : > { %7753 = vrsqrt.f32 %v3919_v50  ;;  %v3857_v15 = vmul.f32 0.0078125, %v3788_v10 }
 0x6a3   : > { %v3921_v63 = vadd.f32 1e-05, %v3857_v15 }
 0x6a5   : > { %v7750_v41 = vpop.eup %7749  ;;  %7755 = vrsqrt.f32 %v3921_v63  ;;  %v12141_v63 = vld [vmem:[#allocation41_spill] sm:$0xff] }
 0x6a6   : > { %v4048_v3 = vmul.f32 %v7750_v41, %v10289_v33 }
 0x6a8   : > { %v4116_v56 = vmul.f32 %v10230_v45, %v4048_v3 }
 0x6a9   : > { %v7752_v44 = vpop.eup %7751 }
 0x6aa   : > { %v3794_v61 = vpop.xlane.xlu1 %3793  ;;  %v4050_v59 = vmul.f32 %v7752_v44, %v10296_v0  ;;  %v4184_v12 = vadd.f32 %v10248_v30, %v4116_v56 }
 0x6ab   : > { %v7754_v8 = vpop.eup %7753  ;;  %v3860_v52 = vmul.f32 0.0078125, %v3794_v61 }
 0x6ac   : > { %v3792_v32 = vpop.xlane.xlu0 %3791  ;;  %v4047_v7 = vmul.f32 %v7754_v8, %v10301_v62  ;;  %v4118_v38 = vmul.f32 %v10230_v45, %v4050_v59 }
 0x6ad   : > { %v3924_v11 = vadd.f32 1e-05, %v3860_v52  ;;  %v3859_v18 = vmul.f32 0.0078125, %v3792_v32 }
 0x6ae   : > { %v3798_v51 = vpop.xlane.xlu1 %3797  ;;  %v4115_v46 = vmul.f32 %v10230_v45, %v4047_v7  ;;  %v4186_v60 = vadd.f32 %v10248_v30, %v4118_v38 }
 0x6af   : > { %v7756_v16 = vpop.eup %7755  ;;  %7757 = vrsqrt.f32 %v3924_v11  ;;  %v3923_v22 = vadd.f32 1e-05, %v3859_v18  ;;  %v3862_v33 = vmul.f32 0.0078125, %v3798_v51 }
 0x6b0   : > { %v3796_v21 = vpop.xlane.xlu0 %3795  ;;  %v4183_v25 = vadd.f32 %v10248_v30, %v4115_v46  ;;  %v4049_v62 = vmul.f32 %v7756_v16, %v10315_v40 }
 0x6b1   : > { %7759 = vrsqrt.f32 %v3923_v22  ;;  %v3926_v0 = vadd.f32 1e-05, %v3862_v33  ;;  %v3861_v49 = vmul.f32 0.0078125, %v3796_v21 }
 0x6b2   : > { %v4219_v47 = vpack.c.bf16 %v4184_v12, %v4183_v25  ;;  %v4117_v54 = vmul.f32 %v10230_v45, %v4049_v62 }
 0x6b3   : > { %7761 = vrsqrt.f32 %v3926_v0  ;;  %v3925_v23 = vadd.f32 1e-05, %v3861_v49 }
 0x6b4   : > { %7132 = vmatprep.mubr.bf16.mxu0 %v4219_v47  ;;  %v4185_v58 = vadd.f32 %v10248_v30, %v4117_v54 }
 0x6b5   : > { %7763 = vrsqrt.f32 %v3925_v23 }
 0x6b6   : > { %v4220_v4 = vpack.c.bf16 %v4186_v60, %v4185_v58 }
 0x6b8   : > { %7133 = vmatmul.mubr.bf16.gmra.mrb[120].mxu0 %v4220_v4 }
 0x6b9   : > { %v7758_v9 = vpop.eup %7757 }
 0x6ba   : > { %v4052_v40 = vmul.f32 %v7758_v9, %v10335_v13 }
 0x6bb   : > { %v7760_v43 = vpop.eup %7759 }
 0x6bc   : > { %v4051_v2 = vmul.f32 %v7760_v43, %v10340_v14  ;;  %v4120_v5 = vmul.f32 %v10230_v45, %v4052_v40 }
 0x6bd   : > { %v7762_v29 = vpop.eup %7761 }
 0x6be   : > { %v4119_v20 = vmul.f32 %v10230_v45, %v4051_v2  ;;  %v4054_v19 = vmul.f32 %v7762_v29, %v10348_v48  ;;  %v4188_v26 = vadd.f32 %v10248_v30, %v4120_v5  ;;  %v1332_v48 = vld [vmem:[%s8360_s0] sm:$0x3] }
 0x6bf   : > { %v7764_v17 = vpop.eup %7763  ;;  %v10511_v41 = vrot.slane %v1332_v48, %v12141_v63 }
 0x6c0   : > { %v4187_v42 = vadd.f32 %v10248_v30, %v4119_v20  ;;  %v4053_v55 = vmul.f32 %v7764_v17, %v10356_v28  ;;  %v4122_v13 = vmul.f32 %v10230_v45, %v4054_v19 }
 0x6c2   : > { %v4221_v6 = vpack.c.bf16 %v4188_v26, %v4187_v42  ;;  %v4121_v14 = vmul.f32 %v10230_v45, %v4053_v55  ;;  %v4190_v10 = vadd.f32 %v10248_v30, %v4122_v13 }
 0x6c4   : > { %7136 = vmatprep.mubr.bf16.mxu0 %v4221_v6  ;;  %v4189_v50 = vadd.f32 %v10248_v30, %v4121_v14 }
 0x6c6   : > { %v4222_v15 = vpack.c.bf16 %v4190_v10, %v4189_v50 }
 0x6c8   : > { %7137 = vmatmul.mubr.bf16.gmra.mrb[124].mxu0 %v4222_v15 }
 0x6d1   : > { %v7078_v3 = vpop.f32.mrb[64].mxu0 }
 0x6d2   : > { %v4318_v44 = vadd.f32 %v7078_v3, %v10511_v41  ;;  %v4309_v28 = vpop.f32.mrb[65].mxu0 }
 0x6d3   : > { %v4310_v61 = vadd.f32 %v4309_v28, %v10511_v41  ;;  %v7079_v8 = vpop.f32.mrb[66].mxu0 }
 0x6d4   : > { %v4630_v52 = vmul.f32 0.70710677, %v4318_v44  ;;  %v4321_v45 = vadd.f32 %v7079_v8, %v10511_v41  ;;  %v4312_v32 = vpop.f32.mrb[67].mxu0  ;;  %v4566_v33 = vmul.f32 0.5, %v4318_v44 }
 0x6d5   : > { %v4628_v7 = vmul.f32 0.70710677, %v4310_v61  ;;  %v4313_v30 = vadd.f32 %v4312_v32, %v10511_v41  ;;  %v4564_v12 = vmul.f32 0.5, %v4310_v61 }
 0x6d6   : > { %7765 = verf.f32 %v4630_v52  ;;  %v4631_v56 = vmul.f32 0.70710677, %v4321_v45  ;;  %v4567_v21 = vmul.f32 0.5, %v4321_v45 }
 0x6d7   : > { %7767 = verf.f32 %v4628_v7  ;;  %v4629_v59 = vmul.f32 0.70710677, %v4313_v30  ;;  %v4565_v62 = vmul.f32 0.5, %v4313_v30 }
 0x6d8   : > { %7769 = verf.f32 %v4631_v56 }
 0x6d9   : > { %7771 = verf.f32 %v4629_v59 }
 0x6e0   : > { %v7766_v11 = vpop.eup %7765 }
 0x6e1   : > { %v7768_v18 = vpop.eup %7767  ;;  %v4758_v51 = vadd.f32 1.0, %v7766_v11 }
 0x6e2   : > { %v7770_v46 = vpop.eup %7769  ;;  %v4756_v16 = vadd.f32 1.0, %v7768_v18 }
 0x6e3   : > { %v7772_v22 = vpop.eup %7771  ;;  %v4759_v25 = vadd.f32 1.0, %v7770_v46  ;;  %v4822_v0 = vmul.f32 %v4758_v51, %v4566_v33 }
 0x6e4   : > { %v4757_v38 = vadd.f32 1.0, %v7772_v22  ;;  %v4820_v47 = vmul.f32 %v4756_v16, %v4564_v12 }
 0x6e5   : > { %v4823_v49 = vmul.f32 %v4759_v25, %v4567_v21 }
 0x6e6   : > { %v4821_v54 = vmul.f32 %v4757_v38, %v4565_v62 }
 0x6e7   : > { %v4885_v23 = vpack.c.bf16 %v4823_v49, %v4822_v0  ;;  %v7082_v60 = vpop.f32.mrb[68].mxu0 }
 0x6e8   : > { %v4884_v58 = vpack.c.bf16 %v4821_v54, %v4820_v47  ;;  %v4334_v4 = vadd.f32 %v7082_v60, %v10511_v41  ;;  %v4325_v9 = vpop.f32.mrb[69].mxu0 }
 0x6e9   : > { %v4326_v40 = vadd.f32 %v4325_v9, %v10511_v41  ;;  %v7083_v43 = vpop.f32.mrb[70].mxu0 }
 0x6ea   : > { %7156 = vmatprep.mubr.bf16.mxu1 %v4884_v58  ;;  %v4634_v2 = vmul.f32 0.70710677, %v4334_v4  ;;  %v4337_v5 = vadd.f32 %v7083_v43, %v10511_v41  ;;  %v4328_v29 = vpop.f32.mrb[71].mxu0  ;;  %v4570_v59 = vmul.f32 0.5, %v4334_v4 }
 0x6eb   : > { %7157 = vmatmul.mubr.bf16.vlgmr.msra.gmra.mrb[64].mxu1 %v4885_v23  ;;  %v4632_v20 = vmul.f32 0.70710677, %v4326_v40  ;;  %v4329_v19 = vadd.f32 %v4328_v29, %v10511_v41  ;;  %v4568_v16 = vmul.f32 0.5, %v4326_v40 }
 0x6ec   : > { %7773 = verf.f32 %v4634_v2  ;;  %v4635_v17 = vmul.f32 0.70710677, %v4337_v5  ;;  %v4571_v11 = vmul.f32 0.5, %v4337_v5 }
 0x6ed   : > { %7775 = verf.f32 %v4632_v20  ;;  %v4633_v42 = vmul.f32 0.70710677, %v4329_v19  ;;  %v4569_v22 = vmul.f32 0.5, %v4329_v19 }
 0x6ee   : > { %7777 = verf.f32 %v4635_v17 }
 0x6ef   : > { %7779 = verf.f32 %v4633_v42  ;;  %v7086_v26 = vpop.f32.mrb[72].mxu0 }
 0x6f0   : > { %v4350_v55 = vadd.f32 %v7086_v26, %v10511_v41  ;;  %v4341_v13 = vpop.f32.mrb[73].mxu0 }
 0x6f1   : > { %v4342_v6 = vadd.f32 %v4341_v13, %v10511_v41  ;;  %v7087_v14 = vpop.f32.mrb[74].mxu0 }
 0x6f2   : > { %v4638_v50 = vmul.f32 0.70710677, %v4350_v55  ;;  %v4353_v10 = vadd.f32 %v7087_v14, %v10511_v41  ;;  %v4344_v15 = vpop.f32.mrb[75].mxu0  ;;  %v4574_v42 = vmul.f32 0.5, %v4350_v55 }
 0x6f3   : > { %v4636_v48 = vmul.f32 0.70710677, %v4342_v6  ;;  %v4345_v63 = vadd.f32 %v4344_v15, %v10511_v41  ;;  %v4572_v15 = vmul.f32 0.5, %v4342_v6 }
 0x6f4   : > { %7781 = verf.f32 %v4638_v50  ;;  %v4639_v3 = vmul.f32 0.70710677, %v4353_v10  ;;  %v4575_v26 = vmul.f32 0.5, %v4353_v10 }
 0x6f5   : > { %7783 = verf.f32 %v4636_v48  ;;  %v4637_v44 = vmul.f32 0.70710677, %v4345_v63  ;;  %v4573_v48 = vmul.f32 0.5, %v4345_v63 }
 0x6f6   : > { %v7774_v28 = vpop.eup %7773  ;;  %7785 = verf.f32 %v4639_v3 }
 0x6f7   : > { %v7776_v61 = vpop.eup %7775  ;;  %v4762_v8 = vadd.f32 1.0, %v7774_v28  ;;  %7787 = verf.f32 %v4637_v44  ;;  %v7090_v52 = vpop.f32.mrb[76].mxu0 }
 0x6f8   : > { %v7778_v45 = vpop.eup %7777  ;;  %v4760_v32 = vadd.f32 1.0, %v7776_v61  ;;  %v10526_v7 = vadd.f32 %v7090_v52, %v10511_v41  ;;  %v4357_v30 = vpop.f32.mrb[77].mxu0 }
 0x6f9   : > { %v7780_v56 = vpop.eup %7779  ;;  %v4763_v18 = vadd.f32 1.0, %v7778_v45  ;;  %v10529_v51 = vadd.f32 %v4357_v30, %v10511_v41  ;;  %v7091_v46 = vpop.f32.mrb[78].mxu0  ;;  %v4826_v12 = vmul.f32 %v4762_v8, %v4570_v59 }
 0x6fa   : > { %v4761_v33 = vadd.f32 1.0, %v7780_v56  ;;  %v4642_v21 = vmul.f32 0.70710677, %v10526_v7  ;;  %v4360_v25 = vpop.f32.mrb[79].mxu0  ;;  %v4369_v0 = vadd.f32 %v7091_v46, %v10511_v41  ;;  %v4824_v49 = vmul.f32 %v4760_v32, %v4568_v16 }
 0x6fb   : > { %v4827_v62 = vmul.f32 %v4763_v18, %v4571_v11  ;;  %v4640_v38 = vmul.f32 0.70710677, %v10529_v51  ;;  %v4361_v54 = vadd.f32 %v4360_v25, %v10511_v41 }
 0x6fc   : > { %v4825_v47 = vmul.f32 %v4761_v33, %v4569_v22  ;;  %7789 = verf.f32 %v4642_v21  ;;  %v4643_v23 = vmul.f32 0.70710677, %v4369_v0  ;;  %v4578_v21 = vmul.f32 0.5, %v10526_v7 }
 0x6fd   : > { %7791 = verf.f32 %v4640_v38  ;;  %v4887_v58 = vpack.c.bf16 %v4827_v62, %v4826_v12  ;;  %v4641_v4 = vmul.f32 0.70710677, %v4361_v54 }
 0x6fe   : > { %v7782_v60 = vpop.eup %7781  ;;  %v4886_v9 = vpack.c.bf16 %v4825_v47, %v4824_v49  ;;  %7793 = verf.f32 %v4643_v23  ;;  %v4576_v49 = vmul.f32 0.5, %v10529_v51  ;;  %v4579_v47 = vmul.f32 0.5, %v4369_v0 }
 0x6ff   : > { %v7784_v40 = vpop.eup %7783  ;;  %v4766_v43 = vadd.f32 1.0, %v7782_v60  ;;  %v7094_v2 = vpop.f32.mrb[80].mxu0  ;;  %7795 = verf.f32 %v4641_v4  ;;  %v4577_v4 = vmul.f32 0.5, %v4361_v54 }
 0x700   : > { %v7786_v5 = vpop.eup %7785  ;;  %v4764_v29 = vadd.f32 1.0, %v7784_v40  ;;  %v10536_v20 = vadd.f32 %v7094_v2, %v10511_v41  ;;  %v4373_v19 = vpop.f32.mrb[81].mxu0  ;;  %7160 = vmatprep.mubr.bf16.mxu1 %v4886_v9 }
 0x701   : > { %v7788_v17 = vpop.eup %7787  ;;  %v4767_v13 = vadd.f32 1.0, %v7786_v5  ;;  %v10539_v14 = vadd.f32 %v4373_v19, %v10511_v41  ;;  %v7095_v50 = vpop.f32.mrb[82].mxu0  ;;  %7161 = vmatmul.mubr.bf16.gmra.mrb[68].mxu1 %v4887_v58  ;;  %v4830_v61 = vmul.f32 %v4766_v43, %v4574_v42 }
 0x702   : > { %v4765_v3 = vadd.f32 1.0, %v7788_v17  ;;  %v4646_v44 = vmul.f32 0.70710677, %v10536_v20  ;;  %v4376_v28 = vpop.f32.mrb[83].mxu0  ;;  %v4385_v45 = vadd.f32 %v7095_v50, %v10511_v41  ;;  %v4828_v55 = vmul.f32 %v4764_v29, %v4572_v15 }
 0x703   : > { %v4831_v8 = vmul.f32 %v4767_v13, %v4575_v26  ;;  %v4644_v52 = vmul.f32 0.70710677, %v10539_v14  ;;  %v4377_v32 = vadd.f32 %v4376_v28, %v10511_v41 }
 0x704   : > { %v4829_v10 = vmul.f32 %v4765_v3, %v4573_v48  ;;  %7797 = verf.f32 %v4646_v44  ;;  %v4647_v30 = vmul.f32 0.70710677, %v4385_v45  ;;  %v4582_v44 = vmul.f32 0.5, %v10536_v20 }
 0x705   : > { %7799 = verf.f32 %v4644_v52  ;;  %v4889_v56 = vpack.c.bf16 %v4831_v8, %v4830_v61  ;;  %v4645_v63 = vmul.f32 0.70710677, %v4377_v32 }
 0x706   : > { %v7790_v6 = vpop.eup %7789  ;;  %v4888_v59 = vpack.c.bf16 %v4829_v10, %v4828_v55  ;;  %7801 = verf.f32 %v4647_v30  ;;  %v4580_v55 = vmul.f32 0.5, %v10539_v14  ;;  %v4583_v10 = vmul.f32 0.5, %v4385_v45 }
 0x707   : > { %v7792_v11 = vpop.eup %7791  ;;  %v7098_v18 = vpop.f32.mrb[84].mxu0  ;;  %v4770_v46 = vadd.f32 1.0, %v7790_v6  ;;  %7803 = verf.f32 %v4645_v63  ;;  %v4581_v63 = vmul.f32 0.5, %v4377_v32 }
 0x708   : > { %v10546_v16 = vadd.f32 %v7098_v18, %v10511_v41  ;;  %v4389_v22 = vpop.f32.mrb[85].mxu0  ;;  %7164 = vmatprep.mubr.bf16.mxu1 %v4888_v59  ;;  %v7794_v33 = vpop.eup %7793  ;;  %v4768_v25 = vadd.f32 1.0, %v7792_v11 }
 0x709   : > { %v10550_v12 = vadd.f32 %v4389_v22, %v10511_v41  ;;  %v7099_v62 = vpop.f32.mrb[86].mxu0  ;;  %7165 = vmatmul.mubr.bf16.gmra.mrb[72].mxu1 %v4889_v56  ;;  %v7796_v38 = vpop.eup %7795  ;;  %v4771_v23 = vadd.f32 1.0, %v7794_v33  ;;  %v4834_v43 = vmul.f32 %v4770_v46, %v4578_v21 }
 0x70a   : > { %v4650_v58 = vmul.f32 0.70710677, %v10546_v16  ;;  %v4392_v60 = vpop.f32.mrb[87].mxu0  ;;  %v4769_v9 = vadd.f32 1.0, %v7796_v38  ;;  %v10556_v7 = vadd.f32 %v7099_v62, %v10511_v41  ;;  %v4832_v29 = vmul.f32 %v4768_v25, %v4576_v49 }
 0x70b   : > { %v4648_v40 = vmul.f32 0.70710677, %v10550_v12  ;;  %v4835_v2 = vmul.f32 %v4771_v23, %v4579_v47  ;;  %v10559_v5 = vadd.f32 %v4392_v60, %v10511_v41 }
 0x70c   : > { %7805 = verf.f32 %v4650_v58  ;;  %v4833_v51 = vmul.f32 %v4769_v9, %v4577_v4  ;;  %v4651_v0 = vmul.f32 0.70710677, %v10556_v7  ;;  %v4586_v4 = vmul.f32 0.5, %v10546_v16 }
 0x70d   : > { %7807 = verf.f32 %v4648_v40  ;;  %v4649_v54 = vmul.f32 0.70710677, %v10559_v5  ;;  %v4891_v17 = vpack.c.bf16 %v4835_v2, %v4834_v43 }
 0x70e   : > { %v7798_v19 = vpop.eup %7797  ;;  %7809 = verf.f32 %v4651_v0  ;;  %v4890_v13 = vpack.c.bf16 %v4833_v51, %v4832_v29  ;;  %v4584_v29 = vmul.f32 0.5, %v10550_v12  ;;  %v4587_v51 = vmul.f32 0.5, %v10556_v7 }
 0x70f   : > { %v7800_v42 = vpop.eup %7799  ;;  %v7102_v26 = vpop.f32.mrb[88].mxu0  ;;  %v4774_v50 = vadd.f32 1.0, %v7798_v19  ;;  %7811 = verf.f32 %v4649_v54 }
 0x710   : > { %v10564_v15 = vadd.f32 %v7102_v26, %v10511_v41  ;;  %v4405_v48 = vpop.f32.mrb[89].mxu0  ;;  %v7802_v3 = vpop.eup %7801  ;;  %v4772_v28 = vadd.f32 1.0, %v7800_v42  ;;  %7168 = vmatprep.mubr.bf16.mxu1 %v4890_v13 }
 0x711   : > { %v10568_v61 = vadd.f32 %v4405_v48, %v10511_v41  ;;  %v7103_v8 = vpop.f32.mrb[90].mxu0  ;;  %v7804_v52 = vpop.eup %7803  ;;  %v4775_v30 = vadd.f32 1.0, %v7802_v3  ;;  %7169 = vmatmul.mubr.bf16.gmra.mrb[76].mxu1 %v4891_v17  ;;  %v4838_v18 = vmul.f32 %v4774_v50, %v4582_v44  ;;  %v4585_v17 = vmul.f32 0.5, %v10559_v5 }
 0x712   : > { %v4654_v56 = vmul.f32 0.70710677, %v10564_v15  ;;  %v4408_v6 = vpop.f32.mrb[91].mxu0  ;;  %v4773_v59 = vadd.f32 1.0, %v7804_v52  ;;  %v4417_v20 = vadd.f32 %v7103_v8, %v10511_v41  ;;  %v4836_v33 = vmul.f32 %v4772_v28, %v4580_v55 }
 0x713   : > { %v4652_v11 = vmul.f32 0.70710677, %v10568_v61  ;;  %v4839_v46 = vmul.f32 %v4775_v30, %v4583_v10  ;;  %v4409_v22 = vadd.f32 %v4408_v6, %v10511_v41  ;;  %v4590_v6 = vmul.f32 0.5, %v10564_v15 }
 0x714   : > { %7813 = verf.f32 %v4654_v56  ;;  %v4837_v21 = vmul.f32 %v4773_v59, %v4581_v63  ;;  %v4655_v14 = vmul.f32 0.70710677, %v4417_v20  ;;  %v4591_v63 = vmul.f32 0.5, %v4417_v20 }
 0x715   : > { %7815 = verf.f32 %v4652_v11  ;;  %v4653_v25 = vmul.f32 0.70710677, %v4409_v22  ;;  %v4893_v62 = vpack.c.bf16 %v4839_v46, %v4838_v18  ;;  %v4588_v11 = vmul.f32 0.5, %v10568_v61 }
 0x716   : > { %v7806_v45 = vpop.eup %7805  ;;  %7817 = verf.f32 %v4655_v14  ;;  %v4892_v49 = vpack.c.bf16 %v4837_v21, %v4836_v33  ;;  %v4589_v18 = vmul.f32 0.5, %v4409_v22 }
 0x717   : > { %v7808_v38 = vpop.eup %7807  ;;  %v7106_v32 = vpop.f32.mrb[92].mxu0  ;;  %v4778_v47 = vadd.f32 1.0, %v7806_v45  ;;  %7819 = verf.f32 %v4653_v25 }
 0x718   : > { %v4430_v23 = vadd.f32 %v7106_v32, %v10511_v41  ;;  %v4421_v58 = vpop.f32.mrb[93].mxu0  ;;  %v7810_v60 = vpop.eup %7809  ;;  %v4776_v9 = vadd.f32 1.0, %v7808_v38  ;;  %7172 = vmatprep.mubr.bf16.mxu1 %v4892_v49 }
 0x719   : > { %v4422_v40 = vadd.f32 %v4421_v58, %v10511_v41  ;;  %v7107_v43 = vpop.f32.mrb[94].mxu0  ;;  %v7812_v2 = vpop.eup %7811  ;;  %v4779_v0 = vadd.f32 1.0, %v7810_v60  ;;  %7173 = vmatmul.mubr.bf16.gmra.mrb[80].mxu1 %v4893_v62  ;;  %v4842_v13 = vmul.f32 %v4778_v47, %v4586_v4 }
 0x71a   : > { %v4658_v19 = vmul.f32 0.70710677, %v4430_v23  ;;  %v4424_v54 = vpop.f32.mrb[95].mxu0  ;;  %v4777_v42 = vadd.f32 1.0, %v7812_v2  ;;  %v4433_v16 = vadd.f32 %v7107_v43, %v10511_v41  ;;  %v4840_v3 = vmul.f32 %v4776_v9, %v4584_v29 }
 0x71b   : > { %v4656_v26 = vmul.f32 0.70710677, %v4422_v40  ;;  %v4843_v50 = vmul.f32 %v4779_v0, %v4587_v51  ;;  %v4425_v48 = vadd.f32 %v4424_v54, %v10511_v41  ;;  %v4594_v20 = vmul.f32 0.5, %v4430_v23 }
 0x71c   : > { %7821 = verf.f32 %v4658_v19  ;;  %v4841_v44 = vmul.f32 %v4777_v42, %v4585_v17  ;;  %v4659_v12 = vmul.f32 0.70710677, %v4433_v16  ;;  %v4595_v60 = vmul.f32 0.5, %v4433_v16 }
 0x71d   : > { %7823 = verf.f32 %v4656_v26  ;;  %v4657_v28 = vmul.f32 0.70710677, %v4425_v48  ;;  %v4895_v8 = vpack.c.bf16 %v4843_v50, %v4842_v13  ;;  %v4592_v61 = vmul.f32 0.5, %v4422_v40 }
 0x71e   : > { %v7814_v7 = vpop.eup %7813  ;;  %7825 = verf.f32 %v4659_v12  ;;  %v4894_v55 = vpack.c.bf16 %v4841_v44, %v4840_v3  ;;  %v4593_v22 = vmul.f32 0.5, %v4425_v48 }
 0x71f   : > { %v7816_v52 = vpop.eup %7815  ;;  %v4782_v5 = vadd.f32 1.0, %v7814_v7  ;;  %7827 = verf.f32 %v4657_v28 }
 0x720   : > { %v7818_v10 = vpop.eup %7817  ;;  %v4780_v30 = vadd.f32 1.0, %v7816_v52  ;;  %7176 = vmatprep.mubr.bf16.mxu1 %v4894_v55 }
 0x721   : > { %v7820_v56 = vpop.eup %7819  ;;  %v4783_v59 = vadd.f32 1.0, %v7818_v10  ;;  %7177 = vmatmul.mubr.bf16.gmra.mrb[84].mxu1 %v4895_v8  ;;  %v4846_v33 = vmul.f32 %v4782_v5, %v4590_v6 }
 0x722   : > { %v4781_v46 = vadd.f32 1.0, %v7820_v56  ;;  %v4844_v14 = vmul.f32 %v4780_v30, %v4588_v11 }
 0x723   : > { %v4847_v21 = vmul.f32 %v4783_v59, %v4591_v63 }
 0x724   : > { %v4845_v45 = vmul.f32 %v4781_v46, %v4589_v18 }
 0x725   : > { %v4897_v62 = vpack.c.bf16 %v4847_v21, %v4846_v33 }
 0x726   : > { %v7822_v25 = vpop.eup %7821  ;;  %v4896_v32 = vpack.c.bf16 %v4845_v45, %v4844_v14 }
 0x727   : > { %v7824_v38 = vpop.eup %7823  ;;  %v4786_v49 = vadd.f32 1.0, %v7822_v25 }
 0x728   : > { %v7826_v47 = vpop.eup %7825  ;;  %v4784_v58 = vadd.f32 1.0, %v7824_v38  ;;  %7180 = vmatprep.mubr.bf16.mxu1 %v4896_v32 }
 0x729   : > { %v7828_v15 = vpop.eup %7827  ;;  %v4787_v4 = vadd.f32 1.0, %v7826_v47  ;;  %7181 = vmatmul.mubr.bf16.gmra.mrb[88].mxu1 %v4897_v62  ;;  %v4850_v43 = vmul.f32 %v4786_v49, %v4594_v20 }
 0x72a   : > { %v4785_v9 = vadd.f32 1.0, %v7828_v15  ;;  %v4848_v29 = vmul.f32 %v4784_v58, %v4592_v61 }
 0x72b   : > { %v4851_v2 = vmul.f32 %v4787_v4, %v4595_v60 }
 0x72c   : > { %v4849_v51 = vmul.f32 %v4785_v9, %v4593_v22 }
 0x72d   : > { %v4899_v0 = vpack.c.bf16 %v4851_v2, %v4850_v43 }
 0x72e   : > { %v4898_v19 = vpack.c.bf16 %v4849_v51, %v4848_v29 }
 0x730   : > { %7184 = vmatprep.mubr.bf16.mxu1 %v4898_v19 }
 0x731   : > { %7185 = vmatmul.mubr.bf16.gmra.mrb[92].mxu1 %v4899_v0 }
 0x735   : > { %v7110_v54 = vpop.f32.mrb[96].mxu0 }
 0x736   : > { %v4446_v17 = vadd.f32 %v7110_v54, %v10511_v41  ;;  %v4437_v42 = vpop.f32.mrb[97].mxu0 }
 0x737   : > { %v4438_v23 = vadd.f32 %v4437_v42, %v10511_v41  ;;  %v7111_v26 = vpop.f32.mrb[98].mxu0 }
 0x738   : > { %v4662_v16 = vmul.f32 0.70710677, %v4446_v17  ;;  %v4449_v40 = vadd.f32 %v7111_v26, %v10511_v41  ;;  %v4440_v13 = vpop.f32.mrb[99].mxu0  ;;  %v4598_v5 = vmul.f32 0.5, %v4446_v17 }
 0x739   : > { %v4660_v50 = vmul.f32 0.70710677, %v4438_v23  ;;  %v4441_v48 = vadd.f32 %v4440_v13, %v10511_v41  ;;  %v4596_v56 = vmul.f32 0.5, %v4438_v23 }
 0x73a   : > { %7829 = verf.f32 %v4662_v16  ;;  %v4663_v3 = vmul.f32 0.70710677, %v4449_v40  ;;  %v4599_v10 = vmul.f32 0.5, %v4449_v40 }
 0x73b   : > { %7831 = verf.f32 %v4660_v50  ;;  %v4661_v44 = vmul.f32 0.70710677, %v4441_v48  ;;  %v4597_v6 = vmul.f32 0.5, %v4441_v48 }
 0x73c   : > { %7833 = verf.f32 %v4663_v3 }
 0x73d   : > { %7835 = verf.f32 %v4661_v44 }
 0x744   : > { %v7830_v12 = vpop.eup %7829 }
 0x745   : > { %v7832_v7 = vpop.eup %7831  ;;  %v4790_v28 = vadd.f32 1.0, %v7830_v12 }
 0x746   : > { %v7834_v8 = vpop.eup %7833  ;;  %v4788_v52 = vadd.f32 1.0, %v7832_v7 }
 0x747   : > { %v7836_v55 = vpop.eup %7835  ;;  %v4791_v30 = vadd.f32 1.0, %v7834_v8  ;;  %v4854_v59 = vmul.f32 %v4790_v28, %v4598_v5 }
 0x748   : > { %v4789_v63 = vadd.f32 1.0, %v7836_v55  ;;  %v4852_v18 = vmul.f32 %v4788_v52, %v4596_v56 }
 0x749   : > { %v4855_v11 = vmul.f32 %v4791_v30, %v4599_v10 }
 0x74a   : > { %v4853_v46 = vmul.f32 %v4789_v63, %v4597_v6 }
 0x74b   : > { %v4901_v33 = vpack.c.bf16 %v4855_v11, %v4854_v59 }
 0x74c   : > { %v4900_v21 = vpack.c.bf16 %v4853_v46, %v4852_v18 }
 0x74d   : > { %v7114_v14 = vpop.f32.mrb[100].mxu0 }
 0x74e   : > { %v4462_v45 = vadd.f32 %v7114_v14, %v10511_v41  ;;  %v4453_v25 = vpop.f32.mrb[101].mxu0  ;;  %7188 = vmatprep.mubr.bf16.mxu1 %v4900_v21 }
 0x74f   : > { %v4454_v62 = vadd.f32 %v4453_v25, %v10511_v41  ;;  %v7115_v38 = vpop.f32.mrb[102].mxu0  ;;  %7189 = vmatmul.mubr.bf16.gmra.mrb[96].mxu1 %v4901_v33 }
 0x750   : > { %v4666_v32 = vmul.f32 0.70710677, %v4462_v45  ;;  %v4465_v49 = vadd.f32 %v7115_v38, %v10511_v41  ;;  %v4456_v47 = vpop.f32.mrb[103].mxu0  ;;  %v4602_v44 = vmul.f32 0.5, %v4462_v45 }
 0x751   : > { %v4664_v58 = vmul.f32 0.70710677, %v4454_v62  ;;  %v4457_v15 = vadd.f32 %v4456_v47, %v10511_v41  ;;  %v4600_v52 = vmul.f32 0.5, %v4454_v62 }
 0x752   : > { %7837 = verf.f32 %v4666_v32  ;;  %v4667_v20 = vmul.f32 0.70710677, %v4465_v49  ;;  %v4603_v12 = vmul.f32 0.5, %v4465_v49 }
 0x753   : > { %7839 = verf.f32 %v4664_v58  ;;  %v4665_v60 = vmul.f32 0.70710677, %v4457_v15  ;;  %v4601_v55 = vmul.f32 0.5, %v4457_v15 }
 0x754   : > { %7841 = verf.f32 %v4667_v20 }
 0x755   : > { %7843 = verf.f32 %v4665_v60  ;;  %v7118_v4 = vpop.f32.mrb[104].mxu0 }
 0x756   : > { %v4478_v61 = vadd.f32 %v7118_v4, %v10511_v41  ;;  %v4469_v22 = vpop.f32.mrb[105].mxu0 }
 0x757   : > { %v4470_v9 = vadd.f32 %v4469_v22, %v10511_v41  ;;  %v7119_v43 = vpop.f32.mrb[106].mxu0 }
 0x758   : > { %v4670_v2 = vmul.f32 0.70710677, %v4478_v61  ;;  %v4481_v29 = vadd.f32 %v7119_v43, %v10511_v41  ;;  %v4472_v51 = vpop.f32.mrb[107].mxu0  ;;  %v4606_v60 = vmul.f32 0.5, %v4478_v61 }
 0x759   : > { %v4668_v0 = vmul.f32 0.70710677, %v4470_v9  ;;  %v4473_v19 = vadd.f32 %v4472_v51, %v10511_v41  ;;  %v4604_v51 = vmul.f32 0.5, %v4470_v9 }
 0x75a   : > { %7845 = verf.f32 %v4670_v2  ;;  %v4671_v54 = vmul.f32 0.70710677, %v4481_v29  ;;  %v4607_v4 = vmul.f32 0.5, %v4481_v29 }
 0x75b   : > { %7847 = verf.f32 %v4668_v0  ;;  %v4669_v17 = vmul.f32 0.70710677, %v4473_v19  ;;  %v4605_v0 = vmul.f32 0.5, %v4473_v19 }
 0x75c   : > { %v7838_v42 = vpop.eup %7837  ;;  %7849 = verf.f32 %v4671_v54 }
 0x75d   : > { %v7840_v23 = vpop.eup %7839  ;;  %v4794_v26 = vadd.f32 1.0, %v7838_v42  ;;  %7851 = verf.f32 %v4669_v17  ;;  %v7122_v16 = vpop.f32.mrb[108].mxu0 }
 0x75e   : > { %v7842_v40 = vpop.eup %7841  ;;  %v4792_v13 = vadd.f32 1.0, %v7840_v23  ;;  %v10598_v50 = vadd.f32 %v7122_v16, %v10511_v41  ;;  %v4485_v48 = vpop.f32.mrb[109].mxu0 }
 0x75f   : > { %v7844_v3 = vpop.eup %7843  ;;  %v4795_v7 = vadd.f32 1.0, %v7842_v40  ;;  %v10601_v28 = vadd.f32 %v4485_v48, %v10511_v41  ;;  %v7123_v8 = vpop.f32.mrb[110].mxu0  ;;  %v4858_v56 = vmul.f32 %v4794_v26, %v4602_v44 }
 0x760   : > { %v4793_v5 = vadd.f32 1.0, %v7844_v3  ;;  %v4674_v10 = vmul.f32 0.70710677, %v10598_v50  ;;  %v4488_v30 = vpop.f32.mrb[111].mxu0  ;;  %v4497_v59 = vadd.f32 %v7123_v8, %v10511_v41  ;;  %v4856_v11 = vmul.f32 %v4792_v13, %v4600_v52 }
 0x761   : > { %v4859_v6 = vmul.f32 %v4795_v7, %v4603_v12  ;;  %v4672_v63 = vmul.f32 0.70710677, %v10601_v28  ;;  %v4489_v46 = vadd.f32 %v4488_v30, %v10511_v41 }
 0x762   : > { %v4857_v18 = vmul.f32 %v4793_v5, %v4601_v55  ;;  %7853 = verf.f32 %v4674_v10  ;;  %v4675_v33 = vmul.f32 0.70710677, %v4497_v59  ;;  %v4610_v10 = vmul.f32 0.5, %v10598_v50 }
 0x763   : > { %7855 = verf.f32 %v4672_v63  ;;  %v4903_v21 = vpack.c.bf16 %v4859_v6, %v4858_v56  ;;  %v4673_v45 = vmul.f32 0.70710677, %v4489_v46 }
 0x764   : > { %v7846_v14 = vpop.eup %7845  ;;  %v4902_v25 = vpack.c.bf16 %v4857_v18, %v4856_v11  ;;  %7857 = verf.f32 %v4675_v33  ;;  %v4608_v11 = vmul.f32 0.5, %v10601_v28  ;;  %v4611_v18 = vmul.f32 0.5, %v4497_v59 }
 0x765   : > { %v7848_v62 = vpop.eup %7847  ;;  %v4798_v38 = vadd.f32 1.0, %v7846_v14  ;;  %v7126_v32 = vpop.f32.mrb[112].mxu0  ;;  %7859 = verf.f32 %v4673_v45  ;;  %v4609_v45 = vmul.f32 0.5, %v4489_v46 }
 0x766   : > { %v7850_v49 = vpop.eup %7849  ;;  %v4796_v47 = vadd.f32 1.0, %v7848_v62  ;;  %v10608_v58 = vadd.f32 %v7126_v32, %v10511_v41  ;;  %v4501_v15 = vpop.f32.mrb[113].mxu0  ;;  %7192 = vmatprep.mubr.bf16.mxu1 %v4902_v25 }
 0x767   : > { %v7852_v20 = vpop.eup %7851  ;;  %v4799_v22 = vadd.f32 1.0, %v7850_v49  ;;  %v10611_v43 = vadd.f32 %v4501_v15, %v10511_v41  ;;  %v7127_v2 = vpop.f32.mrb[114].mxu0  ;;  %7193 = vmatmul.mubr.bf16.gmra.mrb[100].mxu1 %v4903_v21  ;;  %v4862_v23 = vmul.f32 %v4798_v38, %v4606_v60 }
 0x768   : > { %v4797_v54 = vadd.f32 1.0, %v7852_v20  ;;  %v4678_v17 = vmul.f32 0.70710677, %v10608_v58  ;;  %v4504_v42 = vpop.f32.mrb[115].mxu0  ;;  %v4513_v40 = vadd.f32 %v7127_v2, %v10511_v41  ;;  %v4860_v61 = vmul.f32 %v4796_v47, %v4604_v51 }
 0x769   : > { %v4863_v26 = vmul.f32 %v4799_v22, %v4607_v4  ;;  %v4676_v16 = vmul.f32 0.70710677, %v10611_v43  ;;  %v4505_v13 = vadd.f32 %v4504_v42, %v10511_v41 }
 0x76a   : > { %v4861_v29 = vmul.f32 %v4797_v54, %v4605_v0  ;;  %7861 = verf.f32 %v4678_v17  ;;  %v4679_v48 = vmul.f32 0.70710677, %v4513_v40  ;;  %v4614_v54 = vmul.f32 0.5, %v10608_v58 }
 0x76b   : > { %7863 = verf.f32 %v4676_v16  ;;  %v4905_v3 = vpack.c.bf16 %v4863_v26, %v4862_v23  ;;  %v4677_v19 = vmul.f32 0.70710677, %v4505_v13  ;;  %v4615_v17 = vmul.f32 0.5, %v4513_v40 }
 0x76c   : > { %v7854_v9 = vpop.eup %7853  ;;  %v4904_v44 = vpack.c.bf16 %v4861_v29, %v4860_v61  ;;  %7865 = verf.f32 %v4679_v48  ;;  %v4612_v23 = vmul.f32 0.5, %v10611_v43  ;;  %v4613_v26 = vmul.f32 0.5, %v4505_v13 }
 0x76d   : > { %v7856_v12 = vpop.eup %7855  ;;  %v7130_v7 = vpop.f32.mrb[116].mxu0  ;;  %v4802_v8 = vadd.f32 1.0, %v7854_v9  ;;  %7867 = verf.f32 %v4677_v19 }
 0x76e   : > { %v4526_v52 = vadd.f32 %v7130_v7, %v10511_v41  ;;  %v4517_v55 = vpop.f32.mrb[117].mxu0  ;;  %7196 = vmatprep.mubr.bf16.mxu1 %v4904_v44  ;;  %v7858_v5 = vpop.eup %7857  ;;  %v4800_v30 = vadd.f32 1.0, %v7856_v12 }
 0x76f   : > { %v4518_v56 = vadd.f32 %v4517_v55, %v10511_v41  ;;  %v7131_v6 = vpop.f32.mrb[118].mxu0  ;;  %7197 = vmatmul.mubr.bf16.gmra.mrb[104].mxu1 %v4905_v3  ;;  %v7860_v63 = vpop.eup %7859  ;;  %v4803_v33 = vadd.f32 1.0, %v7858_v5  ;;  %v4866_v32 = vmul.f32 %v4802_v8, %v4610_v10 }
 0x770   : > { %v4682_v21 = vmul.f32 0.70710677, %v4526_v52  ;;  %v4520_v14 = vpop.f32.mrb[119].mxu0  ;;  %v4801_v25 = vadd.f32 1.0, %v7860_v63  ;;  %v4529_v38 = vadd.f32 %v7131_v6, %v10511_v41  ;;  %v4864_v47 = vmul.f32 %v4800_v30, %v4608_v11 }
 0x771   : > { %v4680_v62 = vmul.f32 0.70710677, %v4518_v56  ;;  %v4867_v49 = vmul.f32 %v4803_v33, %v4611_v18  ;;  %v4521_v50 = vadd.f32 %v4520_v14, %v10511_v41  ;;  %v4618_v40 = vmul.f32 0.5, %v4526_v52 }
 0x772   : > { %7869 = verf.f32 %v4682_v21  ;;  %v4865_v15 = vmul.f32 %v4801_v25, %v4609_v45  ;;  %v4683_v20 = vmul.f32 0.70710677, %v4529_v38  ;;  %v4619_v5 = vmul.f32 0.5, %v4529_v38 }
 0x773   : > { %7871 = verf.f32 %v4680_v62  ;;  %v4681_v28 = vmul.f32 0.70710677, %v4521_v50  ;;  %v4907_v59 = vpack.c.bf16 %v4867_v49, %v4866_v32  ;;  %v4616_v43 = vmul.f32 0.5, %v4518_v56 }
 0x774   : > { %v7862_v60 = vpop.eup %7861  ;;  %7873 = verf.f32 %v4683_v20  ;;  %v4906_v22 = vpack.c.bf16 %v4865_v15, %v4864_v47  ;;  %v4617_v13 = vmul.f32 0.5, %v4521_v50 }
 0x775   : > { %v7864_v4 = vpop.eup %7863  ;;  %v4806_v46 = vadd.f32 1.0, %v7862_v60  ;;  %7875 = verf.f32 %v4681_v28 }
 0x776   : > { %v7866_v2 = vpop.eup %7865  ;;  %v4804_v51 = vadd.f32 1.0, %v7864_v4  ;;  %7200 = vmatprep.mubr.bf16.mxu1 %v4906_v22 }
 0x777   : > { %v7868_v0 = vpop.eup %7867  ;;  %v4807_v42 = vadd.f32 1.0, %v7866_v2  ;;  %7201 = vmatmul.mubr.bf16.gmra.mrb[108].mxu1 %v4907_v59  ;;  %v4870_v61 = vmul.f32 %v4806_v46, %v4614_v54 }
 0x778   : > { %v4805_v16 = vadd.f32 1.0, %v7868_v0  ;;  %v4868_v48 = vmul.f32 %v4804_v51, %v4612_v23 }
 0x779   : > { %v4871_v29 = vmul.f32 %v4807_v42, %v4615_v17 }
 0x77a   : > { %v4869_v3 = vmul.f32 %v4805_v16, %v4613_v26 }
 0x77b   : > { %v4909_v19 = vpack.c.bf16 %v4871_v29, %v4870_v61 }
 0x77c   : > { %v7870_v9 = vpop.eup %7869  ;;  %v4908_v12 = vpack.c.bf16 %v4869_v3, %v4868_v48 }
 0x77d   : > { %v7872_v44 = vpop.eup %7871  ;;  %v4810_v7 = vadd.f32 1.0, %v7870_v9 }
 0x77e   : > { %v7874_v8 = vpop.eup %7873  ;;  %v4808_v55 = vadd.f32 1.0, %v7872_v44  ;;  %7204 = vmatprep.mubr.bf16.mxu1 %v4908_v12 }
 0x77f   : > { %v7876_v58 = vpop.eup %7875  ;;  %v4811_v10 = vadd.f32 1.0, %v7874_v8  ;;  %7205 = vmatmul.mubr.bf16.gmra.mrb[112].mxu1 %v4909_v19  ;;  %v4874_v6 = vmul.f32 %v4810_v7, %v4618_v40 }
 0x780   : > { %v4809_v30 = vadd.f32 1.0, %v7876_v58  ;;  %v4872_v11 = vmul.f32 %v4808_v55, %v4616_v43 }
 0x781   : > { %v4875_v63 = vmul.f32 %v4811_v10, %v4619_v5 }
 0x782   : > { %v4873_v18 = vmul.f32 %v4809_v30, %v4617_v13 }
 0x783   : > { %v4911_v33 = vpack.c.bf16 %v4875_v63, %v4874_v6 }
 0x784   : > { %v4910_v21 = vpack.c.bf16 %v4873_v18, %v4872_v11 }
 0x786   : > { %7208 = vmatprep.mubr.bf16.mxu1 %v4910_v21 }
 0x787   : > { %7209 = vmatmul.mubr.bf16.gmra.mrb[116].mxu1 %v4911_v33 }
 0x78b   : > { %v7134_v14 = vpop.f32.mrb[120].mxu0 }
 0x78c   : > { %v4542_v45 = vadd.f32 %v7134_v14, %v10511_v41  ;;  %v4533_v25 = vpop.f32.mrb[121].mxu0 }
 0x78d   : > { %v4534_v52 = vadd.f32 %v4533_v25, %v10511_v41  ;;  %v7135_v62 = vpop.f32.mrb[122].mxu0 }
 0x78e   : > { %v4686_v38 = vmul.f32 0.70710677, %v4542_v45  ;;  %v4545_v56 = vadd.f32 %v7135_v62, %v10511_v41  ;;  %v4536_v32 = vpop.f32.mrb[123].mxu0  ;;  %v4622_v0 = vmul.f32 0.5, %v4542_v45 }
 0x78f   : > { %v4684_v49 = vmul.f32 0.70710677, %v4534_v52  ;;  %v4537_v50 = vadd.f32 %v4536_v32, %v10511_v41  ;;  %v4620_v26 = vmul.f32 0.5, %v4534_v52  ;;  %v7958_v32 = vld [vmem:[%s8360_s0] sm:$0x3] }
 0x790   : > { %7877 = verf.f32 %v4686_v38  ;;  %v4687_v47 = vmul.f32 0.70710677, %v4545_v56  ;;  %v4623_v54 = vmul.f32 0.5, %v4545_v56 }
 0x791   : > { %7879 = verf.f32 %v4684_v49  ;;  %v4685_v15 = vmul.f32 0.70710677, %v4537_v50  ;;  %v4621_v16 = vmul.f32 0.5, %v4537_v50  ;;  %v12142_v49 = vld [vmem:[#allocation42_spill] sm:$0xff] }
 0x792   : > { %7881 = verf.f32 %v4687_v47  ;;  %v10635_v50 = vrot.slane %v7958_v32, %v12142_v49 }
 0x793   : > { %7883 = verf.f32 %v4685_v15  ;;  %v12143_v15 = vld [vmem:[#allocation34_spill] sm:$0xff] }
 0x79a   : > { %v7878_v20 = vpop.eup %7877 }
 0x79b   : > { %v7880_v60 = vpop.eup %7879  ;;  %v4814_v28 = vadd.f32 1.0, %v7878_v20  ;;  %v7138_v59 = vpop.f32.mrb[124].mxu0 }
 0x79c   : > { %v7882_v4 = vpop.eup %7881  ;;  %v4812_v22 = vadd.f32 1.0, %v7880_v60  ;;  %v4558_v46 = vadd.f32 %v7138_v59, %v10511_v41  ;;  %v4549_v2 = vpop.f32.mrb[125].mxu0 }
 0x79d   : > { %v7884_v51 = vpop.eup %7883  ;;  %v4815_v17 = vadd.f32 1.0, %v7882_v4  ;;  %v4550_v42 = vadd.f32 %v4549_v2, %v10511_v41  ;;  %v7139_v23 = vpop.f32.mrb[126].mxu0  ;;  %v4878_v3 = vmul.f32 %v4814_v28, %v4622_v0  ;;  %v12144_v28 = vld [vmem:[#allocation25_spill] sm:$0xff] }
 0x79e   : > { %v4813_v61 = vadd.f32 1.0, %v7884_v51  ;;  %v4690_v29 = vmul.f32 0.70710677, %v4558_v46  ;;  %v4552_v48 = vpop.f32.mrb[127].mxu0  ;;  %v4561_v44 = vadd.f32 %v7139_v23, %v10511_v41  ;;  %v4876_v12 = vmul.f32 %v4812_v22, %v4620_v26 }
 0x79f   : > { %v4879_v9 = vmul.f32 %v4815_v17, %v4623_v54  ;;  %v4688_v19 = vmul.f32 0.70710677, %v4550_v42  ;;  %v4553_v8 = vadd.f32 %v4552_v48, %v10511_v41  ;;  %v4626_v11 = vmul.f32 0.5, %v4558_v46  ;;  %v12145_v46 = vld [vmem:[#allocation33_spill] sm:$0xff]  ;;  %v12146_v54 = vld [vmem:[#allocation31_spill] sm:$0xff] }
 0x7a0   : > { %v4877_v7 = vmul.f32 %v4813_v61, %v4621_v16  ;;  %7885 = verf.f32 %v4690_v29  ;;  %v4691_v55 = vmul.f32 0.70710677, %v4561_v44  ;;  %v4627_v18 = vmul.f32 0.5, %v4561_v44  ;;  %v12147_v16 = vld [vmem:[#allocation45_spill] sm:$0xff]  ;;  %v12148_v48 = vld [vmem:[#allocation19_spill] sm:$0xff]  ;;  %v12149_v44 = vld [vmem:[#allocation44_spill] sm:$0xff] }
 0x7a1   : > { %7887 = verf.f32 %v4688_v19  ;;  %v4913_v58 = vpack.c.bf16 %v4879_v9, %v4878_v3  ;;  %v4689_v40 = vmul.f32 0.70710677, %v4553_v8  ;;  %v4624_v41 = vmul.f32 0.5, %v4550_v42 }
 0x7a2   : > { %v4912_v5 = vpack.c.bf16 %v4877_v7, %v4876_v12  ;;  %7889 = verf.f32 %v4691_v55  ;;  %v4625_v21 = vmul.f32 0.5, %v4553_v8  ;;  %v12150_v55 = vld [vmem:[#allocation20_spill] sm:$0xff] }
 0x7a3   : > { %7891 = verf.f32 %v4689_v40 }
 0x7a4   : > { %7212 = vmatprep.mubr.bf16.mxu1 %v4912_v5 }
 0x7a5   : > { %7213 = vmatmul.mubr.bf16.gmra.mrb[120].mxu1 %v4913_v58 }
 0x7aa   : > { %v7886_v10 = vpop.eup %7885 }
 0x7ab   : > { %v7888_v43 = vpop.eup %7887  ;;  %v4818_v13 = vadd.f32 1.0, %v7886_v10 }
 0x7ac   : > { %v7890_v30 = vpop.eup %7889  ;;  %v4816_v6 = vadd.f32 1.0, %v7888_v43  ;;  %v12151_v43 = vld [vmem:[#allocation37_spill] sm:$0xff] }
 0x7ad   : > { %v7892_v63 = vpop.eup %7891  ;;  %v4819_v33 = vadd.f32 1.0, %v7890_v30  ;;  %v4882_v45 = vmul.f32 %v4818_v13, %v4626_v11 }
 0x7ae   : > { %v4817_v14 = vadd.f32 1.0, %v7892_v63  ;;  %v4880_v52 = vmul.f32 %v4816_v6, %v4624_v41  ;;  %v12152_v6 = vld [vmem:[#allocation27_spill] sm:$0xff] }
 0x7af   : > { %v4883_v25 = vmul.f32 %v4819_v33, %v4627_v18  ;;  %v12153_v33 = vld [vmem:[#allocation38_spill] sm:$0xff] }
 0x7b0   : > { %v4881_v62 = vmul.f32 %v4817_v14, %v4625_v21 }
 0x7b1   : > { %v4915_v38 = vpack.c.bf16 %v4883_v25, %v4882_v45  ;;  %v12154_v45 = vld [vmem:[#allocation29_spill] sm:$0xff] }
 0x7b2   : > { %v4914_v56 = vpack.c.bf16 %v4881_v62, %v4880_v52 }
 0x7b4   : > { %7216 = vmatprep.mubr.bf16.mxu1 %v4914_v56  ;;  %v12155_v56 = vld [vmem:[#allocation49_spill] sm:$0xff] }
 0x7b5   : > { %7217 = vmatmul.mubr.bf16.gmra.mrb[124].mxu1 %v4915_v38 }
 0x7be   : > { %v7158_v47 = vpop.f32.mrb[64].mxu1 }
 0x7bf   : > { %v5255_v20 = vadd.f32 %v7158_v47, %v12143_v15  ;;  %v4998_v60 = vpop.f32.mrb[65].mxu1  ;;  %v12156_v47 = vld [vmem:[#allocation23_spill] sm:$0xff] }
 0x7c0   : > { %v5253_v59 = vadd.f32 %v4998_v60, %v12144_v28  ;;  %v7159_v4 = vpop.f32.mrb[66].mxu1  ;;  %v12157_v28 = vld [vmem:[#allocation48_spill] sm:$0xff] }
 0x7c1   : > { %v10640_v22 = vadd.f32 %v10635_v50, %v5255_v20  ;;  %v5256_v2 = vadd.f32 %v7159_v4, %v12145_v46  ;;  %v5001_v51 = vpop.f32.mrb[67].mxu1 }
 0x7c2   : > { %v10644_v0 = vadd.f32 %v10635_v50, %v5253_v59  ;;  %v5254_v17 = vadd.f32 %v5001_v51, %v12146_v54 }
 0x7c3   : > { %v10648_v42 = vadd.f32 %v10635_v50, %v5256_v2  ;;  %v12158_v2 = vld [vmem:[#allocation39_spill] sm:$0xff]  ;;  %5391 = vst [vmem:[#allocation2 + $0x10] sm:$0xff] (!%p6848_p1), %v10640_v22 }
 0x7c4   : > { %v10651_v23 = vadd.f32 %v10635_v50, %v5254_v17  ;;  %5389 = vst [vmem:[#allocation2] sm:$0xff] (!%p6848_p1), %v10644_v0 }
 0x7c5   : > { %5392 = vst [vmem:[#allocation2 + $0x18] sm:$0xff] (!%p6848_p1), %v10648_v42 }
 0x7c6   : > { %5390 = vst [vmem:[#allocation2 + $0x8] sm:$0xff] (!%p6848_p1), %v10651_v23 }
 0x7d4   : > { %v7162_v26 = vpop.f32.mrb[68].mxu1 }
 0x7d5   : > { %v5259_v61 = vadd.f32 %v7162_v26, %v12147_v16  ;;  %v5014_v29 = vpop.f32.mrb[69].mxu1  ;;  %v12159_v16 = vld [vmem:[#allocation35_spill] sm:$0xff] }
 0x7d6   : > { %v5257_v3 = vadd.f32 %v5014_v29, %v12148_v48  ;;  %v7163_v9 = vpop.f32.mrb[70].mxu1  ;;  %v12160_v48 = vld [vmem:[#allocation32_spill] sm:$0xff] }
 0x7d7   : > { %v10656_v19 = vadd.f32 %v10635_v50, %v5259_v61  ;;  %v5260_v12 = vadd.f32 %v7163_v9, %v12149_v44  ;;  %v5017_v7 = vpop.f32.mrb[71].mxu1 }
 0x7d8   : > { %v10660_v8 = vadd.f32 %v10635_v50, %v5257_v3  ;;  %v5258_v58 = vadd.f32 %v5017_v7, %v12150_v55 }
 0x7d9   : > { %v10664_v40 = vadd.f32 %v10635_v50, %v5260_v12  ;;  %v12161_v12 = vld [vmem:[#allocation36_spill] sm:$0xff]  ;;  %5395 = vst [vmem:[#allocation2 + $0x30] sm:$0xff] (!%p6848_p1), %v10656_v19 }
 0x7da   : > { %v10667_v5 = vadd.f32 %v10635_v50, %v5258_v58  ;;  %5393 = vst [vmem:[#allocation2 + $0x20] sm:$0xff] (!%p6848_p1), %v10660_v8 }
 0x7db   : > { %5396 = vst [vmem:[#allocation2 + $0x38] sm:$0xff] (!%p6848_p1), %v10664_v40 }
 0x7dc   : > { %v7166_v10 = vpop.f32.mrb[72].mxu1  ;;  %5394 = vst [vmem:[#allocation2 + $0x28] sm:$0xff] (!%p6848_p1), %v10667_v5 }
 0x7dd   : > { %v5263_v13 = vadd.f32 %v7166_v10, %v12151_v43  ;;  %v5030_v30 = vpop.f32.mrb[73].mxu1  ;;  %v12162_v10 = vld [vmem:[#allocation26_spill] sm:$0xff] }
 0x7de   : > { %v5261_v63 = vadd.f32 %v5030_v30, %v12152_v6  ;;  %v7167_v11 = vpop.f32.mrb[74].mxu1 }
 0x7df   : > { %v10672_v18 = vadd.f32 %v10635_v50, %v5263_v13  ;;  %v5264_v41 = vadd.f32 %v7167_v11, %v12153_v33  ;;  %v5033_v21 = vpop.f32.mrb[75].mxu1 }
 0x7e0   : > { %v10676_v14 = vadd.f32 %v10635_v50, %v5261_v63  ;;  %v5262_v25 = vadd.f32 %v5033_v21, %v12154_v45  ;;  %v12163_v63 = vld [vmem:[#allocation47_spill] sm:$0xff] }
 0x7e1   : > { %v10680_v52 = vadd.f32 %v10635_v50, %v5264_v41  ;;  %v12164_v41 = vld [vmem:[#allocation22_spill] sm:$0xff]  ;;  %5399 = vst [vmem:[#allocation2 + $0x50] sm:$0xff] (!%p6848_p1), %v10672_v18 }
 0x7e2   : > { %v10683_v62 = vadd.f32 %v10635_v50, %v5262_v25  ;;  %5397 = vst [vmem:[#allocation2 + $0x40] sm:$0xff] (!%p6848_p1), %v10676_v14 }
 0x7e3   : > { %5400 = vst [vmem:[#allocation2 + $0x58] sm:$0xff] (!%p6848_p1), %v10680_v52 }
 0x7e4   : > { %v7170_v38 = vpop.f32.mrb[76].mxu1  ;;  %5398 = vst [vmem:[#allocation2 + $0x48] sm:$0xff] (!%p6848_p1), %v10683_v62 }
 0x7e5   : > { %v5267_v32 = vadd.f32 %v7170_v38, %v12155_v56  ;;  %v5046_v49 = vpop.f32.mrb[77].mxu1  ;;  %v12165_v38 = vld [vmem:[#allocation46_spill] sm:$0xff] }
 0x7e6   : > { %v5265_v15 = vadd.f32 %v5046_v49, %v12156_v47  ;;  %v7171_v20 = vpop.f32.mrb[78].mxu1  ;;  %v12166_v47 = vld [vmem:[#allocation21_spill] sm:$0xff] }
 0x7e7   : > { %v10688_v60 = vadd.f32 %v10635_v50, %v5267_v32  ;;  %v5268_v59 = vadd.f32 %v7171_v20, %v12157_v28  ;;  %v5049_v4 = vpop.f32.mrb[79].mxu1 }
 0x7e8   : > { %v10692_v46 = vadd.f32 %v10635_v50, %v5265_v15  ;;  %v5266_v51 = vadd.f32 %v5049_v4, %v12158_v2  ;;  %v12168_v4 = vld [vmem:[#allocation17_spill] sm:$0xff] }
 0x7e9   : > { %v10696_v54 = vadd.f32 %v10635_v50, %v5268_v59  ;;  %5403 = vst [vmem:[#allocation2 + $0x70] sm:$0xff] (!%p6848_p1), %v10688_v60 }
 0x7ea   : > { %v10699_v17 = vadd.f32 %v10635_v50, %v5266_v51  ;;  %5401 = vst [vmem:[#allocation2 + $0x60] sm:$0xff] (!%p6848_p1), %v10692_v46 }
 0x7eb   : > { %5404 = vst [vmem:[#allocation2 + $0x78] sm:$0xff] (!%p6848_p1), %v10696_v54 }
 0x7ec   : > { %v7174_v26 = vpop.f32.mrb[80].mxu1  ;;  %5402 = vst [vmem:[#allocation2 + $0x68] sm:$0xff] (!%p6848_p1), %v10699_v17 }
 0x7ed   : > { %v5271_v61 = vadd.f32 %v7174_v26, %v12159_v16  ;;  %v5062_v29 = vpop.f32.mrb[81].mxu1  ;;  %v12169_v26 = vld [vmem:[#allocation28_spill] sm:$0xff] }
 0x7ee   : > { %v5269_v3 = vadd.f32 %v5062_v29, %v12160_v48  ;;  %v7175_v9 = vpop.f32.mrb[82].mxu1  ;;  %v12170_v48 = vld [vmem:[#allocation18_spill] sm:$0xff] }
 0x7ef   : > { %v10704_v44 = vadd.f32 %v10635_v50, %v5271_v61  ;;  %v5272_v7 = vadd.f32 %v7175_v9, %v12161_v12  ;;  %v5065_v55 = vpop.f32.mrb[83].mxu1 }
 0x7f0   : > { %v10708_v58 = vadd.f32 %v10635_v50, %v5269_v3  ;;  %v5270_v43 = vadd.f32 %v5065_v55, %v12162_v10 }
 0x7f1   : > { %v10712_v13 = vadd.f32 %v10635_v50, %v5272_v7  ;;  %v12171_v7 = vld [vmem:[#allocation30_spill] sm:$0xff]  ;;  %5407 = vst [vmem:[#allocation2 + $0x90] sm:$0xff] (!%p6848_p1), %v10704_v44 }
 0x7f2   : > { %v10715_v30 = vadd.f32 %v10635_v50, %v5270_v43  ;;  %5405 = vst [vmem:[#allocation2 + $0x80] sm:$0xff] (!%p6848_p1), %v10708_v58 }
 0x7f3   : > { %5408 = vst [vmem:[#allocation2 + $0x98] sm:$0xff] (!%p6848_p1), %v10712_v13 }
 0x7f4   : > { %v7178_v6 = vpop.f32.mrb[84].mxu1  ;;  %5406 = vst [vmem:[#allocation2 + $0x88] sm:$0xff] (!%p6848_p1), %v10715_v30 }
 0x7f5   : > { %v5275_v11 = vadd.f32 %v7178_v6, %v12163_v63  ;;  %v5078_v33 = vpop.f32.mrb[85].mxu1  ;;  %v12172_v63 = vld [vmem:[#allocation51_spill] sm:$0xff] }
 0x7f6   : > { %v5273_v21 = vadd.f32 %v5078_v33, %v12164_v41  ;;  %v7179_v45 = vpop.f32.mrb[86].mxu1  ;;  %v12173_v41 = vld [vmem:[#allocation43_spill] sm:$0xff] }
 0x7f7   : > { %v10720_v25 = vadd.f32 %v10635_v50, %v5275_v11  ;;  %v5276_v56 = vadd.f32 %v7179_v45, %v12165_v38  ;;  %v5081_v32 = vpop.f32.mrb[87].mxu1 }
 0x7f8   : > { %v10724_v49 = vadd.f32 %v10635_v50, %v5273_v21  ;;  %v5274_v15 = vadd.f32 %v5081_v32, %v12166_v47 }
 0x7f9   : > { %v10728_v20 = vadd.f32 %v10635_v50, %v5276_v56  ;;  %v12174_v56 = vld [vmem:[#allocation50_spill] sm:$0xff]  ;;  %5411 = vst [vmem:[#allocation2 + $0xb0] sm:$0xff] (!%p6848_p1), %v10720_v25 }
 0x7fa   : > { %v10731_v28 = vadd.f32 %v10635_v50, %v5274_v15  ;;  %5409 = vst [vmem:[#allocation2 + $0xa0] sm:$0xff] (!%p6848_p1), %v10724_v49 }
 0x7fb   : > { %12167 = vst [vmem:[#allocation66_spill] sm:$0xff] %v10728_v20  ;;  %5412 = vst [vmem:[#allocation2 + $0xb8] sm:$0xff] (!%p6848_p1), %v10728_v20 }
 0x7fc   : > { %v7182_v59 = vpop.f32.mrb[88].mxu1  ;;  %5410 = vst [vmem:[#allocation2 + $0xa8] sm:$0xff] (!%p6848_p1), %v10731_v28 }
 0x7fd   : > { %v5279_v2 = vadd.f32 %v7182_v59, %v12168_v4  ;;  %v5094_v51 = vpop.f32.mrb[89].mxu1  ;;  %v12175_v59 = vld [vmem:[#allocation24_spill] sm:$0xff] }
 0x7fe   : > { %v5277_v16 = vadd.f32 %v5094_v51, %v12169_v26  ;;  %v7183_v61 = vpop.f32.mrb[90].mxu1 }
 0x7ff   : > { %v10736_v29 = vadd.f32 %v10635_v50, %v5279_v2  ;;  %v5280_v3 = vadd.f32 %v7183_v61, %v12170_v48  ;;  %v5097_v9 = vpop.f32.mrb[91].mxu1 }
 0x800   : > { %v10740_v12 = vadd.f32 %v10635_v50, %v5277_v16  ;;  %v5278_v55 = vadd.f32 %v5097_v9, %v12171_v7  ;;  %v12177_v16 = vld [vmem:[#allocation58_spill] sm:$0xff] }
 0x801   : > { %v10744_v10 = vadd.f32 %v10635_v50, %v5280_v3  ;;  %v12178_v3 = vld [vmem:[#allocation53_spill] sm:$0xff]  ;;  %5415 = vst [vmem:[#allocation2 + $0xd0] sm:$0xff] (!%p6848_p1), %v10736_v29 }
 0x802   : > { %v10747_v43 = vadd.f32 %v10635_v50, %v5278_v55  ;;  %5413 = vst [vmem:[#allocation2 + $0xc0] sm:$0xff] (!%p6848_p1), %v10740_v12 }
 0x803   : > { %5416 = vst [vmem:[#allocation2 + $0xd8] sm:$0xff] (!%p6848_p1), %v10744_v10 }
 0x804   : > { %v7186_v6 = vpop.f32.mrb[92].mxu1  ;;  %5414 = vst [vmem:[#allocation2 + $0xc8] sm:$0xff] (!%p6848_p1), %v10747_v43 }
 0x805   : > { %v5283_v11 = vadd.f32 %v7186_v6, %v12172_v63  ;;  %v5110_v33 = vpop.f32.mrb[93].mxu1  ;;  %v12179_v6 = vld [vmem:[#allocation59_spill] sm:$0xff] }
 0x806   : > { %v5281_v21 = vadd.f32 %v5110_v33, %v12173_v41  ;;  %v7187_v45 = vpop.f32.mrb[94].mxu1  ;;  %v12180_v41 = vld [vmem:[#allocation52_spill] sm:$0xff] }
 0x807   : > { %v10752_v38 = vadd.f32 %v10635_v50, %v5283_v11  ;;  %v5284_v32 = vadd.f32 %v7187_v45, %v12174_v56  ;;  %v5113_v47 = vpop.f32.mrb[95].mxu1 }
 0x808   : > { %v10756_v15 = vadd.f32 %v10635_v50, %v5281_v21  ;;  %v5282_v4 = vadd.f32 %v5113_v47, %v12175_v59  ;;  %v12182_v47 = vld [vmem:[#allocation70_spill] sm:$0xff] }
 0x809   : > { %v10760_v2 = vadd.f32 %v10635_v50, %v5284_v32  ;;  %5419 = vst [vmem:[#allocation2 + $0xf0] sm:$0xff] (!%p6848_p1), %v10752_v38 }
 0x80a   : > { %v10763_v51 = vadd.f32 %v10635_v50, %v5282_v4  ;;  %5417 = vst [vmem:[#allocation2 + $0xe0] sm:$0xff] (!%p6848_p1), %v10756_v15 }
 0x80b   : > { %12176 = vst [vmem:[#allocation72_spill] sm:$0xff] %v10760_v2  ;;  %5420 = vst [vmem:[#allocation2 + $0xf8] sm:$0xff] (!%p6848_p1), %v10760_v2 }
 0x80c   : > { %5418 = vst [vmem:[#allocation2 + $0xe8] sm:$0xff] (!%p6848_p1), %v10763_v51 }
 0x822   : > { %v7190_v26 = vpop.f32.mrb[96].mxu1 }
 0x823   : > { %v5287_v61 = vadd.f32 %v7190_v26, %v12177_v16  ;;  %v5126_v48 = vpop.f32.mrb[97].mxu1  ;;  %v12183_v26 = vld [vmem:[#allocation64_spill] sm:$0xff] }
 0x824   : > { %v5285_v9 = vadd.f32 %v5126_v48, %v12178_v3  ;;  %v7191_v7 = vpop.f32.mrb[98].mxu1  ;;  %v12185_v3 = vld [vmem:[#allocation71_spill] sm:$0xff] }
 0x825   : > { %v10768_v55 = vadd.f32 %v10635_v50, %v5287_v61  ;;  %v5288_v63 = vadd.f32 %v7191_v7, %v12179_v6  ;;  %v5129_v11 = vpop.f32.mrb[99].mxu1 }
 0x826   : > { %v10772_v33 = vadd.f32 %v10635_v50, %v5285_v9  ;;  %v5286_v21 = vadd.f32 %v5129_v11, %v12180_v41 }
 0x827   : > { %v10776_v45 = vadd.f32 %v10635_v50, %v5288_v63  ;;  %v12187_v63 = vld [vmem:[#allocation65_spill] sm:$0xff]  ;;  %5423 = vst [vmem:[#allocation2 + $0x110] sm:$0xff] (!%p6848_p1), %v10768_v55 }
 0x828   : > { %v10779_v56 = vadd.f32 %v10635_v50, %v5286_v21  ;;  %5421 = vst [vmem:[#allocation2 + $0x100] sm:$0xff] (!%p6848_p1), %v10772_v33 }
 0x829   : > { %12181 = vst [vmem:[#allocation77_spill] sm:$0xff] %v10776_v45 }
 0x82a   : > { %5422 = vst [vmem:[#allocation2 + $0x108] sm:$0xff] (!%p6848_p1), %v10779_v56 }
 0x83a   : > { %v7194_v32 = vpop.f32.mrb[100].mxu1 }
 0x83b   : > { %v5291_v59 = vadd.f32 %v7194_v32, %v12182_v47  ;;  %v5142_v4 = vpop.f32.mrb[101].mxu1  ;;  %v12190_v47 = vld [vmem:[#allocation62_spill] sm:$0xff] }
 0x83c   : > { %v5289_v16 = vadd.f32 %v5142_v4, %v12183_v26  ;;  %v7195_v61 = vpop.f32.mrb[102].mxu1 }
 0x83d   : > { %v10784_v48 = vadd.f32 %v10635_v50, %v5291_v59  ;;  %v5292_v9 = vadd.f32 %v7195_v61, %v12185_v3  ;;  %v5145_v7 = vpop.f32.mrb[103].mxu1  ;;  %v12191_v59 = vld [vmem:[#allocation56_spill] sm:$0xff] }
 0x83e   : > { %v10788_v6 = vadd.f32 %v10635_v50, %v5289_v16  ;;  %v5290_v11 = vadd.f32 %v5145_v7, %v12187_v63  ;;  %v12193_v16 = vld [vmem:[#allocation63_spill] sm:$0xff] }
 0x83f   : > { %12184 = vst [vmem:[#allocation78_spill] sm:$0xff] %v10784_v48  ;;  %v10792_v41 = vadd.f32 %v10635_v50, %v5292_v9  ;;  %v12195_v9 = vld [vmem:[#allocation57_spill] sm:$0xff] }
 0x840   : > { %12186 = vst [vmem:[#allocation76_spill] sm:$0xff] %v10788_v6  ;;  %v10795_v21 = vadd.f32 %v10635_v50, %v5290_v11 }
 0x841   : > { %12188 = vst [vmem:[#allocation75_spill] sm:$0xff] %v10792_v41 }
 0x842   : > { %12189 = vst [vmem:[#allocation79_spill] sm:$0xff] %v10795_v21  ;;  %v7198_v32 = vpop.f32.mrb[104].mxu1 }
 0x843   : > { %v5295_v4 = vadd.f32 %v7198_v32, %v12190_v47  ;;  %v5158_v26 = vpop.f32.mrb[105].mxu1 }
 0x844   : > { %v5293_v48 = vadd.f32 %v5158_v26, %v12191_v59  ;;  %v7199_v45 = vpop.f32.mrb[106].mxu1  ;;  %v12198_v26 = vld [vmem:[#allocation73_spill] sm:$0xff] }
 0x845   : > { %v10800_v61 = vadd.f32 %v10635_v50, %v5295_v4  ;;  %v5296_v3 = vadd.f32 %v7199_v45, %v12193_v16  ;;  %v5161_v6 = vpop.f32.mrb[107].mxu1  ;;  %v12199_v4 = vld [vmem:[#allocation68_spill] sm:$0xff] }
 0x846   : > { %v10804_v7 = vadd.f32 %v10635_v50, %v5293_v48  ;;  %v5294_v63 = vadd.f32 %v5161_v6, %v12195_v9  ;;  %v12201_v48 = vld [vmem:[#allocation74_spill] sm:$0xff] }
 0x847   : > { %12192 = vst [vmem:[#allocation80_spill] sm:$0xff] %v10800_v61  ;;  %v10808_v11 = vadd.f32 %v10635_v50, %v5296_v3  ;;  %v12203_v3 = vld [vmem:[#allocation69_spill] sm:$0xff] }
 0x848   : > { %12194 = vst [vmem:[#allocation81_spill] sm:$0xff] %v10804_v7  ;;  %v10811_v32 = vadd.f32 %v10635_v50, %v5294_v63 }
 0x849   : > { %12196 = vst [vmem:[#allocation82_spill] sm:$0xff] %v10808_v11 }
 0x84a   : > { %12197 = vst [vmem:[#allocation83_spill] sm:$0xff] %v10811_v32  ;;  %v7202_v47 = vpop.f32.mrb[108].mxu1 }
 0x84b   : > { %v5299_v59 = vadd.f32 %v7202_v47, %v12198_v26  ;;  %v5174_v41 = vpop.f32.mrb[109].mxu1 }
 0x84c   : > { %v5297_v61 = vadd.f32 %v5174_v41, %v12199_v4  ;;  %v7203_v21 = vpop.f32.mrb[110].mxu1  ;;  %v12205_v41 = vld [vmem:[#allocation60_spill] sm:$0xff] }
 0x84d   : > { %v10816_v45 = vadd.f32 %v10635_v50, %v5299_v59  ;;  %v5300_v16 = vadd.f32 %v7203_v21, %v12201_v48  ;;  %v5177_v7 = vpop.f32.mrb[111].mxu1  ;;  %v12206_v59 = vld [vmem:[#allocation54_spill] sm:$0xff] }
 0x84e   : > { %v10820_v6 = vadd.f32 %v10635_v50, %v5297_v61  ;;  %v5298_v9 = vadd.f32 %v5177_v7, %v12203_v3  ;;  %v12208_v61 = vld [vmem:[#allocation61_spill] sm:$0xff] }
 0x84f   : > { %12200 = vst [vmem:[#allocation84_spill] sm:$0xff] %v10816_v45  ;;  %v10824_v63 = vadd.f32 %v10635_v50, %v5300_v16  ;;  %v12209_v16 = vld [vmem:[#allocation55_spill] sm:$0xff] }
 0x850   : > { %12202 = vst [vmem:[#allocation85_spill] sm:$0xff] %v10820_v6  ;;  %v10827_v47 = vadd.f32 %v10635_v50, %v5298_v9 }
 0x851   : > { %12204 = vst [vmem:[#allocation86_spill] sm:$0xff] %v10824_v63  ;;  %5436 = vst [vmem:[#allocation2 + $0x178] sm:$0xff] (!%p6848_p1), %v10824_v63 }
 0x852   : > { %v7206_v26 = vpop.f32.mrb[112].mxu1  ;;  %5434 = vst [vmem:[#allocation2 + $0x168] sm:$0xff] (!%p6848_p1), %v10827_v47 }
 0x853   : > { %v5303_v4 = vadd.f32 %v7206_v26, %v12205_v41  ;;  %v5190_v11 = vpop.f32.mrb[113].mxu1 }
 0x854   : > { %v5301_v45 = vadd.f32 %v5190_v11, %v12206_v59  ;;  %v7207_v32 = vpop.f32.mrb[114].mxu1 }
 0x855   : > { %v10832_v21 = vadd.f32 %v10635_v50, %v5303_v4  ;;  %v5304_v48 = vadd.f32 %v7207_v32, %v12208_v61  ;;  %v5193_v6 = vpop.f32.mrb[115].mxu1 }
 0x856   : > { %v10836_v7 = vadd.f32 %v10635_v50, %v5301_v45  ;;  %v5302_v3 = vadd.f32 %v5193_v6, %v12209_v16 }
 0x857   : > { %12207 = vst [vmem:[#allocation87_spill] sm:$0xff] %v10832_v21  ;;  %v10840_v9 = vadd.f32 %v10635_v50, %v5304_v48  ;;  %v12211_v48 = vld [vmem:[#allocation67_spill] sm:$0xff] }
 0x858   : > { %v10843_v26 = vadd.f32 %v10635_v50, %v5302_v3  ;;  %5437 = vst [vmem:[#allocation2 + $0x180] sm:$0xff] (!%p6848_p1), %v10836_v7 }
 0x859   : > { %5440 = vst [vmem:[#allocation2 + $0x198] sm:$0xff] (!%p6848_p1), %v10840_v9 }
 0x85a   : > { %v7210_v41 = vpop.f32.mrb[116].mxu1  ;;  %5438 = vst [vmem:[#allocation2 + $0x188] sm:$0xff] (!%p6848_p1), %v10843_v26 }
 0x85b   : > { %v5307_v11 = vadd.f32 %v7210_v41, %v12114_v39  ;;  %v5206_v59 = vpop.f32.mrb[117].mxu1 }
 0x85c   : > { %v5305_v4 = vadd.f32 %v5206_v59, %v12112_v24  ;;  %v7211_v21 = vpop.f32.mrb[118].mxu1 }
 0x85d   : > { %v10848_v32 = vadd.f32 %v10635_v50, %v5307_v11  ;;  %v5308_v45 = vadd.f32 %v7211_v21, %v9866_v1  ;;  %v5209_v61 = vpop.f32.mrb[119].mxu1 }
 0x85e   : > { %v10852_v6 = vadd.f32 %v10635_v50, %v5305_v4  ;;  %v5306_v16 = vadd.f32 %v5209_v61, %v12211_v48 }
 0x85f   : > { %12210 = vst [vmem:[#allocation88_spill] sm:$0xff] %v10848_v32  ;;  %v10856_v3 = vadd.f32 %v10635_v50, %v5308_v45 }
 0x860   : > { %v10859_v39 = vadd.f32 %v10635_v50, %v5306_v16  ;;  %5441 = vst [vmem:[#allocation2 + $0x1a0] sm:$0xff] (!%p6848_p1), %v10852_v6 }
 0x861   : > { %12212 = vst [vmem:[#allocation90_spill] sm:$0xff] %v10856_v3  ;;  %5444 = vst [vmem:[#allocation2 + $0x1b8] sm:$0xff] (!%p6848_p1), %v10856_v3 }
 0x862   : > { %12213 = vst [vmem:[#allocation89_spill] sm:$0xff] %v10859_v39  ;;  %5442 = vst [vmem:[#allocation2 + $0x1a8] sm:$0xff] (!%p6848_p1), %v10859_v39 }
 0x878   : > { %v7214_v41 = vpop.f32.mrb[120].mxu1 }
 0x879   : > { %v5311_v24 = vadd.f32 %v7214_v41, %v10026_v27  ;;  %v5222_v59 = vpop.f32.mrb[121].mxu1 }
 0x87a   : > { %v5309_v11 = vadd.f32 %v5222_v59, %v10014_v37  ;;  %v7215_v32 = vpop.f32.mrb[122].mxu1 }
 0x87b   : > { %v10864_v1 = vadd.f32 %v10635_v50, %v5311_v24  ;;  %v5312_v21 = vadd.f32 %v7215_v32, %v10007_v57  ;;  %v5225_v4 = vpop.f32.mrb[123].mxu1 }
 0x87c   : > { %v10868_v61 = vadd.f32 %v10635_v50, %v5309_v11  ;;  %v5310_v45 = vadd.f32 %v5225_v4, %v9994_v34 }
 0x87d   : > { %v10872_v48 = vadd.f32 %v10635_v50, %v5312_v21  ;;  %5447 = vst [vmem:[#allocation2 + $0x1d0] sm:$0xff] (!%p6848_p1), %v10864_v1 }
 0x87e   : > { %v10875_v27 = vadd.f32 %v10635_v50, %v5310_v45  ;;  %v12221_v45 = vld [vmem:[#allocation75_spill] sm:$0xff] (!%p6848_p1)  ;;  %5445 = vst [vmem:[#allocation2 + $0x1c0] sm:$0xff] (!%p6848_p1), %v10868_v61 }
 0x87f   : > { %5428 = vst [vmem:[#allocation2 + $0x138] sm:$0xff] (!%p6848_p1), %v12221_v45  ;;  %5448 = vst [vmem:[#allocation2 + $0x1d8] sm:$0xff] (!%p6848_p1), %v10872_v48 }
 0x880   : > { %5446 = vst [vmem:[#allocation2 + $0x1c8] sm:$0xff] (!%p6848_p1), %v10875_v27 }
 0x888   : > { %v7218_v16 = vpop.f32.mrb[124].mxu1 }
 0x889   : > { %v5315_v37 = vadd.f32 %v7218_v16, %v10068_v31  ;;  %v5238_v41 = vpop.f32.mrb[125].mxu1  ;;  %v12222_v16 = vld [vmem:[#allocation81_spill] sm:$0xff] (!%p6848_p1) }
 0x88a   : > { %v5313_v24 = vadd.f32 %v5238_v41, %v10055_v35  ;;  %v7219_v59 = vpop.f32.mrb[126].mxu1  ;;  %5388 = sbr.rel (%p6848_p1) target bundleno = 2197 (0x895), region = 72  ;;  %v12218_v35 = vld [vmem:[#allocation76_spill] sm:$0xff] (!%p6848_p1)  ;;  %5429 = vst [vmem:[#allocation2 + $0x140] sm:$0xff] (!%p6848_p1), %v12222_v16 }
 0x88b   : > { %v10880_v57 = vadd.f32 %v10635_v50, %v5315_v37  ;;  %v5316_v32 = vadd.f32 %v7219_v59, %v10061_v36  ;;  %v5241_v11 = vpop.f32.mrb[127].mxu1  ;;  %5425 = vst [vmem:[#allocation2 + $0x120] sm:$0xff] (!%p6848_p1), %v12218_v35  ;;  %v12219_v36 = vld [vmem:[#allocation79_spill] sm:$0xff] (!%p6848_p1)  ;;  %v12224_v41 = vld [vmem:[#allocation80_spill] sm:$0xff] (!%p6848_p1)  ;;  %v12226_v59 = vld [vmem:[#allocation85_spill] sm:$0xff] (!%p6848_p1) }
 0x88c   : > { %v10884_v34 = vadd.f32 %v10635_v50, %v5313_v24  ;;  %v5314_v21 = vadd.f32 %v5241_v11, %v10050_v53  ;;  %v12217_v53 = vld [vmem:[#allocation77_spill] sm:$0xff] (!%p6848_p1)  ;;  %5426 = vst [vmem:[#allocation2 + $0x128] sm:$0xff] (!%p6848_p1), %v12219_v36  ;;  %v12223_v37 = vld [vmem:[#allocation83_spill] sm:$0xff] (!%p6848_p1)  ;;  %5431 = vst [vmem:[#allocation2 + $0x150] sm:$0xff] (!%p6848_p1), %v12224_v41 }
 0x88d   : > { %12214 = vst [vmem:[#allocation91_spill] sm:$0xff] %v10880_v57  ;;  %v10888_v4 = vadd.f32 %v10635_v50, %v5316_v32  ;;  %5424 = vst [vmem:[#allocation2 + $0x118] sm:$0xff] (!%p6848_p1), %v12217_v53  ;;  %v12225_v24 = vld [vmem:[#allocation82_spill] sm:$0xff] (!%p6848_p1)  ;;  %v12227_v32 = vld [vmem:[#allocation84_spill] sm:$0xff] (!%p6848_p1) }
 0x88e   : > { %12215 = vst [vmem:[#allocation92_spill] sm:$0xff] %v10884_v34  ;;  %v10891_v31 = vadd.f32 %v10635_v50, %v5314_v21  ;;  %v12220_v50 = vld [vmem:[#allocation78_spill] sm:$0xff] (!%p6848_p1)  ;;  %5430 = vst [vmem:[#allocation2 + $0x148] sm:$0xff] (!%p6848_p1), %v12223_v37  ;;  %v12228_v11 = vld [vmem:[#allocation87_spill] sm:$0xff] (!%p6848_p1) }
 0x88f   : > { %5427 = vst [vmem:[#allocation2 + $0x130] sm:$0xff] (!%p6848_p1), %v12220_v50  ;;  %5432 = vst [vmem:[#allocation2 + $0x158] sm:$0xff] (!%p6848_p1), %v12225_v24  ;;  %v12229_v21 = vld [vmem:[#allocation88_spill] sm:$0xff] (!%p6848_p1) }
 0x890   : > { %12216 = vst [vmem:[#allocation93_spill] sm:$0xff] %v10891_v31  ;;  %5433 = vst [vmem:[#allocation2 + $0x160] sm:$0xff] (!%p6848_p1), %v12226_v59 }
 0x891   : > { %5435 = vst [vmem:[#allocation2 + $0x170] sm:$0xff] %v12227_v32  ;;  %5439 = vst [vmem:[#allocation2 + $0x190] sm:$0xff] %v12228_v11 }
 0x892   : > { %5443 = vst [vmem:[#allocation2 + $0x1b0] sm:$0xff] %v12229_v21  ;;  %5449 = vst [vmem:[#allocation2 + $0x1e0] sm:$0xff] %v10884_v34 }
 0x893   : > { %5450 = vst [vmem:[#allocation2 + $0x1e8] sm:$0xff] %v10891_v31  ;;  %5451 = vst [vmem:[#allocation2 + $0x1f0] sm:$0xff] %v10880_v57 }
 0x894   : > { %5452 = vst [vmem:[#allocation2 + $0x1f8] sm:$0xff] %v10888_v4 }
 0x895 PF: > { %p6849_p2 = scmp.ne.s32.totalorder %s8173_s20, 1 }
 0x897   : > { %5456 = sbr.rel (%p6849_p2) target bundleno = 2883 (0xb43), region = 76 }
 0x89e   : > { %5458 = vadd.xlane.f32.xlu0 %v10644_v0  ;;  %5474 = vadd.xlane.f32.xlu1 %v10676_v14  ;;  %v12230_v53 = vld [vmem:[#allocation81_spill] sm:$0xff]  ;;  %v12231_v35 = vld [vmem:[#allocation83_spill] sm:$0xff]  ;;  %v12232_v36 = vld [vmem:[#allocation80_spill] sm:$0xff]  ;;  %vm8193_vm2 = vmmov 0   ;;  %vm6458_vm3 = vcmask 1041409   ;;  %vm6460_vm4 = vcmask 1042434  }
 0x89f   : > { %v12233_v50 = vld [vmem:[#allocation77_spill] sm:$0xff]  ;;  %v12234_v45 = vld [vmem:[#allocation87_spill] sm:$0xff]  ;;  %v12235_v16 = vld [vmem:[#allocation82_spill] sm:$0xff]  ;;  %vm6462_vm5 = vcmask 1043459   ;;  %vm6464_vm6 = vcmask 1044484   ;;  %vm6466_vm7 = vcmask 1045509  }
 0x8a0   : > { %v12236_v37 = vld [vmem:[#allocation76_spill] sm:$0xff]  ;;  %v12237_v41 = vld [vmem:[#allocation85_spill] sm:$0xff]  ;;  %v12238_v24 = vld [vmem:[#allocation79_spill] sm:$0xff]  ;;  %vm6468_vm8 = vcmask 1046534   ;;  %vm6470_vm9 = vcmask 1047559  }
 0x8a1   : > { %v12239_v59 = vld [vmem:[#allocation78_spill] sm:$0xff]  ;;  %v12240_v32 = vld [vmem:[#allocation84_spill] sm:$0xff]  ;;  %v12241_v11 = vld [vmem:[#allocation75_spill] sm:$0xff] }
 0x8a2   : > { %5460 = vadd.xlane.f32.xlu0 %v10651_v23  ;;  %5476 = vadd.xlane.f32.xlu1 %v10683_v62  ;;  %v12242_v21 = vld [vmem:[#allocation88_spill] sm:$0xff] }
 0x8a6   : > { %5490 = vadd.xlane.f32.xlu0 %v10708_v58  ;;  %5492 = vadd.xlane.f32.xlu1 %v10715_v30 }
 0x8aa   : > { %5462 = vadd.xlane.f32.xlu0 %v10640_v22  ;;  %5478 = vadd.xlane.f32.xlu1 %v10672_v18 }
 0x8ae   : > { %5506 = vadd.xlane.f32.xlu0 %v10740_v12  ;;  %5508 = vadd.xlane.f32.xlu1 %v10747_v43 }
 0x8b2   : > { %5494 = vadd.xlane.f32.xlu0 %v10704_v44  ;;  %5522 = vadd.xlane.f32.xlu1 %v10772_v33 }
 0x8b6   : > { %5524 = vadd.xlane.f32.xlu0 %v10779_v56  ;;  %5464 = vadd.xlane.f32.xlu1 %v10648_v42 }
 0x8ba   : > { %5480 = vadd.xlane.f32.xlu0 %v10680_v52  ;;  %5510 = vadd.xlane.f32.xlu1 %v10736_v29 }
 0x8be   : > { %5538 = vadd.xlane.f32.xlu0 %v12230_v53  ;;  %5540 = vadd.xlane.f32.xlu1 %v12231_v35 }
 0x8c2   : > { %5496 = vadd.xlane.f32.xlu0 %v10712_v13  ;;  %5526 = vadd.xlane.f32.xlu1 %v10768_v55 }
 0x8c6   : > { %5554 = vadd.xlane.f32.xlu0 %v10836_v7  ;;  %5556 = vadd.xlane.f32.xlu1 %v10843_v26 }
 0x8ca   : > { %5466 = vadd.xlane.f32.xlu0 %v10660_v8  ;;  %5482 = vadd.xlane.f32.xlu1 %v10692_v46 }
 0x8ce   : > { %5512 = vadd.xlane.f32.xlu0 %v10744_v10  ;;  %5542 = vadd.xlane.f32.xlu1 %v12232_v36 }
 0x8d2   : > { %5570 = vadd.xlane.f32.xlu0 %v10868_v61  ;;  %5572 = vadd.xlane.f32.xlu1 %v10875_v27 }
 0x8d6   : > { %5498 = vadd.xlane.f32.xlu0 %v10724_v49  ;;  %5528 = vadd.xlane.f32.xlu1 %v12233_v50 }
 0x8da   : > { %5558 = vadd.xlane.f32.xlu0 %v12234_v45  ;;  %5468 = vadd.xlane.f32.xlu1 %v10667_v5 }
 0x8de   : > { %5484 = vadd.xlane.f32.xlu0 %v10699_v17  ;;  %5514 = vadd.xlane.f32.xlu1 %v10756_v15 }
 0x8e2   : > { %5544 = vadd.xlane.f32.xlu0 %v12235_v16  ;;  %5574 = vadd.xlane.f32.xlu1 %v10864_v1 }
 0x8e6   : > { %5500 = vadd.xlane.f32.xlu0 %v10731_v28  ;;  %5530 = vadd.xlane.f32.xlu1 %v12236_v37 }
 0x8ea   : > { %5560 = vadd.xlane.f32.xlu0 %v10840_v9  ;;  %5470 = vadd.xlane.f32.xlu1 %v10656_v19 }
 0x8ee   : > { %5486 = vadd.xlane.f32.xlu0 %v10688_v60  ;;  %5516 = vadd.xlane.f32.xlu1 %v10763_v51 }
 0x8f2   : > { %5546 = vadd.xlane.f32.xlu0 %v12237_v41  ;;  %5576 = vadd.xlane.f32.xlu1 %v10872_v48 }
 0x8f6   : > { %5502 = vadd.xlane.f32.xlu0 %v10720_v25  ;;  %5532 = vadd.xlane.f32.xlu1 %v12238_v24 }
 0x8fa   : > { %5562 = vadd.xlane.f32.xlu0 %v10852_v6  ;;  %5472 = vadd.xlane.f32.xlu1 %v10664_v40 }
 0x8fe   : > { %5488 = vadd.xlane.f32.xlu0 %v10696_v54  ;;  %5518 = vadd.xlane.f32.xlu1 %v10752_v38 }
 0x902   : > { %5548 = vadd.xlane.f32.xlu0 %v10827_v47  ;;  %5578 = vadd.xlane.f32.xlu1 %v10884_v34 }
 0x906   : > { %5504 = vadd.xlane.f32.xlu0 %v10728_v20  ;;  %5534 = vadd.xlane.f32.xlu1 %v12239_v59 }
 0x90a   : > { %5564 = vadd.xlane.f32.xlu0 %v10859_v39  ;;  %5520 = vadd.xlane.f32.xlu1 %v10760_v2 }
 0x90e   : > { %5550 = vadd.xlane.f32.xlu0 %v12240_v32  ;;  %5580 = vadd.xlane.f32.xlu1 %v10891_v31 }
 0x912   : > { %5536 = vadd.xlane.f32.xlu0 %v12241_v11  ;;  %5566 = vadd.xlane.f32.xlu1 %v12242_v21 }
 0x916   : > { %5552 = vadd.xlane.f32.xlu0 %v10824_v63  ;;  %5582 = vadd.xlane.f32.xlu1 %v10880_v57 }
 0x91a   : > { %5568 = vadd.xlane.f32.xlu0 %v10856_v3  ;;  %5584 = vadd.xlane.f32.xlu1 %v10888_v4 }
 0x92b   : > { %v5459_v59 = vpop.xlane.xlu0 %5458  ;;  %v5475_v39 = vpop.xlane.xlu1 %5474 }
 0x92c   : > { %v5586_v20 = vmul.f32 0.0078125, %v5459_v59  ;;  %v5594_v2 = vmul.f32 0.0078125, %v5475_v39 }
 0x92e   : > { %v11024_v32 = vsub.f32 %v10644_v0, %v5586_v20  ;;  %v11027_v31 = vsub.f32 %v10676_v14, %v5594_v2 }
 0x92f   : > { %v5461_v11 = vpop.xlane.xlu0 %5460  ;;  %v5477_v21 = vpop.xlane.xlu1 %5476 }
 0x930   : > { %12243 = vst [vmem:[#allocation100_spill] sm:$0xff] %v11024_v32  ;;  %v5587_v34 = vmul.f32 0.0078125, %v5461_v11  ;;  %v5714_v57 = vmul.f32 %v11024_v32, %v11024_v32  ;;  %v5595_v63 = vmul.f32 0.0078125, %v5477_v21  ;;  %v5722_v0 = vmul.f32 %v11027_v31, %v11027_v31 }
 0x932   : > { %v11032_v3 = vsub.f32 %v10651_v23, %v5587_v34  ;;  %5778 = vadd.xlane.f32.xlu0 %v5714_v57  ;;  %v11035_v59 = vsub.f32 %v10683_v62, %v5595_v63 }
 0x933   : > { %v5491_v20 = vpop.xlane.xlu0 %5490  ;;  %v5493_v14 = vpop.xlane.xlu1 %5492 }
 0x934   : > { %v5602_v2 = vmul.f32 0.0078125, %v5491_v20  ;;  %v5715_v39 = vmul.f32 %v11032_v3, %v11032_v3  ;;  %v5603_v11 = vmul.f32 0.0078125, %v5493_v14  ;;  %v5723_v62 = vmul.f32 %v11035_v59, %v11035_v59 }
 0x936   : > { %v11042_v32 = vsub.f32 %v10708_v58, %v5602_v2  ;;  %5794 = vadd.xlane.f32.xlu0 %v5722_v0  ;;  %5780 = vadd.xlane.f32.xlu1 %v5715_v39  ;;  %v11045_v23 = vsub.f32 %v10715_v30, %v5603_v11 }
 0x937   : > { %v5463_v63 = vpop.xlane.xlu0 %5462  ;;  %v5479_v57 = vpop.xlane.xlu1 %5478 }
 0x938   : > { %v5588_v34 = vmul.f32 0.0078125, %v5463_v63  ;;  %v5730_v21 = vmul.f32 %v11042_v32, %v11042_v32  ;;  %v5596_v20 = vmul.f32 0.0078125, %v5479_v57  ;;  %v5731_v30 = vmul.f32 %v11045_v23, %v11045_v23 }
 0x93a   : > { %v11052_v14 = vsub.f32 %v10640_v22, %v5588_v34  ;;  %5796 = vadd.xlane.f32.xlu1 %v5723_v62  ;;  %5810 = vadd.xlane.f32.xlu0 %v5730_v21  ;;  %v11055_v58 = vsub.f32 %v10672_v18, %v5596_v20 }
 0x93b   : > { %v5507_v0 = vpop.xlane.xlu0 %5506  ;;  %v5509_v2 = vpop.xlane.xlu1 %5508 }
 0x93c   : > { %v5610_v39 = vmul.f32 0.0078125, %v5507_v0  ;;  %v5716_v11 = vmul.f32 %v11052_v14, %v11052_v14  ;;  %v5611_v63 = vmul.f32 0.0078125, %v5509_v2  ;;  %v5724_v18 = vmul.f32 %v11055_v58, %v11055_v58 }
 0x93e   : > { %v11062_v57 = vsub.f32 %v10740_v12, %v5610_v39  ;;  %5812 = vadd.xlane.f32.xlu1 %v5731_v30  ;;  %5782 = vadd.xlane.f32.xlu0 %v5716_v11  ;;  %v11065_v22 = vsub.f32 %v10747_v43, %v5611_v63 }
 0x93f   : > { %v5495_v62 = vpop.xlane.xlu0 %5494  ;;  %v5523_v34 = vpop.xlane.xlu1 %5522 }
 0x940   : > { %v5604_v21 = vmul.f32 0.0078125, %v5495_v62  ;;  %v5738_v20 = vmul.f32 %v11062_v57, %v11062_v57  ;;  %v5618_v0 = vmul.f32 0.0078125, %v5523_v34  ;;  %v5739_v43 = vmul.f32 %v11065_v22, %v11065_v22 }
 0x942   : > { %v11072_v2 = vsub.f32 %v10704_v44, %v5604_v21  ;;  %5798 = vadd.xlane.f32.xlu1 %v5724_v18  ;;  %5826 = vadd.xlane.f32.xlu0 %v5738_v20  ;;  %v11075_v12 = vsub.f32 %v10772_v33, %v5618_v0 }
 0x943   : > { %v5525_v30 = vpop.xlane.xlu0 %5524  ;;  %v5465_v39 = vpop.xlane.xlu1 %5464 }
 0x944   : > { %v5619_v11 = vmul.f32 0.0078125, %v5525_v30  ;;  %v5732_v63 = vmul.f32 %v11072_v2, %v11072_v2  ;;  %v5589_v62 = vmul.f32 0.0078125, %v5465_v39  ;;  %v5746_v33 = vmul.f32 %v11075_v12, %v11075_v12 }
 0x946   : > { %v11082_v34 = vsub.f32 %v10779_v56, %v5619_v11  ;;  %5828 = vadd.xlane.f32.xlu1 %v5739_v43  ;;  %5814 = vadd.xlane.f32.xlu0 %v5732_v63  ;;  %v11085_v44 = vsub.f32 %v10648_v42, %v5589_v62 }
 0x947   : > { %v5481_v18 = vpop.xlane.xlu0 %5480  ;;  %v5511_v21 = vpop.xlane.xlu1 %5510 }
 0x948   : > { %v5597_v20 = vmul.f32 0.0078125, %v5481_v18  ;;  %v5747_v0 = vmul.f32 %v11082_v34, %v11082_v34  ;;  %v5612_v30 = vmul.f32 0.0078125, %v5511_v21  ;;  %v5717_v42 = vmul.f32 %v11085_v44, %v11085_v44 }
 0x94a   : > { %v11092_v39 = vsub.f32 %v10680_v52, %v5597_v20  ;;  %5842 = vadd.xlane.f32.xlu1 %v5746_v33  ;;  %5844 = vadd.xlane.f32.xlu0 %v5747_v0  ;;  %v11095_v56 = vsub.f32 %v10736_v29, %v5612_v30 }
 0x94b   : > { %v5539_v43 = vpop.xlane.xlu0 %5538  ;;  %v5541_v11 = vpop.xlane.xlu1 %5540 }
 0x94c   : > { %v5626_v63 = vmul.f32 0.0078125, %v5539_v43  ;;  %v5725_v62 = vmul.f32 %v11092_v39, %v11092_v39  ;;  %v5627_v18 = vmul.f32 0.0078125, %v5541_v11  ;;  %v5740_v29 = vmul.f32 %v11095_v56, %v11095_v56 }
 0x94e   : > { %v11102_v21 = vsub.f32 %v12230_v53, %v5626_v63  ;;  %5784 = vadd.xlane.f32.xlu1 %v5717_v42  ;;  %5800 = vadd.xlane.f32.xlu0 %v5725_v62  ;;  %v11105_v52 = vsub.f32 %v12231_v35, %v5627_v18 }
 0x94f   : > { %v5497_v33 = vpop.xlane.xlu0 %5496  ;;  %v5527_v20 = vpop.xlane.xlu1 %5526 }
 0x950   : > { %v5605_v0 = vmul.f32 0.0078125, %v5497_v33  ;;  %v5754_v30 = vmul.f32 %v11102_v21, %v11102_v21  ;;  %v5620_v43 = vmul.f32 0.0078125, %v5527_v20  ;;  %v5755_v35 = vmul.f32 %v11105_v52, %v11105_v52 }
 0x952   : > { %v11112_v11 = vsub.f32 %v10712_v13, %v5605_v0  ;;  %5830 = vadd.xlane.f32.xlu1 %v5740_v29  ;;  %5858 = vadd.xlane.f32.xlu0 %v5754_v30  ;;  %v11115_v53 = vsub.f32 %v10768_v55, %v5620_v43 }
 0x953   : > { %v5555_v42 = vpop.xlane.xlu0 %5554  ;;  %v5557_v63 = vpop.xlane.xlu1 %5556 }
 0x954   : > { %v5634_v62 = vmul.f32 0.0078125, %v5555_v42  ;;  %v5733_v18 = vmul.f32 %v11112_v11, %v11112_v11  ;;  %v5635_v33 = vmul.f32 0.0078125, %v5557_v63  ;;  %v5748_v55 = vmul.f32 %v11115_v53, %v11115_v53 }
 0x956   : > { %v11122_v20 = vsub.f32 %v10836_v7, %v5634_v62  ;;  %5860 = vadd.xlane.f32.xlu1 %v5755_v35  ;;  %5816 = vadd.xlane.f32.xlu0 %v5733_v18  ;;  %v11125_v13 = vsub.f32 %v10843_v26, %v5635_v33 }
 0x957   : > { %v5467_v29 = vpop.xlane.xlu0 %5466  ;;  %v5483_v0 = vpop.xlane.xlu1 %5482 }
 0x958   : > { %v5590_v30 = vmul.f32 0.0078125, %v5467_v29  ;;  %v5762_v43 = vmul.f32 %v11122_v20, %v11122_v20  ;;  %v5598_v42 = vmul.f32 0.0078125, %v5483_v0  ;;  %v5763_v26 = vmul.f32 %v11125_v13, %v11125_v13 }
 0x95a   : > { %v11132_v63 = vsub.f32 %v10660_v8, %v5590_v30  ;;  %5846 = vadd.xlane.f32.xlu1 %v5748_v55  ;;  %5874 = vadd.xlane.f32.xlu0 %v5762_v43  ;;  %v11135_v7 = vsub.f32 %v10692_v46, %v5598_v42 }
 0x95b   : > { %v5513_v35 = vpop.xlane.xlu0 %5512  ;;  %v5543_v62 = vpop.xlane.xlu1 %5542 }
 0x95c   : > { %v5613_v18 = vmul.f32 0.0078125, %v5513_v35  ;;  %v5718_v33 = vmul.f32 %v11132_v63, %v11132_v63  ;;  %v5628_v29 = vmul.f32 0.0078125, %v5543_v62  ;;  %v5726_v46 = vmul.f32 %v11135_v7, %v11135_v7 }
 0x95e   : > { %v11142_v0 = vsub.f32 %v10744_v10, %v5613_v18  ;;  %5876 = vadd.xlane.f32.xlu1 %v5763_v26  ;;  %5786 = vadd.xlane.f32.xlu0 %v5718_v33  ;;  %v11145_v8 = vsub.f32 %v12232_v36, %v5628_v29 }
 0x95f   : > { %v5571_v55 = vpop.xlane.xlu0 %5570  ;;  %v5573_v30 = vpop.xlane.xlu1 %5572 }
 0x960   : > { %v5642_v43 = vmul.f32 0.0078125, %v5571_v55  ;;  %v5741_v42 = vmul.f32 %v11142_v0, %v11142_v0  ;;  %v5643_v35 = vmul.f32 0.0078125, %v5573_v30  ;;  %v5756_v36 = vmul.f32 %v11145_v8, %v11145_v8 }
 0x962   : > { %v11152_v62 = vsub.f32 %v10868_v61, %v5642_v43  ;;  %5802 = vadd.xlane.f32.xlu1 %v5726_v46  ;;  %5832 = vadd.xlane.f32.xlu0 %v5741_v42  ;;  %v11155_v10 = vsub.f32 %v10875_v27, %v5643_v35 }
 0x963   : > { %v5499_v26 = vpop.xlane.xlu0 %5498  ;;  %v5529_v18 = vpop.xlane.xlu1 %5528 }
 0x964   : > { %v5606_v33 = vmul.f32 0.0078125, %v5499_v26  ;;  %v5770_v29 = vmul.f32 %v11152_v62, %v11152_v62  ;;  %v5621_v55 = vmul.f32 0.0078125, %v5529_v18  ;;  %v5771_v27 = vmul.f32 %v11155_v10, %v11155_v10 }
 0x966   : > { %v11162_v30 = vsub.f32 %v10724_v49, %v5606_v33  ;;  %5862 = vadd.xlane.f32.xlu1 %v5756_v36  ;;  %5890 = vadd.xlane.f32.xlu0 %v5770_v29  ;;  %v11165_v61 = vsub.f32 %v12233_v50, %v5621_v55 }
 0x967   : > { %v5559_v46 = vpop.xlane.xlu0 %5558  ;;  %v5469_v43 = vpop.xlane.xlu1 %5468 }
 0x968   : > { %v5636_v42 = vmul.f32 0.0078125, %v5559_v46  ;;  %v5734_v35 = vmul.f32 %v11162_v30, %v11162_v30  ;;  %v5591_v26 = vmul.f32 0.0078125, %v5469_v43  ;;  %v5749_v50 = vmul.f32 %v11165_v61, %v11165_v61 }
 0x96a   : > { %v11172_v18 = vsub.f32 %v12234_v45, %v5636_v42  ;;  %5892 = vadd.xlane.f32.xlu1 %v5771_v27  ;;  %5818 = vadd.xlane.f32.xlu0 %v5734_v35  ;;  %v11175_v49 = vsub.f32 %v10667_v5, %v5591_v26 }
 0x96b   : > { %v5485_v36 = vpop.xlane.xlu0 %5484  ;;  %v5515_v33 = vpop.xlane.xlu1 %5514 }
 0x96c   : > { %v5599_v29 = vmul.f32 0.0078125, %v5485_v36  ;;  %v5764_v55 = vmul.f32 %v11172_v18, %v11172_v18  ;;  %v5614_v46 = vmul.f32 0.0078125, %v5515_v33  ;;  %v5719_v5 = vmul.f32 %v11175_v49, %v11175_v49 }
 0x96e   : > { %v11182_v43 = vsub.f32 %v10699_v17, %v5599_v29  ;;  %5848 = vadd.xlane.f32.xlu1 %v5749_v50  ;;  %5878 = vadd.xlane.f32.xlu0 %v5764_v55  ;;  %v11185_v45 = vsub.f32 %v10756_v15, %v5614_v46 }
 0x96f   : > { %v5545_v27 = vpop.xlane.xlu0 %5544  ;;  %v5575_v42 = vpop.xlane.xlu1 %5574 }
 0x970   : > { %v5629_v35 = vmul.f32 0.0078125, %v5545_v27  ;;  %v5727_v26 = vmul.f32 %v11182_v43, %v11182_v43  ;;  %v5644_v36 = vmul.f32 0.0078125, %v5575_v42  ;;  %v5742_v15 = vmul.f32 %v11185_v45, %v11185_v45 }
 0x972   : > { %v11192_v33 = vsub.f32 %v12235_v16, %v5629_v35  ;;  %5788 = vadd.xlane.f32.xlu1 %v5719_v5  ;;  %5804 = vadd.xlane.f32.xlu0 %v5727_v26  ;;  %v11195_v17 = vsub.f32 %v10864_v1, %v5644_v36 }
 0x973   : > { %v5501_v50 = vpop.xlane.xlu0 %5500  ;;  %v5531_v29 = vpop.xlane.xlu1 %5530 }
 0x974   : > { %12244 = vst [vmem:[#allocation101_spill] sm:$0xff] %v11192_v33  ;;  %v5757_v55 = vmul.f32 %v11192_v33, %v11192_v33  ;;  %v5607_v46 = vmul.f32 0.0078125, %v5501_v50  ;;  %v5622_v27 = vmul.f32 0.0078125, %v5531_v29  ;;  %v5772_v42 = vmul.f32 %v11195_v17, %v11195_v17 }
 0x976   : > { %v11204_v16 = vsub.f32 %v10731_v28, %v5607_v46  ;;  %5834 = vadd.xlane.f32.xlu1 %v5742_v15  ;;  %5864 = vadd.xlane.f32.xlu0 %v5757_v55  ;;  %v11207_v1 = vsub.f32 %v12236_v37, %v5622_v27 }
 0x977   : > { %v5561_v5 = vpop.xlane.xlu0 %5560  ;;  %v5471_v35 = vpop.xlane.xlu1 %5470 }
 0x978   : > { %v5735_v26 = vmul.f32 %v11204_v16, %v11204_v16  ;;  %v5637_v36 = vmul.f32 0.0078125, %v5561_v5  ;;  %v5592_v33 = vmul.f32 0.0078125, %v5471_v35  ;;  %v5750_v50 = vmul.f32 %v11207_v1, %v11207_v1 }
 0x97a   : > { %v11214_v29 = vsub.f32 %v10840_v9, %v5637_v36  ;;  %5894 = vadd.xlane.f32.xlu1 %v5772_v42  ;;  %5820 = vadd.xlane.f32.xlu0 %v5735_v26  ;;  %v11217_v28 = vsub.f32 %v10656_v19, %v5592_v33 }
 0x97b   : > { %v5487_v37 = vpop.xlane.xlu0 %5486  ;;  %v5517_v15 = vpop.xlane.xlu1 %5516 }
 0x97c   : > { %v5765_v55 = vmul.f32 %v11214_v29, %v11214_v29  ;;  %v5600_v46 = vmul.f32 0.0078125, %v5487_v37  ;;  %v5615_v27 = vmul.f32 0.0078125, %v5517_v15  ;;  %v5720_v5 = vmul.f32 %v11217_v28, %v11217_v28 }
 0x97e   : > { %v11224_v35 = vsub.f32 %v10688_v60, %v5600_v46  ;;  %5850 = vadd.xlane.f32.xlu1 %v5750_v50  ;;  %5880 = vadd.xlane.f32.xlu0 %v5765_v55  ;;  %v11227_v9 = vsub.f32 %v10763_v51, %v5615_v27 }
 0x97f   : > { %v5547_v19 = vpop.xlane.xlu0 %5546  ;;  %v5577_v33 = vpop.xlane.xlu1 %5576 }
 0x980   : > { %v5728_v42 = vmul.f32 %v11224_v35, %v11224_v35  ;;  %v5630_v26 = vmul.f32 0.0078125, %v5547_v19  ;;  %v5645_v36 = vmul.f32 0.0078125, %v5577_v33  ;;  %v5743_v37 = vmul.f32 %v11227_v9, %v11227_v9 }
 0x982   : > { %v11234_v15 = vsub.f32 %v12237_v41, %v5630_v26  ;;  %5790 = vadd.xlane.f32.xlu1 %v5720_v5  ;;  %5806 = vadd.xlane.f32.xlu0 %v5728_v42  ;;  %v11237_v60 = vsub.f32 %v10872_v48, %v5645_v36 }
 0x983   : > { %v5503_v51 = vpop.xlane.xlu0 %5502  ;;  %v5533_v50 = vpop.xlane.xlu1 %5532 }
 0x984   : > { %v5758_v55 = vmul.f32 %v11234_v15, %v11234_v15  ;;  %v5608_v46 = vmul.f32 0.0078125, %v5503_v51  ;;  %v5623_v27 = vmul.f32 0.0078125, %v5533_v50  ;;  %v5773_v19 = vmul.f32 %v11237_v60, %v11237_v60 }
 0x986   : > { %v11244_v33 = vsub.f32 %v10720_v25, %v5608_v46  ;;  %5836 = vadd.xlane.f32.xlu1 %v5743_v37  ;;  %5866 = vadd.xlane.f32.xlu0 %v5758_v55  ;;  %v11247_v41 = vsub.f32 %v12238_v24, %v5623_v27 }
 0x987   : > { %v5563_v48 = vpop.xlane.xlu0 %5562  ;;  %v5473_v5 = vpop.xlane.xlu1 %5472 }
 0x988   : > { %12245 = vst [vmem:[#allocation102_spill] sm:$0xff] %v11247_v41  ;;  %v5736_v42 = vmul.f32 %v11244_v33, %v11244_v33  ;;  %v5638_v26 = vmul.f32 0.0078125, %v5563_v48  ;;  %v5593_v36 = vmul.f32 0.0078125, %v5473_v5  ;;  %v5751_v51 = vmul.f32 %v11247_v41, %v11247_v41 }
 0x98a   : > { %v11254_v50 = vsub.f32 %v10852_v6, %v5638_v26  ;;  %5896 = vadd.xlane.f32.xlu1 %v5773_v19  ;;  %5822 = vadd.xlane.f32.xlu0 %v5736_v42  ;;  %v11257_v25 = vsub.f32 %v10664_v40, %v5593_v36 }
 0x98b   : > { %v5489_v24 = vpop.xlane.xlu0 %5488  ;;  %v5519_v37 = vpop.xlane.xlu1 %5518 }
 0x98c   : > { %12246 = vst [vmem:[#allocation103_spill] sm:$0xff] %v11254_v50  ;;  %12247 = vst [vmem:[#allocation104_spill] sm:$0xff] %v11257_v25  ;;  %v5766_v55 = vmul.f32 %v11254_v50, %v11254_v50  ;;  %v5601_v46 = vmul.f32 0.0078125, %v5489_v24  ;;  %v5616_v27 = vmul.f32 0.0078125, %v5519_v37  ;;  %v5721_v48 = vmul.f32 %v11257_v25, %v11257_v25 }
 0x98e   : > { %v11264_v5 = vsub.f32 %v10696_v54, %v5601_v46  ;;  %5852 = vadd.xlane.f32.xlu1 %v5751_v51  ;;  %5882 = vadd.xlane.f32.xlu0 %v5766_v55  ;;  %v11267_v6 = vsub.f32 %v10752_v38, %v5616_v27  ;;  %v12251_v54 = vld [vmem:[#allocation92_spill] sm:$0xff] }
 0x98f   : > { %v5549_v40 = vpop.xlane.xlu0 %5548  ;;  %v5579_v19 = vpop.xlane.xlu1 %5578 }
 0x990   : > { %12248 = vst [vmem:[#allocation105_spill] sm:$0xff] %v11264_v5  ;;  %12249 = vst [vmem:[#allocation106_spill] sm:$0xff] %v11267_v6  ;;  %v5729_v42 = vmul.f32 %v11264_v5, %v11264_v5  ;;  %v5631_v26 = vmul.f32 0.0078125, %v5549_v40  ;;  %v5646_v36 = vmul.f32 0.0078125, %v5579_v19  ;;  %v5744_v24 = vmul.f32 %v11267_v6, %v11267_v6  ;;  %v12253_v19 = vld [vmem:[#allocation66_spill] sm:$0xff] }
 0x992   : > { %v11274_v37 = vsub.f32 %v10827_v47, %v5631_v26  ;;  %5792 = vadd.xlane.f32.xlu1 %v5721_v48  ;;  %5808 = vadd.xlane.f32.xlu0 %v5729_v42  ;;  %v11277_v51 = vsub.f32 %v12251_v54, %v5646_v36  ;;  %v12255_v47 = vld [vmem:[#allocation78_spill] sm:$0xff] }
 0x993   : > { %v5505_v38 = vpop.xlane.xlu0 %5504  ;;  %v5535_v55 = vpop.xlane.xlu1 %5534 }
 0x994   : > { %12250 = vst [vmem:[#allocation107_spill] sm:$0xff] %v11274_v37  ;;  %12252 = vst [vmem:[#allocation108_spill] sm:$0xff] %v11277_v51  ;;  %v5759_v46 = vmul.f32 %v11274_v37, %v11274_v37  ;;  %v5609_v27 = vmul.f32 0.0078125, %v5505_v38  ;;  %v5624_v5 = vmul.f32 0.0078125, %v5535_v55  ;;  %v5774_v40 = vmul.f32 %v11277_v51, %v11277_v51  ;;  %v12257_v55 = vld [vmem:[#allocation89_spill] sm:$0xff] }
 0x996   : > { %v11284_v6 = vsub.f32 %v12253_v19, %v5609_v27  ;;  %5838 = vadd.xlane.f32.xlu1 %v5744_v24  ;;  %5868 = vadd.xlane.f32.xlu0 %v5759_v46  ;;  %v11287_v48 = vsub.f32 %v12255_v47, %v5624_v5  ;;  %v12259_v24 = vld [vmem:[#allocation72_spill] sm:$0xff] }
 0x997   : > { %v5565_v42 = vpop.xlane.xlu0 %5564  ;;  %v5521_v26 = vpop.xlane.xlu1 %5520 }
 0x998   : > { %12254 = vst [vmem:[#allocation109_spill] sm:$0xff] %v11284_v6  ;;  %12256 = vst [vmem:[#allocation110_spill] sm:$0xff] %v11287_v48  ;;  %v5737_v36 = vmul.f32 %v11284_v6, %v11284_v6  ;;  %v5639_v54 = vmul.f32 0.0078125, %v5565_v42  ;;  %v5617_v37 = vmul.f32 0.0078125, %v5521_v26  ;;  %v5752_v38 = vmul.f32 %v11287_v48, %v11287_v48  ;;  %v12261_v26 = vld [vmem:[#allocation84_spill] sm:$0xff] }
 0x99a   : > { %v11294_v51 = vsub.f32 %v12257_v55, %v5639_v54  ;;  %5898 = vadd.xlane.f32.xlu1 %v5774_v40  ;;  %5824 = vadd.xlane.f32.xlu0 %v5737_v36  ;;  %v11297_v46 = vsub.f32 %v12259_v24, %v5617_v37  ;;  %v12263_v40 = vld [vmem:[#allocation93_spill] sm:$0xff] }
 0x99b   : > { %v5551_v5 = vpop.xlane.xlu0 %5550  ;;  %v5581_v27 = vpop.xlane.xlu1 %5580 }
 0x99c   : > { %12258 = vst [vmem:[#allocation111_spill] sm:$0xff] %v11294_v51  ;;  %12260 = vst [vmem:[#allocation112_spill] sm:$0xff] %v11297_v46  ;;  %v5767_v19 = vmul.f32 %v11294_v51, %v11294_v51  ;;  %v5632_v47 = vmul.f32 0.0078125, %v5551_v5  ;;  %v5647_v6 = vmul.f32 0.0078125, %v5581_v27  ;;  %v5745_v42 = vmul.f32 %v11297_v46, %v11297_v46  ;;  %v12265_v27 = vld [vmem:[#allocation75_spill] sm:$0xff] }
 0x99e   : > { %v11304_v48 = vsub.f32 %v12261_v26, %v5632_v47  ;;  %5854 = vadd.xlane.f32.xlu1 %v5752_v38  ;;  %5884 = vadd.xlane.f32.xlu0 %v5767_v19  ;;  %v11307_v36 = vsub.f32 %v12263_v40, %v5647_v6  ;;  %v12267_v38 = vld [vmem:[#allocation88_spill] sm:$0xff] }
 0x99f   : > { %v5537_v37 = vpop.xlane.xlu0 %5536  ;;  %v5567_v54 = vpop.xlane.xlu1 %5566 }
 0x9a0   : > { %12262 = vst [vmem:[#allocation113_spill] sm:$0xff] %v11304_v48  ;;  %12264 = vst [vmem:[#allocation114_spill] sm:$0xff] %v11307_v36  ;;  %v5760_v55 = vmul.f32 %v11304_v48, %v11304_v48  ;;  %v5625_v24 = vmul.f32 0.0078125, %v5537_v37  ;;  %v5640_v51 = vmul.f32 0.0078125, %v5567_v54  ;;  %v5775_v5 = vmul.f32 %v11307_v36, %v11307_v36  ;;  %v12269_v54 = vld [vmem:[#allocation86_spill] sm:$0xff] }
 0x9a2   : > { %v11314_v46 = vsub.f32 %v12265_v27, %v5625_v24  ;;  %5840 = vadd.xlane.f32.xlu1 %v5745_v42  ;;  %5870 = vadd.xlane.f32.xlu0 %v5760_v55  ;;  %v11317_v19 = vsub.f32 %v12267_v38, %v5640_v51  ;;  %v12271_v42 = vld [vmem:[#allocation91_spill] sm:$0xff] }
 0x9a3   : > { %v5553_v6 = vpop.xlane.xlu0 %5552  ;;  %v5583_v47 = vpop.xlane.xlu1 %5582 }
 0x9a4   : > { %12266 = vst [vmem:[#allocation115_spill] sm:$0xff] %v11314_v46  ;;  %12268 = vst [vmem:[#allocation116_spill] sm:$0xff] %v11317_v19  ;;  %v5753_v26 = vmul.f32 %v11314_v46, %v11314_v46  ;;  %v5633_v40 = vmul.f32 0.0078125, %v5553_v6  ;;  %v5648_v48 = vmul.f32 0.0078125, %v5583_v47  ;;  %v5768_v37 = vmul.f32 %v11317_v19, %v11317_v19  ;;  %v12273_v47 = vld [vmem:[#allocation90_spill] sm:$0xff] }
 0x9a6   : > { %v11324_v36 = vsub.f32 %v12269_v54, %v5633_v40  ;;  %5900 = vadd.xlane.f32.xlu1 %v5775_v5  ;;  %5856 = vadd.xlane.f32.xlu0 %v5753_v26  ;;  %v11327_v55 = vsub.f32 %v12271_v42, %v5648_v48 }
 0x9a7   : > { %v5569_v51 = vpop.xlane.xlu0 %5568  ;;  %v5585_v24 = vpop.xlane.xlu1 %5584 }
 0x9a8   : > { %12270 = vst [vmem:[#allocation117_spill] sm:$0xff] %v11324_v36  ;;  %12272 = vst [vmem:[#allocation118_spill] sm:$0xff] %v11327_v55  ;;  %v5761_v27 = vmul.f32 %v11324_v36, %v11324_v36  ;;  %v5641_v38 = vmul.f32 0.0078125, %v5569_v51  ;;  %v5649_v46 = vmul.f32 0.0078125, %v5585_v24  ;;  %v5776_v6 = vmul.f32 %v11327_v55, %v11327_v55 }
 0x9aa   : > { %v11334_v19 = vsub.f32 %v12273_v47, %v5641_v38  ;;  %5886 = vadd.xlane.f32.xlu1 %v5768_v37  ;;  %5872 = vadd.xlane.f32.xlu0 %v5761_v27  ;;  %v11337_v5 = vsub.f32 %v10888_v4, %v5649_v46 }
 0x9ac   : > { %12274 = vst [vmem:[#allocation119_spill] sm:$0xff] %v11334_v19  ;;  %12275 = vst [vmem:[#allocation120_spill] sm:$0xff] %v11337_v5  ;;  %v5769_v48 = vmul.f32 %v11334_v19, %v11334_v19  ;;  %v5777_v26 = vmul.f32 %v11337_v5, %v11337_v5 }
 0x9ae   : > { %5902 = vadd.xlane.f32.xlu1 %v5776_v6  ;;  %5888 = vadd.xlane.f32.xlu0 %v5769_v48 }
 0x9b2   : > { %5904 = vadd.xlane.f32.xlu1 %v5777_v26 }
 0x9bf   : > { %v5779_v40 = vpop.xlane.xlu0 %5778 }
 0x9c0   : > { %v5906_v54 = vmul.f32 0.0078125, %v5779_v40  ;;  %v5457_v40 = vld [vmem:[%s11722_s8] sm:$0x3] }
 0x9c2   : > { %v5970_v42 = vadd.f32 1e-05, %v5906_v54 }
 0x9c3   : > { %v5781_v51 = vpop.xlane.xlu1 %5780  ;;  %v5795_v24 = vpop.xlane.xlu0 %5794 }
 0x9c4   : > { %7967 = vrsqrt.f32 %v5970_v42  ;;  %v5907_v37 = vmul.f32 0.0078125, %v5781_v51  ;;  %v5914_v27 = vmul.f32 0.0078125, %v5795_v24 }
 0x9c6   : > { %v5971_v38 = vadd.f32 1e-05, %v5907_v37  ;;  %v5978_v4 = vadd.f32 1e-05, %v5914_v27  ;;  %v12276_v27 = vld [vmem:[#allocation100_spill] sm:$0xff] }
 0x9c7   : > { %v5797_v46 = vpop.xlane.xlu1 %5796  ;;  %v5811_v47 = vpop.xlane.xlu0 %5810 }
 0x9c8   : > { %7969 = vrsqrt.f32 %v5971_v38  ;;  %v5915_v19 = vmul.f32 0.0078125, %v5797_v46  ;;  %v5922_v55 = vmul.f32 0.0078125, %v5811_v47  ;;  %v12277_v46 = vld [vmem:[#allocation41_spill] sm:$0xff] }
 0x9c9   : > { %7971 = vrsqrt.f32 %v5978_v4  ;;  %v11348_v47 = vrot.slane %v5457_v40, %v12277_v46 }
 0x9ca   : > { %v5979_v5 = vadd.f32 1e-05, %v5915_v19  ;;  %v5986_v6 = vadd.f32 1e-05, %v5922_v55 }
 0x9cb   : > { %v5813_v48 = vpop.xlane.xlu1 %5812  ;;  %v5783_v26 = vpop.xlane.xlu0 %5782 }
 0x9cc   : > { %7973 = vrsqrt.f32 %v5979_v5  ;;  %v5923_v54 = vmul.f32 0.0078125, %v5813_v48  ;;  %v5908_v42 = vmul.f32 0.0078125, %v5783_v26  ;;  %v7959_v5 = vld [vmem:[%s11723_s9] sm:$0xff]  }
 0x9cd   : > { %7975 = vrsqrt.f32 %v5986_v6 }
 0x9ce   : > { %v7968_v51 = vpop.eup %7967  ;;  %v5987_v24 = vadd.f32 1e-05, %v5923_v54  ;;  %v5972_v37 = vadd.f32 1e-05, %v5908_v42  ;;  %v8192_v54 = vmov 0.0  }
 0x9cf   : > { %v6098_v38 = vmul.f32 %v7968_v51, %v12276_v27  ;;  %v5799_v19 = vpop.xlane.xlu1 %5798  ;;  %v5827_v55 = vpop.xlane.xlu0 %5826  ;;  %7220 = vmatprep.subr.bf16.mxu0 %v8192_v54  ;;  %v12278_v27 = vld [vmem:[#allocation42_spill] sm:$0xff]  ;;  %7236 = vmatprep.mubr.msk.bf16.mxu0 %vm8193_vm2, %v8192_v54 }
 0x9d0   : > { %7977 = vrsqrt.f32 %v5987_v24  ;;  %v5916_v4 = vmul.f32 0.0078125, %v5799_v19  ;;  %v5930_v36 = vmul.f32 0.0078125, %v5827_v55  ;;  %v11356_v46 = vrot.slane %v5457_v40, %v12278_v27  ;;  %7221 = vmatpush3.bf16.msra.mxu0 %v7959_v5  ;;  %v7960_v40 = vld [vmem:[%s11723_s9 + $0x8] sm:$0xff]  }
 0x9d1   : > { %7979 = vrsqrt.f32 %v5972_v37  ;;  %v6166_v51 = vmul.f32 %v11348_v47, %v6098_v38  ;;  %7222 = vmatprep.subr.bf16.mxu0 %v8192_v54 }
 0x9d2   : > { %v7970_v48 = vpop.eup %7969  ;;  %v5980_v6 = vadd.f32 1e-05, %v5916_v4  ;;  %v5994_v26 = vadd.f32 1e-05, %v5930_v36 }
 0x9d3   : > { %v7972_v42 = vpop.eup %7971  ;;  %v6099_v24 = vmul.f32 %v7970_v48, %v11032_v3  ;;  %v5829_v19 = vpop.xlane.xlu1 %5828 }
 0x9d4   : > { %v5815_v37 = vpop.xlane.xlu0 %5814  ;;  %v6106_v55 = vmul.f32 %v7972_v42, %v11027_v31  ;;  %7981 = vrsqrt.f32 %v5980_v6  ;;  %v5931_v50 = vmul.f32 0.0078125, %v5829_v19  ;;  %v6234_v31 = vadd.f32 %v11356_v46, %v6166_v51  ;;  %7223 = vmatpush3.bf16.msra.mxu0 %v7960_v40 }
 0x9d5   : > { %v5924_v4 = vmul.f32 0.0078125, %v5815_v37  ;;  %v6167_v36 = vmul.f32 %v11348_v47, %v6099_v24  ;;  %7983 = vrsqrt.f32 %v5994_v26  ;;  %v7961_v26 = vld [vmem:[%s11723_s9 + $0x10] sm:$0xff]   ;;  %7224 = vmatprep.subr.bf16.mxu0 %v8192_v54 }
 0x9d6   : > { %v7974_v38 = vpop.eup %7973  ;;  %v6174_v3 = vmul.f32 %v11348_v47, %v6106_v55  ;;  %v5995_v48 = vadd.f32 1e-05, %v5931_v50 }
 0x9d7   : > { %v5988_v27 = vadd.f32 1e-05, %v5924_v4  ;;  %v7976_v5 = vpop.eup %7975  ;;  %v6235_v6 = vadd.f32 %v11356_v46, %v6167_v36  ;;  %v6107_v42 = vmul.f32 %v7974_v38, %v11035_v59  ;;  %v5843_v19 = vpop.xlane.xlu1 %5842 }
 0x9d8   : > { %v5845_v37 = vpop.xlane.xlu0 %5844  ;;  %v6114_v24 = vmul.f32 %v7976_v5, %v11042_v32  ;;  %7985 = vrsqrt.f32 %v5995_v48  ;;  %v5938_v55 = vmul.f32 0.0078125, %v5843_v19  ;;  %v6242_v36 = vadd.f32 %v11356_v46, %v6174_v3  ;;  %7225 = vmatpush3.bf16.msra.mxu0 %v7961_v26 }
 0x9d9   : > { %v6298_v50 = vadd.f32 %v6235_v6, %v6234_v31  ;;  %v6175_v51 = vmul.f32 %v11348_v47, %v6107_v42  ;;  %7987 = vrsqrt.f32 %v5988_v27  ;;  %v5939_v59 = vmul.f32 0.0078125, %v5845_v37  ;;  %v7962_v27 = vld [vmem:[%s11723_s9 + $0x18] sm:$0xff]   ;;  %7226 = vmatprep.subr.bf16.mxu0 %v8192_v54 }
 0x9da   : > { %v7978_v4 = vpop.eup %7977  ;;  %v6002_v40 = vadd.f32 1e-05, %v5938_v55  ;;  %v6182_v32 = vmul.f32 %v11348_v47, %v6114_v24 }
 0x9db   : > { %v7980_v38 = vpop.eup %7979  ;;  %v6243_v25 = vadd.f32 %v11356_v46, %v6175_v51  ;;  %v6115_v48 = vmul.f32 %v7978_v4, %v11045_v23  ;;  %v6003_v5 = vadd.f32 1e-05, %v5939_v59  ;;  %v5785_v19 = vpop.xlane.xlu1 %5784 }
 0x9dc   : > { %v5801_v41 = vpop.xlane.xlu0 %5800  ;;  %v6100_v31 = vmul.f32 %v7980_v38, %v11052_v14  ;;  %7989 = vrsqrt.f32 %v6002_v40  ;;  %v5909_v3 = vmul.f32 0.0078125, %v5785_v19  ;;  %v6250_v51 = vadd.f32 %v11356_v46, %v6182_v32  ;;  %7227 = vmatpush3.bf16.msra.mxu0 %v7962_v27 }
 0x9dd   : > { %v6311_v6 = vadd.f32 %v6243_v25, %v6242_v36  ;;  %v6183_v42 = vmul.f32 %v11348_v47, %v6115_v48  ;;  %7991 = vrsqrt.f32 %v6003_v5  ;;  %v5917_v37 = vmul.f32 0.0078125, %v5801_v41  ;;  %v7963_v25 = vld [vmem:[%s11723_s9 + $0x20] sm:$0xff]   ;;  %7228 = vmatprep.subr.bf16.mxu0 %v8192_v54 }
 0x9de   : > { %v7982_v23 = vpop.eup %7981  ;;  %v6168_v24 = vmul.f32 %v11348_v47, %v6100_v31  ;;  %v5973_v55 = vadd.f32 1e-05, %v5909_v3 }
 0x9df   : > { %v7984_v26 = vpop.eup %7983  ;;  %v6251_v59 = vadd.f32 %v11356_v46, %v6183_v42  ;;  %v6108_v14 = vmul.f32 %v7982_v23, %v11055_v58  ;;  %v5981_v4 = vadd.f32 1e-05, %v5917_v37  ;;  %v5831_v40 = vpop.xlane.xlu1 %5830 }
 0x9e0   : > { %v5859_v38 = vpop.xlane.xlu0 %5858  ;;  %v6236_v41 = vadd.f32 %v11356_v46, %v6168_v24  ;;  %v6122_v36 = vmul.f32 %v7984_v26, %v11062_v57  ;;  %7993 = vrsqrt.f32 %v5973_v55  ;;  %v5932_v48 = vmul.f32 0.0078125, %v5831_v40  ;;  %7229 = vmatpush3.bf16.msra.mxu0 %v7963_v25  ;;  %v7964_v26 = vld [vmem:[%s11723_s9 + $0x28] sm:$0xff]  }
 0x9e1   : > { %v6324_v32 = vadd.f32 %v6251_v59, %v6250_v51  ;;  %v6176_v5 = vmul.f32 %v11348_v47, %v6108_v14  ;;  %7995 = vrsqrt.f32 %v5981_v4  ;;  %v5946_v58 = vmul.f32 0.0078125, %v5859_v38  ;;  %7230 = vmatprep.subr.bf16.mxu0 %v8192_v54 }
 0x9e2   : > { %v7986_v19 = vpop.eup %7985  ;;  %v11397_v31 = vadd.f32 %v6298_v50, %v6236_v41  ;;  %v5996_v27 = vadd.f32 1e-05, %v5932_v48  ;;  %v6190_v37 = vmul.f32 %v11348_v47, %v6122_v36 }
 0x9e3   : > { %v7988_v3 = vpop.eup %7987  ;;  %v6244_v42 = vadd.f32 %v11356_v46, %v6176_v5  ;;  %v6123_v57 = vmul.f32 %v7986_v19, %v11065_v22  ;;  %v6010_v23 = vadd.f32 1e-05, %v5946_v58  ;;  %v5861_v24 = vpop.xlane.xlu1 %5860 }
 0x9e4   : > { %v5817_v55 = vpop.xlane.xlu0 %5816  ;;  %v6116_v51 = vmul.f32 %v7988_v3, %v11072_v2  ;;  %7997 = vrsqrt.f32 %v5996_v27  ;;  %v5947_v50 = vmul.f32 0.0078125, %v5861_v24  ;;  %v6258_v41 = vadd.f32 %v11356_v46, %v6190_v37  ;;  %7231 = vmatpush3.bf16.msra.mxu0 %v7964_v26 }
 0x9e5   : > { %v11407_v59 = vadd.f32 %v6311_v6, %v6244_v42  ;;  %v6191_v14 = vmul.f32 %v11348_v47, %v6123_v57  ;;  %7999 = vrsqrt.f32 %v6010_v23  ;;  %v5925_v22 = vmul.f32 0.0078125, %v5817_v55  ;;  %v7965_v6 = vld [vmem:[%s11723_s9 + $0x30] sm:$0xff]   ;;  %7232 = vmatprep.subr.bf16.mxu0 %v8192_v54 }
 0x9e6   : > { %v7990_v4 = vpop.eup %7989  ;;  %v6184_v40 = vmul.f32 %v11348_v47, %v6116_v51  ;;  %v6011_v38 = vadd.f32 1e-05, %v5947_v50 }
 0x9e7   : > { %v7992_v25 = vpop.eup %7991  ;;  %v6259_v36 = vadd.f32 %v11356_v46, %v6191_v14  ;;  %v6130_v2 = vmul.f32 %v7990_v4, %v11075_v12  ;;  %v5989_v48 = vadd.f32 1e-05, %v5925_v22  ;;  %v5847_v5 = vpop.xlane.xlu1 %5846  ;;  %v7966_v4 = vld [vmem:[%s11723_s9 + $0x38] sm:$0xff]  }
 0x9e8   : > { %v5875_v58 = vpop.xlane.xlu0 %5874  ;;  %v6252_v19 = vadd.f32 %v11356_v46, %v6184_v40  ;;  %v6131_v27 = vmul.f32 %v7992_v25, %v11082_v34  ;;  %8001 = vrsqrt.f32 %v6011_v38  ;;  %v5940_v3 = vmul.f32 0.0078125, %v5847_v5  ;;  %7233 = vmatpush3.bf16.msra.mxu0 %v7965_v6 }
 0x9e9   : > { %v6337_v42 = vadd.f32 %v6259_v36, %v6258_v41  ;;  %v6198_v37 = vmul.f32 %v11348_v47, %v6130_v2  ;;  %8003 = vrsqrt.f32 %v5989_v48  ;;  %v5954_v12 = vmul.f32 0.0078125, %v5875_v58  ;;  %7234 = vmatprep.subr.bf16.mxu0 %v8192_v54 }
 0x9ea   : > { %v7994_v57 = vpop.eup %7993  ;;  %v11421_v23 = vadd.f32 %v6324_v32, %v6252_v19  ;;  %v6199_v24 = vmul.f32 %v11348_v47, %v6131_v27  ;;  %v6004_v55 = vadd.f32 1e-05, %v5940_v3 }
 0x9eb   : > { %v7996_v26 = vpop.eup %7995  ;;  %v6266_v51 = vadd.f32 %v11356_v46, %v6198_v37  ;;  %v6101_v34 = vmul.f32 %v7994_v57, %v11085_v44  ;;  %v6018_v50 = vadd.f32 1e-05, %v5954_v12  ;;  %v5877_v14 = vpop.xlane.xlu1 %5876 }
 0x9ec   : > { %v5787_v22 = vpop.xlane.xlu0 %5786  ;;  %v6267_v40 = vadd.f32 %v11356_v46, %v6199_v24  ;;  %v6109_v32 = vmul.f32 %v7996_v26, %v11092_v39  ;;  %8005 = vrsqrt.f32 %v6004_v55  ;;  %v5955_v38 = vmul.f32 0.0078125, %v5877_v14  ;;  %7235 = vmatpush3.bf16.msra.mxu0 %v7966_v4 }
 0x9ed   : > { %v6169_v25 = vmul.f32 %v11348_v47, %v6101_v34  ;;  %8007 = vrsqrt.f32 %v6018_v50  ;;  %v5910_v44 = vmul.f32 0.0078125, %v5787_v22 }
 0x9ee   : > { %v7998_v41 = vpop.eup %7997  ;;  %v11433_v36 = vadd.f32 %v6267_v40, %v6266_v51  ;;  %v6177_v2 = vmul.f32 %v11348_v47, %v6109_v32  ;;  %v6019_v48 = vadd.f32 1e-05, %v5955_v38 }
 0x9ef   : > { %v8000_v5 = vpop.eup %7999  ;;  %v6237_v58 = vadd.f32 %v11356_v46, %v6169_v25  ;;  %v6124_v6 = vmul.f32 %v7998_v41, %v11095_v56  ;;  %v5974_v39 = vadd.f32 1e-05, %v5910_v44  ;;  %v5803_v19 = vpop.xlane.xlu1 %5802 }
 0x9f0   : > { %v5833_v27 = vpop.xlane.xlu0 %5832  ;;  %v6245_v54 = vadd.f32 %v11356_v46, %v6177_v2  ;;  %v6138_v3 = vmul.f32 %v8000_v5, %v11102_v21  ;;  %8009 = vrsqrt.f32 %v6019_v48  ;;  %v5918_v37 = vmul.f32 0.0078125, %v5803_v19 }
 0x9f1   : > { %v11441_v12 = vadd.f32 %v11397_v31, %v6237_v58  ;;  %v6192_v57 = vmul.f32 %v11348_v47, %v6124_v6  ;;  %8011 = vrsqrt.f32 %v5974_v39  ;;  %v5933_v24 = vmul.f32 0.0078125, %v5833_v27 }
 0x9f2   : > { %v8002_v55 = vpop.eup %8001  ;;  %v11445_v56 = vadd.f32 %v11407_v59, %v6245_v54  ;;  %v5982_v26 = vadd.f32 1e-05, %v5918_v37  ;;  %v6206_v50 = vmul.f32 %v11348_v47, %v6138_v3 }
 0x9f3   : > { %v8004_v51 = vpop.eup %8003  ;;  %v6260_v34 = vadd.f32 %v11356_v46, %v6192_v57  ;;  %v6139_v21 = vmul.f32 %v8002_v55, %v11105_v52  ;;  %v5997_v14 = vadd.f32 1e-05, %v5933_v24  ;;  %v5863_v22 = vpop.xlane.xlu1 %5862 }
 0x9f4   : > { %v5891_v31 = vpop.xlane.xlu0 %5890  ;;  %v6117_v4 = vmul.f32 %v8004_v51, %v11112_v11  ;;  %8013 = vrsqrt.f32 %v5982_v26  ;;  %v5948_v40 = vmul.f32 0.0078125, %v5863_v22  ;;  %v6274_v52 = vadd.f32 %v11356_v46, %v6206_v50 }
 0x9f5   : > { %v11451_v32 = vadd.f32 %v6337_v42, %v6260_v34  ;;  %v6207_v59 = vmul.f32 %v11348_v47, %v6139_v21  ;;  %8015 = vrsqrt.f32 %v5997_v14  ;;  %v5962_v41 = vmul.f32 0.0078125, %v5891_v31 }
 0x9f6   : > { %v8006_v38 = vpop.eup %8005  ;;  %v6185_v25 = vmul.f32 %v11348_v47, %v6117_v4  ;;  %v6012_v44 = vadd.f32 1e-05, %v5948_v40 }
 0x9f7   : > { %v8008_v2 = vpop.eup %8007  ;;  %v6275_v48 = vadd.f32 %v11356_v46, %v6207_v59  ;;  %v6132_v5 = vmul.f32 %v8006_v38, %v11115_v53  ;;  %v5893_v11 = vpop.xlane.xlu1 %5892  ;;  %v6026_v57 = vadd.f32 1e-05, %v5962_v41 }
 0x9f8   : > { %v5819_v58 = vpop.xlane.xlu0 %5818  ;;  %v6253_v42 = vadd.f32 %v11356_v46, %v6185_v25  ;;  %v6146_v6 = vmul.f32 %v8008_v2, %v11122_v20  ;;  %8017 = vrsqrt.f32 %v6012_v44  ;;  %v5963_v39 = vmul.f32 0.0078125, %v5893_v11 }
 0x9f9   : > { %v6363_v19 = vadd.f32 %v6275_v48, %v6274_v52  ;;  %v6200_v27 = vmul.f32 %v11348_v47, %v6132_v5  ;;  %v5926_v54 = vmul.f32 0.0078125, %v5819_v58  ;;  %8019 = vrsqrt.f32 %v6026_v57 }
 0x9fa   : > { %v8010_v3 = vpop.eup %8009  ;;  %v11462_v37 = vadd.f32 %v11421_v23, %v6253_v42  ;;  %v6214_v55 = vmul.f32 %v11348_v47, %v6146_v6  ;;  %v6027_v50 = vadd.f32 1e-05, %v5963_v39 }
 0x9fb   : > { %v8012_v24 = vpop.eup %8011  ;;  %v6268_v53 = vadd.f32 %v11356_v46, %v6200_v27  ;;  %v6147_v26 = vmul.f32 %v8010_v3, %v11125_v13  ;;  %v5849_v51 = vpop.xlane.xlu1 %5848  ;;  %v5990_v22 = vadd.f32 1e-05, %v5926_v54 }
 0x9fc   : > { %v5879_v20 = vpop.xlane.xlu0 %5878  ;;  %v6102_v34 = vmul.f32 %v8012_v24, %v11132_v63  ;;  %v5941_v21 = vmul.f32 0.0078125, %v5849_v51  ;;  %v6282_v13 = vadd.f32 %v11356_v46, %v6214_v55  ;;  %8021 = vrsqrt.f32 %v6027_v50 }
 0x9fd   : > { %v11469_v14 = vadd.f32 %v11433_v36, %v6268_v53  ;;  %v6215_v23 = vmul.f32 %v11348_v47, %v6147_v26  ;;  %v5956_v40 = vmul.f32 0.0078125, %v5879_v20  ;;  %8023 = vrsqrt.f32 %v5990_v22 }
 0x9fe   : > { %v8014_v31 = vpop.eup %8013  ;;  %v6170_v4 = vmul.f32 %v11348_v47, %v6102_v34  ;;  %v6005_v25 = vadd.f32 1e-05, %v5941_v21 }
 0x9ff   : > { %v8016_v59 = vpop.eup %8015  ;;  %v6283_v38 = vadd.f32 %v11356_v46, %v6215_v23  ;;  %v6110_v63 = vmul.f32 %v8014_v31, %v11135_v7  ;;  %v5789_v44 = vpop.xlane.xlu1 %5788  ;;  %v6020_v42 = vadd.f32 1e-05, %v5956_v40 }
 0xa00   : > { %v5805_v41 = vpop.xlane.xlu0 %5804  ;;  %v6238_v36 = vadd.f32 %v11356_v46, %v6170_v4  ;;  %v6125_v2 = vmul.f32 %v8016_v59, %v11142_v0  ;;  %v5911_v52 = vmul.f32 0.0078125, %v5789_v44  ;;  %8025 = vrsqrt.f32 %v6005_v25 }
 0xa01   : > { %v11478_v48 = vadd.f32 %v6283_v38, %v6282_v13  ;;  %v6178_v5 = vmul.f32 %v11348_v47, %v6110_v63  ;;  %v5919_v6 = vmul.f32 0.0078125, %v5805_v41  ;;  %8027 = vrsqrt.f32 %v6020_v42 }
 0xa02   : > { %v8018_v11 = vpop.eup %8017  ;;  %v11482_v58 = vadd.f32 %v11441_v12, %v6238_v36  ;;  %v6193_v7 = vmul.f32 %v11348_v47, %v6125_v2  ;;  %v5975_v57 = vadd.f32 1e-05, %v5911_v52 }
 0xa03   : > { %v6246_v39 = vadd.f32 %v11356_v46, %v6178_v5  ;;  %v6140_v27 = vmul.f32 %v8018_v11, %v11145_v8  ;;  %v5835_v0 = vpop.xlane.xlu1 %5834  ;;  %v5983_v55 = vadd.f32 1e-05, %v5919_v6  ;;  %v8020_v50 = vpop.eup %8019 }
 0xa04   : > { %v5865_v54 = vpop.xlane.xlu0 %5864  ;;  %v6261_v3 = vadd.f32 %v11356_v46, %v6193_v7  ;;  %v5934_v26 = vmul.f32 0.0078125, %v5835_v0  ;;  %8029 = vrsqrt.f32 %v5975_v57  ;;  %v6154_v7 = vmul.f32 %v8020_v50, %v11152_v62 }
 0xa05   : > { %v11489_v24 = vadd.f32 %v11445_v56, %v6246_v39  ;;  %v6208_v12 = vmul.f32 %v11348_v47, %v6140_v27  ;;  %v5949_v8 = vmul.f32 0.0078125, %v5865_v54  ;;  %8031 = vrsqrt.f32 %v5983_v55 }
 0xa06   : > { %v11493_v53 = vadd.f32 %v11451_v32, %v6261_v3  ;;  %v8022_v22 = vpop.eup %8021  ;;  %v5998_v31 = vadd.f32 1e-05, %v5934_v26 }
 0xa07   : > { %v6276_v51 = vadd.f32 %v11356_v46, %v6208_v12  ;;  %v5895_v20 = vpop.xlane.xlu1 %5894  ;;  %v8024_v4 = vpop.eup %8023  ;;  %v6013_v32 = vadd.f32 1e-05, %v5949_v8  ;;  %v6155_v41 = vmul.f32 %v8022_v22, %v11155_v10 }
 0xa08   : > { %v5821_v34 = vpop.xlane.xlu0 %5820  ;;  %v5964_v21 = vmul.f32 0.0078125, %v5895_v20  ;;  %8033 = vrsqrt.f32 %v5998_v31 }
 0xa09   : > { %v11496_v23 = vadd.f32 %v6363_v19, %v6276_v51  ;;  %v5927_v56 = vmul.f32 0.0078125, %v5821_v34  ;;  %v6118_v19 = vmul.f32 %v8024_v4, %v11162_v30  ;;  %8035 = vrsqrt.f32 %v6013_v32 }
 0xa0a   : > { %v6028_v13 = vadd.f32 1e-05, %v5964_v21  ;;  %v8026_v63 = vpop.eup %8025  ;;  %v6223_v10 = vmul.f32 %v11348_v47, %v6155_v41 }
 0xa0b   : > { %v5851_v40 = vpop.xlane.xlu1 %5850  ;;  %v5991_v25 = vadd.f32 1e-05, %v5927_v56  ;;  %v8028_v11 = vpop.eup %8027  ;;  %v6133_v42 = vmul.f32 %v8026_v63, %v11165_v61  ;;  %v6186_v30 = vmul.f32 %v11348_v47, %v6118_v19  ;;  %v6222_v61 = vmul.f32 %v11348_v47, %v6154_v7 }
 0xa0c   : > { %v5881_v59 = vpop.xlane.xlu0 %5880  ;;  %v5942_v38 = vmul.f32 0.0078125, %v5851_v40  ;;  %8037 = vrsqrt.f32 %v6028_v13  ;;  %v6148_v54 = vmul.f32 %v8028_v11, %v11172_v18  ;;  %v6291_v20 = vadd.f32 %v11356_v46, %v6223_v10 }
 0xa0d   : > { %v5957_v44 = vmul.f32 0.0078125, %v5881_v59  ;;  %8039 = vrsqrt.f32 %v5991_v25  ;;  %v6201_v55 = vmul.f32 %v11348_v47, %v6133_v42  ;;  %v6254_v18 = vadd.f32 %v11356_v46, %v6186_v30 }
 0xa0e   : > { %v6006_v36 = vadd.f32 1e-05, %v5942_v38  ;;  %v8030_v27 = vpop.eup %8029  ;;  %v6216_v50 = vmul.f32 %v11348_v47, %v6148_v54  ;;  %v6290_v4 = vadd.f32 %v11356_v46, %v6222_v61 }
 0xa0f   : > { %v6021_v2 = vadd.f32 1e-05, %v5957_v44  ;;  %v5791_v52 = vpop.xlane.xlu1 %5790  ;;  %v8032_v62 = vpop.eup %8031  ;;  %v6103_v51 = vmul.f32 %v8030_v27, %v11175_v49  ;;  %v6269_v32 = vadd.f32 %v11356_v46, %v6201_v55 }
 0xa10   : > { %v5807_v5 = vpop.xlane.xlu0 %5806  ;;  %v5912_v6 = vmul.f32 0.0078125, %v5791_v52  ;;  %8041 = vrsqrt.f32 %v6006_v36  ;;  %v6111_v21 = vmul.f32 %v8032_v62, %v11182_v43  ;;  %v11515_v25 = vadd.f32 %v6291_v20, %v6290_v4 }
 0xa11   : > { %v5920_v39 = vmul.f32 0.0078125, %v5807_v5  ;;  %8043 = vrsqrt.f32 %v6021_v2  ;;  %v6171_v13 = vmul.f32 %v11348_v47, %v6103_v51  ;;  %v11518_v43 = vadd.f32 %v11462_v37, %v6254_v18 }
 0xa12   : > { %v5976_v0 = vadd.f32 1e-05, %v5912_v6  ;;  %v8034_v31 = vpop.eup %8033  ;;  %v6284_v41 = vadd.f32 %v11356_v46, %v6216_v50  ;;  %v6179_v36 = vmul.f32 %v11348_v47, %v6111_v21  ;;  %v11523_v11 = vadd.f32 %v11469_v14, %v6269_v32 }
 0xa13   : > { %v5984_v3 = vadd.f32 1e-05, %v5920_v39  ;;  %v5837_v57 = vpop.xlane.xlu1 %5836  ;;  %v8036_v59 = vpop.eup %8035  ;;  %v6239_v39 = vadd.f32 %v11356_v46, %v6171_v13  ;;  %v6126_v37 = vmul.f32 %v8034_v31, %v11185_v45 }
 0xa14   : > { %v5867_v12 = vpop.xlane.xlu0 %5866  ;;  %8045 = vrsqrt.f32 %v5976_v0  ;;  %v5935_v26 = vmul.f32 0.0078125, %v5837_v57  ;;  %v12279_v0 = vld [vmem:[#allocation101_spill] sm:$0xff]  ;;  %v11531_v14 = vadd.f32 %v11478_v48, %v6284_v41 }
 0xa15   : > { %v5950_v8 = vmul.f32 0.0078125, %v5867_v12  ;;  %8047 = vrsqrt.f32 %v5984_v3  ;;  %v6141_v30 = vmul.f32 %v8036_v59, %v12279_v0  ;;  %v6247_v12 = vadd.f32 %v11356_v46, %v6179_v36 }
 0xa16   : > { %v5999_v34 = vadd.f32 1e-05, %v5935_v26  ;;  %v8038_v63 = vpop.eup %8037  ;;  %v6194_v20 = vmul.f32 %v11348_v47, %v6126_v37 }
 0xa17   : > { %v5897_v56 = vpop.xlane.xlu1 %5896  ;;  %v6014_v40 = vadd.f32 1e-05, %v5950_v8  ;;  %v8040_v44 = vpop.eup %8039  ;;  %v6156_v54 = vmul.f32 %v8038_v63, %v11195_v17 }
 0xa18   : > { %v5823_v22 = vpop.xlane.xlu0 %5822  ;;  %v5965_v49 = vmul.f32 0.0078125, %v5897_v56  ;;  %8049 = vrsqrt.f32 %v5999_v34  ;;  %v6119_v3 = vmul.f32 %v8040_v44, %v11204_v16  ;;  %v6302_v16 = vadd.f32 %v11482_v58, %v6239_v39 }
 0xa19   : > { %v5928_v38 = vmul.f32 0.0078125, %v5823_v22  ;;  %8051 = vrsqrt.f32 %v6014_v40  ;;  %v6209_v34 = vmul.f32 %v11348_v47, %v6141_v30  ;;  %v6315_v40 = vadd.f32 %v11489_v24, %v6247_v12 }
 0xa1a   : > { %v8042_v5 = vpop.eup %8041  ;;  %v6029_v7 = vadd.f32 1e-05, %v5965_v49  ;;  %v6187_v18 = vmul.f32 %v11348_v47, %v6119_v3  ;;  %v6262_v49 = vadd.f32 %v11356_v46, %v6194_v20  ;;  %v12280_v20 = vld [vmem:[#allocation102_spill] sm:$0xff] }
 0xa1b   : > { %v5992_v19 = vadd.f32 1e-05, %v5928_v38  ;;  %v5853_v2 = vpop.xlane.xlu1 %5852  ;;  %v8044_v6 = vpop.eup %8043  ;;  %v6134_v62 = vmul.f32 %v8042_v5, %v11207_v1  ;;  %v6224_v1 = vmul.f32 %v11348_v47, %v6156_v54 }
 0xa1c   : > { %v5883_v52 = vpop.xlane.xlu0 %5882  ;;  %v5943_v42 = vmul.f32 0.0078125, %v5853_v2  ;;  %v6149_v51 = vmul.f32 %v8044_v6, %v11214_v29  ;;  %v6255_v63 = vadd.f32 %v11356_v46, %v6187_v18  ;;  %v11557_v39 = vadd.f32 %v11493_v53, %v6262_v49 }
 0xa1d   : > { %8053 = vrsqrt.f32 %v5992_v19  ;;  %v5958_v27 = vmul.f32 0.0078125, %v5883_v52  ;;  %v6202_v21 = vmul.f32 %v11348_v47, %v6134_v62  ;;  %v6292_v38 = vadd.f32 %v11356_v46, %v6224_v1 }
 0xa1e   : > { %v8046_v10 = vpop.eup %8045  ;;  %v6007_v57 = vadd.f32 1e-05, %v5943_v42  ;;  %8055 = vrsqrt.f32 %v6029_v7  ;;  %v6217_v31 = vmul.f32 %v11348_v47, %v6149_v51 }
 0xa1f   : > { %v6022_v61 = vadd.f32 1e-05, %v5958_v27  ;;  %v5793_v55 = vpop.xlane.xlu1 %5792  ;;  %v8048_v26 = vpop.eup %8047  ;;  %v6104_v8 = vmul.f32 %v8046_v10, %v11217_v28  ;;  %v6270_v36 = vadd.f32 %v11356_v46, %v6202_v21 }
 0xa20   : > { %v5809_v45 = vpop.xlane.xlu0 %5808  ;;  %v5913_v17 = vmul.f32 0.0078125, %v5793_v55  ;;  %8057 = vrsqrt.f32 %v6007_v57  ;;  %v6112_v29 = vmul.f32 %v8048_v26, %v11224_v35  ;;  %v6277_v35 = vadd.f32 %v11356_v46, %v6209_v34 }
 0xa21   : > { %v5921_v48 = vmul.f32 0.0078125, %v5809_v45  ;;  %8059 = vrsqrt.f32 %v6022_v61  ;;  %v6172_v4 = vmul.f32 %v11348_v47, %v6104_v8  ;;  %v6285_v7 = vadd.f32 %v11356_v46, %v6217_v31 }
 0xa22   : > { %v5977_v50 = vadd.f32 1e-05, %v5913_v17  ;;  %v8050_v58 = vpop.eup %8049  ;;  %v6180_v19 = vmul.f32 %v11348_v47, %v6112_v29  ;;  %v6365_v0 = vadd.f32 %v11496_v23, %v6277_v35  ;;  %v11566_v57 = vadd.f32 %v11518_v43, %v6255_v63 }
 0xa23   : > { %v5985_v28 = vadd.f32 1e-05, %v5921_v48  ;;  %v5839_v56 = vpop.xlane.xlu1 %5838  ;;  %v8052_v13 = vpop.eup %8051  ;;  %v6127_v2 = vmul.f32 %v8050_v58, %v11227_v9  ;;  %v6240_v42 = vadd.f32 %v11356_v46, %v6172_v4  ;;  %v11562_v9 = vadd.f32 %v11515_v25, %v6292_v38 }
 0xa24   : > { %v5869_v22 = vpop.xlane.xlu0 %5868  ;;  %8061 = vrsqrt.f32 %v5977_v50  ;;  %v5936_v32 = vmul.f32 0.0078125, %v5839_v56  ;;  %v6142_v37 = vmul.f32 %v8052_v13, %v11234_v15  ;;  %v6248_v53 = vadd.f32 %v11356_v46, %v6180_v19  ;;  %v12283_v56 = vld [vmem:[#allocation105_spill] sm:$0xff] }
 0xa25   : > { %8063 = vrsqrt.f32 %v5985_v28  ;;  %v5951_v59 = vmul.f32 0.0078125, %v5869_v22  ;;  %v6195_v12 = vmul.f32 %v11348_v47, %v6127_v2  ;;  %v11571_v55 = vadd.f32 %v11523_v11, %v6270_v36  ;;  %v12282_v28 = vld [vmem:[#allocation103_spill] sm:$0xff] }
 0xa26   : > { %v6000_v44 = vadd.f32 1e-05, %v5936_v32  ;;  %v11574_v23 = vadd.f32 %v11531_v14, %v6285_v7  ;;  %v6303_v25 = vadd.f32 %v6302_v16, %v6240_v42  ;;  %v6210_v26 = vmul.f32 %v11348_v47, %v6142_v37  ;;  %v12281_v16 = vld [vmem:[#allocation104_spill] sm:$0xff] }
 0xa27   : > { %v8054_v41 = vpop.eup %8053  ;;  %v6015_v24 = vadd.f32 1e-05, %v5951_v59  ;;  %v5899_v52 = vpop.xlane.xlu1 %5898  ;;  %v6316_v1 = vadd.f32 %v6315_v40, %v6248_v53  ;;  %v6263_v14 = vadd.f32 %v11356_v46, %v6195_v12 }
 0xa28   : > { %v5825_v5 = vpop.xlane.xlu0 %5824  ;;  %8065 = vrsqrt.f32 %v6000_v44  ;;  %v5966_v6 = vmul.f32 0.0078125, %v5899_v52  ;;  %v8056_v10 = vpop.eup %8055  ;;  %v6120_v30 = vmul.f32 %v8054_v41, %v11244_v33  ;;  %v6278_v31 = vadd.f32 %v11356_v46, %v6210_v26  ;;  %v12284_v41 = vld [vmem:[#allocation106_spill] sm:$0xff] }
 0xa29   : > { %8067 = vrsqrt.f32 %v6015_v24  ;;  %v5929_v27 = vmul.f32 0.0078125, %v5825_v5  ;;  %v6157_v43 = vmul.f32 %v8056_v10, %v11237_v60  ;;  %v6341_v10 = vadd.f32 %v11557_v39, %v6263_v14 }
 0xa2a   : > { %v6030_v54 = vadd.f32 1e-05, %v5966_v6  ;;  %v8058_v3 = vpop.eup %8057  ;;  %v6188_v17 = vmul.f32 %v11348_v47, %v6120_v30  ;;  %v12285_v6 = vld [vmem:[#allocation107_spill] sm:$0xff]  ;;  %v6366_v30 = vadd.f32 %v6365_v0, %v6278_v31 }
 0xa2b   : > { %v5993_v15 = vadd.f32 1e-05, %v5929_v27  ;;  %v5855_v62 = vpop.xlane.xlu1 %5854  ;;  %v8060_v45 = vpop.eup %8059  ;;  %v6135_v48 = vmul.f32 %v8058_v3, %v12280_v20  ;;  %v6225_v4 = vmul.f32 %v11348_v47, %v6157_v43 }
 0xa2c   : > { %v5885_v61 = vpop.xlane.xlu0 %5884  ;;  %v5944_v33 = vmul.f32 0.0078125, %v5855_v62  ;;  %v6150_v60 = vmul.f32 %v8060_v45, %v12282_v28  ;;  %v6256_v59 = vadd.f32 %v11356_v46, %v6188_v17 }
 0xa2d   : > { %8069 = vrsqrt.f32 %v5993_v15  ;;  %v5959_v51 = vmul.f32 0.0078125, %v5885_v61  ;;  %v6203_v13 = vmul.f32 %v11348_v47, %v6135_v48  ;;  %v6293_v12 = vadd.f32 %v11356_v46, %v6225_v4 }
 0xa2e   : > { %v8062_v8 = vpop.eup %8061  ;;  %8071 = vrsqrt.f32 %v6030_v54  ;;  %v6008_v11 = vadd.f32 1e-05, %v5944_v33  ;;  %v6218_v52 = vmul.f32 %v11348_v47, %v6150_v60  ;;  %v12288_v60 = vld [vmem:[#allocation110_spill] sm:$0xff] }
 0xa2f   : > { %v8064_v34 = vpop.eup %8063  ;;  %v6105_v18 = vmul.f32 %v8062_v8, %v12281_v16  ;;  %v6023_v50 = vadd.f32 1e-05, %v5959_v51  ;;  %v5841_v21 = vpop.xlane.xlu1 %5840  ;;  %v6271_v26 = vadd.f32 %v11356_v46, %v6203_v13  ;;  %v12286_v51 = vld [vmem:[#allocation109_spill] sm:$0xff]  ;;  %v12287_v16 = vld [vmem:[#allocation108_spill] sm:$0xff]  ;;  %v11609_v31 = vadd.f32 %v11562_v9, %v6293_v12 }
 0xa30   : > { %v5871_v29 = vpop.xlane.xlu0 %5870  ;;  %v6113_v22 = vmul.f32 %v8064_v34, %v12283_v56  ;;  %8073 = vrsqrt.f32 %v6008_v11  ;;  %v5937_v58 = vmul.f32 0.0078125, %v5841_v21  ;;  %v6286_v0 = vadd.f32 %v11356_v46, %v6218_v52 }
 0xa31   : > { %v6173_v32 = vmul.f32 %v11348_v47, %v6105_v18  ;;  %v5952_v40 = vmul.f32 0.0078125, %v5871_v29  ;;  %8075 = vrsqrt.f32 %v6023_v50  ;;  %v6354_v4 = vadd.f32 %v11571_v55, %v6271_v26  ;;  %v12292_v26 = vld [vmem:[#allocation115_spill] sm:$0xff] }
 0xa32   : > { %v8066_v49 = vpop.eup %8065  ;;  %v6181_v35 = vmul.f32 %v11348_v47, %v6113_v22  ;;  %v6001_v38 = vadd.f32 1e-05, %v5937_v58 }
 0xa33   : > { %v8068_v63 = vpop.eup %8067  ;;  %v6241_v44 = vadd.f32 %v11356_v46, %v6173_v32  ;;  %v6128_v36 = vmul.f32 %v8066_v49, %v12284_v41  ;;  %v6016_v19 = vadd.f32 1e-05, %v5952_v40  ;;  %v5901_v2 = vpop.xlane.xlu1 %5900 }
 0xa34   : > { %v5857_v24 = vpop.xlane.xlu0 %5856  ;;  %v6249_v5 = vadd.f32 %v11356_v46, %v6181_v35  ;;  %8077 = vrsqrt.f32 %v6001_v38  ;;  %v5967_v7 = vmul.f32 0.0078125, %v5901_v2  ;;  %v6143_v37 = vmul.f32 %v8068_v63, %v12285_v6 }
 0xa35   : > { %v6304_v42 = vadd.f32 %v6303_v25, %v6241_v44  ;;  %8079 = vrsqrt.f32 %v6016_v19  ;;  %v5945_v27 = vmul.f32 0.0078125, %v5857_v24  ;;  %v6196_v62 = vmul.f32 %v11348_v47, %v6128_v36  ;;  %v12289_v36 = vld [vmem:[#allocation112_spill] sm:$0xff] }
 0xa36   : > { %v6317_v54 = vadd.f32 %v6316_v1, %v6249_v5  ;;  %v6031_v3 = vadd.f32 1e-05, %v5967_v7  ;;  %v6329_v25 = vadd.f32 %v11566_v57, %v6256_v59  ;;  %v6211_v20 = vmul.f32 %v11348_v47, %v6143_v37  ;;  %v12290_v5 = vld [vmem:[#allocation113_spill] sm:$0xff] }
 0xa37   : > { %v8070_v53 = vpop.eup %8069  ;;  %v6305_v15 = vrot.slane %v6304_v42, 4  ;;  %v6009_v61 = vadd.f32 1e-05, %v5945_v27  ;;  %v5887_v33 = vpop.xlane.xlu1 %5886  ;;  %v6264_v57 = vadd.f32 %v11356_v46, %v6196_v62  ;;  %v11613_v59 = vadd.f32 %v11574_v23, %v6286_v0 }
 0xa38   : > { %v8072_v45 = vpop.eup %8071  ;;  %v6318_v43 = vrot.slane %v6317_v54, 4  ;;  %v6121_v8 = vmul.f32 %v8070_v53, %v12286_v51  ;;  %v5873_v39 = vpop.xlane.xlu0 %5872  ;;  %v5960_v1 = vmul.f32 0.0078125, %v5887_v33  ;;  %v6279_v13 = vadd.f32 %v11356_v46, %v6211_v20 }
 0xa39   : > { %v6306_v17 = vadd.f32 %v6305_v15, %v6304_v42  ;;  %8081 = vrsqrt.f32 %v6009_v61  ;;  %v6158_v18 = vmul.f32 %v8072_v45, %v12287_v16  ;;  %v5953_v50 = vmul.f32 0.0078125, %v5873_v39 }
 0xa3a   : > { %v8074_v48 = vpop.eup %8073  ;;  %v6319_v11 = vadd.f32 %v6318_v43, %v6317_v54  ;;  %v6189_v34 = vmul.f32 %v11348_v47, %v6121_v8  ;;  %8083 = vrsqrt.f32 %v6031_v3  ;;  %v6024_v22 = vadd.f32 1e-05, %v5960_v1  ;;  %v12291_v54 = vld [vmem:[#allocation111_spill] sm:$0xff] }
 0xa3b   : > { %v6307_v14 = vrot.slane %v6306_v17, 2  ;;  %v5903_v21 = vpop.xlane.xlu1 %5902  ;;  %v6136_v56 = vmul.f32 %v8074_v48, %v12288_v60  ;;  %v8076_v58 = vpop.eup %8075  ;;  %v6017_v40 = vadd.f32 1e-05, %v5953_v50  ;;  %v6342_v41 = vadd.f32 %v6341_v10, %v6264_v57  ;;  %v12294_v60 = vld [vmem:[#allocation116_spill] sm:$0xff] }
 0xa3c   : > { %v6320_v29 = vrot.slane %v6319_v11, 2  ;;  %v6257_v28 = vadd.f32 %v11356_v46, %v6189_v34  ;;  %8085 = vrsqrt.f32 %v6024_v22  ;;  %v5889_v38 = vpop.xlane.xlu0 %5888  ;;  %v6226_v55 = vmul.f32 %v11348_v47, %v6158_v18 }
 0xa3d   : > { %v6308_v32 = vadd.f32 %v6307_v14, %v6306_v17  ;;  %8087 = vrsqrt.f32 %v6017_v40  ;;  %v6204_v52 = vmul.f32 %v11348_v47, %v6136_v56  ;;  %v5968_v42 = vmul.f32 0.0078125, %v5903_v21 }
 0xa3e   : > { %v8078_v49 = vpop.eup %8077  ;;  %v6330_v35 = vadd.f32 %v6329_v25, %v6257_v28  ;;  %v6321_v44 = vadd.f32 %v6320_v29, %v6319_v11  ;;  %v5961_v6 = vmul.f32 0.0078125, %v5889_v38  ;;  %v6367_v37 = vadd.f32 %v6366_v30, %v6279_v13  ;;  %v12293_v11 = vld [vmem:[#allocation114_spill] sm:$0xff] }
 0xa3f   : > { %v8080_v63 = vpop.eup %8079  ;;  %v6129_v19 = vmul.f32 %v8078_v49, %v12289_v36  ;;  %v5905_v9 = vpop.xlane.xlu1 %5904  ;;  %v6309_v2 = vrot.slane %v6308_v32, 1  ;;  %v6151_v10 = vmul.f32 %v8076_v58, %v12291_v54  ;;  %v6032_v62 = vadd.f32 1e-05, %v5968_v42 }
 0xa40   : > { %v6331_v24 = vrot.slane %v6330_v35, 4  ;;  %v6144_v7 = vmul.f32 %v8080_v63, %v12290_v5  ;;  %v5969_v3 = vmul.f32 0.0078125, %v5905_v9  ;;  %v6322_v12 = vrot.slane %v6321_v44, 1 }
 0xa41   : > { %v6197_v23 = vmul.f32 %v11348_v47, %v6129_v19  ;;  %v6025_v61 = vadd.f32 1e-05, %v5961_v6  ;;  %v6272_v25 = vadd.f32 %v11356_v46, %v6204_v52  ;;  %8089 = vrsqrt.f32 %v6032_v62 }
 0xa42   : > { %v6332_v27 = vadd.f32 %v6331_v24, %v6330_v35  ;;  %v6033_v51 = vadd.f32 1e-05, %v5969_v3  ;;  %v6212_v30 = vmul.f32 %v11348_v47, %v6144_v7  ;;  %v6310_v39 = vadd.f32 %v6309_v2, %v6308_v32  ;;  %v12295_v32 = vld [vmem:[#allocation117_spill] sm:$0xff] }
 0xa43   : > { %v8082_v53 = vpop.eup %8081  ;;  %v6265_v15 = vadd.f32 %v11356_v46, %v6197_v23  ;;  %v6219_v17 = vmul.f32 %v11348_v47, %v6151_v10  ;;  %8091 = vrsqrt.f32 %v6025_v61  ;;  %v6323_v1 = vadd.f32 %v6322_v12, %v6321_v44  ;;  %v12296_v12 = vld [vmem:[#allocation118_spill] sm:$0xff] }
 0xa44   : > { %v8084_v33 = vpop.eup %8083  ;;  %v6333_v45 = vrot.slane %v6332_v27, 2  ;;  %v6137_v43 = vmul.f32 %v8082_v53, %v12292_v26  ;;  %8093 = vrsqrt.f32 %v6033_v51  ;;  %v6355_v57 = vadd.f32 %v6354_v4, %v6272_v25  ;;  %v12297_v25 = vld [vmem:[#allocation119_spill] sm:$0xff] }
 0xa45   : > { %v6343_v8 = vadd.f32 %v6342_v41, %v6265_v15  ;;  %v6159_v34 = vmul.f32 %v8084_v33, %v12293_v11  ;;  %v6403_v50 = vmul.f32 0.015625, %v6310_v39  ;;  %v6280_v28 = vadd.f32 %v11356_v46, %v6212_v30 }
 0xa46   : > { %v6334_v0 = vadd.f32 %v6333_v45, %v6332_v27  ;;  %v6205_v20 = vmul.f32 %v11348_v47, %v6137_v43  ;;  %v8086_v14 = vpop.eup %8085  ;;  %v6404_v22 = vmul.f32 0.015625, %v6323_v1  ;;  %v6294_v35 = vadd.f32 %v11356_v46, %v6226_v55 }
 0xa47   : > { %v6344_v48 = vrot.slane %v6343_v8, 4  ;;  %v8088_v21 = vpop.eup %8087  ;;  %v6152_v56 = vmul.f32 %v8086_v14, %v12294_v60  ;;  %v6411_v13 = vpack.c.bf16 %v6403_v50, %v6403_v50  ;;  %v6227_v38 = vmul.f32 %v11348_v47, %v6159_v34 }
 0xa48   : > { %v6273_v16 = vadd.f32 %v11356_v46, %v6205_v20  ;;  %v6335_v18 = vrot.slane %v6334_v0, 1  ;;  %v6145_v40 = vmul.f32 %v8088_v21, %v12295_v32  ;;  %v6412_v63 = vpack.c.bf16 %v6404_v22, %v6404_v22 }
 0xa49   : > { %v6345_v29 = vadd.f32 %v6344_v48, %v6343_v8  ;;  %v6450_v19 = vunpack.c.l.b16 %v6411_v13  ;;  %v6287_v9 = vadd.f32 %v11356_v46, %v6219_v17  ;;  %v6220_v2 = vmul.f32 %v11348_v47, %v6152_v56  ;;  %v12298_v8 = vld [vmem:[#allocation120_spill] sm:$0xff] }
 0xa4a   : > { %v6356_v58 = vadd.f32 %v6355_v57, %v6273_v16  ;;  %v6336_v49 = vadd.f32 %v6335_v18, %v6334_v0  ;;  %v6213_v41 = vmul.f32 %v11348_v47, %v6145_v40  ;;  %v6451_v52 = vunpack.c.l.b16 %v6412_v63 }
 0xa4b   : > { %v6346_v4 = vrot.slane %v6345_v29, 2  ;;  %v6368_v23 = vadd.f32 %v6367_v37, %v6280_v28  ;;  %v8090_v42 = vpop.eup %8089  ;;  %v6392_v6 = vadd.f32 %v11609_v31, %v6294_v35  ;;  %v6295_v27 = vadd.f32 %v11356_v46, %v6227_v38 }
 0xa4c   : > { %v6357_v44 = vrot.slane %v6356_v58, 4  ;;  %v6405_v36 = vmul.f32 0.015625, %v6336_v49  ;;  %v6281_v7 = vadd.f32 %v11356_v46, %v6213_v41  ;;  %v6459_v10 = vsel %vm6458_vm3, %v6451_v52, %v6450_v19 }
 0xa4d   : > { %v6347_v24 = vadd.f32 %v6346_v4, %v6345_v29  ;;  %v8092_v3 = vpop.eup %8091  ;;  %v6160_v15 = vmul.f32 %v8090_v42, %v12296_v12  ;;  %v6380_v37 = vadd.f32 %v11613_v59, %v6287_v9  ;;  %v6288_v45 = vadd.f32 %v11356_v46, %v6220_v2 }
 0xa4e   : > { %v6358_v5 = vadd.f32 %v6357_v44, %v6356_v58  ;;  %v6413_v55 = vpack.c.bf16 %v6405_v36, %v6405_v36  ;;  %v6369_v53 = vadd.f32 %v6368_v23, %v6281_v7  ;;  %v8094_v33 = vpop.eup %8093  ;;  %v6153_v26 = vmul.f32 %v8092_v3, %v12297_v25 }
 0xa4f   : > { %v6348_v54 = vrot.slane %v6347_v24, 1  ;;  %v6228_v51 = vmul.f32 %v11348_v47, %v6160_v15  ;;  %v6161_v30 = vmul.f32 %v8094_v33, %v12298_v8  ;;  %v6393_v0 = vadd.f32 %v6392_v6, %v6295_v27 }
 0xa50   : > { %v6359_v62 = vrot.slane %v6358_v5, 2  ;;  %v6452_v61 = vunpack.c.l.b16 %v6413_v55  ;;  %v6370_v31 = vrot.slane %v6369_v53, 4  ;;  %v6221_v17 = vmul.f32 %v11348_v47, %v6153_v26 }
 0xa51   : > { %v6349_v43 = vadd.f32 %v6348_v54, %v6347_v24  ;;  %v6296_v11 = vadd.f32 %v11356_v46, %v6228_v51  ;;  %v6229_v59 = vmul.f32 %v11348_v47, %v6161_v30  ;;  %v6381_v14 = vadd.f32 %v6380_v37, %v6288_v45 }
 0xa52   : > { %v6360_v39 = vadd.f32 %v6359_v62, %v6358_v5  ;;  %v6461_v48 = vsel %vm6460_vm4, %v6452_v61, %v6459_v10  ;;  %v6371_v1 = vadd.f32 %v6370_v31, %v6369_v53  ;;  %v6289_v57 = vadd.f32 %v11356_v46, %v6221_v17  ;;  %v6850_v62 = vld [vmem:[%s11724_s10] ss:$0 sm:$0xff] }
 0xa53   : > { %v6406_v20 = vmul.f32 0.015625, %v6349_v43  ;;  %v6297_v18 = vadd.f32 %v11356_v46, %v6229_v59  ;;  %v6394_v29 = vadd.f32 %v6393_v0, %v6296_v11 }
 0xa54   : > { %v6361_v34 = vrot.slane %v6360_v39, 1  ;;  %v6372_v21 = vrot.slane %v6371_v1, 2  ;;  %v6382_v28 = vadd.f32 %v6381_v14, %v6289_v57 }
 0xa55   : > { %v6414_v16 = vpack.c.bf16 %v6406_v20, %v6406_v20  ;;  %v6395_v22 = vadd.f32 %v6394_v29, %v6297_v18 }
 0xa56   : > { %v6362_v50 = vadd.f32 %v6361_v34, %v6360_v39  ;;  %v6373_v56 = vadd.f32 %v6372_v21, %v6371_v1  ;;  %v6383_v32 = vrot.slane %v6382_v28, 4 }
 0xa57   : > { %v6453_v60 = vunpack.c.l.b16 %v6414_v16  ;;  %v6396_v49 = vrot.slane %v6395_v22, 4 }
 0xa58   : > { %v6407_v58 = vmul.f32 0.015625, %v6362_v50  ;;  %v6374_v47 = vrot.slane %v6373_v56, 1  ;;  %v6384_v35 = vadd.f32 %v6383_v32, %v6382_v28 }
 0xa59   : > { %v6463_v40 = vsel %vm6462_vm5, %v6453_v60, %v6461_v48  ;;  %v6397_v38 = vadd.f32 %v6396_v49, %v6395_v22 }
 0xa5a   : > { %v6415_v13 = vpack.c.bf16 %v6407_v58, %v6407_v58  ;;  %v6375_v4 = vadd.f32 %v6374_v47, %v6373_v56  ;;  %v6385_v44 = vrot.slane %v6384_v35, 2 }
 0xa5b   : > { %v6398_v46 = vrot.slane %v6397_v38, 2 }
 0xa5c   : > { %v6454_v63 = vunpack.c.l.b16 %v6415_v13  ;;  %v6408_v41 = vmul.f32 0.015625, %v6375_v4  ;;  %v6386_v19 = vadd.f32 %v6385_v44, %v6384_v35 }
 0xa5d   : > { %v6399_v9 = vadd.f32 %v6398_v46, %v6397_v38 }
 0xa5e   : > { %v6465_v36 = vsel %vm6464_vm6, %v6454_v63, %v6463_v40  ;;  %v6416_v2 = vpack.c.bf16 %v6408_v41, %v6408_v41  ;;  %v6387_v24 = vrot.slane %v6386_v19, 1 }
 0xa5f   : > { %v6400_v52 = vrot.slane %v6399_v9, 1 }
 0xa60   : > { %v6455_v23 = vunpack.c.l.b16 %v6416_v2  ;;  %v6388_v5 = vadd.f32 %v6387_v24, %v6386_v19 }
 0xa61   : > { %v6401_v7 = vadd.f32 %v6400_v52, %v6399_v9 }
 0xa62   : > { %v6467_v55 = vsel %vm6466_vm7, %v6455_v23, %v6465_v36  ;;  %v6409_v42 = vmul.f32 0.015625, %v6388_v5 }
 0xa63   : > { %v6410_v6 = vmul.f32 0.015625, %v6401_v7 }
 0xa64   : > { %v6417_v27 = vpack.c.bf16 %v6409_v42, %v6409_v42 }
 0xa65   : > { %v6418_v54 = vpack.c.bf16 %v6410_v6, %v6410_v6 }
 0xa66   : > { %v6456_v10 = vunpack.c.l.b16 %v6417_v27 }
 0xa67   : > { %v6457_v3 = vunpack.c.l.b16 %v6418_v54 }
 0xa68   : > { %v6469_v53 = vsel %vm6468_vm8, %v6456_v10, %v6467_v55 }
 0xa69   : > { %v6471_v12 = vsel %vm6470_vm9, %v6457_v3, %v6469_v53 }
 0xa6a   : > { %v6472_v15 = vpack.c.b16 %v6471_v12, %v6471_v12 }
 0xa6c   : > { %7237 = vmatmul.mubr.bf16.vlgmr.msra.gmra.mrb[0].mxu0 %v6472_v15 }
 0xb3f   : > { %v6556_v61 = vpop.f32.mrb[0].mxu0 }
 0xb40   : > { %v6557_v33 = vadd.f32 %v6850_v62, %v6556_v61  ;;  %v7238_v37 = vpop.f32.mrb[1].mxu0 }
 0xb41   : > { %v6559_v45 = vpop.f32.mrb[2].mxu0 }
 0xb42   : > { %6562 = vst [vmem:[%s463_s17] sm:$0xff] %v6557_v33  ;;  %v7239_v25 = vpop.f32.mrb[3].mxu0 }
 0xb43 PF: > { %s12299_s19 = sld [smem:[#allocation7_spill]]  ;;  %s6860_s24 = sshll.u32 %s8177_s21, 7 }
 0xb44   : > { %s12301_s22 = sld [smem:[#allocation122_spill]]  ;;  %s6577_s30 = sshll.u32 %s463_s17, 4  ;;  %s6578_s30 = int_to_ptr.vmem [resolvable:$true] %s6577_s30 }
 0xb45   : > { %s8095_s16 = scalar_lea.vmem %s6578_s30, 128  ;;  %s8194_s11 = smov [#allocation3]  }
 0xb46   : > { %p8096_p4 = scmp.ne.s32.totalorder %s6578_s30, %s8095_s16  ;;  %s8099_s26 = sshll.u32 %s8194_s11, 4  ;;  %s8100_s26 = int_to_ptr.vmem [resolvable:$false] %s8099_s26 }
 0xb47   : > { %s8101_s28 = scalar_lea.vmem %s8100_s26, 256  ;;  %p8102_p7 = scmp.lt.s32.totalorder %s6578_s30, %s8100_s26 }
 0xb48   : > { %p8097_p5 = pnand %p8096_p4, %p8304_p3  ;;  %p8103_p8 = scmp.lt.s32.totalorder %s8101_s28, %s8095_s16 }
 0xb49   : > { %s12303_s15 = sand.u32 1, %s12299_s19  }
 0xb4a   : > { %s12302_s14 = smov %s12301_s22  ;;  %s11663_s23 = scalar_lea.hbm %s12301_s22, %s6860_s24 }
 0xb4b   : > { %s6564_s29 = scalar_lea.sflag [#allocation4], %s12303_s15  ;;  %p8098_p6 = pneg %p8097_p5 }
 0xb4c   : > { %p8104_p10 = por %p8103_p8, %p8102_p7 }
 0xb4e   : > { %p8105_p11 = pnand %p8104_p10, %p8098_p6 }
 0xb50   : > { %8108 = shalt.err (!%p8105_p11)
}
 0xb51   : > { %s8109_s21 = scalar_lea.hbm %s11663_s23, 128  ;;  %s8113_s12 = scalar_lea.hbm %s12302_s14, 256 }
 0xb52   : > { %p8110_p12 = scmp.ne.s32.totalorder %s11663_s23, %s8109_s21  ;;  %p8114_p1 = scmp.lt.u32.totalorder %s11663_s23, %s12302_s14 }
 0xb53   : > { %p8115_p2 = scmp.lt.u32.totalorder %s8113_s12, %s8109_s21  ;;  %p8117_p5 = scmp.lt.u32.totalorder %s8109_s21, %s11663_s23 }
 0xb54   : > { %p8111_p13 = pnand %p8110_p12, %p8304_p3 }
 0xb55   : > { %p8116_p4 = por %p8115_p2, %p8114_p1 }
 0xb56   : > { %p8112_p0 = pneg %p8111_p13 }
 0xb57   : > { %p8118_p6 = por %p8117_p5, %p8116_p4 }
 0xb59   : > { %p8119_p7 = pnand %p8118_p6, %p8112_p0 }
 0xb5b   : > { %8122 = shalt.err (!%p8119_p7)
}
 0xb5c   : > { %7246 = dma.vmem_to_hbm [thread:$0]  (%p8304_p3), %s6578_s30, 128, %s11663_s23, %s6564_s29  }
 0xb5d PF: > { %s12304_s19 = sld [smem:[#allocation11_spill]]  ;;  %s12305_s24 = sld [smem:[#allocation6_spill]] }
 0xb63   : > { %p7252_p8 = scmp.ge.s32.totalorder %s12304_s19, 2  ;;  %s6589_s13 = sand.u32 1, %s12305_s24  }
 0xb64   : > { %s6590_s22 = scalar_lea.sflag [#allocation4], %s6589_s13 }
 0xb65   : > { %p7249_p10 = pnand %p7252_p8, %p8314_p9 }
 0xb67   : > { %8156 = dma.done.wait (!%p7249_p10), %s6590_s22, 128  }
 0xb68   : > { %8158 = vsyncadd (!%p7249_p10), %s6590_s22, 4294967168  ;;  %s24_s24 = sadd.s32 1, %s12304_s19   ;;  %s12307_s17 = sld [smem:[#allocation7_spill]] }
 0xb69   : > { %p21_p11 = scmp.ge.s32.totalorder %s24_s24, 6   ;;  %s12308_s18 = sld [smem:[#allocation8_spill]] }
 0xb6a   : > { %s12309_s19 = sld [smem:[#allocation16_spill]]  ;;  %s12310_s20 = sld [smem:[#allocation9_spill]] }
 0xb6b   : > { %s12311_s21 = sld [smem:[#allocation10_spill]]  ;;  %s12312_s22 = sld [smem:[#allocation12_spill]] }
 0xb6c   : > { %s12313_s23 = sld [smem:[#allocation14_spill]]  ;;  %23 = sbr.rel (!%p21_p11) target bundleno = 8 (0x8), region = 126 }
 0xb73   :  { %6595 = vsyncpa [#allocation4], 1 }
 0xb74   :  { %6597 = vsyncpa [#allocation4 + $0x1], 1 }

</bundles_post_ra>
